<compile_context>
chip_gen: v6e
topology: v6e:2x2x1
jax: 0.10.0
libtpu: 0.0.40
codegen_flags: <defaults>
</compile_context>

<pallas_src>
import jax
import jax.numpy as jnp
from jax.experimental import pallas as pl
from jax.experimental.pallas import tpu as pltpu

H = 768        # BERT hidden size (hard-coded by MLP(768, 2))
SEQ = 128      # sequence length implied by .view(2, -1, 127)  -> S - 1 = 127
B = 2          # batch
VOCAB = 1000   # synthetic vocab for the encoder stand-in
NPAD = 128     # lane-padded span class dim (true classes = 2) -> unmasked store
M = B * SEQ    # 256 rows fed through the span MLP (CLS rows dropped in glue)
NCLS = 2       # true class count for both heads
NW = 2 * NCLS  # packed small-weight slab: [:, 0:2] = span W2, [:, 2:4] = NSP Wc


# ----------------------------------------------------------------------------
# Fused kernel: span MLP over all B*S rows + NSP pooler/classifier + CE loss.
# Grid axis = K contraction of the two first-layer matmuls (1 or 2 steps).
# ----------------------------------------------------------------------------
def fused_kernel(x_ref, w1_ref, wp_ref, wsm_ref, b1_ref, bp_ref, bsm_ref,
                 lbl_ref, span_ref, loss_ref, acc_h, acc_p):
    k = pl.program_id(0)
    nk = pl.num_programs(0)

    @pl.when(k == 0)
    def _init():
        acc_h[...] = jnp.zeros_like(acc_h)
        acc_p[...] = jnp.zeros_like(acc_p)

    # ---- K-partial of both first-layer matmuls (bf16 MXU, f32 accumulate) ----
    x = x_ref[...]                                               # (M, Kblk) bf16
    acc_h[...] += jnp.dot(x, w1_ref[...], preferred_element_type=jnp.float32)
    # CLS rows (0 and SEQ) are already resident in the x block: no extra input.
    cls = jnp.concatenate(
        [x[0:1, :].astype(jnp.float32), x[SEQ:SEQ + 1, :].astype(jnp.float32)],
        axis=0).astype(jnp.bfloat16)                             # (B, Kblk)
    acc_p[...] += jnp.dot(cls, wp_ref[...], preferred_element_type=jnp.float32)

    @pl.when(k == nk - 1)
    def _epilogue():
        wsm = wsm_ref[...]                                       # (H, 4) bf16
        bsm = bsm_ref[...]                                       # (1, 4) f32

        # ---- span head: bias + ReLU, N=2 matmul, pad to lane-dense 128 ------
        h = jnp.maximum(acc_h[...] + b1_ref[...], 0.0)           # (M, H) f32
        s_all = jnp.dot(h.astype(jnp.bfloat16), wsm,
                        preferred_element_type=jnp.float32)      # (M, 4)
        s2 = s_all[:, 0:NCLS] + bsm[:, 0:NCLS]                   # (M, 2)
        col = jax.lax.broadcasted_iota(jnp.int32, (M, NPAD), 1)
        span_full = jnp.where(col == 0, s2[:, 0:1],
                              jnp.where(col == 1, s2[:, 1:2], 0.0))
        span_ref[...] = span_full.astype(span_ref.dtype)

        # ---- NSP pooler (tanh) + classifier + cross-entropy (true 2-class) --
        pooled = jnp.tanh(acc_p[...] + bp_ref[...])              # (B, H) f32
        p_all = jnp.dot(pooled.astype(jnp.bfloat16), wsm,
                        preferred_element_type=jnp.float32)      # (B, 4)
        logits = p_all[:, NCLS:NW] + bsm[:, NCLS:NW]             # (B, 2)
        m = jnp.max(logits, axis=-1, keepdims=True)
        lse = m + jnp.log(jnp.sum(jnp.exp(logits - m), axis=-1, keepdims=True))
        cc = jax.lax.broadcasted_iota(jnp.int32, (B, NCLS), 1)
        picked = jnp.sum(jnp.where(cc == lbl_ref[...], logits, 0.0),
                         axis=-1, keepdims=True)
        nll = lse - picked                                       # (B, 1)
        loss_ref[...] = jnp.sum(nll, axis=(0, 1), keepdims=True) / B


def _k_grid_steps():
    # Stream K only on v5e (DMA ~3.4us vs ~1.8us compute); v6e/v7x single-shot.
    try:
        kind = jax.devices()[0].device_kind.lower()
    except Exception:
        return 1
    return 2 if "v5" in kind else 1


def span_and_nsp(x, w1, wp, wsm, b1, bp, bsm, labels2d):
    nk = _k_grid_steps()
    kb = H // nk
    flops = (2 * M * H * H + 2 * B * H * H          # first-layer matmuls
             + 2 * (M + B) * H * NW)                # packed small matmuls
    bytes_accessed = (2 * (M * H + 2 * H * H + H * NW)   # bf16 inputs
                      + 4 * (2 * H + NW) + 4 * B         # f32 biases + labels
                      + 2 * M * NPAD + 4)                # bf16 span out + loss
    return pl.pallas_call(
        fused_kernel,
        out_shape=(jax.ShapeDtypeStruct((M, NPAD), jnp.bfloat16),
                   jax.ShapeDtypeStruct((1, 1), jnp.float32)),
        grid_spec=pltpu.PrefetchScalarGridSpec(
            num_scalar_prefetch=0,
            grid=(nk,),
            in_specs=[
                pl.BlockSpec((M, kb), lambda k: (0, k)),     # x  (K-blocked)
                pl.BlockSpec((kb, H), lambda k: (k, 0)),     # w1 (K-blocked)
                pl.BlockSpec((kb, H), lambda k: (k, 0)),     # wp (K-blocked)
                pl.BlockSpec((H, NW), lambda k: (0, 0)),     # packed w2|wc
                pl.BlockSpec((1, H), lambda k: (0, 0)),      # b1
                pl.BlockSpec((1, H), lambda k: (0, 0)),      # bp
                pl.BlockSpec((1, NW), lambda k: (0, 0)),     # packed b2|bc
                pl.BlockSpec((B, 1), lambda k: (0, 0)),      # labels
            ],
            out_specs=(pl.BlockSpec((M, NPAD), lambda k: (0, 0)),
                       pl.BlockSpec((1, 1), lambda k: (0, 0))),
            scratch_shapes=[pltpu.VMEM((M, H), jnp.float32),
                            pltpu.VMEM((B, H), jnp.float32)]),
        compiler_params=pltpu.CompilerParams(
            dimension_semantics=("arbitrary",)),
        cost_estimate=pl.CostEstimate(flops=flops,
                                      transcendentals=B * (H + NCLS),
                                      bytes_accessed=bytes_accessed),
    )(x, w1, wp, wsm, b1, bp, bsm, labels2d)


# ----------------------------------------------------------------------------
# Glue: deterministic stand-in for the pretrained BERT encoder.
# ----------------------------------------------------------------------------
def bert_standin_hidden(params, input_ids, attention_mask, token_type_ids):
    # TODO(synk): pretrained BERT encoder weights unavailable; stand in with
    # deterministic (word + position + token-type) embeddings + LayerNorm.
    emb = (params["word_emb"][input_ids]
           + params["type_emb"][token_type_ids]
           + params["pos_emb"][None, :, :])
    emb = emb * attention_mask[..., None].astype(emb.dtype)
    mu = jnp.mean(emb, axis=-1, keepdims=True)
    var = jnp.var(emb, axis=-1, keepdims=True)
    h = (emb - mu) * jax.lax.rsqrt(var + 1e-12)
    h = h * params["ln_g"] + params["ln_b"]
    # bf16 straight out of the LayerNorm fusion: no extra f32->bf16 copy kernel.
    return h.astype(jnp.bfloat16)


def span_extraction_forward(params, input_ids, attention_mask, token_type_ids,
                            labels):
    hidden = bert_standin_hidden(params, input_ids, attention_mask,
                                 token_type_ids)                  # [B, S, H] bf16
    x = hidden.reshape(M, H)                                      # full slab, no copy
    labels2d = labels.reshape(B, 1).astype(jnp.int32)

    span_pad, loss = span_and_nsp(
        x, params["w1"], params["wp"], params["wsm"],
        params["b1"], params["bp"], params["bsm"], labels2d)

    # Drop CLS rows and pad lanes, then reproduce torch's row-major
    # .view(2, -1, 127) over the contiguous (B, 127, 2) span logits.
    logits = span_pad[:, :NCLS].reshape(B, SEQ, NCLS)[:, 1:, :]   # (B, 127, 2)
    logits_span = logits.reshape(2, -1, 127)                      # (2, 2, 127)
    return loss[0, 0], logits_span


def init_params(key):
    ks = jax.random.split(key, 7)
    s = 0.02
    w2 = s * jax.random.normal(ks[4], (H, NCLS), jnp.float32)   # span Linear(768,2)
    wc = s * jax.random.normal(ks[5], (H, NCLS), jnp.float32)   # NSP classifier
    return {
        # stand-in embeddings / LayerNorm (f32, XLA side)
        "word_emb": s * jax.random.normal(ks[0], (VOCAB, H), jnp.float32),
        "pos_emb": s * jax.random.normal(ks[1], (SEQ, H), jnp.float32),
        "type_emb": s * jax.random.normal(ks[2], (2, H), jnp.float32),
        "ln_g": jnp.ones((H,), jnp.float32),
        "ln_b": jnp.zeros((H,), jnp.float32),
        # span MLP Linear(768,768)+ReLU and NSP pooler Linear(768,768); bf16
        "w1": (s * jax.random.normal(ks[3], (H, H), jnp.float32)).astype(jnp.bfloat16),
        "wp": (s * jax.random.normal(ks[6], (H, H), jnp.float32)).astype(jnp.bfloat16),
        "b1": jnp.zeros((1, H), jnp.float32),
        "bp": jnp.zeros((1, H), jnp.float32),
        # packed small-weight slab: cols 0:2 = span W2, cols 2:4 = NSP Wc (bf16)
        "wsm": jnp.concatenate([w2, wc], axis=1).astype(jnp.bfloat16),
        "bsm": jnp.zeros((1, NW), jnp.float32),
    }


if __name__ == "__main__":
    key = jax.random.PRNGKey(0)
    kp, ki, kl = jax.random.split(key, 3)
    params = init_params(kp)

    input_ids = jax.random.randint(ki, (B, SEQ), 0, VOCAB, dtype=jnp.int32)
    attention_mask = jnp.ones((B, SEQ), dtype=jnp.int32)
    token_type_ids = jnp.concatenate(
        [jnp.zeros((B, SEQ // 2), jnp.int32), jnp.ones((B, SEQ // 2), jnp.int32)],
        axis=1)
    labels = jax.random.randint(kl, (B,), 0, 2, dtype=jnp.int32)

    fwd = jax.jit(span_extraction_forward)
    loss, logits_span = fwd(params, input_ids, attention_mask,
                            token_type_ids, labels)
    jax.block_until_ready((loss, logits_span))

    assert logits_span.shape == (2, B, 127), logits_span.shape
    assert loss.shape == (), loss.shape
    print("KERNEL_OK")
</pallas_src>

<mosaic_0001>
module attributes {stable_mosaic.version = 11 : i64} {
  func.func @fused_kernel(%arg0: i32, %arg1: memref<256x768xbf16, #tpu.memory_space<vmem>>, %arg2: memref<768x768xbf16, #tpu.memory_space<vmem>>, %arg3: memref<768x768xbf16, #tpu.memory_space<vmem>>, %arg4: memref<768x4xbf16, #tpu.memory_space<vmem>>, %arg5: memref<1x768xf32, #tpu.memory_space<vmem>>, %arg6: memref<1x768xf32, #tpu.memory_space<vmem>>, %arg7: memref<1x4xf32, #tpu.memory_space<vmem>>, %arg8: memref<2x1xi32, #tpu.memory_space<vmem>>, %arg9: memref<256x128xbf16, #tpu.memory_space<vmem>>, %arg10: memref<1x1xf32, #tpu.memory_space<vmem>>, %arg11: memref<256x768xf32, #tpu.memory_space<vmem>>, %arg12: memref<2x768xf32, #tpu.memory_space<vmem>>) attributes {dimension_semantics = [#tpu.dimension_semantics<arbitrary>], iteration_bounds = array<i64: 1>, scalar_prefetch = 0 : i64, scratch_operands = 2 : i64, tpu.core_type = #tpu.core_type<tc>, window_params = [{transform_indices = @transform_0, window_bounds = array<i64: 256, 768>}, {transform_indices = @transform_1, window_bounds = array<i64: 768, 768>}, {transform_indices = @transform_2, window_bounds = array<i64: 768, 768>}, {pipeline_mode = #tpu.pipeline_mode<synchronous>, transform_indices = @transform_3, window_bounds = array<i64: 768, 4>}, {pipeline_mode = #tpu.pipeline_mode<synchronous>, transform_indices = @transform_4, window_bounds = array<i64: 1, 768>}, {pipeline_mode = #tpu.pipeline_mode<synchronous>, transform_indices = @transform_5, window_bounds = array<i64: 1, 768>}, {pipeline_mode = #tpu.pipeline_mode<synchronous>, transform_indices = @transform_6, window_bounds = array<i64: 1, 4>}, {pipeline_mode = #tpu.pipeline_mode<synchronous>, transform_indices = @transform_7, window_bounds = array<i64: 2, 1>}, {pipeline_mode = #tpu.pipeline_mode<synchronous>, transform_indices = @transform_8, window_bounds = array<i64: 256, 128>}, {pipeline_mode = #tpu.pipeline_mode<synchronous>, transform_indices = @transform_9, window_bounds = array<i64: 1, 1>}]} {
    %c0_i32 = arith.constant 0 : i32
    %0 = arith.cmpi eq, %arg0, %c0_i32 : i32
    %1 = arith.extui %0 : i1 to i32
    %c0_i32_0 = arith.constant 0 : i32
    %2 = arith.cmpi ne, %1, %c0_i32_0 : i32
    scf.if %2 {
      %cst_17 = arith.constant 0.000000e+00 : f32
      %23 = vector.broadcast %cst_17 : f32 to vector<256x768xf32>
      %c0_18 = arith.constant 0 : index
      %c0_19 = arith.constant 0 : index
      %24 = vector.load %arg11[%c0_18, %c0_19] : memref<256x768xf32, #tpu.memory_space<vmem>>, vector<256x768xf32>
      tpu.vector_store %arg11[%c0_18, %c0_19], %23 {strides = array<i32>} : memref<256x768xf32, #tpu.memory_space<vmem>>, vector<256x768xf32>,
      %cst_20 = arith.constant 0.000000e+00 : f32
      %25 = vector.broadcast %cst_20 : f32 to vector<2x768xf32>
      %c0_21 = arith.constant 0 : index
      %c0_22 = arith.constant 0 : index
      %26 = vector.load %arg12[%c0_21, %c0_22] : memref<2x768xf32, #tpu.memory_space<vmem>>, vector<2x768xf32>
      tpu.vector_store %arg12[%c0_21, %c0_22], %25 {strides = array<i32>} : memref<2x768xf32, #tpu.memory_space<vmem>>, vector<2x768xf32>,
    } else {
    }
    %c0 = arith.constant 0 : index
    %c0_1 = arith.constant 0 : index
    %3 = vector.load %arg1[%c0, %c0_1] : memref<256x768xbf16, #tpu.memory_space<vmem>>, vector<256x768xbf16>
    %c0_2 = arith.constant 0 : index
    %c0_3 = arith.constant 0 : index
    %4 = vector.load %arg11[%c0_2, %c0_3] : memref<256x768xf32, #tpu.memory_space<vmem>>, vector<256x768xf32>
    %c0_4 = arith.constant 0 : index
    %c0_5 = arith.constant 0 : index
    %5 = vector.load %arg2[%c0_4, %c0_5] : memref<768x768xbf16, #tpu.memory_space<vmem>>, vector<768x768xbf16>
    %cst = arith.constant dense<0.000000e+00> : vector<256x768xf32>
    %6 = tpu.matmul %3, %5, %cst {dimension_numbers = #tpu.dot_dimension_numbers<[1], [0], [0], [1], [0, 0, 1, 1], [], []>} : vector<256x768xbf16>, vector<768x768xbf16>, vector<256x768xf32> -> vector<256x768xf32>
    %7 = arith.addf %4, %6 : vector<256x768xf32>
    %c0_6 = arith.constant 0 : index
    %c0_7 = arith.constant 0 : index
    %8 = vector.load %arg11[%c0_6, %c0_7] : memref<256x768xf32, #tpu.memory_space<vmem>>, vector<256x768xf32>
    tpu.vector_store %arg11[%c0_6, %c0_7], %7 {strides = array<i32>} : memref<256x768xf32, #tpu.memory_space<vmem>>, vector<256x768xf32>,
    %9 = vector.extract_strided_slice %3 {offsets = [0, 0], sizes = [1, 768], strides = [1, 1]} : vector<256x768xbf16> to vector<1x768xbf16>
    %10 = arith.extf %9 : vector<1x768xbf16> to vector<1x768xf32>
    %11 = vector.extract_strided_slice %3 {offsets = [128, 0], sizes = [1, 768], strides = [1, 1]} : vector<256x768xbf16> to vector<1x768xbf16>
    %12 = arith.extf %11 : vector<1x768xbf16> to vector<1x768xf32>
    %13 = tpu.concatenate %10, %12 in 0 : vector<1x768xf32>, vector<1x768xf32> -> vector<2x768xf32>
    %14 = arith.truncf %13 : vector<2x768xf32> to vector<2x768xbf16>
    %c0_8 = arith.constant 0 : index
    %c0_9 = arith.constant 0 : index
    %15 = vector.load %arg12[%c0_8, %c0_9] : memref<2x768xf32, #tpu.memory_space<vmem>>, vector<2x768xf32>
    %c0_10 = arith.constant 0 : index
    %c0_11 = arith.constant 0 : index
    %16 = vector.load %arg3[%c0_10, %c0_11] : memref<768x768xbf16, #tpu.memory_space<vmem>>, vector<768x768xbf16>
    %cst_12 = arith.constant dense<0.000000e+00> : vector<2x768xf32>
    %17 = tpu.matmul %14, %16, %cst_12 {dimension_numbers = #tpu.dot_dimension_numbers<[1], [0], [0], [1], [0, 0, 1, 1], [], []>} : vector<2x768xbf16>, vector<768x768xbf16>, vector<2x768xf32> -> vector<2x768xf32>
    %18 = arith.addf %15, %17 : vector<2x768xf32>
    %c0_13 = arith.constant 0 : index
    %c0_14 = arith.constant 0 : index
    %19 = vector.load %arg12[%c0_13, %c0_14] : memref<2x768xf32, #tpu.memory_space<vmem>>, vector<2x768xf32>
    tpu.vector_store %arg12[%c0_13, %c0_14], %18 {strides = array<i32>} : memref<2x768xf32, #tpu.memory_space<vmem>>, vector<2x768xf32>,
    %c0_i32_15 = arith.constant 0 : i32
    %20 = arith.cmpi eq, %arg0, %c0_i32_15 : i32
    %21 = arith.extui %20 : i1 to i32
    %c0_i32_16 = arith.constant 0 : i32
    %22 = arith.cmpi ne, %21, %c0_i32_16 : i32
    scf.if %22 {
      %c0_17 = arith.constant 0 : index
      %c0_18 = arith.constant 0 : index
      %23 = vector.load %arg4[%c0_17, %c0_18] : memref<768x4xbf16, #tpu.memory_space<vmem>>, vector<768x4xbf16>
      %c0_19 = arith.constant 0 : index
      %c0_20 = arith.constant 0 : index
      %24 = vector.load %arg7[%c0_19, %c0_20] : memref<1x4xf32, #tpu.memory_space<vmem>>, vector<1x4xf32>
      %c0_21 = arith.constant 0 : index
      %c0_22 = arith.constant 0 : index
      %25 = vector.load %arg11[%c0_21, %c0_22] : memref<256x768xf32, #tpu.memory_space<vmem>>, vector<256x768xf32>
      %c0_23 = arith.constant 0 : index
      %c0_24 = arith.constant 0 : index
      %26 = vector.load %arg5[%c0_23, %c0_24] : memref<1x768xf32, #tpu.memory_space<vmem>>, vector<1x768xf32>
      %27 = vector.broadcast %26 : vector<1x768xf32> to vector<256x768xf32>
      %28 = arith.addf %25, %27 : vector<256x768xf32>
      %cst_25 = arith.constant 0.000000e+00 : f32
      %29 = vector.broadcast %cst_25 : f32 to vector<256x768xf32>
      %30 = arith.maximumf %28, %29 : vector<256x768xf32>
      %31 = arith.truncf %30 : vector<256x768xf32> to vector<256x768xbf16>
      %cst_26 = arith.constant dense<0.000000e+00> : vector<256x4xf32>
      %32 = tpu.matmul %31, %23, %cst_26 {dimension_numbers = #tpu.dot_dimension_numbers<[1], [0], [0], [1], [0, 0, 1, 1], [], []>} : vector<256x768xbf16>, vector<768x4xbf16>, vector<256x4xf32> -> vector<256x4xf32>
      %33 = vector.extract_strided_slice %32 {offsets = [0, 0], sizes = [256, 2], strides = [1, 1]} : vector<256x4xf32> to vector<256x2xf32>
      %34 = vector.extract_strided_slice %24 {offsets = [0, 0], sizes = [1, 2], strides = [1, 1]} : vector<1x4xf32> to vector<1x2xf32>
      %35 = vector.broadcast %34 : vector<1x2xf32> to vector<256x2xf32>
      %36 = arith.addf %33, %35 : vector<256x2xf32>
      %37 = tpu.iota {dimensions = array<i32: 1>} : vector<256x128xi32>
      %c0_i32_27 = arith.constant 0 : i32
      %38 = vector.broadcast %c0_i32_27 : i32 to vector<256x128xi32>
      %39 = arith.cmpi eq, %37, %38 : vector<256x128xi32>
      %40 = vector.extract_strided_slice %36 {offsets = [0, 0], sizes = [256, 1], strides = [1, 1]} : vector<256x2xf32> to vector<256x1xf32>
      %c1_i32 = arith.constant 1 : i32
      %41 = vector.broadcast %c1_i32 : i32 to vector<256x128xi32>
      %42 = arith.cmpi eq, %37, %41 : vector<256x128xi32>
      %43 = vector.extract_strided_slice %36 {offsets = [0, 1], sizes = [256, 1], strides = [1, 1]} : vector<256x2xf32> to vector<256x1xf32>
      %cst_28 = arith.constant 0.000000e+00 : f32
      %44 = vector.shape_cast %43 : vector<256x1xf32> to vector<256x1xf32>
      %45 = vector.broadcast %44 : vector<256x1xf32> to vector<256x128xf32>
      %46 = vector.broadcast %cst_28 : f32 to vector<256x128xf32>
      %47 = arith.select %42, %45, %46 : vector<256x128xi1>, vector<256x128xf32>
      %48 = vector.shape_cast %40 : vector<256x1xf32> to vector<256x1xf32>
      %49 = vector.broadcast %48 : vector<256x1xf32> to vector<256x128xf32>
      %50 = arith.select %39, %49, %47 : vector<256x128xi1>, vector<256x128xf32>
      %51 = arith.truncf %50 : vector<256x128xf32> to vector<256x128xbf16>
      %c0_29 = arith.constant 0 : index
      %c0_30 = arith.constant 0 : index
      %52 = vector.load %arg9[%c0_29, %c0_30] : memref<256x128xbf16, #tpu.memory_space<vmem>>, vector<256x128xbf16>
      tpu.vector_store %arg9[%c0_29, %c0_30], %51 {strides = array<i32>} : memref<256x128xbf16, #tpu.memory_space<vmem>>, vector<256x128xbf16>,
      %c0_31 = arith.constant 0 : index
      %c0_32 = arith.constant 0 : index
      %53 = vector.load %arg12[%c0_31, %c0_32] : memref<2x768xf32, #tpu.memory_space<vmem>>, vector<2x768xf32>
      %c0_33 = arith.constant 0 : index
      %c0_34 = arith.constant 0 : index
      %54 = vector.load %arg6[%c0_33, %c0_34] : memref<1x768xf32, #tpu.memory_space<vmem>>, vector<1x768xf32>
      %55 = vector.broadcast %54 : vector<1x768xf32> to vector<2x768xf32>
      %56 = arith.addf %53, %55 : vector<2x768xf32>
      %57 = math.tanh %56 : vector<2x768xf32>
      %58 = arith.truncf %57 : vector<2x768xf32> to vector<2x768xbf16>
      %cst_35 = arith.constant dense<0.000000e+00> : vector<2x4xf32>
      %59 = tpu.matmul %58, %23, %cst_35 {dimension_numbers = #tpu.dot_dimension_numbers<[1], [0], [0], [1], [0, 0, 1, 1], [], []>} : vector<2x768xbf16>, vector<768x4xbf16>, vector<2x4xf32> -> vector<2x4xf32>
      %60 = vector.extract_strided_slice %59 {offsets = [0, 2], sizes = [2, 2], strides = [1, 1]} : vector<2x4xf32> to vector<2x2xf32>
      %61 = vector.extract_strided_slice %24 {offsets = [0, 2], sizes = [1, 2], strides = [1, 1]} : vector<1x4xf32> to vector<1x2xf32>
      %62 = vector.broadcast %61 : vector<1x2xf32> to vector<2x2xf32>
      %63 = arith.addf %60, %62 : vector<2x2xf32>
      %cst_36 = arith.constant dense<0xFF800000> : vector<2xf32>
      %64 = vector.multi_reduction <maximumf>, %63, %cst_36 [1] : vector<2x2xf32> to vector<2xf32>
      %65 = vector.shape_cast %64 : vector<2xf32> to vector<2x1xf32>
      %66 = vector.broadcast %65 : vector<2x1xf32> to vector<2x2xf32>
      %67 = arith.subf %63, %66 : vector<2x2xf32>
      %68 = math.exp %67 : vector<2x2xf32>
      %cst_37 = arith.constant dense<0.000000e+00> : vector<2xf32>
      %69 = vector.multi_reduction <add>, %68, %cst_37 [1] : vector<2x2xf32> to vector<2xf32>
      %70 = vector.shape_cast %69 : vector<2xf32> to vector<2x1xf32>
      %71 = math.log %70 : vector<2x1xf32>
      %72 = arith.addf %65, %71 : vector<2x1xf32>
      %73 = tpu.iota {dimensions = array<i32: 1>} : vector<2x2xi32>
      %c0_38 = arith.constant 0 : index
      %c0_39 = arith.constant 0 : index
      %74 = vector.load %arg8[%c0_38, %c0_39] : memref<2x1xi32, #tpu.memory_space<vmem>>, vector<2x1xi32>
      %75 = vector.broadcast %74 : vector<2x1xi32> to vector<2x2xi32>
      %76 = arith.cmpi eq, %73, %75 : vector<2x2xi32>
      %cst_40 = arith.constant 0.000000e+00 : f32
      %77 = vector.broadcast %cst_40 : f32 to vector<2x2xf32>
      %78 = arith.select %76, %63, %77 : vector<2x2xi1>, vector<2x2xf32>
      %cst_41 = arith.constant dense<0.000000e+00> : vector<2xf32>
      %79 = vector.multi_reduction <add>, %78, %cst_41 [1] : vector<2x2xf32> to vector<2xf32>
      %80 = vector.shape_cast %79 : vector<2xf32> to vector<2x1xf32>
      %81 = arith.subf %72, %80 : vector<2x1xf32>
      %82 = vector.shape_cast %81 : vector<2x1xf32> to vector<1x2x1xf32>
      %cst_42 = arith.constant dense<0.000000e+00> : vector<1xf32>
      %83 = vector.multi_reduction <add>, %82, %cst_42 [1, 2] : vector<1x2x1xf32> to vector<1xf32>
      %84 = vector.shape_cast %83 : vector<1xf32> to vector<1x1x1xf32>
      %85 = vector.extract %84[0, 0, 0] : f32 from vector<1x1x1xf32>
      %86 = vector.broadcast %85 : f32 to vector<1x1xf32>
      %cst_43 = arith.constant 2.000000e+00 : f32
      %87 = vector.broadcast %cst_43 : f32 to vector<1x1xf32>
      %88 = arith.divf %86, %87 : vector<1x1xf32>
      %c0_44 = arith.constant 0 : index
      %c0_45 = arith.constant 0 : index
      %89 = vector.load %arg10[%c0_44, %c0_45] : memref<1x1xf32, #tpu.memory_space<vmem>>, vector<1x1xf32>
      tpu.vector_store %arg10[%c0_44, %c0_45], %88 {strides = array<i32>} : memref<1x1xf32, #tpu.memory_space<vmem>>, vector<1x1xf32>,
    } else {
    }
    return
  }
  func.func @transform_0(%arg0: i32) -> (i32, i32) {
    %c0_i32 = arith.constant 0 : i32
    %c0_i32_0 = arith.constant 0 : i32
    return %c0_i32, %arg0 : i32, i32
  }
  func.func @transform_1(%arg0: i32) -> (i32, i32) {
    %c0_i32 = arith.constant 0 : i32
    %c0_i32_0 = arith.constant 0 : i32
    return %arg0, %c0_i32 : i32, i32
  }
  func.func @transform_2(%arg0: i32) -> (i32, i32) {
    %c0_i32 = arith.constant 0 : i32
    %c0_i32_0 = arith.constant 0 : i32
    return %arg0, %c0_i32 : i32, i32
  }
  func.func @transform_3(%arg0: i32) -> (i32, i32) {
    %c0_i32 = arith.constant 0 : i32
    %c0_i32_0 = arith.constant 0 : i32
    %c0_i32_1 = arith.constant 0 : i32
    return %c0_i32, %c0_i32_0 : i32, i32
  }
  func.func @transform_4(%arg0: i32) -> (i32, i32) {
    %c0_i32 = arith.constant 0 : i32
    %c0_i32_0 = arith.constant 0 : i32
    %c0_i32_1 = arith.constant 0 : i32
    return %c0_i32, %c0_i32_0 : i32, i32
  }
  func.func @transform_5(%arg0: i32) -> (i32, i32) {
    %c0_i32 = arith.constant 0 : i32
    %c0_i32_0 = arith.constant 0 : i32
    %c0_i32_1 = arith.constant 0 : i32
    return %c0_i32, %c0_i32_0 : i32, i32
  }
  func.func @transform_6(%arg0: i32) -> (i32, i32) {
    %c0_i32 = arith.constant 0 : i32
    %c0_i32_0 = arith.constant 0 : i32
    %c0_i32_1 = arith.constant 0 : i32
    return %c0_i32, %c0_i32_0 : i32, i32
  }
  func.func @transform_7(%arg0: i32) -> (i32, i32) {
    %c0_i32 = arith.constant 0 : i32
    %c0_i32_0 = arith.constant 0 : i32
    %c0_i32_1 = arith.constant 0 : i32
    return %c0_i32, %c0_i32_0 : i32, i32
  }
  func.func @transform_8(%arg0: i32) -> (i32, i32) {
    %c0_i32 = arith.constant 0 : i32
    %c0_i32_0 = arith.constant 0 : i32
    %c0_i32_1 = arith.constant 0 : i32
    return %c0_i32, %c0_i32_0 : i32, i32
  }
  func.func @transform_9(%arg0: i32) -> (i32, i32) {
    %c0_i32 = arith.constant 0 : i32
    %c0_i32_0 = arith.constant 0 : i32
    %c0_i32_1 = arith.constant 0 : i32
    return %c0_i32, %c0_i32_0 : i32, i32
  }
}

</mosaic_0001>

<bundles_post_ra>
// kernel: span_extraction_forward.1
= control target key start
LH: loop header
LB: loop body
LE: loop exit
PB: predicated region body
PF: predicated region fallthrough
CT: control target
= control target key end

     0   :  { %s16962_s0 = inlined_call_operand.vmem [shape: bf16[256,768], index: 0, kind: input, shape index: {}]   ;;  %s16963_s1 = inlined_call_operand.vmem [shape: bf16[768,768], index: 1, kind: input, shape index: {}]   ;;  %s16964_s2 = inlined_call_operand.vmem [shape: bf16[768,768], index: 2, kind: input, shape index: {}]   ;;  %s16965_s3 = inlined_call_operand.vmem [shape: bf16[768,4], index: 3, kind: input, shape index: {}]   ;;  %s16966_s4 = inlined_call_operand.vmem [shape: f32[1,768], index: 4, kind: input, shape index: {}]   ;;  %s16967_s5 = inlined_call_operand.vmem [shape: f32[1,768], index: 5, kind: input, shape index: {}]   ;;  %s16968_s6 = inlined_call_operand.vmem [shape: f32[1,4], index: 6, kind: input, shape index: {}]   ;;  %s16969_s7 = inlined_call_operand.vmem [shape: s32[2,1], index: 7, kind: input, shape index: {}]   ;;  %s16970_s8 = inlined_call_operand.vmem [shape: bf16[256,128], index: 8, kind: output, shape index: {0}]   ;;  %s16971_s9 = inlined_call_operand.hbm [shape: f32[1,1], index: 9, kind: output, shape index: {1}]  }
   0x1   :  { %v10896_v0 = vld [vmem:[%s16963_s1 + $0x154] ss:$24 sps:$4 sm:$0xff]   ;;  %v10900_v2 = vld [vmem:[%s16963_s1 + $0x150] ss:$24 sps:$4 sm:$0xff]   ;;  %v10902_v4 = vld [vmem:[%s16963_s1 + $0x124] ss:$24 sps:$4 sm:$0xff]  }
   0x2   :  { %v10898_v1 = vld [vmem:[%s16963_s1 + $0x454] ss:$24 sps:$4 sm:$0xff]   ;;  %2727 = vmatprep.subr.bf16.mxu0 %v10896_v0  ;;  %v10901_v3 = vld [vmem:[%s16963_s1 + $0x450] ss:$24 sps:$4 sm:$0xff]   ;;  %v10904_v5 = vld [vmem:[%s16963_s1 + $0x424] ss:$24 sps:$4 sm:$0xff]  }
   0x3   :  { %2920 = vmatprep.subr.bf16.mxu1 %v10898_v1  ;;  %2728 = vmatpush1.bf16.msra.mxu0 %v10900_v2  ;;  %v10906_v6 = vld [vmem:[%s16963_s1 + $0x120] ss:$24 sps:$4 sm:$0xff]   ;;  %v10908_v8 = vld [vmem:[%s16963_s1 + $0xf4] ss:$24 sps:$4 sm:$0xff]   ;;  %v10912_v10 = vld [vmem:[%s16963_s1 + $0xf0] ss:$24 sps:$4 sm:$0xff]  }
   0x4   :  { %2921 = vmatpush1.bf16.msra.mxu1 %v10901_v3  ;;  %2729 = vmatprep.subr.bf16.mxu0 %v10902_v4  ;;  %v10907_v7 = vld [vmem:[%s16963_s1 + $0x420] ss:$24 sps:$4 sm:$0xff]   ;;  %v10910_v9 = vld [vmem:[%s16963_s1 + $0x3f4] ss:$24 sps:$4 sm:$0xff]   ;;  %v10913_v11 = vld [vmem:[%s16963_s1 + $0x3f0] ss:$24 sps:$4 sm:$0xff]  }
   0x5   :  { %2922 = vmatprep.subr.bf16.mxu1 %v10904_v5  ;;  %v10914_v12 = vld [vmem:[%s16963_s1 + $0xc4] ss:$24 sps:$4 sm:$0xff]   ;;  %v10918_v14 = vld [vmem:[%s16963_s1 + $0xc0] ss:$24 sps:$4 sm:$0xff]   ;;  %v10920_v16 = vld [vmem:[%s16963_s1 + $0x94] ss:$24 sps:$4 sm:$0xff]  }
   0x6   :  { %v10916_v13 = vld [vmem:[%s16963_s1 + $0x3c4] ss:$24 sps:$4 sm:$0xff]   ;;  %v10919_v15 = vld [vmem:[%s16963_s1 + $0x3c0] ss:$24 sps:$4 sm:$0xff]   ;;  %v10922_v17 = vld [vmem:[%s16963_s1 + $0x394] ss:$24 sps:$4 sm:$0xff]  }
   0x7   :  { %2730 = vmatpush1.bf16.msra.mxu0 %v10906_v6  ;;  %v10924_v18 = vld [vmem:[%s16963_s1 + $0x90] ss:$24 sps:$4 sm:$0xff]   ;;  %v10926_v20 = vld [vmem:[%s16963_s1 + $0x64] ss:$24 sps:$4 sm:$0xff]   ;;  %v10930_v22 = vld [vmem:[%s16963_s1 + $0x60] ss:$24 sps:$4 sm:$0xff]  }
   0x8   :  { %2923 = vmatpush1.bf16.msra.mxu1 %v10907_v7  ;;  %2731 = vmatprep.subr.bf16.mxu0 %v10908_v8  ;;  %v10925_v19 = vld [vmem:[%s16963_s1 + $0x390] ss:$24 sps:$4 sm:$0xff]   ;;  %v10928_v21 = vld [vmem:[%s16963_s1 + $0x364] ss:$24 sps:$4 sm:$0xff]   ;;  %v10931_v23 = vld [vmem:[%s16963_s1 + $0x360] ss:$24 sps:$4 sm:$0xff]  }
   0x9   :  { %2924 = vmatprep.subr.bf16.mxu1 %v10910_v9  ;;  %v10932_v24 = vld [vmem:[%s16963_s1 + $0x34] ss:$24 sps:$4 sm:$0xff]   ;;  %v10936_v26 = vld [vmem:[%s16963_s1 + $0x30] ss:$24 sps:$4 sm:$0xff]   ;;  %v10938_v28 = vld [vmem:[%s16963_s1 + $0x4] ss:$24 sps:$4 sm:$0xff]  }
   0xa   :  { %v10934_v25 = vld [vmem:[%s16963_s1 + $0x334] ss:$24 sps:$4 sm:$0xff]   ;;  %v10937_v27 = vld [vmem:[%s16963_s1 + $0x330] ss:$24 sps:$4 sm:$0xff]   ;;  %v10940_v29 = vld [vmem:[%s16963_s1 + $0x304] ss:$24 sps:$4 sm:$0xff]  }
   0xb   :  { %2732 = vmatpush1.bf16.msra.mxu0 %v10912_v10  ;;  %v10942_v30 = vld [vmem:[%s16963_s1] ss:$24 sps:$4 sm:$0xff]   ;;  %v10944_v32 = vld [vmem:[%s16963_s1 + $0x2d4] ss:$24 sps:$4 sm:$0xff]   ;;  %v10948_v34 = vld [vmem:[%s16963_s1 + $0x2d0] ss:$24 sps:$4 sm:$0xff]  }
   0xc   :  { %2925 = vmatpush1.bf16.msra.mxu1 %v10913_v11  ;;  %2733 = vmatprep.subr.bf16.mxu0 %v10914_v12  ;;  %v10943_v31 = vld [vmem:[%s16963_s1 + $0x300] ss:$24 sps:$4 sm:$0xff]   ;;  %v10946_v33 = vld [vmem:[%s16963_s1 + $0x5d4] ss:$24 sps:$4 sm:$0xff]   ;;  %v10949_v35 = vld [vmem:[%s16963_s1 + $0x5d0] ss:$24 sps:$4 sm:$0xff]  }
   0xd   :  { %2926 = vmatprep.subr.bf16.mxu1 %v10916_v13  ;;  %v10950_v36 = vld [vmem:[%s16963_s1 + $0x2a4] ss:$24 sps:$4 sm:$0xff]   ;;  %v10954_v38 = vld [vmem:[%s16963_s1 + $0x2a0] ss:$24 sps:$4 sm:$0xff]   ;;  %v10956_v40 = vld [vmem:[%s16963_s1 + $0x274] ss:$24 sps:$4 sm:$0xff]  }
   0xe   :  { %v10952_v37 = vld [vmem:[%s16963_s1 + $0x5a4] ss:$24 sps:$4 sm:$0xff]   ;;  %v10955_v39 = vld [vmem:[%s16963_s1 + $0x5a0] ss:$24 sps:$4 sm:$0xff]   ;;  %v10958_v41 = vld [vmem:[%s16963_s1 + $0x574] ss:$24 sps:$4 sm:$0xff]  }
   0xf   :  { %2734 = vmatpush1.bf16.msra.mxu0 %v10918_v14  ;;  %v10960_v42 = vld [vmem:[%s16963_s1 + $0x270] ss:$24 sps:$4 sm:$0xff]   ;;  %v10962_v44 = vld [vmem:[%s16963_s1 + $0x244] ss:$24 sps:$4 sm:$0xff]   ;;  %v10966_v46 = vld [vmem:[%s16963_s1 + $0x240] ss:$24 sps:$4 sm:$0xff]  }
  0x10   :  { %2927 = vmatpush1.bf16.msra.mxu1 %v10919_v15  ;;  %2735 = vmatprep.subr.bf16.mxu0 %v10920_v16  ;;  %v10961_v43 = vld [vmem:[%s16963_s1 + $0x570] ss:$24 sps:$4 sm:$0xff]   ;;  %v10964_v45 = vld [vmem:[%s16963_s1 + $0x544] ss:$24 sps:$4 sm:$0xff]   ;;  %v10967_v47 = vld [vmem:[%s16963_s1 + $0x540] ss:$24 sps:$4 sm:$0xff]  }
  0x11   :  { %2928 = vmatprep.subr.bf16.mxu1 %v10922_v17  ;;  %v231_v48 = vld [vmem:[%s16962_s0] sm:$0xff]  ;;  %v234_v49 = vld [vmem:[%s16962_s0 + $0x18] sm:$0xff]  ;;  %v232_v50 = vld [vmem:[%s16962_s0 + $0x8] sm:$0xff] }
  0x12   :  { %v235_v51 = vld [vmem:[%s16962_s0 + $0x20] sm:$0xff]  ;;  %v10968_v52 = vld [vmem:[%s16963_s1 + $0x214] ss:$24 sps:$4 sm:$0xff]   ;;  %v12363_v53 = vcombine.high %v231_v48, %v234_v49  ;;  %v10972_v56 = vld [vmem:[%s16963_s1 + $0x210] ss:$24 sps:$4 sm:$0xff]   ;;  %v12417_v7 = vcombine.low %v231_v48, %v234_v49 }
  0x13   :  { %2736 = vmatpush1.bf16.msra.mxu0 %v10924_v18  ;;  %v12365_v54 = vcombine.high %v232_v50, %v235_v51  ;;  %v10970_v55 = vld [vmem:[%s16963_s1 + $0x514] ss:$24 sps:$4 sm:$0xff]   ;;  %v10973_v57 = vld [vmem:[%s16963_s1 + $0x510] ss:$24 sps:$4 sm:$0xff]   ;;  %v10974_v58 = vld [vmem:[%s16963_s1 + $0x1e4] ss:$24 sps:$4 sm:$0xff]   ;;  %v12419_v8 = vcombine.low %v232_v50, %v235_v51 }
  0x14   :  { %2929 = vmatpush1.bf16.msra.mxu1 %v10925_v19  ;;  %2737 = vmatprep.subr.bf16.mxu0 %v10926_v20  ;;  %v10976_v59 = vld [vmem:[%s16963_s1 + $0x4e4] ss:$24 sps:$4 sm:$0xff]   ;;  %v10978_v60 = vld [vmem:[%s16963_s1 + $0x1e0] ss:$24 sps:$4 sm:$0xff]   ;;  %v10980_v62 = vld [vmem:[%s16963_s1 + $0x1b4] ss:$24 sps:$4 sm:$0xff]  }
  0x15   :  { %2930 = vmatprep.subr.bf16.mxu1 %v10928_v21  ;;  %2759 = vmatprep.mubr.bf16.mxu0 %v12363_v53  ;;  %v10979_v61 = vld [vmem:[%s16963_s1 + $0x4e0] ss:$24 sps:$4 sm:$0xff]   ;;  %v10982_v63 = vld [vmem:[%s16963_s1 + $0x4b4] ss:$24 sps:$4 sm:$0xff]   ;;  %v10984_v0 = vld [vmem:[%s16963_s1 + $0x1b0] ss:$24 sps:$4 sm:$0xff]  }
  0x16   :  { %2952 = vmatprep.mubr.bf16.mxu1 %v12365_v54  ;;  %v10985_v1 = vld [vmem:[%s16963_s1 + $0x4b0] ss:$24 sps:$4 sm:$0xff]   ;;  %v10986_v2 = vld [vmem:[%s16963_s1 + $0x184] ss:$24 sps:$4 sm:$0xff]   ;;  %v10990_v4 = vld [vmem:[%s16963_s1 + $0x180] ss:$24 sps:$4 sm:$0xff]  }
  0x17   :  { %2738 = vmatpush1.bf16.msra.mxu0 %v10930_v22  ;;  %v10988_v3 = vld [vmem:[%s16963_s1 + $0x484] ss:$24 sps:$4 sm:$0xff]   ;;  %v10991_v5 = vld [vmem:[%s16963_s1 + $0x480] ss:$24 sps:$4 sm:$0xff]   ;;  %v10998_v6 = vld [vmem:[%s16963_s1 + $0x754] ss:$24 sps:$4 sm:$0xff]  }
  0x18   :  { %2931 = vmatpush1.bf16.msra.mxu1 %v10931_v23  ;;  %2739 = vmatprep.subr.bf16.mxu0 %v10932_v24  ;;  %v10996_v9 = vld [vmem:[%s16963_s1 + $0x750] ss:$24 sps:$4 sm:$0xff]   ;;  %v12427_v10 = vld [vmem:[%s16962_s0 + $0x34] ss:$24 sps:$4 sm:$0xff]   ;;  %v11007_v12 = vld [vmem:[%s16963_s1 + $0x724] ss:$24 sps:$4 sm:$0xff]  }
  0x19   :  { %2932 = vmatprep.subr.bf16.mxu1 %v10934_v25  ;;  %v11001_v11 = vld [vmem:[%s16962_s0 + $0x3c] ss:$24 sps:$4 sm:$0xff]   ;;  %v11005_v13 = vld [vmem:[%s16963_s1 + $0x720] ss:$24 sps:$4 sm:$0xff]   ;;  %v12447_v15 = vld [vmem:[%s16962_s0 + $0x30] ss:$24 sps:$4 sm:$0xff]  }
  0x1a   :  { %v11016_v14 = vld [vmem:[%s16963_s1 + $0x6f4] ss:$24 sps:$4 sm:$0xff]   ;;  %v11004_v16 = vld [vmem:[%s16962_s0 + $0x38] ss:$24 sps:$4 sm:$0xff]   ;;  %v12455_v17 = vld [vmem:[%s16962_s0 + $0x64] ss:$24 sps:$4 sm:$0xff]  }
  0x1b   :  { %2740 = vmatpush1.bf16.msra.mxu0 %v10936_v26  ;;  %v11010_v18 = vld [vmem:[%s16962_s0 + $0x6c] ss:$24 sps:$4 sm:$0xff]   ;;  %v11014_v19 = vld [vmem:[%s16963_s1 + $0x6f0] ss:$24 sps:$4 sm:$0xff]   ;;  %v11064_v22 = vld [vmem:[%s16963_s1 + $0x15c] ss:$24 sps:$4 sm:$0xff]  }
  0x1c   :  { %2933 = vmatpush1.bf16.msra.mxu1 %v10937_v27  ;;  %2741 = vmatprep.subr.bf16.mxu0 %v10938_v28  ;;  %v11025_v20 = vld [vmem:[%s16963_s1 + $0x6c4] ss:$24 sps:$4 sm:$0xff]   ;;  %v11062_v21 = vld [vmem:[%s16963_s1 + $0x158] ss:$24 sps:$4 sm:$0xff]   ;;  %v11034_v25 = vld [vmem:[%s16963_s1 + $0x694] ss:$24 sps:$4 sm:$0xff]  }
  0x1d   :  { %2934 = vmatprep.subr.bf16.mxu1 %v10940_v29  ;;  %v11023_v23 = vld [vmem:[%s16963_s1 + $0x6c0] ss:$24 sps:$4 sm:$0xff]   ;;  %v11074_v27 = vld [vmem:[%s16963_s1 + $0x12c] ss:$24 sps:$4 sm:$0xff]  }
  0x1e   :  { %v11012_v24 = vld [vmem:[%s16962_s0 + $0x60] ss:$24 sps:$4 sm:$0xff]   ;;  %v12495_v29 = vld [vmem:[%s16962_s0 + $0x94] ss:$24 sps:$4 sm:$0xff]  }
  0x1f   :  { %2742 = vmatpush1.bf16.msra.mxu0 %v10942_v30  ;;  %v11072_v26 = vld [vmem:[%s16963_s1 + $0x128] ss:$24 sps:$4 sm:$0xff]   ;;  %v11019_v30 = vld [vmem:[%s16962_s0 + $0x9c] ss:$24 sps:$4 sm:$0xff]  }
  0x20   :  { %2935 = vmatpush1.bf16.msra.mxu1 %v10943_v31  ;;  %2743 = vmatprep.subr.bf16.mxu0 %v10944_v32  ;;  %v11013_v28 = vld [vmem:[%s16962_s0 + $0x68] ss:$24 sps:$4 sm:$0xff]   ;;  %v11043_v32 = vld [vmem:[%s16963_s1 + $0x664] ss:$24 sps:$4 sm:$0xff]   ;;  %v11071_v51 = vld [vmem:[%s16963_s1 + $0x8d4] ss:$24 sps:$4 sm:$0xff]  }
  0x21   :  { %2936 = vmatprep.subr.bf16.mxu1 %v10946_v33  ;;  %v11032_v31 = vld [vmem:[%s16963_s1 + $0x690] ss:$24 sps:$4 sm:$0xff]   ;;  %v11041_v33 = vld [vmem:[%s16963_s1 + $0x660] ss:$24 sps:$4 sm:$0xff]  }
  0x22   :  { %v11030_v48 = vld [vmem:[%s16962_s0 + $0xc0] ss:$24 sps:$4 sm:$0xff]  }
  0x23   :  { %2744 = vmatpush2.bf16.msra.mxu0 %v10948_v34  ;;  %v11084_v34 = vld [vmem:[%s16963_s1 + $0xf8] ss:$24 sps:$4 sm:$0xff]   ;;  %v11031_v49 = vld [vmem:[%s16962_s0 + $0xc8] ss:$24 sps:$4 sm:$0xff]  }
  0x24   :  { %2937 = vmatpush2.bf16.msra.mxu1 %v10949_v35  ;;  %2745 = vmatprep.subr.bf16.mxu0 %v10950_v36  ;;  %v11086_v35 = vld [vmem:[%s16963_s1 + $0xfc] ss:$24 sps:$4 sm:$0xff]   ;;  %v11059_v50 = vld [vmem:[%s16963_s1 + $0x600] ss:$24 sps:$4 sm:$0xff]  }
  0x25   :  { %2938 = vmatprep.subr.bf16.mxu1 %v10952_v37  ;;  %v11052_v36 = vld [vmem:[%s16963_s1 + $0x634] ss:$24 sps:$4 sm:$0xff]   ;;  %v11021_v37 = vld [vmem:[%s16962_s0 + $0x90] ss:$24 sps:$4 sm:$0xff]  }
  0x27   :  { %2746 = vmatpush2.bf16.msra.mxu0 %v10954_v38  ;;  %v11089_v38 = vld [vmem:[%s16963_s1 + $0xcc] ss:$24 sps:$4 sm:$0xff]  }
  0x28   :  { %2939 = vmatpush2.bf16.msra.mxu1 %v10955_v39  ;;  %2747 = vmatprep.subr.bf16.mxu0 %v10956_v40  ;;  %v11087_v39 = vld [vmem:[%s16963_s1 + $0xc8] ss:$24 sps:$4 sm:$0xff]   ;;  %v11022_v40 = vld [vmem:[%s16962_s0 + $0x98] ss:$24 sps:$4 sm:$0xff]  }
  0x29   :  { %2940 = vmatprep.subr.bf16.mxu1 %v10958_v41  ;;  %v11026_v41 = vld [vmem:[%s16962_s0 + $0xc4] ss:$24 sps:$4 sm:$0xff]  }
  0x2b   :  { %2748 = vmatpush2.bf16.msra.mxu0 %v10960_v42  ;;  %v11028_v42 = vld [vmem:[%s16962_s0 + $0xcc] ss:$24 sps:$4 sm:$0xff]  }
  0x2c   :  { %2941 = vmatpush2.bf16.msra.mxu1 %v10961_v43  ;;  %2749 = vmatprep.subr.bf16.mxu0 %v10962_v44  ;;  %v11050_v43 = vld [vmem:[%s16963_s1 + $0x630] ss:$24 sps:$4 sm:$0xff]   ;;  %v11061_v44 = vld [vmem:[%s16963_s1 + $0x604] ss:$24 sps:$4 sm:$0xff]  }
  0x2d   :  { %2942 = vmatprep.subr.bf16.mxu1 %v10964_v45  ;;  %v11099_v45 = vld [vmem:[%s16963_s1 + $0x98] ss:$24 sps:$4 sm:$0xff]  }
  0x2f   :  { %2750 = vmatpush2.bf16.msra.mxu0 %v10966_v46  ;;  %v11101_v46 = vld [vmem:[%s16963_s1 + $0x9c] ss:$24 sps:$4 sm:$0xff]  }
  0x30   :  { %2943 = vmatpush2.bf16.msra.mxu1 %v10967_v47  ;;  %2751 = vmatprep.subr.bf16.mxu0 %v10968_v52  ;;  %v11104_v47 = vld [vmem:[%s16963_s1 + $0x6c] ss:$24 sps:$4 sm:$0xff]   ;;  %v11102_v52 = vld [vmem:[%s16963_s1 + $0x68] ss:$24 sps:$4 sm:$0xff]  }
  0x31   :  { %2944 = vmatprep.subr.bf16.mxu1 %v10970_v55  ;;  %v11035_v55 = vld [vmem:[%s16962_s0 + $0xf4] ss:$24 sps:$4 sm:$0xff]  }
  0x33   :  { %2752 = vmatpush2.bf16.msra.mxu0 %v10972_v56  ;;  %v11037_v56 = vld [vmem:[%s16962_s0 + $0xfc] ss:$24 sps:$4 sm:$0xff]  }
  0x34   :  { %2945 = vmatpush2.bf16.msra.mxu1 %v10973_v57  ;;  %2753 = vmatprep.subr.bf16.mxu0 %v10974_v58  ;;  %v11069_v57 = vld [vmem:[%s16963_s1 + $0x8d0] ss:$24 sps:$4 sm:$0xff]   ;;  %v11116_v58 = vld [vmem:[%s16963_s1 + $0x3c] ss:$24 sps:$4 sm:$0xff]  }
  0x35   :  { %2946 = vmatprep.subr.bf16.mxu1 %v10976_v59  ;;  %v11083_v59 = vld [vmem:[%s16963_s1 + $0x8a4] ss:$24 sps:$4 sm:$0xff]  }
  0x37   :  { %2754 = vmatpush2.bf16.msra.mxu0 %v10978_v60  ;;  %v11114_v60 = vld [vmem:[%s16963_s1 + $0x38] ss:$24 sps:$4 sm:$0xff]  }
  0x38   :  { %2947 = vmatpush2.bf16.msra.mxu1 %v10979_v61  ;;  %2755 = vmatprep.subr.bf16.mxu0 %v10980_v62  ;;  %v11119_v61 = vld [vmem:[%s16963_s1 + $0xc] ss:$24 sps:$4 sm:$0xff]   ;;  %v11039_v62 = vld [vmem:[%s16962_s0 + $0xf0] ss:$24 sps:$4 sm:$0xff]  }
  0x39   :  { %2948 = vmatprep.subr.bf16.mxu1 %v10982_v63  ;;  %v11040_v63 = vld [vmem:[%s16962_s0 + $0xf8] ss:$24 sps:$4 sm:$0xff]  }
  0x3b   :  { %2756 = vmatpush2.bf16.msra.mxu0 %v10984_v0  ;;  %v11081_v0 = vld [vmem:[%s16963_s1 + $0x8a0] ss:$24 sps:$4 sm:$0xff]  }
  0x3c   :  { %2949 = vmatpush2.bf16.msra.mxu1 %v10985_v1  ;;  %2757 = vmatprep.subr.bf16.mxu0 %v10986_v2  ;;  %v11044_v1 = vld [vmem:[%s16962_s0 + $0x124] ss:$24 sps:$4 sm:$0xff]   ;;  %v11098_v2 = vld [vmem:[%s16963_s1 + $0x874] ss:$24 sps:$4 sm:$0xff]  }
  0x3d   :  { %2950 = vmatprep.subr.bf16.mxu1 %v10988_v3  ;;  %v11117_v3 = vld [vmem:[%s16963_s1 + $0x8] ss:$24 sps:$4 sm:$0xff]  }
  0x3f   :  { %2758 = vmatpush2.bf16.msra.mxu0 %v10990_v4  ;;  %v11046_v4 = vld [vmem:[%s16962_s0 + $0x12c] ss:$24 sps:$4 sm:$0xff]  }
  0x40   :  { %2951 = vmatpush2.bf16.msra.mxu1 %v10991_v5  ;;  %3113 = vmatprep.subr.bf16.mxu0 %v10998_v6  ;;  %v11096_v5 = vld [vmem:[%s16963_s1 + $0x870] ss:$24 sps:$4 sm:$0xff]   ;;  %v11113_v6 = vld [vmem:[%s16963_s1 + $0x844] ss:$24 sps:$4 sm:$0xff]  }
  0x41   :  { %3306 = vmatprep.subr.bf16.mxu1 %v11064_v22  ;;  %v11126_v22 = vld [vmem:[%s16963_s1 + $0x810] ss:$24 sps:$4 sm:$0xff]  }
  0x42   :  { %2760 = vmatmul.mubr.bf16.vlgmr.msra.gmra.mxu0 %v12417_v7 }
  0x43   :  { %2953 = vmatmul.mubr.bf16.vlgmr.msra.gmra.mxu1 %v12419_v8  ;;  %3114 = vmatpush1.bf16.msra.mxu0 %v10996_v9  ;;  %v11131_v9 = vld [vmem:[%s16963_s1 + $0x2dc] ss:$24 sps:$4 sm:$0xff]  }
  0x44   :  { %2769 = vmatprep.mubr.bf16.mxu0 %v12427_v10  ;;  %2962 = vmatprep.mubr.bf16.mxu1 %v11001_v11  ;;  %v11129_v11 = vld [vmem:[%s16963_s1 + $0x2d8] ss:$24 sps:$4 sm:$0xff]  }
  0x45   :  { %3115 = vmatprep.subr.bf16.mxu0 %v11007_v12  ;;  %3307 = vmatpush1.bf16.msra.mxu1 %v11062_v21  ;;  %v11134_v12 = vld [vmem:[%s16963_s1 + $0x2ac] ss:$24 sps:$4 sm:$0xff]   ;;  %v11055_v21 = vld [vmem:[%s16962_s0 + $0x15c] ss:$24 sps:$4 sm:$0xff]  }
  0x46   :  { %3308 = vmatprep.subr.bf16.mxu1 %v11074_v27  ;;  %v282_v27 = vld [vmem:[%s16962_s0 + $0x198] sm:$0xff] }
  0x47   :  { %3116 = vmatpush1.bf16.msra.mxu0 %v11005_v13  ;;  %v11048_v13 = vld [vmem:[%s16962_s0 + $0x120] ss:$24 sps:$4 sm:$0xff]  }
  0x48   :  { %3117 = vmatprep.subr.bf16.mxu0 %v11016_v14  ;;  %v11049_v14 = vld [vmem:[%s16962_s0 + $0x128] ss:$24 sps:$4 sm:$0xff]  }
  0x49   :  { %3309 = vmatpush1.bf16.msra.mxu1 %v11072_v26  ;;  %v279_v26 = vld [vmem:[%s16962_s0 + $0x180] sm:$0xff] }
  0x4a   :  { %2770 = vmatmul.mubr.bf16.gmra.mxu0 %v12447_v15  ;;  %3310 = vmatprep.subr.bf16.mxu1 %v11086_v35  ;;  %v11158_v35 = vld [vmem:[%s16963_s1 + $0x7b4] ss:$24 sps:$4 sm:$0xff]  }
  0x4b   :  { %2963 = vmatmul.mubr.bf16.gmra.mxu1 %v11004_v16  ;;  %2779 = vmatprep.mubr.bf16.mxu0 %v12455_v17  ;;  %v11111_v16 = vld [vmem:[%s16963_s1 + $0x840] ss:$24 sps:$4 sm:$0xff]  }
  0x4c   :  { %2972 = vmatprep.mubr.bf16.mxu1 %v11010_v18  ;;  %3118 = vmatpush1.bf16.msra.mxu0 %v11014_v19  ;;  %v11128_v18 = vld [vmem:[%s16963_s1 + $0x814] ss:$24 sps:$4 sm:$0xff]   ;;  %v11132_v19 = vld [vmem:[%s16963_s1 + $0x2a8] ss:$24 sps:$4 sm:$0xff]  }
  0x4d   :  { %3119 = vmatprep.subr.bf16.mxu0 %v11025_v20  ;;  %3311 = vmatpush1.bf16.msra.mxu1 %v11084_v34  ;;  %v11053_v20 = vld [vmem:[%s16962_s0 + $0x154] ss:$24 sps:$4 sm:$0xff]   ;;  %v11147_v34 = vld [vmem:[%s16963_s1 + $0x248] ss:$24 sps:$4 sm:$0xff]  }
  0x4e   :  { %3312 = vmatprep.subr.bf16.mxu1 %v11089_v38 }
  0x50   :  { %3120 = vmatpush1.bf16.msra.mxu0 %v11023_v23  ;;  %v11146_v23 = vld [vmem:[%s16963_s1 + $0x27c] ss:$24 sps:$4 sm:$0xff]  }
  0x51   :  { %3121 = vmatprep.subr.bf16.mxu0 %v11034_v25  ;;  %3313 = vmatpush1.bf16.msra.mxu1 %v11087_v39  ;;  %v11144_v25 = vld [vmem:[%s16963_s1 + $0x278] ss:$24 sps:$4 sm:$0xff]  }
  0x52   :  { %2780 = vmatmul.mubr.bf16.gmra.mxu0 %v11012_v24  ;;  %3314 = vmatprep.subr.bf16.mxu1 %v11101_v46  ;;  %v11143_v24 = vld [vmem:[%s16963_s1 + $0x7e4] ss:$24 sps:$4 sm:$0xff]   ;;  %v11156_v39 = vld [vmem:[%s16963_s1 + $0x7b0] ss:$24 sps:$4 sm:$0xff]   ;;  %v12714_v46 = vcombine.low %v279_v26, %v282_v27 }
  0x53   :  { %2973 = vmatmul.mubr.bf16.gmra.mxu1 %v11013_v28  ;;  %2789 = vmatprep.mubr.bf16.mxu0 %v12495_v29  ;;  %v280_v28 = vld [vmem:[%s16962_s0 + $0x188] sm:$0xff] }
  0x54   :  { %2982 = vmatprep.mubr.bf16.mxu1 %v11019_v30  ;;  %3122 = vmatpush1.bf16.msra.mxu0 %v11032_v31  ;;  %v11149_v30 = vld [vmem:[%s16963_s1 + $0x24c] ss:$24 sps:$4 sm:$0xff]   ;;  %17007 = vst [vmem:[#allocation9_spill] sm:$0xff] %v12714_v46 }
  0x55   :  { %3123 = vmatprep.subr.bf16.mxu0 %v11043_v32  ;;  %3315 = vmatpush1.bf16.msra.mxu1 %v11099_v45  ;;  %v283_v31 = vld [vmem:[%s16962_s0 + $0x1a0] sm:$0xff]  ;;  %v11057_v32 = vld [vmem:[%s16962_s0 + $0x150] ss:$24 sps:$4 sm:$0xff]  }
  0x56   :  { %3316 = vmatprep.subr.bf16.mxu1 %v11104_v47  ;;  %v12689_v38 = vcombine.high %v280_v28, %v283_v31  ;;  %v11162_v45 = vld [vmem:[%s16963_s1 + $0x1e8] ss:$24 sps:$4 sm:$0xff]   ;;  %v12716_v47 = vcombine.low %v280_v28, %v283_v31  ;;  %v11182_v28 = vld [vmem:[%s16963_s1 + $0x458] ss:$24 sps:$4 sm:$0xff]  }
  0x58   :  { %3124 = vmatpush1.bf16.msra.mxu0 %v11041_v33  ;;  %v11141_v33 = vld [vmem:[%s16963_s1 + $0x7e0] ss:$24 sps:$4 sm:$0xff]   ;;  %17006 = vst [vmem:[#allocation8_spill] sm:$0xff] %v12689_v38  ;;  %17008 = vst [vmem:[#allocation10_spill] sm:$0xff] %v12716_v47 }
  0x59   :  { %3125 = vmatprep.subr.bf16.mxu0 %v11052_v36  ;;  %3317 = vmatpush1.bf16.msra.mxu1 %v11102_v52  ;;  %v11058_v36 = vld [vmem:[%s16962_s0 + $0x158] ss:$24 sps:$4 sm:$0xff]  }
  0x5a   :  { %2790 = vmatmul.mubr.bf16.gmra.mxu0 %v11021_v37  ;;  %3318 = vmatprep.subr.bf16.mxu1 %v11116_v58  ;;  %v12687_v37 = vcombine.high %v279_v26, %v282_v27  ;;  %v11174_v52 = vld [vmem:[%s16963_s1 + $0x1b8] ss:$24 sps:$4 sm:$0xff]  }
  0x5b   :  { %2983 = vmatmul.mubr.bf16.gmra.mxu1 %v11022_v40  ;;  %2799 = vmatprep.mubr.bf16.mxu0 %v11026_v41  ;;  %v11161_v40 = vld [vmem:[%s16963_s1 + $0x21c] ss:$24 sps:$4 sm:$0xff]   ;;  %v11159_v41 = vld [vmem:[%s16963_s1 + $0x218] ss:$24 sps:$4 sm:$0xff]  }
  0x5c   :  { %2992 = vmatprep.mubr.bf16.mxu1 %v11028_v42  ;;  %3126 = vmatpush1.bf16.msra.mxu0 %v11050_v43  ;;  %17005 = vst [vmem:[#allocation7_spill] sm:$0xff] %v12687_v37  ;;  %v11173_v42 = vld [vmem:[%s16963_s1 + $0x784] ss:$24 sps:$4 sm:$0xff]   ;;  %v11080_v58 = vld [vmem:[%s16962_s0 + $0x1b8] ss:$24 sps:$4 sm:$0xff]  }
  0x5d   :  { %3127 = vmatprep.subr.bf16.mxu0 %v11061_v44  ;;  %3319 = vmatpush1.bf16.msra.mxu1 %v11114_v60  ;;  %v11164_v43 = vld [vmem:[%s16963_s1 + $0x1ec] ss:$24 sps:$4 sm:$0xff]   ;;  %v11171_v44 = vld [vmem:[%s16963_s1 + $0x780] ss:$24 sps:$4 sm:$0xff]  }
  0x5e   :  { %3320 = vmatprep.subr.bf16.mxu1 %v11119_v61  ;;  %v11092_v60 = vld [vmem:[%s16962_s0 + $0x1ec] ss:$24 sps:$4 sm:$0xff]   ;;  %v11094_v61 = vld [vmem:[%s16962_s0 + $0x1e0] ss:$24 sps:$4 sm:$0xff]  }
  0x5f   :  { %v11170_v26 = vld [vmem:[%s16962_s0 + $0x2d8] ss:$24 sps:$4 sm:$0xff]  }
  0x60   :  { %3128 = vmatpush1.bf16.msra.mxu0 %v11059_v50  ;;  %v11077_v50 = vld [vmem:[%s16962_s0 + $0x1bc] ss:$24 sps:$4 sm:$0xff]  }
  0x61   :  { %3129 = vmatprep.subr.bf16.mxu0 %v11071_v51  ;;  %3321 = vmatpush1.bf16.msra.mxu1 %v11117_v3  ;;  %v11176_v51 = vld [vmem:[%s16963_s1 + $0x1bc] ss:$24 sps:$4 sm:$0xff]   ;;  %v11110_v3 = vld [vmem:[%s16962_s0 + $0x218] ss:$24 sps:$4 sm:$0xff]  }
  0x62   :  { %2800 = vmatmul.mubr.bf16.gmra.mxu0 %v11030_v48  ;;  %3322 = vmatprep.subr.bf16.mxu1 %v11131_v9  ;;  %v11184_v48 = vld [vmem:[%s16963_s1 + $0x45c] ss:$24 sps:$4 sm:$0xff]   ;;  %v11125_v9 = vld [vmem:[%s16962_s0 + $0x248] ss:$24 sps:$4 sm:$0xff]  }
  0x63   :  { %2993 = vmatmul.mubr.bf16.gmra.mxu1 %v11031_v49  ;;  %2809 = vmatprep.mubr.bf16.mxu0 %v11035_v55  ;;  %v11075_v49 = vld [vmem:[%s16962_s0 + $0x1b4] ss:$24 sps:$4 sm:$0xff]  }
  0x64   :  { %3002 = vmatprep.mubr.bf16.mxu1 %v11037_v56  ;;  %3130 = vmatpush2.bf16.msra.mxu0 %v11069_v57  ;;  %v11179_v55 = vld [vmem:[%s16963_s1 + $0x18c] ss:$24 sps:$4 sm:$0xff]   ;;  %v11079_v56 = vld [vmem:[%s16962_s0 + $0x1b0] ss:$24 sps:$4 sm:$0xff]  }
  0x65   :  { %3131 = vmatprep.subr.bf16.mxu0 %v11083_v59  ;;  %3323 = vmatpush2.bf16.msra.mxu1 %v11129_v11  ;;  %v11177_v57 = vld [vmem:[%s16963_s1 + $0x188] ss:$24 sps:$4 sm:$0xff]   ;;  %v11090_v59 = vld [vmem:[%s16962_s0 + $0x1e4] ss:$24 sps:$4 sm:$0xff]   ;;  %v11135_v11 = vld [vmem:[%s16962_s0 + $0x274] ss:$24 sps:$4 sm:$0xff]  }
  0x66   :  { %3324 = vmatprep.subr.bf16.mxu1 %v11134_v12  ;;  %v11137_v12 = vld [vmem:[%s16962_s0 + $0x27c] ss:$24 sps:$4 sm:$0xff]  }
  0x68   :  { %3132 = vmatpush2.bf16.msra.mxu0 %v11081_v0  ;;  %v11107_v0 = vld [vmem:[%s16962_s0 + $0x21c] ss:$24 sps:$4 sm:$0xff]  }
  0x69   :  { %3133 = vmatprep.subr.bf16.mxu0 %v11098_v2  ;;  %3325 = vmatpush2.bf16.msra.mxu1 %v11132_v19  ;;  %v11109_v2 = vld [vmem:[%s16962_s0 + $0x210] ss:$24 sps:$4 sm:$0xff]   ;;  %v11154_v19 = vld [vmem:[%s16962_s0 + $0x2a0] ss:$24 sps:$4 sm:$0xff]  }
  0x6a   :  { %2810 = vmatmul.mubr.bf16.gmra.mxu0 %v11039_v62  ;;  %3326 = vmatprep.subr.bf16.mxu1 %v11146_v23  ;;  %v11095_v62 = vld [vmem:[%s16962_s0 + $0x1e8] ss:$24 sps:$4 sm:$0xff]   ;;  %v233_v23 = vld [vmem:[%s16962_s0 + $0x10] sm:$0xff] }
  0x6b   :  { %3003 = vmatmul.mubr.bf16.gmra.mxu1 %v11040_v63  ;;  %2819 = vmatprep.mubr.bf16.mxu0 %v11044_v1  ;;  %v11105_v63 = vld [vmem:[%s16962_s0 + $0x214] ss:$24 sps:$4 sm:$0xff]  }
  0x6c   :  { %3012 = vmatprep.mubr.bf16.mxu1 %v11046_v4  ;;  %3134 = vmatpush2.bf16.msra.mxu0 %v11096_v5  ;;  %v11229_v1 = vld [vmem:[%s16963_s1 + $0x75c] ss:$24 sps:$4 sm:$0xff]   ;;  %v11122_v5 = vld [vmem:[%s16962_s0 + $0x24c] ss:$24 sps:$4 sm:$0xff]  }
  0x6d   :  { %3135 = vmatprep.subr.bf16.mxu0 %v11113_v6  ;;  %3327 = vmatpush2.bf16.msra.mxu1 %v11144_v25  ;;  %v11120_v4 = vld [vmem:[%s16962_s0 + $0x244] ss:$24 sps:$4 sm:$0xff]   ;;  %v11124_v6 = vld [vmem:[%s16962_s0 + $0x240] ss:$24 sps:$4 sm:$0xff]   ;;  %v11169_v25 = vld [vmem:[%s16962_s0 + $0x2d0] ss:$24 sps:$4 sm:$0xff]  }
  0x6e   :  { %3328 = vmatprep.subr.bf16.mxu1 %v11149_v30  ;;  %v11185_v30 = vld [vmem:[%s16962_s0 + $0x44] ss:$24 sps:$4 sm:$0xff]  }
  0x70   :  { %3136 = vmatpush2.bf16.msra.mxu0 %v11111_v16  ;;  %v11150_v16 = vld [vmem:[%s16962_s0 + $0x2a4] ss:$24 sps:$4 sm:$0xff]  }
  0x71   :  { %3137 = vmatprep.subr.bf16.mxu0 %v11128_v18  ;;  %3329 = vmatpush2.bf16.msra.mxu1 %v11147_v34  ;;  %v11152_v18 = vld [vmem:[%s16962_s0 + $0x2ac] ss:$24 sps:$4 sm:$0xff]  }
  0x72   :  { %2820 = vmatmul.mubr.bf16.gmra.mxu0 %v11048_v13  ;;  %3330 = vmatprep.subr.bf16.mxu1 %v11161_v40  ;;  %v11139_v13 = vld [vmem:[%s16962_s0 + $0x270] ss:$24 sps:$4 sm:$0xff]   ;;  %v11237_v34 = vld [vmem:[%s16963_s1 + $0x72c] ss:$24 sps:$4 sm:$0xff]   ;;  %v11187_v40 = vld [vmem:[%s16962_s0 + $0x40] ss:$24 sps:$4 sm:$0xff]  }
  0x73   :  { %3013 = vmatmul.mubr.bf16.gmra.mxu1 %v11049_v14  ;;  %2829 = vmatprep.mubr.bf16.mxu0 %v11053_v20  ;;  %v11140_v14 = vld [vmem:[%s16962_s0 + $0x278] ss:$24 sps:$4 sm:$0xff]   ;;  %v11155_v20 = vld [vmem:[%s16962_s0 + $0x2a8] ss:$24 sps:$4 sm:$0xff]  }
  0x74   :  { %3022 = vmatprep.mubr.bf16.mxu1 %v11055_v21  ;;  %3138 = vmatpush2.bf16.msra.mxu0 %v11126_v22  ;;  %v11165_v21 = vld [vmem:[%s16962_s0 + $0x2d4] ss:$24 sps:$4 sm:$0xff]  }
  0x75   :  { %3139 = vmatprep.subr.bf16.mxu0 %v11143_v24  ;;  %3331 = vmatpush2.bf16.msra.mxu1 %v11159_v41  ;;  %v11167_v22 = vld [vmem:[%s16962_s0 + $0x2dc] ss:$24 sps:$4 sm:$0xff]   ;;  %v236_v24 = vld [vmem:[%s16962_s0 + $0x28] sm:$0xff] }
  0x76   :  { %3332 = vmatprep.subr.bf16.mxu1 %v11164_v43  ;;  %v12828_v27 = vcombine.high %v233_v23, %v236_v24  ;;  %v12838_v31 = vcombine.low %v233_v23, %v236_v24  ;;  %v11191_v41 = vld [vmem:[%s16962_s0 + $0x74] ss:$24 sps:$4 sm:$0xff]  }
  0x77   :  { %v11246_v43 = vld [vmem:[%s16963_s1 + $0x6fc] ss:$24 sps:$4 sm:$0xff]  }
  0x78   :  { %3140 = vmatpush2.bf16.msra.mxu0 %v11141_v33  ;;  %17009 = vst [vmem:[#allocation11_spill] sm:$0xff] %v12828_v27  ;;  %17010 = vst [vmem:[#allocation12_spill] sm:$0xff] %v12838_v31  ;;  %v11227_v33 = vld [vmem:[%s16963_s1 + $0x758] ss:$24 sps:$4 sm:$0xff]   ;;  %v11958_v23 = vld [vmem:[%s16962_s0 + $0xf4] ss:$24 sps:$4 sm:$0xff]  }
  0x79   :  { %3141 = vmatprep.subr.bf16.mxu0 %v11158_v35  ;;  %3333 = vmatpush2.bf16.msra.mxu1 %v11162_v45  ;;  %v11188_v35 = vld [vmem:[%s16963_s1 + $0x428] ss:$24 sps:$4 sm:$0xff]   ;;  %v11249_v45 = vld [vmem:[%s16963_s1 + $0x6cc] ss:$24 sps:$4 sm:$0xff]   ;;  %v11255_v24 = vld [vmem:[%s16963_s1 + $0x57c] ss:$24 sps:$4 sm:$0xff]  }
  0x7a   :  { %2830 = vmatmul.mubr.bf16.gmra.mxu0 %v11057_v32  ;;  %3334 = vmatprep.subr.bf16.mxu1 %v11176_v51  ;;  %v11190_v32 = vld [vmem:[%s16963_s1 + $0x42c] ss:$24 sps:$4 sm:$0xff]   ;;  %v11193_v51 = vld [vmem:[%s16962_s0 + $0x70] ss:$24 sps:$4 sm:$0xff]  }
  0x7b   :  { %3023 = vmatmul.mubr.bf16.gmra.mxu1 %v11058_v36  ;;  %2839 = vmatprep.mubr.bf16.mxu0 %v12687_v37  ;;  %v11196_v36 = vld [vmem:[%s16963_s1 + $0x3fc] ss:$24 sps:$4 sm:$0xff]  }
  0x7c   :  { %3032 = vmatprep.mubr.bf16.mxu1 %v12689_v38  ;;  %3142 = vmatpush2.bf16.msra.mxu0 %v11156_v39  ;;  %v11235_v39 = vld [vmem:[%s16963_s1 + $0x728] ss:$24 sps:$4 sm:$0xff]  }
  0x7d   :  { %3143 = vmatprep.subr.bf16.mxu0 %v11173_v42  ;;  %3335 = vmatpush2.bf16.msra.mxu1 %v11174_v52  ;;  %v11194_v42 = vld [vmem:[%s16963_s1 + $0x3f8] ss:$24 sps:$4 sm:$0xff]   ;;  %v11258_v52 = vld [vmem:[%s16963_s1 + $0x69c] ss:$24 sps:$4 sm:$0xff]  }
  0x7e   :  { %3336 = vmatprep.subr.bf16.mxu1 %v11179_v55  ;;  %v11214_v55 = vld [vmem:[%s16963_s1 + $0x36c] ss:$24 sps:$4 sm:$0xff]  }
  0x80   :  { %3144 = vmatpush2.bf16.msra.mxu0 %v11171_v44  ;;  %v11244_v44 = vld [vmem:[%s16963_s1 + $0x6f8] ss:$24 sps:$4 sm:$0xff]  }
  0x81   :  { %3499 = vmatprep.subr.bf16.mxu0 %v11184_v48  ;;  %3337 = vmatpush2.bf16.msra.mxu1 %v11177_v57  ;;  %v11200_v48 = vld [vmem:[%s16963_s1 + $0x3c8] ss:$24 sps:$4 sm:$0xff]   ;;  %v11261_v57 = vld [vmem:[%s16963_s1 + $0x66c] ss:$24 sps:$4 sm:$0xff]  }
  0x82   :  { %2840 = vmatmul.mubr.bf16.gmra.mxu0 %v12714_v46  ;;  %3692 = vmatprep.subr.bf16.mxu1 %v11229_v1  ;;  %v11226_v1 = vld [vmem:[%s16963_s1 + $0x30c] ss:$24 sps:$4 sm:$0xff]  }
  0x83   :  { %3033 = vmatmul.mubr.bf16.gmra.mxu1 %v12716_v47  ;;  %2849 = vmatprep.mubr.bf16.mxu0 %v11075_v49  ;;  %v11208_v49 = vld [vmem:[%s16963_s1 + $0x39c] ss:$24 sps:$4 sm:$0xff]  }
  0x84   :  { %3042 = vmatprep.mubr.bf16.mxu1 %v11077_v50  ;;  %v11247_v50 = vld [vmem:[%s16963_s1 + $0x6c8] ss:$24 sps:$4 sm:$0xff]  }
  0x8a   :  { %2850 = vmatmul.mubr.bf16.gmra.mxu0 %v11079_v56  ;;  %v11256_v56 = vld [vmem:[%s16963_s1 + $0x698] ss:$24 sps:$4 sm:$0xff]  }
  0x8b   :  { %3043 = vmatmul.mubr.bf16.gmra.mxu1 %v11080_v58  ;;  %2859 = vmatprep.mubr.bf16.mxu0 %v11090_v59  ;;  %v11954_v58 = vld [vmem:[%s16962_s0 + $0x60] ss:$24 sps:$4 sm:$0xff]  }
  0x8c   :  { %3052 = vmatprep.mubr.bf16.mxu1 %v11092_v60  ;;  %v11212_v59 = vld [vmem:[%s16963_s1 + $0x368] ss:$24 sps:$4 sm:$0xff]   ;;  %v11220_v60 = vld [vmem:[%s16963_s1 + $0x33c] ss:$24 sps:$4 sm:$0xff]  }
  0x92   :  { %2860 = vmatmul.mubr.bf16.gmra.mxu0 %v11094_v61  ;;  %v11259_v61 = vld [vmem:[%s16963_s1 + $0x668] ss:$24 sps:$4 sm:$0xff]  }
  0x93   :  { %3053 = vmatmul.mubr.bf16.gmra.mxu1 %v11095_v62  ;;  %2869 = vmatprep.mubr.bf16.mxu0 %v11105_v63  ;;  %v11199_v62 = vld [vmem:[%s16962_s0 + $0xa0] ss:$24 sps:$4 sm:$0xff]   ;;  %v11203_v63 = vld [vmem:[%s16962_s0 + $0xd4] ss:$24 sps:$4 sm:$0xff]  }
  0x94   :  { %3062 = vmatprep.mubr.bf16.mxu1 %v11107_v0  ;;  %v11270_v0 = vld [vmem:[%s16963_s1 + $0x63c] ss:$24 sps:$4 sm:$0xff]  }
  0x9a   :  { %2870 = vmatmul.mubr.bf16.gmra.mxu0 %v11109_v2  ;;  %v11268_v2 = vld [vmem:[%s16963_s1 + $0x638] ss:$24 sps:$4 sm:$0xff]  }
  0x9b   :  { %3063 = vmatmul.mubr.bf16.gmra.mxu1 %v11110_v3  ;;  %2879 = vmatprep.mubr.bf16.mxu0 %v11120_v4  ;;  %v11273_v3 = vld [vmem:[%s16963_s1 + $0x60c] ss:$24 sps:$4 sm:$0xff]   ;;  %v11955_v4 = vld [vmem:[%s16962_s0 + $0x90] ss:$24 sps:$4 sm:$0xff]  }
  0x9c   :  { %3072 = vmatprep.mubr.bf16.mxu1 %v11122_v5  ;;  %v11224_v5 = vld [vmem:[%s16963_s1 + $0x308] ss:$24 sps:$4 sm:$0xff]  }
  0xa2   :  { %2880 = vmatmul.mubr.bf16.gmra.mxu0 %v11124_v6  ;;  %v11956_v6 = vld [vmem:[%s16962_s0 + $0xc4] ss:$24 sps:$4 sm:$0xff]  }
  0xa3   :  { %3073 = vmatmul.mubr.bf16.gmra.mxu1 %v11125_v9  ;;  %2889 = vmatprep.mubr.bf16.mxu0 %v11135_v11  ;;  %v11234_v9 = vld [vmem:[%s16963_s1 + $0x5dc] ss:$24 sps:$4 sm:$0xff]   ;;  %v11271_v11 = vld [vmem:[%s16963_s1 + $0x608] ss:$24 sps:$4 sm:$0xff]  }
  0xa4   :  { %3082 = vmatprep.mubr.bf16.mxu1 %v11137_v12  ;;  %v11205_v12 = vld [vmem:[%s16962_s0 + $0xd0] ss:$24 sps:$4 sm:$0xff]  }
  0xaa   :  { %2890 = vmatmul.mubr.bf16.gmra.mxu0 %v11139_v13  ;;  %v11209_v13 = vld [vmem:[%s16962_s0 + $0x104] ss:$24 sps:$4 sm:$0xff]  }
  0xab   :  { %3083 = vmatmul.mubr.bf16.gmra.mxu1 %v11140_v14  ;;  %2899 = vmatprep.mubr.bf16.mxu0 %v11150_v16  ;;  %v11232_v14 = vld [vmem:[%s16963_s1 + $0x5d8] ss:$24 sps:$4 sm:$0xff]   ;;  %v11282_v16 = vld [vmem:[%s16963_s1 + $0x8dc] ss:$24 sps:$4 sm:$0xff]  }
  0xac   :  { %3092 = vmatprep.mubr.bf16.mxu1 %v11152_v18  ;;  %v11243_v18 = vld [vmem:[%s16963_s1 + $0x5ac] ss:$24 sps:$4 sm:$0xff]  }
  0xb2   :  { %2900 = vmatmul.mubr.bf16.gmra.mxu0 %v11154_v19  ;;  %v11280_v19 = vld [vmem:[%s16963_s1 + $0x8d8] ss:$24 sps:$4 sm:$0xff]  }
  0xb3   :  { %3093 = vmatmul.mubr.bf16.gmra.mxu1 %v11155_v20  ;;  %2909 = vmatprep.mubr.bf16.mxu0 %v11165_v21  ;;  %v11285_v20 = vld [vmem:[%s16963_s1 + $0x8ac] ss:$24 sps:$4 sm:$0xff]   ;;  %v11957_v21 = vld [vmem:[%s16962_s0 + $0xc0] ss:$24 sps:$4 sm:$0xff]  }
  0xb4   :  { %3102 = vmatprep.mubr.bf16.mxu1 %v11167_v22  ;;  %v11241_v22 = vld [vmem:[%s16963_s1 + $0x5a8] ss:$24 sps:$4 sm:$0xff]  }
  0xba   :  { %2910 = vmatmul.mubr.bf16.gmra.mxu0 %v11169_v25  ;;  %v11283_v25 = vld [vmem:[%s16963_s1 + $0x8a8] ss:$24 sps:$4 sm:$0xff]  }
  0xbb   :  { %3103 = vmatmul.mubr.bf16.gmra.mxu1 %v11170_v26  ;;  %3145 = vmatprep.mubr.bf16.mxu0 %v12828_v27  ;;  %v11211_v26 = vld [vmem:[%s16962_s0 + $0x100] ss:$24 sps:$4 sm:$0xff]  }
  0xbc   :  { %3338 = vmatprep.mubr.bf16.mxu1 %v12363_v53 }
  0xc2   :  { %3146 = vmatmul.mubr.bf16.vlgmr.msra.gmra.mxu0 %v12838_v31 }
  0xc3   :  { %3339 = vmatmul.mubr.bf16.vlgmr.msra.gmra.mxu1 %v12417_v7  ;;  %3500 = vmatpush1.bf16.msra.mxu0 %v11182_v28  ;;  %v11215_v28 = vld [vmem:[%s16962_s0 + $0x134] ss:$24 sps:$4 sm:$0xff]  }
  0xc4   :  { %3155 = vmatprep.mubr.bf16.mxu0 %v11185_v30  ;;  %3348 = vmatprep.mubr.bf16.mxu1 %v12427_v10  ;;  %v11202_v10 = vld [vmem:[%s16963_s1 + $0x3cc] ss:$24 sps:$4 sm:$0xff]   ;;  %v11253_v30 = vld [vmem:[%s16963_s1 + $0x578] ss:$24 sps:$4 sm:$0xff]  }
  0xc5   :  { %3501 = vmatprep.subr.bf16.mxu0 %v11190_v32  ;;  %3693 = vmatpush1.bf16.msra.mxu1 %v11227_v33  ;;  %v11294_v32 = vld [vmem:[%s16963_s1 + $0x87c] ss:$24 sps:$4 sm:$0xff]   ;;  %v11267_v33 = vld [vmem:[%s16963_s1 + $0x54c] ss:$24 sps:$4 sm:$0xff]  }
  0xc6   :  { %3694 = vmatprep.subr.bf16.mxu1 %v11237_v34  ;;  %v11292_v34 = vld [vmem:[%s16963_s1 + $0x878] ss:$24 sps:$4 sm:$0xff]  }
  0xc7   :  { %3502 = vmatpush1.bf16.msra.mxu0 %v11188_v35  ;;  %v11297_v35 = vld [vmem:[%s16963_s1 + $0x84c] ss:$24 sps:$4 sm:$0xff]  }
  0xc8   :  { %3503 = vmatprep.subr.bf16.mxu0 %v11196_v36  ;;  %v11959_v36 = vld [vmem:[%s16962_s0 + $0xf0] ss:$24 sps:$4 sm:$0xff]  }
  0xc9   :  { %3695 = vmatpush1.bf16.msra.mxu1 %v11235_v39  ;;  %v11265_v39 = vld [vmem:[%s16963_s1 + $0x548] ss:$24 sps:$4 sm:$0xff]  }
  0xca   :  { %3156 = vmatmul.mubr.bf16.gmra.mxu0 %v11187_v40  ;;  %3696 = vmatprep.subr.bf16.mxu1 %v11246_v43  ;;  %v11960_v40 = vld [vmem:[%s16962_s0 + $0x124] ss:$24 sps:$4 sm:$0xff]   ;;  %v11217_v43 = vld [vmem:[%s16962_s0 + $0x130] ss:$24 sps:$4 sm:$0xff]  }
  0xcb   :  { %3349 = vmatmul.mubr.bf16.gmra.mxu1 %v12447_v15  ;;  %3165 = vmatprep.mubr.bf16.mxu0 %v11191_v41  ;;  %v11197_v15 = vld [vmem:[%s16962_s0 + $0xa4] ss:$24 sps:$4 sm:$0xff]  }
  0xcc   :  { %3358 = vmatprep.mubr.bf16.mxu1 %v12455_v17  ;;  %3504 = vmatpush1.bf16.msra.mxu0 %v11194_v42  ;;  %v11206_v17 = vld [vmem:[%s16963_s1 + $0x398] ss:$24 sps:$4 sm:$0xff]   ;;  %v11279_v41 = vld [vmem:[%s16963_s1 + $0x51c] ss:$24 sps:$4 sm:$0xff]   ;;  %v11295_v42 = vld [vmem:[%s16963_s1 + $0x848] ss:$24 sps:$4 sm:$0xff]  }
  0xcd   :  { %3505 = vmatprep.subr.bf16.mxu0 %v11202_v10  ;;  %3697 = vmatpush1.bf16.msra.mxu1 %v11244_v44  ;;  %v11221_v10 = vld [vmem:[%s16962_s0 + $0x164] ss:$24 sps:$4 sm:$0xff]   ;;  %v11277_v44 = vld [vmem:[%s16963_s1 + $0x518] ss:$24 sps:$4 sm:$0xff]  }
  0xce   :  { %3698 = vmatprep.subr.bf16.mxu1 %v11249_v45  ;;  %v11306_v45 = vld [vmem:[%s16963_s1 + $0x81c] ss:$24 sps:$4 sm:$0xff]  }
  0xd0   :  { %3506 = vmatpush1.bf16.msra.mxu0 %v11200_v48  ;;  %v11291_v48 = vld [vmem:[%s16963_s1 + $0x4ec] ss:$24 sps:$4 sm:$0xff]  }
  0xd1   :  { %3507 = vmatprep.subr.bf16.mxu0 %v11208_v49  ;;  %3699 = vmatpush1.bf16.msra.mxu1 %v11247_v50  ;;  %v11304_v49 = vld [vmem:[%s16963_s1 + $0x818] ss:$24 sps:$4 sm:$0xff]   ;;  %v11309_v50 = vld [vmem:[%s16963_s1 + $0x7ec] ss:$24 sps:$4 sm:$0xff]  }
  0xd2   :  { %3166 = vmatmul.mubr.bf16.gmra.mxu0 %v11193_v51  ;;  %3700 = vmatprep.subr.bf16.mxu1 %v11258_v52  ;;  %v11961_v51 = vld [vmem:[%s16962_s0 + $0x120] ss:$24 sps:$4 sm:$0xff]  }
  0xd3   :  { %3359 = vmatmul.mubr.bf16.gmra.mxu1 %v11954_v58  ;;  %3175 = vmatprep.mubr.bf16.mxu0 %v11197_v15  ;;  %v281_v15 = vld [vmem:[%s16962_s0 + $0x190] sm:$0xff]  ;;  %v11289_v52 = vld [vmem:[%s16963_s1 + $0x4e8] ss:$24 sps:$4 sm:$0xff]  }
  0xd4   :  { %3368 = vmatprep.mubr.bf16.mxu1 %v12495_v29  ;;  %3508 = vmatpush1.bf16.msra.mxu0 %v11206_v17  ;;  %v11218_v29 = vld [vmem:[%s16963_s1 + $0x338] ss:$24 sps:$4 sm:$0xff]   ;;  %v284_v17 = vld [vmem:[%s16962_s0 + $0x1a8] sm:$0xff] }
  0xd5   :  { %3509 = vmatprep.subr.bf16.mxu0 %v11214_v55  ;;  %3701 = vmatpush1.bf16.msra.mxu1 %v11256_v56  ;;  %v11962_v55 = vld [vmem:[%s16962_s0 + $0x154] ss:$24 sps:$4 sm:$0xff]   ;;  %v11223_v58 = vld [vmem:[%s16962_s0 + $0x160] ss:$24 sps:$4 sm:$0xff]  }
  0xd6   :  { %3702 = vmatprep.subr.bf16.mxu1 %v11261_v57  ;;  %v11303_v56 = vld [vmem:[%s16963_s1 + $0x4bc] ss:$24 sps:$4 sm:$0xff]   ;;  %v11307_v57 = vld [vmem:[%s16963_s1 + $0x7e8] ss:$24 sps:$4 sm:$0xff]  }
  0xd8   :  { %3510 = vmatpush1.bf16.msra.mxu0 %v11212_v59  ;;  %v11301_v59 = vld [vmem:[%s16963_s1 + $0x4b8] ss:$24 sps:$4 sm:$0xff]  }
  0xd9   :  { %3511 = vmatprep.subr.bf16.mxu0 %v11220_v60  ;;  %3703 = vmatpush1.bf16.msra.mxu1 %v11259_v61  ;;  %v11318_v60 = vld [vmem:[%s16963_s1 + $0x7bc] ss:$24 sps:$4 sm:$0xff]   ;;  %v13086_v61 = vcombine.high %v281_v15, %v284_v17 }
  0xda   :  { %3176 = vmatmul.mubr.bf16.gmra.mxu0 %v11199_v62  ;;  %3704 = vmatprep.subr.bf16.mxu1 %v11270_v0  ;;  %v11315_v62 = vld [vmem:[%s16963_s1 + $0x48c] ss:$24 sps:$4 sm:$0xff]   ;;  %v11963_v0 = vld [vmem:[%s16962_s0 + $0x150] ss:$24 sps:$4 sm:$0xff]  }
  0xdb   :  { %3369 = vmatmul.mubr.bf16.gmra.mxu1 %v11955_v4  ;;  %3185 = vmatprep.mubr.bf16.mxu0 %v11203_v63  ;;  %17011 = vst [vmem:[#allocation13_spill] sm:$0xff] %v13086_v61  ;;  %v11316_v63 = vld [vmem:[%s16963_s1 + $0x7b8] ss:$24 sps:$4 sm:$0xff]   ;;  %v11238_v4 = vld [vmem:[%s16962_s0 + $0x1c4] ss:$24 sps:$4 sm:$0xff]  }
  0xdc   :  { %3378 = vmatprep.mubr.bf16.mxu1 %v11956_v6  ;;  %3512 = vmatpush1.bf16.msra.mxu0 %v11218_v29  ;;  %v11321_v29 = vld [vmem:[%s16963_s1 + $0x78c] ss:$24 sps:$4 sm:$0xff]  }
  0xdd   :  { %3513 = vmatprep.subr.bf16.mxu0 %v11226_v1  ;;  %3705 = vmatpush1.bf16.msra.mxu1 %v11268_v2  ;;  %v11313_v1 = vld [vmem:[%s16963_s1 + $0x488] ss:$24 sps:$4 sm:$0xff]   ;;  %v11348_v6 = vld [vmem:[%s16963_s1 + $0x464] ss:$24 sps:$4 sm:$0xff]  }
  0xde   :  { %3706 = vmatprep.subr.bf16.mxu1 %v11273_v3  ;;  %v11319_v2 = vld [vmem:[%s16963_s1 + $0x788] ss:$24 sps:$4 sm:$0xff]   ;;  %v11324_v3 = vld [vmem:[%s16963_s1 + $0x164] ss:$24 sps:$4 sm:$0xff]  }
  0xe0   :  { %3514 = vmatpush1.bf16.msra.mxu0 %v11224_v5  ;;  %v13114_v5 = vcombine.low %v281_v15, %v284_v17  ;;  %v11968_v17 = vld [vmem:[%s16962_s0 + $0x214] ss:$24 sps:$4 sm:$0xff]  }
  0xe1   :  { %3515 = vmatprep.subr.bf16.mxu0 %v11234_v9  ;;  %3707 = vmatpush1.bf16.msra.mxu1 %v11271_v11 }
  0xe2   :  { %3186 = vmatmul.mubr.bf16.gmra.mxu0 %v11205_v12  ;;  %3708 = vmatprep.subr.bf16.mxu1 %v11282_v16  ;;  %17012 = vst [vmem:[#allocation14_spill] sm:$0xff] %v13114_v5 }
  0xe3   :  { %3379 = vmatmul.mubr.bf16.gmra.mxu1 %v11957_v21  ;;  %3195 = vmatprep.mubr.bf16.mxu0 %v11209_v13  ;;  %v11964_v13 = vld [vmem:[%s16962_s0 + $0x1b4] ss:$24 sps:$4 sm:$0xff]  }
  0xe4   :  { %3388 = vmatprep.mubr.bf16.mxu1 %v11958_v23  ;;  %3516 = vmatpush2.bf16.msra.mxu0 %v11232_v14  ;;  %v11250_v23 = vld [vmem:[%s16962_s0 + $0x1f4] ss:$24 sps:$4 sm:$0xff]  }
  0xe5   :  { %3517 = vmatprep.subr.bf16.mxu0 %v11243_v18  ;;  %3709 = vmatpush2.bf16.msra.mxu1 %v11280_v19  ;;  %v11240_v19 = vld [vmem:[%s16962_s0 + $0x1c0] ss:$24 sps:$4 sm:$0xff]  }
  0xe6   :  { %3710 = vmatprep.subr.bf16.mxu1 %v11285_v20 }
  0xe8   :  { %3518 = vmatpush2.bf16.msra.mxu0 %v11241_v22 }
  0xe9   :  { %3519 = vmatprep.subr.bf16.mxu0 %v11255_v24  ;;  %3711 = vmatpush2.bf16.msra.mxu1 %v11283_v25 }
  0xea   :  { %3196 = vmatmul.mubr.bf16.gmra.mxu0 %v11211_v26  ;;  %3712 = vmatprep.subr.bf16.mxu1 %v11294_v32  ;;  %v11965_v32 = vld [vmem:[%s16962_s0 + $0x1b0] ss:$24 sps:$4 sm:$0xff]  }
  0xeb   :  { %3389 = vmatmul.mubr.bf16.gmra.mxu1 %v11959_v36  ;;  %3205 = vmatprep.mubr.bf16.mxu0 %v11215_v28 }
  0xec   :  { %3398 = vmatprep.mubr.bf16.mxu1 %v11960_v40  ;;  %3520 = vmatpush2.bf16.msra.mxu0 %v11253_v30  ;;  %v11252_v40 = vld [vmem:[%s16962_s0 + $0x1f0] ss:$24 sps:$4 sm:$0xff]  }
  0xed   :  { %3521 = vmatprep.subr.bf16.mxu0 %v11267_v33  ;;  %3713 = vmatpush2.bf16.msra.mxu1 %v11292_v34  ;;  %v11966_v34 = vld [vmem:[%s16962_s0 + $0x1e4] ss:$24 sps:$4 sm:$0xff]  }
  0xee   :  { %3714 = vmatprep.subr.bf16.mxu1 %v11297_v35 }
  0xf0   :  { %3522 = vmatpush2.bf16.msra.mxu0 %v11265_v39 }
  0xf1   :  { %3523 = vmatprep.subr.bf16.mxu0 %v11279_v41  ;;  %3715 = vmatpush2.bf16.msra.mxu1 %v11295_v42 }
  0xf2   :  { %3206 = vmatmul.mubr.bf16.gmra.mxu0 %v11217_v43  ;;  %3716 = vmatprep.subr.bf16.mxu1 %v11306_v45 }
  0xf3   :  { %3399 = vmatmul.mubr.bf16.gmra.mxu1 %v11961_v51  ;;  %3215 = vmatprep.mubr.bf16.mxu0 %v11221_v10  ;;  %v11262_v10 = vld [vmem:[%s16962_s0 + $0x224] ss:$24 sps:$4 sm:$0xff]   ;;  %v11967_v51 = vld [vmem:[%s16962_s0 + $0x1e0] ss:$24 sps:$4 sm:$0xff]  }
  0xf4   :  { %3408 = vmatprep.mubr.bf16.mxu1 %v11962_v55  ;;  %3524 = vmatpush2.bf16.msra.mxu0 %v11277_v44 }
  0xf5   :  { %3525 = vmatprep.subr.bf16.mxu0 %v11291_v48  ;;  %3717 = vmatpush2.bf16.msra.mxu1 %v11304_v49 }
  0xf6   :  { %3718 = vmatprep.subr.bf16.mxu1 %v11309_v50 }
  0xf8   :  { %3526 = vmatpush2.bf16.msra.mxu0 %v11289_v52 }
  0xf9   :  { %3527 = vmatprep.subr.bf16.mxu0 %v11303_v56  ;;  %3719 = vmatpush2.bf16.msra.mxu1 %v11307_v57  ;;  %v11264_v57 = vld [vmem:[%s16962_s0 + $0x220] ss:$24 sps:$4 sm:$0xff]  }
  0xfa   :  { %3216 = vmatmul.mubr.bf16.gmra.mxu0 %v11223_v58  ;;  %3720 = vmatprep.subr.bf16.mxu1 %v11318_v60 }
  0xfb   :  { %3409 = vmatmul.mubr.bf16.gmra.mxu1 %v11963_v0  ;;  %3225 = vmatprep.mubr.bf16.mxu0 %v13086_v61 }
  0xfc   :  { %3418 = vmatprep.mubr.bf16.mxu1 %v12687_v37  ;;  %3528 = vmatpush2.bf16.msra.mxu0 %v11301_v59 }
  0xfd   :  { %3529 = vmatprep.subr.bf16.mxu0 %v11315_v62  ;;  %3721 = vmatpush2.bf16.msra.mxu1 %v11316_v63  ;;  %v11276_v62 = vld [vmem:[%s16962_s0 + $0x254] ss:$24 sps:$4 sm:$0xff]  }
  0xfe   :  { %3722 = vmatprep.subr.bf16.mxu1 %v11321_v29 }
 0x100   :  { %3530 = vmatpush2.bf16.msra.mxu0 %v11313_v1 }
 0x101   :  { %3723 = vmatpush2.bf16.msra.mxu1 %v11319_v2  ;;  %3885 = vmatprep.subr.bf16.mxu0 %v11324_v3  ;;  %v11969_v3 = vld [vmem:[%s16962_s0 + $0x210] ss:$24 sps:$4 sm:$0xff]  }
 0x102   :  { %v2761_v9 = vpop.f32.mrf.mxu0  ;;  %3226 = vmatmul.mubr.bf16.gmra.mxu0 %v13114_v5  ;;  %4078 = vmatprep.subr.bf16.mxu1 %v11348_v6  ;;  %v11970_v6 = vld [vmem:[%s16962_s0 + $0x244] ss:$24 sps:$4 sm:$0xff]  }
 0x103   :  { %v2954_v11 = vpop.f32.mrf.mxu1  ;;  %3419 = vmatmul.mubr.bf16.gmra.mxu1 %v12714_v46  ;;  %3235 = vmatprep.mubr.bf16.mxu0 %v11238_v4 }
 0x104   :  { %v13121_v12 = vadd.f32 %v2954_v11, %v2761_v9  ;;  %3428 = vmatprep.mubr.bf16.mxu1 %v11964_v13  ;;  %v2763_v14 = vpop.f32.mrf.mxu0 }
 0x105   :  { %v2956_v16 = vpop.f32.mrf.mxu1 }
 0x106   :  { %v13126_v18 = vadd.f32 %v2956_v16, %v2763_v14  ;;  %v2765_v20 = vpop.f32.mrf.mxu0  ;;  %v11274_v14 = vld [vmem:[%s16962_s0 + $0x250] ss:$24 sps:$4 sm:$0xff]  }
 0x107   :  { %v2958_v21 = vpop.f32.mrf.mxu1 }
 0x108   :  { %v13131_v22 = vadd.f32 %v2958_v21, %v2765_v20  ;;  %v2767_v24 = vpop.f32.mrf.mxu0  ;;  %v11288_v21 = vld [vmem:[%s16962_s0 + $0x284] ss:$24 sps:$4 sm:$0xff]  }
 0x109   :  { %v2960_v25 = vpop.f32.mrf.mxu1 }
 0x10a   :  { %v13136_v26 = vadd.f32 %v2960_v25, %v2767_v24  ;;  %v2771_v28 = vpop.f32.mrf.mxu0  ;;  %3236 = vmatmul.mubr.bf16.gmra.mxu0 %v11240_v19 }
 0x10b   :  { %v2964_v30 = vpop.f32.mrf.mxu1  ;;  %3429 = vmatmul.mubr.bf16.gmra.mxu1 %v11965_v32  ;;  %3245 = vmatprep.mubr.bf16.mxu0 %v11250_v23  ;;  %v11971_v32 = vld [vmem:[%s16962_s0 + $0x240] ss:$24 sps:$4 sm:$0xff]  }
 0x10c   :  { %v13141_v33 = vadd.f32 %v2964_v30, %v2771_v28  ;;  %3438 = vmatprep.mubr.bf16.mxu1 %v11966_v34  ;;  %v2773_v35 = vpop.f32.mrf.mxu0 }
 0x10d   :  { %v2966_v36 = vpop.f32.mrf.mxu1 }
 0x10e   :  { %v13146_v39 = vadd.f32 %v2966_v36, %v2773_v35  ;;  %v2775_v41 = vpop.f32.mrf.mxu0  ;;  %v11972_v35 = vld [vmem:[%s16962_s0 + $0x274] ss:$24 sps:$4 sm:$0xff]  }
 0x10f   :  { %v2968_v42 = vpop.f32.mrf.mxu1 }
 0x110   :  { %v13151_v43 = vadd.f32 %v2968_v42, %v2775_v41  ;;  %v2777_v44 = vpop.f32.mrf.mxu0  ;;  %v11286_v42 = vld [vmem:[%s16962_s0 + $0x280] ss:$24 sps:$4 sm:$0xff]  }
 0x111   :  { %v2970_v45 = vpop.f32.mrf.mxu1 }
 0x112   :  { %v13156_v48 = vadd.f32 %v2970_v45, %v2777_v44  ;;  %v2781_v49 = vpop.f32.mrf.mxu0  ;;  %3246 = vmatmul.mubr.bf16.gmra.mxu0 %v11252_v40 }
 0x113   :  { %v2974_v50 = vpop.f32.mrf.mxu1  ;;  %3439 = vmatmul.mubr.bf16.gmra.mxu1 %v11967_v51  ;;  %3255 = vmatprep.mubr.bf16.mxu0 %v11262_v10 }
 0x114   :  { %v13161_v15 = vadd.f32 %v2974_v50, %v2781_v49  ;;  %3448 = vmatprep.mubr.bf16.mxu1 %v11968_v17  ;;  %v2783_v52 = vpop.f32.mrf.mxu0  ;;  %v11300_v49 = vld [vmem:[%s16962_s0 + $0x2b4] ss:$24 sps:$4 sm:$0xff]  }
 0x115   :  { %v2976_v55 = vpop.f32.mrf.mxu1 }
 0x116   :  { %v13166_v56 = vadd.f32 %v2976_v55, %v2783_v52  ;;  %v2785_v58 = vpop.f32.mrf.mxu0 }
 0x117   :  { %v2978_v59 = vpop.f32.mrf.mxu1 }
 0x118   :  { %v13171_v60 = vadd.f32 %v2978_v59, %v2785_v58  ;;  %v2787_v63 = vpop.f32.mrf.mxu0  ;;  %v11974_v59 = vld [vmem:[%s16962_s0 + $0x2a4] ss:$24 sps:$4 sm:$0xff]  }
 0x119   :  { %v2980_v29 = vpop.f32.mrf.mxu1 }
 0x11a   :  { %v13176_v0 = vadd.f32 %v2980_v29, %v2787_v63  ;;  %v2791_v1 = vpop.f32.mrf.mxu0  ;;  %3256 = vmatmul.mubr.bf16.gmra.mxu0 %v11264_v57  ;;  %v11973_v57 = vld [vmem:[%s16962_s0 + $0x270] ss:$24 sps:$4 sm:$0xff]  }
 0x11b   :  { %v2984_v2 = vpop.f32.mrf.mxu1  ;;  %3449 = vmatmul.mubr.bf16.gmra.mxu1 %v11969_v3  ;;  %3265 = vmatprep.mubr.bf16.mxu0 %v11276_v62 }
 0x11c   :  { %v13181_v4 = vadd.f32 %v2984_v2, %v2791_v1  ;;  %3458 = vmatprep.mubr.bf16.mxu1 %v11970_v6  ;;  %v2793_v9 = vpop.f32.mrf.mxu0  ;;  %v11298_v1 = vld [vmem:[%s16962_s0 + $0x2b0] ss:$24 sps:$4 sm:$0xff]  }
 0x11d   :  { %v2986_v11 = vpop.f32.mrf.mxu1 }
 0x11e   :  { %v13186_v13 = vadd.f32 %v2986_v11, %v2793_v9  ;;  %v2795_v16 = vpop.f32.mrf.mxu0  ;;  %v11312_v9 = vld [vmem:[%s16962_s0 + $0x2e4] ss:$24 sps:$4 sm:$0xff]  }
 0x11f   :  { %v2988_v19 = vpop.f32.mrf.mxu1 }
 0x120   :  { %v13191_v20 = vadd.f32 %v2988_v19, %v2795_v16  ;;  %v2797_v23 = vpop.f32.mrf.mxu0 }
 0x121   :  { %v2990_v24 = vpop.f32.mrf.mxu1 }
 0x122   :  { %v13196_v25 = vadd.f32 %v2990_v24, %v2797_v23  ;;  %v2801_v28 = vpop.f32.mrf.mxu0  ;;  %3266 = vmatmul.mubr.bf16.gmra.mxu0 %v11274_v14  ;;  %v11975_v23 = vld [vmem:[%s16962_s0 + $0x2a0] ss:$24 sps:$4 sm:$0xff]  }
 0x123   :  { %v2994_v30 = vpop.f32.mrf.mxu1  ;;  %3459 = vmatmul.mubr.bf16.gmra.mxu1 %v11971_v32  ;;  %3275 = vmatprep.mubr.bf16.mxu0 %v11288_v21 }
 0x124   :  { %v13201_v34 = vadd.f32 %v2994_v30, %v2801_v28  ;;  %3468 = vmatprep.mubr.bf16.mxu1 %v11972_v35  ;;  %v2803_v36 = vpop.f32.mrf.mxu0  ;;  %v11976_v28 = vld [vmem:[%s16962_s0 + $0x2d4] ss:$24 sps:$4 sm:$0xff]  }
 0x125   :  { %v2996_v40 = vpop.f32.mrf.mxu1 }
 0x126   :  { %v13206_v41 = vadd.f32 %v2996_v40, %v2803_v36  ;;  %v2805_v10 = vpop.f32.mrf.mxu0  ;;  %v11310_v36 = vld [vmem:[%s16962_s0 + $0x2e0] ss:$24 sps:$4 sm:$0xff]  }
 0x127   :  { %v2998_v44 = vpop.f32.mrf.mxu1 }
 0x128   :  { %v13211_v45 = vadd.f32 %v2998_v44, %v2805_v10  ;;  %v2807_v50 = vpop.f32.mrf.mxu0 }
 0x129   :  { %v3000_v51 = vpop.f32.mrf.mxu1 }
 0x12a   :  { %v13216_v17 = vadd.f32 %v3000_v51, %v2807_v50  ;;  %v2811_v52 = vpop.f32.mrf.mxu0  ;;  %3276 = vmatmul.mubr.bf16.gmra.mxu0 %v11286_v42 }
 0x12b   :  { %v3004_v55 = vpop.f32.mrf.mxu1  ;;  %3469 = vmatmul.mubr.bf16.gmra.mxu1 %v11973_v57  ;;  %3285 = vmatprep.mubr.bf16.mxu0 %v11300_v49 }
 0x12c   :  { %v13221_v58 = vadd.f32 %v3004_v55, %v2811_v52  ;;  %3478 = vmatprep.mubr.bf16.mxu1 %v11974_v59  ;;  %v2813_v62 = vpop.f32.mrf.mxu0  ;;  %v11977_v55 = vld [vmem:[%s16962_s0 + $0x2d0] ss:$24 sps:$4 sm:$0xff]  }
 0x12d   :  { %v3006_v63 = vpop.f32.mrf.mxu1 }
 0x12e   :  { %v13226_v29 = vadd.f32 %v3006_v63, %v2813_v62  ;;  %v2815_v2 = vpop.f32.mrf.mxu0 }
 0x12f   :  { %v3008_v3 = vpop.f32.mrf.mxu1 }
 0x130   :  { %v13231_v6 = vadd.f32 %v3008_v3, %v2815_v2  ;;  %v2817_v11 = vpop.f32.mrf.mxu0 }
 0x131   :  { %v3010_v14 = vpop.f32.mrf.mxu1 }
 0x132   :  { %v13236_v16 = vadd.f32 %v3010_v14, %v2817_v11  ;;  %v2821_v19 = vpop.f32.mrf.mxu0  ;;  %3286 = vmatmul.mubr.bf16.gmra.mxu0 %v11298_v1  ;;  %v11322_v1 = vld [vmem:[%s16963_s1 + $0x160] ss:$24 sps:$4 sm:$0xff]  }
 0x133   :  { %v3014_v21 = vpop.f32.mrf.mxu1  ;;  %3479 = vmatmul.mubr.bf16.gmra.mxu1 %v11975_v23  ;;  %3295 = vmatprep.mubr.bf16.mxu0 %v11312_v9  ;;  %v11327_v9 = vld [vmem:[%s16963_s1 + $0x134] ss:$24 sps:$4 sm:$0xff]   ;;  %v11346_v14 = vld [vmem:[%s16963_s1 + $0x460] ss:$24 sps:$4 sm:$0xff]  }
 0x134   :  { %v13241_v24 = vadd.f32 %v3014_v21, %v2821_v19  ;;  %3488 = vmatprep.mubr.bf16.mxu1 %v11976_v28  ;;  %v2823_v30 = vpop.f32.mrf.mxu0  ;;  %v11354_v23 = vld [vmem:[%s16963_s1 + $0x434] ss:$24 sps:$4 sm:$0xff]  }
 0x135   :  { %v3016_v32 = vpop.f32.mrf.mxu1 }
 0x136   :  { %v13246_v35 = vadd.f32 %v3016_v32, %v2823_v30  ;;  %v2825_v40 = vpop.f32.mrf.mxu0  ;;  %v11325_v30 = vld [vmem:[%s16963_s1 + $0x130] ss:$24 sps:$4 sm:$0xff]  }
 0x137   :  { %v3018_v42 = vpop.f32.mrf.mxu1 }
 0x138   :  { %v13251_v10 = vadd.f32 %v3018_v42, %v2825_v40  ;;  %v2827_v44 = vpop.f32.mrf.mxu0  ;;  %v11330_v40 = vld [vmem:[%s16963_s1 + $0x104] ss:$24 sps:$4 sm:$0xff]  }
 0x139   :  { %v3020_v49 = vpop.f32.mrf.mxu1 }
 0x13a   :  { %v13253_v50 = vadd.f32 %v3020_v49, %v2827_v44  ;;  %v2831_v51 = vpop.f32.mrf.mxu0  ;;  %3296 = vmatmul.mubr.bf16.gmra.mxu0 %v11310_v36  ;;  %v11978_v44 = vld [vmem:[%s16962_s0 + $0x3c] ss:$24 sps:$4 sm:$0xff]   ;;  %v11352_v49 = vld [vmem:[%s16963_s1 + $0x430] ss:$24 sps:$4 sm:$0xff]  }
 0x13b   :  { %v3024_v52 = vpop.f32.mrf.mxu1  ;;  %3489 = vmatmul.mubr.bf16.gmra.mxu1 %v11977_v55  ;;  %3531 = vmatprep.mubr.bf16.mxu0 %v12365_v54  ;;  %v11979_v55 = vld [vmem:[%s16962_s0 + $0x44] ss:$24 sps:$4 sm:$0xff]  }
 0x13c   :  { %v13258_v57 = vadd.f32 %v3024_v52, %v2831_v51  ;;  %3724 = vmatprep.mubr.bf16.mxu1 %v12828_v27  ;;  %v2833_v59 = vpop.f32.mrf.mxu0  ;;  %v11985_v27 = vld [vmem:[%s16962_s0 + $0x70] ss:$24 sps:$4 sm:$0xff]  }
 0x13d   :  { %v3026_v62 = vpop.f32.mrf.mxu1 }
 0x13e   :  { %v13262_v63 = vadd.f32 %v3026_v62, %v2833_v59  ;;  %v2835_v2 = vpop.f32.mrf.mxu0 }
 0x13f   :  { %v3028_v3 = vpop.f32.mrf.mxu1 }
 0x140   :  { %v13270_v11 = vadd.f32 %v3028_v3, %v2835_v2  ;;  %v2837_v19 = vpop.f32.mrf.mxu0  ;;  %v11328_v2 = vld [vmem:[%s16963_s1 + $0x100] ss:$24 sps:$4 sm:$0xff]  }
 0x141   :  { %v3030_v21 = vpop.f32.mrf.mxu1 }
 0x142   :  { %v13278_v28 = vadd.f32 %v3030_v21, %v2837_v19  ;;  %v2841_v32 = vpop.f32.mrf.mxu0  ;;  %3532 = vmatmul.mubr.bf16.vlgmr.msra.gmra.mxu0 %v12419_v8  ;;  %v11333_v19 = vld [vmem:[%s16963_s1 + $0xd4] ss:$24 sps:$4 sm:$0xff]  }
 0x143   :  { %v3034_v36 = vpop.f32.mrf.mxu1  ;;  %3725 = vmatmul.mubr.bf16.vlgmr.msra.gmra.mxu1 %v12838_v31  ;;  %3886 = vmatpush1.bf16.msra.mxu0 %v11322_v1  ;;  %v11339_v31 = vld [vmem:[%s16963_s1 + $0x74] ss:$24 sps:$4 sm:$0xff]  }
 0x144   :  { %v13288_v42 = vadd.f32 %v3034_v36, %v2841_v32  ;;  %3541 = vmatprep.mubr.bf16.mxu0 %v11978_v44  ;;  %v2843_v51 = vpop.f32.mrf.mxu0  ;;  %3734 = vmatprep.mubr.bf16.mxu1 %v11979_v55 }
 0x145   :  { %v3036_v52 = vpop.f32.mrf.mxu1  ;;  %3887 = vmatprep.subr.bf16.mxu0 %v11327_v9  ;;  %4079 = vmatpush1.bf16.msra.mxu1 %v11346_v14  ;;  %v11358_v9 = vld [vmem:[%s16963_s1 + $0x400] ss:$24 sps:$4 sm:$0xff]   ;;  %v11360_v14 = vld [vmem:[%s16963_s1 + $0x404] ss:$24 sps:$4 sm:$0xff]  }
 0x146   :  { %v13299_v59 = vadd.f32 %v3036_v52, %v2843_v51  ;;  %v2845_v62 = vpop.f32.mrf.mxu0  ;;  %4080 = vmatprep.subr.bf16.mxu1 %v11354_v23  ;;  %v11363_v23 = vld [vmem:[%s16963_s1 + $0x3d4] ss:$24 sps:$4 sm:$0xff]   ;;  %v11980_v51 = vld [vmem:[%s16962_s0 + $0x38] ss:$24 sps:$4 sm:$0xff]  }
 0x147   :  { %v3038_v1 = vpop.f32.mrf.mxu1  ;;  %3888 = vmatpush1.bf16.msra.mxu0 %v11325_v30  ;;  %v11981_v52 = vld [vmem:[%s16962_s0 + $0x40] ss:$24 sps:$4 sm:$0xff]  }
 0x148   :  { %v13304_v3 = vadd.f32 %v3038_v1, %v2845_v62  ;;  %v2847_v21 = vpop.f32.mrf.mxu0  ;;  %3889 = vmatprep.subr.bf16.mxu0 %v11330_v40  ;;  %v11331_v40 = vld [vmem:[%s16963_s1 + $0xd0] ss:$24 sps:$4 sm:$0xff]   ;;  %v11983_v62 = vld [vmem:[%s16962_s0 + $0x74] ss:$24 sps:$4 sm:$0xff]   ;;  %v11336_v1 = vld [vmem:[%s16963_s1 + $0xa4] ss:$24 sps:$4 sm:$0xff]  }
 0x149   :  { %v3040_v32 = vpop.f32.mrf.mxu1  ;;  %4081 = vmatpush1.bf16.msra.mxu1 %v11352_v49  ;;  %v11982_v49 = vld [vmem:[%s16962_s0 + $0x6c] ss:$24 sps:$4 sm:$0xff]  }
 0x14a   :  { %v13318_v30 = vadd.f32 %v3040_v32, %v2847_v21  ;;  %v2851_v36 = vpop.f32.mrf.mxu0  ;;  %3542 = vmatmul.mubr.bf16.gmra.mxu0 %v11980_v51  ;;  %v11361_v21 = vld [vmem:[%s16963_s1 + $0x3d0] ss:$24 sps:$4 sm:$0xff]   ;;  %4082 = vmatprep.subr.bf16.mxu1 %v11360_v14 }
 0x14b   :  { %v3044_v44 = vpop.f32.mrf.mxu1  ;;  %3735 = vmatmul.mubr.bf16.gmra.mxu1 %v11981_v52  ;;  %3551 = vmatprep.mubr.bf16.mxu0 %v11982_v49  ;;  %v11334_v49 = vld [vmem:[%s16963_s1 + $0xa0] ss:$24 sps:$4 sm:$0xff]  }
 0x14c   :  { %v13329_v55 = vadd.f32 %v3044_v44, %v2851_v36  ;;  %3744 = vmatprep.mubr.bf16.mxu1 %v11983_v62  ;;  %v2853_v32 = vpop.f32.mrf.mxu0  ;;  %3890 = vmatpush1.bf16.msra.mxu0 %v11328_v2  ;;  %v11367_v2 = vld [vmem:[%s16963_s1 + $0x3a0] ss:$24 sps:$4 sm:$0xff]  }
 0x14d   :  { %v3046_v36 = vpop.f32.mrf.mxu1  ;;  %3891 = vmatprep.subr.bf16.mxu0 %v11333_v19  ;;  %4083 = vmatpush1.bf16.msra.mxu1 %v11358_v9  ;;  %v11369_v19 = vld [vmem:[%s16963_s1 + $0x3a4] ss:$24 sps:$4 sm:$0xff]  }
 0x14e   :  { %v13343_v44 = vadd.f32 %v3046_v36, %v2853_v32  ;;  %v2855_v51 = vpop.f32.mrf.mxu0  ;;  %4084 = vmatprep.subr.bf16.mxu1 %v11363_v23  ;;  %v11372_v23 = vld [vmem:[%s16963_s1 + $0x374] ss:$24 sps:$4 sm:$0xff]  }
 0x14f   :  { %v3048_v52 = vpop.f32.mrf.mxu1 }
 0x150   :  { %v13348_v62 = vadd.f32 %v3048_v52, %v2855_v51  ;;  %v2857_v9 = vpop.f32.mrf.mxu0  ;;  %3892 = vmatpush1.bf16.msra.mxu0 %v11331_v40  ;;  %v11984_v52 = vld [vmem:[%s16962_s0 + $0x68] ss:$24 sps:$4 sm:$0xff]  }
 0x151   :  { %v3050_v14 = vpop.f32.mrf.mxu1  ;;  %3893 = vmatprep.subr.bf16.mxu0 %v11336_v1  ;;  %4085 = vmatpush1.bf16.msra.mxu1 %v11361_v21  ;;  %v11337_v40 = vld [vmem:[%s16963_s1 + $0x70] ss:$24 sps:$4 sm:$0xff]   ;;  %v11986_v1 = vld [vmem:[%s16962_s0 + $0x9c] ss:$24 sps:$4 sm:$0xff]  }
 0x152   :  { %v13362_v32 = vadd.f32 %v3050_v14, %v2857_v9  ;;  %v2861_v36 = vpop.f32.mrf.mxu0  ;;  %3552 = vmatmul.mubr.bf16.gmra.mxu0 %v11984_v52  ;;  %v11987_v21 = vld [vmem:[%s16962_s0 + $0xa4] ss:$24 sps:$4 sm:$0xff]   ;;  %v11370_v14 = vld [vmem:[%s16963_s1 + $0x370] ss:$24 sps:$4 sm:$0xff]   ;;  %4086 = vmatprep.subr.bf16.mxu1 %v11369_v19 }
 0x153   :  { %v3054_v51 = vpop.f32.mrf.mxu1  ;;  %3745 = vmatmul.mubr.bf16.gmra.mxu1 %v11985_v27  ;;  %3561 = vmatprep.mubr.bf16.mxu0 %v11986_v1  ;;  %v11342_v27 = vld [vmem:[%s16963_s1 + $0x44] ss:$24 sps:$4 sm:$0xff]  }
 0x154   :  { %v13373_v9 = vadd.f32 %v3054_v51, %v2861_v36  ;;  %3754 = vmatprep.mubr.bf16.mxu1 %v11987_v21  ;;  %v2863_v36 = vpop.f32.mrf.mxu0  ;;  %3894 = vmatpush1.bf16.msra.mxu0 %v11334_v49  ;;  %v11340_v21 = vld [vmem:[%s16963_s1 + $0x40] ss:$24 sps:$4 sm:$0xff]  }
 0x155   :  { %v3056_v51 = vpop.f32.mrf.mxu1  ;;  %3895 = vmatprep.subr.bf16.mxu0 %v11339_v31  ;;  %4087 = vmatpush1.bf16.msra.mxu1 %v11367_v2  ;;  %v11376_v49 = vld [vmem:[%s16963_s1 + $0x340] ss:$24 sps:$4 sm:$0xff]   ;;  %v11378_v31 = vld [vmem:[%s16963_s1 + $0x344] ss:$24 sps:$4 sm:$0xff]  }
 0x156   :  { %17013 = vst [vmem:[#allocation15_spill] sm:$0xff] %v13373_v9  ;;  %v13387_v52 = vadd.f32 %v3056_v51, %v2863_v36  ;;  %v2865_v1 = vpop.f32.mrf.mxu0  ;;  %4088 = vmatprep.subr.bf16.mxu1 %v11372_v23  ;;  %v11345_v9 = vld [vmem:[%s16963_s1 + $0x14] ss:$24 sps:$4 sm:$0xff]  }
 0x157   :  { %v3058_v46 = vpop.f32.mrf.mxu1 }
 0x158   :  { %17014 = vst [vmem:[#allocation16_spill] sm:$0xff] %v13387_v52  ;;  %v13392_v37 = vadd.f32 %v3058_v46, %v2865_v1  ;;  %v2867_v2 = vpop.f32.mrf.mxu0  ;;  %3896 = vmatpush1.bf16.msra.mxu0 %v11337_v40  ;;  %v11381_v46 = vld [vmem:[%s16963_s1 + $0x314] ss:$24 sps:$4 sm:$0xff]   ;;  %v11988_v1 = vld [vmem:[%s16962_s0 + $0x98] ss:$24 sps:$4 sm:$0xff]  }
 0x159   :  { %v3060_v19 = vpop.f32.mrf.mxu1  ;;  %3897 = vmatprep.subr.bf16.mxu0 %v11342_v27  ;;  %4089 = vmatpush1.bf16.msra.mxu1 %v11370_v14  ;;  %v11343_v40 = vld [vmem:[%s16963_s1 + $0x10] ss:$24 sps:$4 sm:$0xff]   ;;  %v11990_v27 = vld [vmem:[%s16962_s0 + $0xcc] ss:$24 sps:$4 sm:$0xff]  }
 0x15a   :  { %17015 = vst [vmem:[#allocation17_spill] sm:$0xff] %v13392_v37  ;;  %v13406_v23 = vadd.f32 %v3060_v19, %v2867_v2  ;;  %v2871_v36 = vpop.f32.mrf.mxu0  ;;  %3562 = vmatmul.mubr.bf16.gmra.mxu0 %v11988_v1  ;;  %v11989_v37 = vld [vmem:[%s16962_s0 + $0xa0] ss:$24 sps:$4 sm:$0xff]   ;;  %v11991_v14 = vld [vmem:[%s16962_s0 + $0xd4] ss:$24 sps:$4 sm:$0xff]   ;;  %4090 = vmatprep.subr.bf16.mxu1 %v11378_v31 }
 0x15b   :  { %v3064_v51 = vpop.f32.mrf.mxu1  ;;  %3755 = vmatmul.mubr.bf16.gmra.mxu1 %v11989_v37  ;;  %3571 = vmatprep.mubr.bf16.mxu0 %v11990_v27  ;;  %v11351_v37 = vld [vmem:[%s16963_s1 + $0x2e4] ss:$24 sps:$4 sm:$0xff]   ;;  %v11379_v19 = vld [vmem:[%s16963_s1 + $0x310] ss:$24 sps:$4 sm:$0xff]   ;;  %v11357_v52 = vld [vmem:[%s16963_s1 + $0x2b4] ss:$24 sps:$4 sm:$0xff]  }
 0x15c   :  { %17016 = vst [vmem:[#allocation18_spill] sm:$0xff] %v13406_v23  ;;  %v13417_v2 = vadd.f32 %v3064_v51, %v2871_v36  ;;  %3764 = vmatprep.mubr.bf16.mxu1 %v11991_v14  ;;  %v2873_v36 = vpop.f32.mrf.mxu0  ;;  %3898 = vmatpush1.bf16.msra.mxu0 %v11340_v21  ;;  %v11349_v14 = vld [vmem:[%s16963_s1 + $0x2e0] ss:$24 sps:$4 sm:$0xff]  }
 0x15d   :  { %v3066_v51 = vpop.f32.mrf.mxu1  ;;  %3899 = vmatprep.subr.bf16.mxu0 %v11345_v9  ;;  %4091 = vmatpush1.bf16.msra.mxu1 %v11376_v49  ;;  %v11385_v21 = vld [vmem:[%s16963_s1 + $0x5e0] ss:$24 sps:$4 sm:$0xff]   ;;  %v11387_v9 = vld [vmem:[%s16963_s1 + $0x5e4] ss:$24 sps:$4 sm:$0xff]  }
 0x15e   :  { %17017 = vst [vmem:[#allocation19_spill] sm:$0xff] %v13417_v2  ;;  %v13431_v1 = vadd.f32 %v3066_v51, %v2873_v36  ;;  %v2875_v27 = vpop.f32.mrf.mxu0  ;;  %4092 = vmatprep.subr.bf16.mxu1 %v11381_v46  ;;  %v11390_v46 = vld [vmem:[%s16963_s1 + $0x5b4] ss:$24 sps:$4 sm:$0xff]  }
 0x15f   :  { %v3068_v2 = vpop.f32.mrf.mxu1 }
 0x160   :  { %17018 = vst [vmem:[#allocation20_spill] sm:$0xff] %v13431_v1  ;;  %v13436_v23 = vadd.f32 %v3068_v2, %v2875_v27  ;;  %v2877_v49 = vpop.f32.mrf.mxu0  ;;  %3900 = vmatpush1.bf16.msra.mxu0 %v11343_v40  ;;  %v11992_v27 = vld [vmem:[%s16962_s0 + $0xc8] ss:$24 sps:$4 sm:$0xff]   ;;  %v11375_v1 = vld [vmem:[%s16963_s1 + $0x254] ss:$24 sps:$4 sm:$0xff]  }
 0x161   :  { %v3070_v31 = vpop.f32.mrf.mxu1  ;;  %3901 = vmatprep.subr.bf16.mxu0 %v11351_v37  ;;  %4093 = vmatpush1.bf16.msra.mxu1 %v11379_v19  ;;  %v11355_v40 = vld [vmem:[%s16963_s1 + $0x2b0] ss:$24 sps:$4 sm:$0xff]   ;;  %v11994_v37 = vld [vmem:[%s16962_s0 + $0xfc] ss:$24 sps:$4 sm:$0xff]  }
 0x162   :  { %17019 = vst [vmem:[#allocation21_spill] sm:$0xff] %v13436_v23  ;;  %v13450_v2 = vadd.f32 %v3070_v31, %v2877_v49  ;;  %v2881_v36 = vpop.f32.mrf.mxu0  ;;  %3572 = vmatmul.mubr.bf16.gmra.mxu0 %v11992_v27  ;;  %v11993_v23 = vld [vmem:[%s16962_s0 + $0xd0] ss:$24 sps:$4 sm:$0xff]   ;;  %v11995_v19 = vld [vmem:[%s16962_s0 + $0x104] ss:$24 sps:$4 sm:$0xff]   ;;  %4094 = vmatprep.subr.bf16.mxu1 %v11387_v9 }
 0x163   :  { %v3074_v51 = vpop.f32.mrf.mxu1  ;;  %3765 = vmatmul.mubr.bf16.gmra.mxu1 %v11993_v23  ;;  %3581 = vmatprep.mubr.bf16.mxu0 %v11994_v37  ;;  %v11366_v23 = vld [vmem:[%s16963_s1 + $0x284] ss:$24 sps:$4 sm:$0xff]   ;;  %v11388_v31 = vld [vmem:[%s16963_s1 + $0x5b0] ss:$24 sps:$4 sm:$0xff]  }
 0x164   :  { %17020 = vst [vmem:[#allocation22_spill] sm:$0xff] %v13450_v2  ;;  %v13461_v49 = vadd.f32 %v3074_v51, %v2881_v36  ;;  %3774 = vmatprep.mubr.bf16.mxu1 %v11995_v19  ;;  %v2883_v36 = vpop.f32.mrf.mxu0  ;;  %3902 = vmatpush2.bf16.msra.mxu0 %v11349_v14  ;;  %v11364_v19 = vld [vmem:[%s16963_s1 + $0x280] ss:$24 sps:$4 sm:$0xff]  }
 0x165   :  { %v3076_v51 = vpop.f32.mrf.mxu1  ;;  %3903 = vmatprep.subr.bf16.mxu0 %v11357_v52  ;;  %4095 = vmatpush2.bf16.msra.mxu1 %v11385_v21  ;;  %v11394_v14 = vld [vmem:[%s16963_s1 + $0x580] ss:$24 sps:$4 sm:$0xff]   ;;  %v11396_v52 = vld [vmem:[%s16963_s1 + $0x584] ss:$24 sps:$4 sm:$0xff]  }
 0x166   :  { %17021 = vst [vmem:[#allocation23_spill] sm:$0xff] %v13461_v49  ;;  %v13475_v27 = vadd.f32 %v3076_v51, %v2883_v36  ;;  %v2885_v37 = vpop.f32.mrf.mxu0  ;;  %4096 = vmatprep.subr.bf16.mxu1 %v11390_v46  ;;  %v11399_v46 = vld [vmem:[%s16963_s1 + $0x554] ss:$24 sps:$4 sm:$0xff]  }
 0x167   :  { %v3078_v49 = vpop.f32.mrf.mxu1 }
 0x168   :  { %17022 = vst [vmem:[#allocation24_spill] sm:$0xff] %v13475_v27  ;;  %v13480_v2 = vadd.f32 %v3078_v49, %v2885_v37  ;;  %v2887_v21 = vpop.f32.mrf.mxu0  ;;  %3904 = vmatpush2.bf16.msra.mxu0 %v11355_v40  ;;  %v11996_v37 = vld [vmem:[%s16962_s0 + $0xf8] ss:$24 sps:$4 sm:$0xff]   ;;  %v11393_v27 = vld [vmem:[%s16963_s1 + $0x1f4] ss:$24 sps:$4 sm:$0xff]  }
 0x169   :  { %v3080_v9 = vpop.f32.mrf.mxu1  ;;  %3905 = vmatprep.subr.bf16.mxu0 %v11366_v23  ;;  %4097 = vmatpush2.bf16.msra.mxu1 %v11388_v31  ;;  %v11373_v40 = vld [vmem:[%s16963_s1 + $0x250] ss:$24 sps:$4 sm:$0xff]   ;;  %v11998_v23 = vld [vmem:[%s16962_s0 + $0x12c] ss:$24 sps:$4 sm:$0xff]  }
 0x16a   :  { %17023 = vst [vmem:[#allocation25_spill] sm:$0xff] %v13480_v2  ;;  %v13494_v49 = vadd.f32 %v3080_v9, %v2887_v21  ;;  %v2891_v36 = vpop.f32.mrf.mxu0  ;;  %3582 = vmatmul.mubr.bf16.gmra.mxu0 %v11996_v37  ;;  %v11997_v2 = vld [vmem:[%s16962_s0 + $0x100] ss:$24 sps:$4 sm:$0xff]   ;;  %v11999_v31 = vld [vmem:[%s16962_s0 + $0x134] ss:$24 sps:$4 sm:$0xff]   ;;  %4098 = vmatprep.subr.bf16.mxu1 %v11396_v52 }
 0x16b   :  { %v3084_v51 = vpop.f32.mrf.mxu1  ;;  %3775 = vmatmul.mubr.bf16.gmra.mxu1 %v11997_v2  ;;  %3591 = vmatprep.mubr.bf16.mxu0 %v11998_v23  ;;  %v11384_v2 = vld [vmem:[%s16963_s1 + $0x224] ss:$24 sps:$4 sm:$0xff]   ;;  %v11397_v9 = vld [vmem:[%s16963_s1 + $0x550] ss:$24 sps:$4 sm:$0xff]  }
 0x16c   :  { %17024 = vst [vmem:[#allocation26_spill] sm:$0xff] %v13494_v49  ;;  %v13505_v21 = vadd.f32 %v3084_v51, %v2891_v36  ;;  %3784 = vmatprep.mubr.bf16.mxu1 %v11999_v31  ;;  %v2893_v36 = vpop.f32.mrf.mxu0  ;;  %3906 = vmatpush2.bf16.msra.mxu0 %v11364_v19  ;;  %v11382_v31 = vld [vmem:[%s16963_s1 + $0x220] ss:$24 sps:$4 sm:$0xff]  }
 0x16d   :  { %v3086_v51 = vpop.f32.mrf.mxu1  ;;  %3907 = vmatprep.subr.bf16.mxu0 %v11375_v1  ;;  %4099 = vmatpush2.bf16.msra.mxu1 %v11394_v14  ;;  %v11403_v19 = vld [vmem:[%s16963_s1 + $0x520] ss:$24 sps:$4 sm:$0xff]   ;;  %v11405_v1 = vld [vmem:[%s16963_s1 + $0x524] ss:$24 sps:$4 sm:$0xff]  }
 0x16e   :  { %17025 = vst [vmem:[#allocation27_spill] sm:$0xff] %v13505_v21  ;;  %v13519_v37 = vadd.f32 %v3086_v51, %v2893_v36  ;;  %v2895_v23 = vpop.f32.mrf.mxu0  ;;  %4100 = vmatprep.subr.bf16.mxu1 %v11399_v46  ;;  %v11408_v46 = vld [vmem:[%s16963_s1 + $0x4f4] ss:$24 sps:$4 sm:$0xff]  }
 0x16f   :  { %v3088_v21 = vpop.f32.mrf.mxu1 }
 0x170   :  { %v13524_v49 = vadd.f32 %v3088_v21, %v2895_v23  ;;  %v2897_v14 = vpop.f32.mrf.mxu0  ;;  %3908 = vmatpush2.bf16.msra.mxu0 %v11373_v40  ;;  %v12000_v23 = vld [vmem:[%s16962_s0 + $0x128] ss:$24 sps:$4 sm:$0xff]  }
 0x171   :  { %v3090_v52 = vpop.f32.mrf.mxu1  ;;  %3909 = vmatprep.subr.bf16.mxu0 %v11384_v2  ;;  %4101 = vmatpush2.bf16.msra.mxu1 %v11397_v9  ;;  %v11391_v40 = vld [vmem:[%s16963_s1 + $0x1f0] ss:$24 sps:$4 sm:$0xff]   ;;  %v12002_v2 = vld [vmem:[%s16962_s0 + $0x15c] ss:$24 sps:$4 sm:$0xff]  }
 0x172   :  { %17026 = vst [vmem:[#allocation28_spill] sm:$0xff] %v13524_v49  ;;  %v13538_v21 = vadd.f32 %v3090_v52, %v2897_v14  ;;  %v2901_v36 = vpop.f32.mrf.mxu0  ;;  %3592 = vmatmul.mubr.bf16.gmra.mxu0 %v12000_v23  ;;  %v12001_v49 = vld [vmem:[%s16962_s0 + $0x130] ss:$24 sps:$4 sm:$0xff]   ;;  %v12003_v9 = vld [vmem:[%s16962_s0 + $0x164] ss:$24 sps:$4 sm:$0xff]   ;;  %4102 = vmatprep.subr.bf16.mxu1 %v11405_v1 }
 0x173   :  { %v3094_v51 = vpop.f32.mrf.mxu1  ;;  %3785 = vmatmul.mubr.bf16.gmra.mxu1 %v12001_v49  ;;  %3601 = vmatprep.mubr.bf16.mxu0 %v12002_v2 }
 0x174   :  { %17027 = vst [vmem:[#allocation29_spill] sm:$0xff] %v13538_v21  ;;  %v13549_v14 = vadd.f32 %v3094_v51, %v2901_v36  ;;  %3794 = vmatprep.mubr.bf16.mxu1 %v12003_v9  ;;  %v2903_v52 = vpop.f32.mrf.mxu0  ;;  %3910 = vmatpush2.bf16.msra.mxu0 %v11382_v31 }
 0x175   :  { %v3096_v23 = vpop.f32.mrf.mxu1 }
 0x176   :  { %17028 = vst [vmem:[#allocation30_spill] sm:$0xff] %v13549_v14 }
 0x177   :  { %15 = vsyncpa [#allocation5], 0  ;;  %v13557_v49 = vadd.f32 %v3096_v23, %v2903_v52  ;;  %3911 = vmatprep.subr.bf16.mxu0 %v11393_v27  ;;  %v11402_v36 = vld [vmem:[%s16963_s1 + $0x1c4] ss:$24 sps:$4 sm:$0xff]   ;;  %4103 = vmatpush2.bf16.msra.mxu1 %v11403_v19  ;;  %v11406_v51 = vld [vmem:[%s16963_s1 + $0x4f0] ss:$24 sps:$4 sm:$0xff]   ;;  %v2905_v2 = vpop.f32.mrf.mxu0  ;;  %v3098_v14 = vpop.f32.mrf.mxu1  ;;  %v16976_v31 = vlaneseq }
 0x178   :  { %4104 = vmatprep.subr.bf16.mxu1 %v11408_v46  ;;  %v13565_v9 = vadd.f32 %v3098_v14, %v2905_v2  ;;  %3912 = vmatpush2.bf16.msra.mxu0 %v11391_v40  ;;  %v11400_v27 = vld [vmem:[%s16963_s1 + $0x1c0] ss:$24 sps:$4 sm:$0xff]   ;;  %v11414_v19 = vld [vmem:[%s16963_s1 + $0x4c4] ss:$24 sps:$4 sm:$0xff]   ;;  %v11411_v46 = vld [vmem:[%s16963_s1 + $0x194] ss:$24 sps:$4 sm:$0xff]  }
 0x179   :  { %v2907_v1 = vpop.f32.mrf.mxu0  ;;  %v3100_v21 = vpop.f32.mrf.mxu1  ;;  %3913 = vmatprep.subr.bf16.mxu0 %v11402_v36  ;;  %v11412_v40 = vld [vmem:[%s16963_s1 + $0x4c0] ss:$24 sps:$4 sm:$0xff]   ;;  %v11417_v36 = vld [vmem:[%s16963_s1 + $0x494] ss:$24 sps:$4 sm:$0xff]   ;;  %vm4878_vm0 = vcmask 1040384   ;;  %vm9375_vm1 = vcmask 25616  }
 0x17a   :  { %17029 = vst [vmem:[#allocation31_spill] sm:$0xff] %v13565_v9  ;;  %v13573_v52 = vadd.f32 %v3100_v21, %v2907_v1  ;;  %v12004_v2 = vld [vmem:[%s16962_s0 + $0x158] ss:$24 sps:$4 sm:$0xff]   ;;  %v13595_v1 = vshrl.u32 %v16976_v31, 7  ;;  %vm9386_vm2 = vcmask 9216   ;;  %vm9407_vm4 = vcmask 1024  }
 0x17b   :  { %4105 = vmatpush2.bf16.msra.mxu1 %v11406_v51  ;;  %v2911_v14 = vpop.f32.mrf.mxu0  ;;  %v3104_v23 = vpop.f32.mrf.mxu1  ;;  %3602 = vmatmul.mubr.bf16.gmra.mxu0 %v12004_v2  ;;  %v12005_v21 = vld [vmem:[%s16962_s0 + $0x160] ss:$24 sps:$4 sm:$0xff]   ;;  %s12153_s14 = smov [#allocation4]   ;;  %vm9421_vm7 = vcmask 0  }
 0x17c   :  { %17030 = vst [vmem:[#allocation32_spill] sm:$0xff] %v13573_v52  ;;  %3795 = vmatmul.mubr.bf16.gmra.mxu1 %v12005_v21  ;;  %v13590_v51 = vadd.f32 %v3104_v23, %v2911_v14  ;;  %3611 = vmatprep.mubr.bf16.mxu0 %v12689_v38  ;;  %17031 = vst [vmem:[#allocation33_spill] sm:$0xff] %v13595_v1  ;;  %v11409_v21 = vld [vmem:[%s16963_s1 + $0x190] ss:$24 sps:$4 sm:$0xff]   ;;  %v11420_v23 = vld [vmem:[%s16963_s1 + $0x764] ss:$24 sps:$4 sm:$0xff]  }
 0x17d   :  { %3804 = vmatprep.mubr.bf16.mxu1 %v13086_v61  ;;  %v2913_v52 = vpop.f32.mrf.mxu0  ;;  %v3106_v2 = vpop.f32.mrf.mxu1  ;;  %3914 = vmatpush2.bf16.msra.mxu0 %v11400_v27  ;;  %v11415_v14 = vld [vmem:[%s16963_s1 + $0x490] ss:$24 sps:$4 sm:$0xff]   ;;  %v16979_v38 = vsub.s32 0, %v13595_v1  ;;  %s9431_s15 = sshll.u32 %s12153_s14, 4  ;;  %s9432_s15 = int_to_ptr.vmem [resolvable:$true] %s9431_s15 }
 0x17e   :  { %4106 = vmatprep.subr.bf16.mxu1 %v11414_v19  ;;  %v13600_v9 = vadd.f32 %v3106_v2, %v2913_v52  ;;  %3915 = vmatprep.subr.bf16.mxu0 %v11411_v46  ;;  %v7319_v46 = vld [vmem:[%s16966_s4] sm:$0x3f]  ;;  %s12126_s17 = scalar_lea.vmem %s9432_s15, 16  ;;  %s12130_s18 = scalar_lea.vmem %s9432_s15, 32 }
 0x17f   :  { %4107 = vmatpush2.bf16.msra.mxu1 %v11412_v40  ;;  %v2915_v31 = vpop.f32.mrf.mxu0  ;;  %v3108_v61 = vpop.f32.mrf.mxu1  ;;  %v11444_v40 = vld [vmem:[%s16964_s2 + $0x154] ss:$24 sps:$4 sm:$0xff]   ;;  %p12127_p0 = scmp.ne.s32.totalorder %s9432_s15, %s12126_s17  ;;  %p12131_p1 = scmp.lt.s32.totalorder %s9432_s15, %s9432_s15 }
 0x180   :  { %17032 = vst [vmem:[#allocation34_spill] sm:$0xff] %v13600_v9  ;;  %4108 = vmatprep.subr.bf16.mxu1 %v11417_v36  ;;  %v13608_v27 = vadd.f32 %v3108_v61, %v2915_v31  ;;  %v16982_v9 = vsub.s32 1, %v13595_v1  ;;  %p12132_p2 = scmp.lt.s32.totalorder %s12130_s18, %s12126_s17 }
 0x181   :  { %v2917_v19 = vpop.f32.mrf.mxu0  ;;  %v3110_v52 = vpop.f32.mrf.mxu1  ;;  %3916 = vmatpush2.bf16.msra.mxu0 %v11409_v21  ;;  %v13627_v21 = vrot.slane %v7319_v46, %v16979_v38 }
 0x182   :  { %v13617_v2 = vadd.f32 %v3110_v52, %v2917_v19  ;;  %4271 = vmatprep.subr.bf16.mxu0 %v11420_v23  ;;  %v12006_v19 = vld [vmem:[%s16962_s0 + $0x1bc] ss:$24 sps:$4 sm:$0xff]   ;;  %p12133_p3 = por %p12132_p2, %p12131_p1 }
 0x183   :  { %4109 = vmatpush2.bf16.msra.mxu1 %v11415_v14  ;;  %v3147_v61 = vpop.f32.mrf.mxu0  ;;  %v13620_v31 = vpop.f32.mrf.mxu1  ;;  %3612 = vmatmul.mubr.bf16.gmra.mxu0 %v12716_v47  ;;  %v12007_v14 = vld [vmem:[%s16962_s0 + $0x1c4] ss:$24 sps:$4 sm:$0xff]  }
 0x184   :  { %17033 = vst [vmem:[#allocation35_spill] sm:$0xff] %v13617_v2  ;;  %17034 = vst [vmem:[#allocation36_spill] sm:$0xff] %v13620_v31  ;;  %3805 = vmatmul.mubr.bf16.gmra.mxu1 %v13114_v5  ;;  %v3148_v36 = vadd.f32 %v3147_v61, %v13121_v12  ;;  %3621 = vmatprep.mubr.bf16.mxu0 %v12006_v19  ;;  %v13640_v61 = vrot.slane %v7319_v46, %v16982_v9  ;;  %v12008_v46 = vld [vmem:[%s16962_s0 + $0x1b8] ss:$24 sps:$4 sm:$0xff]   ;;  %p12134_p4 = pnand %p12133_p3, %p12127_p0 }
 0x185   :  { %3814 = vmatprep.mubr.bf16.mxu1 %v12007_v14  ;;  %v3149_v23 = vpop.f32.mrf.mxu0  ;;  %v13635_v52 = vpop.f32.mrf.mxu1  ;;  %6621 = vmatprep.subr.bf16.mxu1 %v11444_v40 }
 0x186   :  { %17035 = vst [vmem:[#allocation37_spill] sm:$0xff] %v13635_v52  ;;  %v3150_v12 = vadd.f32 %v3149_v23, %v13126_v18  ;;  %v7351_v19 = vadd.f32 %v13627_v21, %v3148_v36 }
 0x187   :  { %v3151_v38 = vpop.f32.mrf.mxu0  ;;  %v13642_v5 = vpop.f32.mrf.mxu1 }
 0x188   :  { %17036 = vst [vmem:[#allocation38_spill] sm:$0xff] %v13642_v5  ;;  %v3152_v31 = vadd.f32 %v3151_v38, %v13131_v22  ;;  %v7352_v14 = vadd.f32 %v13640_v61, %v3150_v12  ;;  %v12009_v38 = vld [vmem:[%s16962_s0 + $0x1c0] ss:$24 sps:$4 sm:$0xff]   ;;  %v7543_v22 = vmax.f32 %v7351_v19, 0.0 }
 0x189   :  { %v3153_v47 = vpop.f32.mrf.mxu0  ;;  %v13646_v2 = vpop.f32.mrf.mxu1 }
 0x18a   :  { %17037 = vst [vmem:[#allocation39_spill] sm:$0xff] %v13646_v2  ;;  %v7357_v40 = vadd.f32 %v13627_v21, %v3152_v31  ;;  %v3154_v18 = vadd.f32 %v3153_v47, %v13136_v26  ;;  %v12010_v47 = vld [vmem:[%s16962_s0 + $0x1ec] ss:$24 sps:$4 sm:$0xff]  }
 0x18b   :  { %v3157_v23 = vpop.f32.mrf.mxu0  ;;  %v13651_v52 = vpop.f32.mrf.mxu1  ;;  %3622 = vmatmul.mubr.bf16.gmra.mxu0 %v12008_v46  ;;  %v12011_v26 = vld [vmem:[%s16962_s0 + $0x1f4] ss:$24 sps:$4 sm:$0xff]  }
 0x18c   :  { %17038 = vst [vmem:[#allocation40_spill] sm:$0xff] %v13651_v52  ;;  %3815 = vmatmul.mubr.bf16.gmra.mxu1 %v12009_v38  ;;  %v7549_v36 = vmax.f32 %v7357_v40, 0.0  ;;  %v7358_v12 = vadd.f32 %v13640_v61, %v3154_v18  ;;  %v3158_v31 = vadd.f32 %v3157_v23, %v13141_v33  ;;  %3631 = vmatprep.mubr.bf16.mxu0 %v12010_v47  ;;  %v7544_v38 = vmax.f32 %v7352_v14, 0.0 }
 0x18d   :  { %3824 = vmatprep.mubr.bf16.mxu1 %v12011_v26  ;;  %v3159_v46 = vpop.f32.mrf.mxu0  ;;  %v13667_v9 = vpop.f32.mrf.mxu1 }
 0x18e   :  { %17039 = vst [vmem:[#allocation41_spill] sm:$0xff] %v13667_v9  ;;  %v13669_v19 = vpack.c.bf16 %v7549_v36, %v7543_v22  ;;  %v7550_v40 = vmax.f32 %v7358_v12, 0.0  ;;  %v3160_v18 = vadd.f32 %v3159_v46, %v13146_v39  ;;  %v7363_v52 = vadd.f32 %v13627_v21, %v3158_v31  ;;  %v12012_v12 = vld [vmem:[%s16962_s0 + $0x1e8] ss:$24 sps:$4 sm:$0xff]  }
 0x18f   :  { %v3161_v33 = vpop.f32.mrf.mxu0  ;;  %v13672_v23 = vpop.f32.mrf.mxu1 }
 0x190   :  { %17040 = vst [vmem:[#allocation42_spill] sm:$0xff] %v13669_v19  ;;  %v3162_v47 = vadd.f32 %v3161_v33, %v13151_v43  ;;  %v13676_v2 = vpack.c.bf16 %v7550_v40, %v7544_v38  ;;  %v7364_v9 = vadd.f32 %v13640_v61, %v3160_v18  ;;  %v12013_v43 = vld [vmem:[%s16962_s0 + $0x1f0] ss:$24 sps:$4 sm:$0xff]   ;;  %v7555_v31 = vmax.f32 %v7363_v52, 0.0 }
 0x191   :  { %v3163_v5 = vpop.f32.mrf.mxu0  ;;  %v13678_v26 = vpop.f32.mrf.mxu1 }
 0x192   :  { %17041 = vst [vmem:[#allocation43_spill] sm:$0xff] %v13676_v2  ;;  %v7369_v14 = vadd.f32 %v13627_v21, %v3162_v47  ;;  %v3164_v22 = vadd.f32 %v3163_v5, %v13156_v48  ;;  %v12014_v5 = vld [vmem:[%s16962_s0 + $0x21c] ss:$24 sps:$4 sm:$0xff]   ;;  %v7556_v47 = vmax.f32 %v7364_v9, 0.0 }
 0x193   :  { %v3167_v36 = vpop.f32.mrf.mxu0  ;;  %v13683_v39 = vpop.f32.mrf.mxu1  ;;  %3632 = vmatmul.mubr.bf16.gmra.mxu0 %v12012_v12  ;;  %v12015_v48 = vld [vmem:[%s16962_s0 + $0x224] ss:$24 sps:$4 sm:$0xff]  }
 0x194   :  { %3825 = vmatmul.mubr.bf16.gmra.mxu1 %v12013_v43  ;;  %v7561_v46 = vmax.f32 %v7369_v14, 0.0  ;;  %v7370_v38 = vadd.f32 %v13640_v61, %v3164_v22  ;;  %v3168_v40 = vadd.f32 %v3167_v36, %v13161_v15  ;;  %3641 = vmatprep.mubr.bf16.mxu0 %v12014_v5 }
 0x195   :  { %3834 = vmatprep.mubr.bf16.mxu1 %v12015_v48  ;;  %v3169_v18 = vpop.f32.mrf.mxu0  ;;  %v13699_v33 = vpop.f32.mrf.mxu1 }
 0x196   :  { %v13701_v52 = vpack.c.bf16 %v7561_v46, %v7555_v31  ;;  %v7562_v14 = vmax.f32 %v7370_v38, 0.0  ;;  %v3170_v22 = vadd.f32 %v3169_v18, %v13166_v56  ;;  %v7375_v12 = vadd.f32 %v13627_v21, %v3168_v40  ;;  %v12016_v38 = vld [vmem:[%s16962_s0 + $0x218] ss:$24 sps:$4 sm:$0xff]  }
 0x197   :  { %v3171_v15 = vpop.f32.mrf.mxu0  ;;  %v13704_v36 = vpop.f32.mrf.mxu1 }
 0x198   :  { %17042 = vst [vmem:[#allocation44_spill] sm:$0xff] %v13701_v52  ;;  %v3172_v43 = vadd.f32 %v3171_v15, %v13171_v60  ;;  %v13708_v5 = vpack.c.bf16 %v7562_v14, %v7556_v47  ;;  %v7376_v2 = vadd.f32 %v13640_v61, %v3170_v22  ;;  %v12017_v60 = vld [vmem:[%s16962_s0 + $0x220] ss:$24 sps:$4 sm:$0xff]   ;;  %v7567_v40 = vmax.f32 %v7375_v12, 0.0 }
 0x199   :  { %v3173_v19 = vpop.f32.mrf.mxu0  ;;  %v13710_v48 = vpop.f32.mrf.mxu1 }
 0x19a   :  { %17043 = vst [vmem:[#allocation45_spill] sm:$0xff] %v13708_v5  ;;  %v7381_v9 = vadd.f32 %v13627_v21, %v3172_v43  ;;  %v3174_v31 = vadd.f32 %v3173_v19, %v13176_v0  ;;  %v12018_v0 = vld [vmem:[%s16962_s0 + $0x24c] ss:$24 sps:$4 sm:$0xff]   ;;  %v7568_v43 = vmax.f32 %v7376_v2, 0.0 }
 0x19b   :  { %v3177_v46 = vpop.f32.mrf.mxu0  ;;  %v13715_v56 = vpop.f32.mrf.mxu1  ;;  %3642 = vmatmul.mubr.bf16.gmra.mxu0 %v12016_v38  ;;  %v12019_v19 = vld [vmem:[%s16962_s0 + $0x254] ss:$24 sps:$4 sm:$0xff]  }
 0x19c   :  { %3835 = vmatmul.mubr.bf16.gmra.mxu1 %v12017_v60  ;;  %v7573_v18 = vmax.f32 %v7381_v9, 0.0  ;;  %v7382_v47 = vadd.f32 %v13640_v61, %v3174_v31  ;;  %v3178_v14 = vadd.f32 %v3177_v46, %v13181_v4  ;;  %3651 = vmatprep.mubr.bf16.mxu0 %v12018_v0 }
 0x19d   :  { %3844 = vmatprep.mubr.bf16.mxu1 %v12019_v19  ;;  %v3179_v22 = vpop.f32.mrf.mxu0  ;;  %v13731_v15 = vpop.f32.mrf.mxu1 }
 0x19e   :  { %v13733_v12 = vpack.c.bf16 %v7573_v18, %v7567_v40  ;;  %v7574_v9 = vmax.f32 %v7382_v47, 0.0  ;;  %v3180_v31 = vadd.f32 %v3179_v22, %v13186_v13  ;;  %v7387_v38 = vadd.f32 %v13627_v21, %v3178_v14  ;;  %v12020_v47 = vld [vmem:[%s16962_s0 + $0x248] ss:$24 sps:$4 sm:$0xff]  }
 0x19f   :  { %v3181_v4 = vpop.f32.mrf.mxu0  ;;  %v13736_v46 = vpop.f32.mrf.mxu1 }
 0x1a0   :  { %17044 = vst [vmem:[#allocation46_spill] sm:$0xff] %v13733_v12  ;;  %v3182_v60 = vadd.f32 %v3181_v4, %v13191_v20  ;;  %v13740_v0 = vpack.c.bf16 %v7574_v9, %v7568_v43  ;;  %v7388_v5 = vadd.f32 %v13640_v61, %v3180_v31  ;;  %v12021_v20 = vld [vmem:[%s16962_s0 + $0x250] ss:$24 sps:$4 sm:$0xff]   ;;  %v7579_v14 = vmax.f32 %v7387_v38, 0.0 }
 0x1a1   :  { %v3183_v52 = vpop.f32.mrf.mxu0  ;;  %v13742_v19 = vpop.f32.mrf.mxu1 }
 0x1a2   :  { %17045 = vst [vmem:[#allocation47_spill] sm:$0xff] %v13740_v0  ;;  %v7393_v2 = vadd.f32 %v13627_v21, %v3182_v60  ;;  %v3184_v40 = vadd.f32 %v3183_v52, %v13196_v25  ;;  %v12022_v25 = vld [vmem:[%s16962_s0 + $0x27c] ss:$24 sps:$4 sm:$0xff]   ;;  %v7580_v60 = vmax.f32 %v7388_v5, 0.0 }
 0x1a3   :  { %v3187_v18 = vpop.f32.mrf.mxu0  ;;  %v13747_v13 = vpop.f32.mrf.mxu1  ;;  %3652 = vmatmul.mubr.bf16.gmra.mxu0 %v12020_v47  ;;  %v12023_v52 = vld [vmem:[%s16962_s0 + $0x284] ss:$24 sps:$4 sm:$0xff]  }
 0x1a4   :  { %3845 = vmatmul.mubr.bf16.gmra.mxu1 %v12021_v20  ;;  %v7585_v22 = vmax.f32 %v7393_v2, 0.0  ;;  %v7394_v43 = vadd.f32 %v13640_v61, %v3184_v40  ;;  %v3188_v9 = vadd.f32 %v3187_v18, %v13201_v34  ;;  %3661 = vmatprep.mubr.bf16.mxu0 %v12022_v25 }
 0x1a5   :  { %3854 = vmatprep.mubr.bf16.mxu1 %v12023_v52  ;;  %v3189_v31 = vpop.f32.mrf.mxu0  ;;  %v13763_v4 = vpop.f32.mrf.mxu1 }
 0x1a6   :  { %v13765_v38 = vpack.c.bf16 %v7585_v22, %v7579_v14  ;;  %v7586_v2 = vmax.f32 %v7394_v43, 0.0  ;;  %v3190_v40 = vadd.f32 %v3189_v31, %v13206_v41  ;;  %v7399_v47 = vadd.f32 %v13627_v21, %v3188_v9  ;;  %v12024_v43 = vld [vmem:[%s16962_s0 + $0x278] ss:$24 sps:$4 sm:$0xff]  }
 0x1a7   :  { %v3191_v34 = vpop.f32.mrf.mxu0  ;;  %v13768_v18 = vpop.f32.mrf.mxu1 }
 0x1a8   :  { %17046 = vst [vmem:[#allocation48_spill] sm:$0xff] %v13765_v38  ;;  %v3192_v20 = vadd.f32 %v3191_v34, %v13211_v45  ;;  %v13772_v25 = vpack.c.bf16 %v7586_v2, %v7580_v60  ;;  %v7400_v0 = vadd.f32 %v13640_v61, %v3190_v40  ;;  %v12025_v45 = vld [vmem:[%s16962_s0 + $0x280] ss:$24 sps:$4 sm:$0xff]   ;;  %v7591_v9 = vmax.f32 %v7399_v47, 0.0 }
 0x1a9   :  { %v3193_v12 = vpop.f32.mrf.mxu0  ;;  %v13774_v52 = vpop.f32.mrf.mxu1 }
 0x1aa   :  { %17047 = vst [vmem:[#allocation49_spill] sm:$0xff] %v13772_v25  ;;  %v7405_v5 = vadd.f32 %v13627_v21, %v3192_v20  ;;  %v3194_v14 = vadd.f32 %v3193_v12, %v13216_v17  ;;  %v12026_v17 = vld [vmem:[%s16962_s0 + $0x2ac] ss:$24 sps:$4 sm:$0xff]   ;;  %v7592_v20 = vmax.f32 %v7400_v0, 0.0 }
 0x1ab   :  { %v3197_v22 = vpop.f32.mrf.mxu0  ;;  %v13779_v41 = vpop.f32.mrf.mxu1  ;;  %3662 = vmatmul.mubr.bf16.gmra.mxu0 %v12024_v43  ;;  %v12027_v12 = vld [vmem:[%s16962_s0 + $0x2b4] ss:$24 sps:$4 sm:$0xff]  }
 0x1ac   :  { %3855 = vmatmul.mubr.bf16.gmra.mxu1 %v12025_v45  ;;  %v7597_v31 = vmax.f32 %v7405_v5, 0.0  ;;  %v7406_v60 = vadd.f32 %v13640_v61, %v3194_v14  ;;  %v3198_v2 = vadd.f32 %v3197_v22, %v13221_v58  ;;  %3671 = vmatprep.mubr.bf16.mxu0 %v12026_v17 }
 0x1ad   :  { %3864 = vmatprep.mubr.bf16.mxu1 %v12027_v12  ;;  %v3199_v40 = vpop.f32.mrf.mxu0  ;;  %v13795_v34 = vpop.f32.mrf.mxu1 }
 0x1ae   :  { %v13797_v47 = vpack.c.bf16 %v7597_v31, %v7591_v9  ;;  %v7598_v5 = vmax.f32 %v7406_v60, 0.0  ;;  %v3200_v14 = vadd.f32 %v3199_v40, %v13226_v29  ;;  %v7411_v43 = vadd.f32 %v13627_v21, %v3198_v2  ;;  %v12028_v60 = vld [vmem:[%s16962_s0 + $0x2a8] ss:$24 sps:$4 sm:$0xff]  }
 0x1af   :  { %v3201_v58 = vpop.f32.mrf.mxu0  ;;  %v13800_v22 = vpop.f32.mrf.mxu1 }
 0x1b0   :  { %17048 = vst [vmem:[#allocation50_spill] sm:$0xff] %v13797_v47  ;;  %v3202_v45 = vadd.f32 %v3201_v58, %v13231_v6  ;;  %v13804_v17 = vpack.c.bf16 %v7598_v5, %v7592_v20  ;;  %v7412_v25 = vadd.f32 %v13640_v61, %v3200_v14  ;;  %v12029_v6 = vld [vmem:[%s16962_s0 + $0x2b0] ss:$24 sps:$4 sm:$0xff]   ;;  %v7603_v2 = vmax.f32 %v7411_v43, 0.0 }
 0x1b1   :  { %v3203_v38 = vpop.f32.mrf.mxu0  ;;  %v13806_v12 = vpop.f32.mrf.mxu1 }
 0x1b2   :  { %17049 = vst [vmem:[#allocation51_spill] sm:$0xff] %v13804_v17  ;;  %v7417_v0 = vadd.f32 %v13627_v21, %v3202_v45  ;;  %v3204_v9 = vadd.f32 %v3203_v38, %v13236_v16  ;;  %v12030_v16 = vld [vmem:[%s16962_s0 + $0x2dc] ss:$24 sps:$4 sm:$0xff]   ;;  %v7604_v45 = vmax.f32 %v7412_v25, 0.0 }
 0x1b3   :  { %v3207_v31 = vpop.f32.mrf.mxu0  ;;  %v13811_v29 = vpop.f32.mrf.mxu1  ;;  %3672 = vmatmul.mubr.bf16.gmra.mxu0 %v12028_v60  ;;  %v12031_v38 = vld [vmem:[%s16962_s0 + $0x2e4] ss:$24 sps:$4 sm:$0xff]  }
 0x1b4   :  { %3865 = vmatmul.mubr.bf16.gmra.mxu1 %v12029_v6  ;;  %v7609_v40 = vmax.f32 %v7417_v0, 0.0  ;;  %v7418_v20 = vadd.f32 %v13640_v61, %v3204_v9  ;;  %v3208_v5 = vadd.f32 %v3207_v31, %v13241_v24  ;;  %3681 = vmatprep.mubr.bf16.mxu0 %v12030_v16 }
 0x1b5   :  { %3874 = vmatprep.mubr.bf16.mxu1 %v12031_v38  ;;  %v3209_v14 = vpop.f32.mrf.mxu0  ;;  %v13827_v58 = vpop.f32.mrf.mxu1 }
 0x1b6   :  { %v13829_v43 = vpack.c.bf16 %v7609_v40, %v7603_v2  ;;  %v7610_v0 = vmax.f32 %v7418_v20, 0.0  ;;  %v3210_v9 = vadd.f32 %v3209_v14, %v13246_v35  ;;  %v7423_v60 = vadd.f32 %v13627_v21, %v3208_v5  ;;  %v12032_v20 = vld [vmem:[%s16962_s0 + $0x2d8] ss:$24 sps:$4 sm:$0xff]  }
 0x1b7   :  { %v3211_v24 = vpop.f32.mrf.mxu0  ;;  %v13832_v31 = vpop.f32.mrf.mxu1 }
 0x1b8   :  { %17050 = vst [vmem:[#allocation52_spill] sm:$0xff] %v13829_v43  ;;  %v3212_v6 = vadd.f32 %v3211_v24, %v13251_v10  ;;  %v13836_v16 = vpack.c.bf16 %v7610_v0, %v7604_v45  ;;  %v7424_v17 = vadd.f32 %v13640_v61, %v3210_v9  ;;  %v12033_v10 = vld [vmem:[%s16962_s0 + $0x2e0] ss:$24 sps:$4 sm:$0xff]   ;;  %v7615_v5 = vmax.f32 %v7423_v60, 0.0 }
 0x1b9   :  { %v3213_v47 = vpop.f32.mrf.mxu0  ;;  %v13838_v38 = vpop.f32.mrf.mxu1 }
 0x1ba   :  { %17051 = vst [vmem:[#allocation53_spill] sm:$0xff] %v13836_v16  ;;  %v7429_v25 = vadd.f32 %v13627_v21, %v3212_v6  ;;  %v3214_v2 = vadd.f32 %v3213_v47, %v13253_v50  ;;  %v7616_v9 = vmax.f32 %v7424_v17, 0.0  ;;  %v12046_v16 = vld [vmem:[%s16962_s0 + $0xc4] ss:$24 sps:$4 sm:$0xff]  }
 0x1bb   :  { %v3217_v40 = vpop.f32.mrf.mxu0  ;;  %v13843_v35 = vpop.f32.mrf.mxu1  ;;  %3682 = vmatmul.mubr.bf16.gmra.mxu0 %v12032_v20 }
 0x1bc   :  { %3875 = vmatmul.mubr.bf16.gmra.mxu1 %v12033_v10  ;;  %v7621_v14 = vmax.f32 %v7429_v25, 0.0  ;;  %v7430_v45 = vadd.f32 %v13640_v61, %v3214_v2  ;;  %v3218_v0 = vadd.f32 %v3217_v40, %v13258_v57  ;;  %3917 = vmatprep.mubr.bf16.mxu0 %v12363_v53  ;;  %v11418_v53 = vld [vmem:[%s16963_s1 + $0x760] ss:$24 sps:$4 sm:$0xff]  }
 0x1bd   :  { %4110 = vmatprep.mubr.bf16.mxu1 %v12365_v54  ;;  %v3219_v50 = vpop.f32.mrf.mxu0  ;;  %v13855_v47 = vpop.f32.mrf.mxu1 }
 0x1be   :  { %v13857_v24 = vpack.c.bf16 %v7621_v14, %v7615_v5  ;;  %v7622_v6 = vmax.f32 %v7430_v45, 0.0  ;;  %v3220_v20 = vadd.f32 %v3219_v50, %v13262_v63  ;;  %v7435_v25 = vadd.f32 %v13627_v21, %v3218_v0  ;;  %v11423_v63 = vld [vmem:[%s16963_s1 + $0x734] ss:$24 sps:$4 sm:$0xff]   ;;  %v11450_v50 = vld [vmem:[%s16964_s2 + $0x124] ss:$24 sps:$4 sm:$0xff]  }
 0x1bf   :  { %v3221_v10 = vpop.f32.mrf.mxu0  ;;  %v13860_v60 = vpop.f32.mrf.mxu1 }
 0x1c0   :  { %17052 = vst [vmem:[#allocation54_spill] sm:$0xff] %v13857_v24  ;;  %v3222_v57 = vadd.f32 %v3221_v10, %v13270_v11  ;;  %v13867_v54 = vpack.c.bf16 %v7622_v6, %v7616_v9  ;;  %v7436_v40 = vadd.f32 %v13640_v61, %v3220_v20  ;;  %v11442_v11 = vld [vmem:[%s16964_s2 + $0x150] ss:$24 sps:$4 sm:$0xff]   ;;  %v7627_v9 = vmax.f32 %v7435_v25, 0.0  ;;  %v12034_v10 = vld [vmem:[%s16962_s0 + $0x34] ss:$24 sps:$4 sm:$0xff]  }
 0x1c1   :  { %v3223_v2 = vpop.f32.mrf.mxu0  ;;  %v13869_v17 = vpop.f32.mrf.mxu1  ;;  %v12035_v25 = vld [vmem:[%s16962_s0 + $0x3c] ss:$24 sps:$4 sm:$0xff]  }
 0x1c2   :  { %17053 = vst [vmem:[#allocation55_spill] sm:$0xff] %v13867_v54  ;;  %v7441_v5 = vadd.f32 %v13627_v21, %v3222_v57  ;;  %v3224_v14 = vadd.f32 %v3223_v2, %v13278_v28 }
 0x1c3   :  { %v3227_v45 = vpop.f32.mrf.mxu0  ;;  %v13880_v0 = vpop.f32.mrf.mxu1  ;;  %3918 = vmatmul.mubr.bf16.vlgmr.msra.gmra.mxu0 %v12417_v7  ;;  %v11421_v7 = vld [vmem:[%s16963_s1 + $0x730] ss:$24 sps:$4 sm:$0xff]  }
 0x1c4   :  { %4111 = vmatmul.mubr.bf16.vlgmr.msra.gmra.mxu1 %v12419_v8  ;;  %v7633_v6 = vmax.f32 %v7441_v5, 0.0  ;;  %v7442_v20 = vadd.f32 %v13640_v61, %v3224_v14  ;;  %v3228_v28 = vadd.f32 %v3227_v45, %v13288_v42  ;;  %4272 = vmatpush1.bf16.msra.mxu0 %v11418_v53  ;;  %v11426_v42 = vld [vmem:[%s16963_s1 + $0x704] ss:$24 sps:$4 sm:$0xff]   ;;  %v7628_v53 = vmax.f32 %v7436_v40, 0.0  ;;  %v11448_v45 = vld [vmem:[%s16964_s2 + $0x120] ss:$24 sps:$4 sm:$0xff]  }
 0x1c5   :  { %3927 = vmatprep.mubr.bf16.mxu0 %v12034_v10  ;;  %v3229_v8 = vpop.f32.mrf.mxu0  ;;  %v13895_v57 = vpop.f32.mrf.mxu1  ;;  %4120 = vmatprep.mubr.bf16.mxu1 %v12035_v25 }
 0x1c6   :  { %4273 = vmatprep.subr.bf16.mxu0 %v11423_v63  ;;  %v13903_v2 = vpack.c.bf16 %v7633_v6, %v7627_v9  ;;  %v7634_v5 = vmax.f32 %v7442_v20, 0.0  ;;  %v3230_v14 = vadd.f32 %v3229_v8, %v13299_v59  ;;  %6622 = vmatpush1.bf16.msra.mxu1 %v11442_v11  ;;  %v7447_v63 = vadd.f32 %v13627_v21, %v3228_v28  ;;  %v11424_v59 = vld [vmem:[%s16963_s1 + $0x700] ss:$24 sps:$4 sm:$0xff]   ;;  %v11453_v11 = vld [vmem:[%s16964_s2 + $0xf4] ss:$24 sps:$4 sm:$0xff]  }
 0x1c7   :  { %v3231_v10 = vpop.f32.mrf.mxu0  ;;  %v13909_v24 = vpop.f32.mrf.mxu1  ;;  %6623 = vmatprep.subr.bf16.mxu1 %v11450_v50  ;;  %v11429_v28 = vld [vmem:[%s16963_s1 + $0x6d4] ss:$24 sps:$4 sm:$0xff]  }
 0x1c8   :  { %17054 = vst [vmem:[#allocation56_spill] sm:$0xff] %v13903_v2  ;;  %v3232_v25 = vadd.f32 %v3231_v10, %v13304_v3  ;;  %4274 = vmatpush1.bf16.msra.mxu0 %v11421_v7  ;;  %v13913_v40 = vpack.c.bf16 %v7634_v5, %v7628_v53  ;;  %v7448_v50 = vadd.f32 %v13640_v61, %v3230_v14  ;;  %v11451_v7 = vld [vmem:[%s16964_s2 + $0xf0] ss:$24 sps:$4 sm:$0xff]   ;;  %v11459_v5 = vld [vmem:[%s16964_s2 + $0xc4] ss:$24 sps:$4 sm:$0xff]   ;;  %v7639_v14 = vmax.f32 %v7447_v63, 0.0 }
 0x1c9   :  { %v3233_v9 = vpop.f32.mrf.mxu0  ;;  %v13915_v6 = vpop.f32.mrf.mxu1  ;;  %4275 = vmatprep.subr.bf16.mxu0 %v11426_v42  ;;  %v12036_v53 = vld [vmem:[%s16962_s0 + $0x30] ss:$24 sps:$4 sm:$0xff]  }
 0x1ca   :  { %17055 = vst [vmem:[#allocation57_spill] sm:$0xff] %v13913_v40  ;;  %v7453_v20 = vadd.f32 %v13627_v21, %v3232_v25  ;;  %v3234_v3 = vadd.f32 %v3233_v9, %v13318_v30  ;;  %6624 = vmatpush1.bf16.msra.mxu1 %v11448_v45  ;;  %v12037_v30 = vld [vmem:[%s16962_s0 + $0x38] ss:$24 sps:$4 sm:$0xff]   ;;  %v12038_v9 = vld [vmem:[%s16962_s0 + $0x64] ss:$24 sps:$4 sm:$0xff]  }
 0x1cb   :  { %v3237_v8 = vpop.f32.mrf.mxu0  ;;  %v13932_v42 = vpop.f32.mrf.mxu1  ;;  %3928 = vmatmul.mubr.bf16.gmra.mxu0 %v12036_v53  ;;  %v12039_v53 = vld [vmem:[%s16962_s0 + $0x6c] ss:$24 sps:$4 sm:$0xff]   ;;  %v11427_v63 = vld [vmem:[%s16963_s1 + $0x6d0] ss:$24 sps:$4 sm:$0xff]   ;;  %6625 = vmatprep.subr.bf16.mxu1 %v11453_v11 }
 0x1cc   :  { %4121 = vmatmul.mubr.bf16.gmra.mxu1 %v12037_v30  ;;  %v7645_v45 = vmax.f32 %v7453_v20, 0.0  ;;  %v7454_v10 = vadd.f32 %v13640_v61, %v3234_v3  ;;  %v3238_v25 = vadd.f32 %v3237_v8, %v13329_v55  ;;  %3937 = vmatprep.mubr.bf16.mxu0 %v12038_v9  ;;  %v7640_v55 = vmax.f32 %v7448_v50, 0.0  ;;  %v11432_v9 = vld [vmem:[%s16963_s1 + $0x6a4] ss:$24 sps:$4 sm:$0xff]  }
 0x1cd   :  { %4130 = vmatprep.mubr.bf16.mxu1 %v12039_v53  ;;  %v3239_v30 = vpop.f32.mrf.mxu0  ;;  %v13951_v2 = vpop.f32.mrf.mxu1  ;;  %4276 = vmatpush1.bf16.msra.mxu0 %v11424_v59  ;;  %v11457_v59 = vld [vmem:[%s16964_s2 + $0xc0] ss:$24 sps:$4 sm:$0xff]  }
 0x1ce   :  { %v13956_v20 = vpack.c.bf16 %v7645_v45, %v7639_v14  ;;  %v7646_v3 = vmax.f32 %v7454_v10, 0.0  ;;  %v3240_v8 = vadd.f32 %v3239_v30, %v13343_v44  ;;  %4277 = vmatprep.subr.bf16.mxu0 %v11429_v28  ;;  %6626 = vmatpush1.bf16.msra.mxu1 %v11451_v7  ;;  %v7459_v11 = vadd.f32 %v13627_v21, %v3238_v25  ;;  %v11430_v7 = vld [vmem:[%s16963_s1 + $0x6a0] ss:$24 sps:$4 sm:$0xff]   ;;  %v11462_v45 = vld [vmem:[%s16964_s2 + $0x94] ss:$24 sps:$4 sm:$0xff]  }
 0x1cf   :  { %v3241_v53 = vpop.f32.mrf.mxu0  ;;  %v13965_v40 = vpop.f32.mrf.mxu1  ;;  %6627 = vmatprep.subr.bf16.mxu1 %v11459_v5  ;;  %v11435_v25 = vld [vmem:[%s16963_s1 + $0x674] ss:$24 sps:$4 sm:$0xff]   ;;  %v11460_v30 = vld [vmem:[%s16964_s2 + $0x90] ss:$24 sps:$4 sm:$0xff]  }
 0x1d0   :  { %17056 = vst [vmem:[#allocation58_spill] sm:$0xff] %v13956_v20  ;;  %v3242_v50 = vadd.f32 %v3241_v53, %v13348_v62  ;;  %v13969_v14 = vpack.c.bf16 %v7646_v3, %v7640_v55  ;;  %v7460_v5 = vadd.f32 %v13640_v61, %v3240_v8  ;;  %v12040_v3 = vld [vmem:[%s16962_s0 + $0x60] ss:$24 sps:$4 sm:$0xff]   ;;  %v11468_v8 = vld [vmem:[%s16964_s2 + $0x64] ss:$24 sps:$4 sm:$0xff]  }
 0x1d1   :  { %v3243_v44 = vpop.f32.mrf.mxu0  ;;  %v13971_v28 = vpop.f32.mrf.mxu1  ;;  %4278 = vmatpush1.bf16.msra.mxu0 %v11427_v63  ;;  %v12042_v20 = vld [vmem:[%s16962_s0 + $0x94] ss:$24 sps:$4 sm:$0xff]  }
 0x1d2   :  { %17057 = vst [vmem:[#allocation59_spill] sm:$0xff] %v13969_v14  ;;  %v7465_v10 = vadd.f32 %v13627_v21, %v3242_v50  ;;  %v3244_v62 = vadd.f32 %v3243_v44, %v13362_v32  ;;  %4279 = vmatprep.subr.bf16.mxu0 %v11432_v9  ;;  %6628 = vmatpush1.bf16.msra.mxu1 %v11457_v59  ;;  %v12041_v32 = vld [vmem:[%s16962_s0 + $0x68] ss:$24 sps:$4 sm:$0xff]   ;;  %v7651_v9 = vmax.f32 %v7459_v11, 0.0  ;;  %v17058_v50 = vld [vmem:[#allocation15_spill] sm:$0xff] }
 0x1d3   :  { %v3247_v63 = vpop.f32.mrf.mxu0  ;;  %v13988_v55 = vpop.f32.mrf.mxu1  ;;  %3938 = vmatmul.mubr.bf16.gmra.mxu0 %v12040_v3  ;;  %v12043_v3 = vld [vmem:[%s16962_s0 + $0x9c] ss:$24 sps:$4 sm:$0xff]   ;;  %v11433_v11 = vld [vmem:[%s16963_s1 + $0x670] ss:$24 sps:$4 sm:$0xff]   ;;  %6629 = vmatprep.subr.bf16.mxu1 %v11462_v45 }
 0x1d4   :  { %4131 = vmatmul.mubr.bf16.gmra.mxu1 %v12041_v32  ;;  %v7657_v59 = vmax.f32 %v7465_v10, 0.0  ;;  %v7466_v53 = vadd.f32 %v13640_v61, %v3244_v62  ;;  %v3248_v44 = vadd.f32 %v3247_v63, %v17058_v50  ;;  %3947 = vmatprep.mubr.bf16.mxu0 %v12042_v20  ;;  %v7652_v10 = vmax.f32 %v7460_v5, 0.0  ;;  %v17060_v50 = vld [vmem:[#allocation16_spill] sm:$0xff]  ;;  %v17061_v5 = vld [vmem:[#allocation17_spill] sm:$0xff] }
 0x1d5   :  { %4140 = vmatprep.mubr.bf16.mxu1 %v12043_v3  ;;  %v3249_v32 = vpop.f32.mrf.mxu0  ;;  %v14007_v14 = vpop.f32.mrf.mxu1  ;;  %4280 = vmatpush1.bf16.msra.mxu0 %v11430_v7  ;;  %v11438_v3 = vld [vmem:[%s16963_s1 + $0x644] ss:$24 sps:$4 sm:$0xff]   ;;  %v11466_v7 = vld [vmem:[%s16964_s2 + $0x60] ss:$24 sps:$4 sm:$0xff]  }
 0x1d6   :  { %v14012_v62 = vpack.c.bf16 %v7657_v59, %v7651_v9  ;;  %v7658_v63 = vmax.f32 %v7466_v53, 0.0  ;;  %v3250_v20 = vadd.f32 %v3249_v32, %v17060_v50  ;;  %4281 = vmatprep.subr.bf16.mxu0 %v11435_v25  ;;  %6630 = vmatpush1.bf16.msra.mxu1 %v11460_v30  ;;  %v7471_v45 = vadd.f32 %v13627_v21, %v3248_v44  ;;  %v11436_v30 = vld [vmem:[%s16963_s1 + $0x640] ss:$24 sps:$4 sm:$0xff]   ;;  %v11471_v32 = vld [vmem:[%s16964_s2 + $0x34] ss:$24 sps:$4 sm:$0xff]  }
 0x1d7   :  { %v3251_v54 = vpop.f32.mrf.mxu0  ;;  %v14021_v43 = vpop.f32.mrf.mxu1  ;;  %6631 = vmatprep.subr.bf16.mxu1 %v11468_v8  ;;  %v17064_v50 = vld [vmem:[#allocation18_spill] sm:$0xff] }
 0x1d8   :  { %17059 = vst [vmem:[#allocation15_spill] sm:$0xff] %v14012_v62  ;;  %v3252_v9 = vadd.f32 %v3251_v54, %v17061_v5  ;;  %v14025_v59 = vpack.c.bf16 %v7658_v63, %v7652_v10  ;;  %v7472_v8 = vadd.f32 %v13640_v61, %v3250_v20  ;;  %v11441_v10 = vld [vmem:[%s16963_s1 + $0x614] ss:$24 sps:$4 sm:$0xff]   ;;  %v12044_v20 = vld [vmem:[%s16962_s0 + $0x90] ss:$24 sps:$4 sm:$0xff]  }
 0x1d9   :  { %v3253_v25 = vpop.f32.mrf.mxu0  ;;  %v14027_v53 = vpop.f32.mrf.mxu1  ;;  %4282 = vmatpush1.bf16.msra.mxu0 %v11433_v11  ;;  %v11469_v11 = vld [vmem:[%s16964_s2 + $0x30] ss:$24 sps:$4 sm:$0xff]  }
 0x1da   :  { %17062 = vst [vmem:[#allocation16_spill] sm:$0xff] %v14025_v59  ;;  %17063 = vst [vmem:[#allocation17_spill] sm:$0xff] %v14027_v53  ;;  %v7477_v44 = vadd.f32 %v13627_v21, %v3252_v9  ;;  %v3254_v54 = vadd.f32 %v3253_v25, %v17064_v50  ;;  %4283 = vmatprep.subr.bf16.mxu0 %v11438_v3  ;;  %6632 = vmatpush1.bf16.msra.mxu1 %v11466_v7  ;;  %v12045_v3 = vld [vmem:[%s16962_s0 + $0x98] ss:$24 sps:$4 sm:$0xff]   ;;  %v11477_v7 = vld [vmem:[%s16964_s2 + $0x4] ss:$24 sps:$4 sm:$0xff]  }
 0x1db   :  { %v3257_v63 = vpop.f32.mrf.mxu0  ;;  %v14044_v5 = vpop.f32.mrf.mxu1  ;;  %3948 = vmatmul.mubr.bf16.gmra.mxu0 %v12044_v20  ;;  %v7663_v9 = vmax.f32 %v7471_v45, 0.0  ;;  %v17066_v62 = vld [vmem:[#allocation19_spill] sm:$0xff]  ;;  %6633 = vmatprep.subr.bf16.mxu1 %v11471_v32 }
 0x1dc   :  { %17065 = vst [vmem:[#allocation18_spill] sm:$0xff] %v14044_v5  ;;  %4141 = vmatmul.mubr.bf16.gmra.mxu1 %v12045_v3  ;;  %v7669_v25 = vmax.f32 %v7477_v44, 0.0  ;;  %v7478_v50 = vadd.f32 %v13640_v61, %v3254_v54  ;;  %v3258_v59 = vadd.f32 %v3257_v63, %v17066_v62  ;;  %3957 = vmatprep.mubr.bf16.mxu0 %v12046_v16  ;;  %v12047_v20 = vld [vmem:[%s16962_s0 + $0xcc] ss:$24 sps:$4 sm:$0xff]   ;;  %v11439_v45 = vld [vmem:[%s16963_s1 + $0x610] ss:$24 sps:$4 sm:$0xff]  }
 0x1dd   :  { %4150 = vmatprep.mubr.bf16.mxu1 %v12047_v20  ;;  %v3259_v3 = vpop.f32.mrf.mxu0  ;;  %v14063_v5 = vpop.f32.mrf.mxu1  ;;  %4284 = vmatpush1.bf16.msra.mxu0 %v11436_v30  ;;  %v7664_v62 = vmax.f32 %v7472_v8, 0.0  ;;  %v17069_v63 = vld [vmem:[#allocation20_spill] sm:$0xff]  ;;  %v17071_v8 = vld [vmem:[#allocation21_spill] sm:$0xff] }
 0x1de   :  { %17067 = vst [vmem:[#allocation19_spill] sm:$0xff] %v14063_v5  ;;  %v14068_v44 = vpack.c.bf16 %v7669_v25, %v7663_v9  ;;  %v7670_v54 = vmax.f32 %v7478_v50, 0.0  ;;  %v3260_v16 = vadd.f32 %v3259_v3, %v17069_v63  ;;  %4285 = vmatprep.subr.bf16.mxu0 %v11441_v10  ;;  %v11447_v20 = vld [vmem:[%s16963_s1 + $0x8e4] ss:$24 sps:$4 sm:$0xff]   ;;  %6634 = vmatpush1.bf16.msra.mxu1 %v11469_v11  ;;  %v11475_v30 = vld [vmem:[%s16964_s2] ss:$24 sps:$4 sm:$0xff]  }
 0x1df   :  { %v3261_v5 = vpop.f32.mrf.mxu0  ;;  %v14077_v53 = vpop.f32.mrf.mxu1  ;;  %6635 = vmatprep.subr.bf16.mxu1 %v11477_v7  ;;  %v7483_v32 = vadd.f32 %v13627_v21, %v3258_v59  ;;  %v11445_v11 = vld [vmem:[%s16963_s1 + $0x8e0] ss:$24 sps:$4 sm:$0xff]   ;;  %v11480_v3 = vld [vmem:[%s16964_s2 + $0x2d4] ss:$24 sps:$4 sm:$0xff]  }
 0x1e0   :  { %17068 = vst [vmem:[#allocation60_spill] sm:$0xff] %v14068_v44  ;;  %17070 = vst [vmem:[#allocation20_spill] sm:$0xff] %v14077_v53  ;;  %v3262_v9 = vadd.f32 %v3261_v5, %v17071_v8  ;;  %v14081_v25 = vpack.c.bf16 %v7670_v54, %v7664_v62  ;;  %v7484_v7 = vadd.f32 %v13640_v61, %v3260_v16  ;;  %v17074_v63 = vld [vmem:[#allocation22_spill] sm:$0xff]  ;;  %v12048_v16 = vld [vmem:[%s16962_s0 + $0xc0] ss:$24 sps:$4 sm:$0xff]  }
 0x1e1   :  { %v3263_v10 = vpop.f32.mrf.mxu0  ;;  %v14083_v50 = vpop.f32.mrf.mxu1  ;;  %4286 = vmatpush1.bf16.msra.mxu0 %v11439_v45  ;;  %v11456_v62 = vld [vmem:[%s16963_s1 + $0x8b4] ss:$24 sps:$4 sm:$0xff]   ;;  %v11478_v45 = vld [vmem:[%s16964_s2 + $0x2d0] ss:$24 sps:$4 sm:$0xff]  }
 0x1e2   :  { %17072 = vst [vmem:[#allocation21_spill] sm:$0xff] %v14081_v25  ;;  %17073 = vst [vmem:[#allocation61_spill] sm:$0xff] %v14083_v50  ;;  %v7489_v59 = vadd.f32 %v13627_v21, %v3262_v9  ;;  %v3264_v5 = vadd.f32 %v3263_v10, %v17074_v63  ;;  %4287 = vmatprep.subr.bf16.mxu0 %v11447_v20  ;;  %6636 = vmatpush1.bf16.msra.mxu1 %v11475_v30  ;;  %v12049_v20 = vld [vmem:[%s16962_s0 + $0xc8] ss:$24 sps:$4 sm:$0xff]   ;;  %v11486_v30 = vld [vmem:[%s16964_s2 + $0x2a4] ss:$24 sps:$4 sm:$0xff]  }
 0x1e3   :  { %v3267_v54 = vpop.f32.mrf.mxu0  ;;  %v14100_v8 = vpop.f32.mrf.mxu1  ;;  %3958 = vmatmul.mubr.bf16.gmra.mxu0 %v12048_v16  ;;  %v7675_v9 = vmax.f32 %v7483_v32, 0.0  ;;  %v17076_v44 = vld [vmem:[#allocation23_spill] sm:$0xff]  ;;  %6637 = vmatprep.subr.bf16.mxu1 %v11480_v3 }
 0x1e4   :  { %17075 = vst [vmem:[#allocation22_spill] sm:$0xff] %v14100_v8  ;;  %4151 = vmatmul.mubr.bf16.gmra.mxu1 %v12049_v20  ;;  %v7681_v10 = vmax.f32 %v7489_v59, 0.0  ;;  %v7490_v63 = vadd.f32 %v13640_v61, %v3264_v5  ;;  %v3268_v25 = vadd.f32 %v3267_v54, %v17076_v44  ;;  %v12050_v8 = vld [vmem:[%s16962_s0 + $0xf4] ss:$24 sps:$4 sm:$0xff]   ;;  %v11454_v32 = vld [vmem:[%s16963_s1 + $0x8b0] ss:$24 sps:$4 sm:$0xff]  }
 0x1e5   :  { %3967 = vmatprep.mubr.bf16.mxu0 %v12050_v8  ;;  %v12051_v16 = vld [vmem:[%s16962_s0 + $0xfc] ss:$24 sps:$4 sm:$0xff]   ;;  %v3269_v20 = vpop.f32.mrf.mxu0  ;;  %v14119_v50 = vpop.f32.mrf.mxu1  ;;  %4288 = vmatpush2.bf16.msra.mxu0 %v11445_v11  ;;  %v7676_v44 = vmax.f32 %v7484_v7, 0.0  ;;  %v11484_v11 = vld [vmem:[%s16964_s2 + $0x2a0] ss:$24 sps:$4 sm:$0xff]  }
 0x1e6   :  { %4160 = vmatprep.mubr.bf16.mxu1 %v12051_v16  ;;  %17077 = vst [vmem:[#allocation23_spill] sm:$0xff] %v14119_v50  ;;  %v14124_v59 = vpack.c.bf16 %v7681_v10, %v7675_v9  ;;  %v7682_v5 = vmax.f32 %v7490_v63, 0.0  ;;  %v17079_v54 = vld [vmem:[#allocation24_spill] sm:$0xff]  ;;  %4289 = vmatprep.subr.bf16.mxu0 %v11456_v62  ;;  %v7495_v3 = vadd.f32 %v13627_v21, %v3268_v25  ;;  %v17080_v7 = vld [vmem:[#allocation25_spill] sm:$0xff] }
 0x1e7   :  { %v3270_v8 = vadd.f32 %v3269_v20, %v17079_v54  ;;  %v11465_v16 = vld [vmem:[%s16963_s1 + $0x884] ss:$24 sps:$4 sm:$0xff]   ;;  %6638 = vmatpush2.bf16.msra.mxu1 %v11478_v45  ;;  %v3271_v50 = vpop.f32.mrf.mxu0  ;;  %v14133_v53 = vpop.f32.mrf.mxu1  ;;  %v11463_v45 = vld [vmem:[%s16963_s1 + $0x880] ss:$24 sps:$4 sm:$0xff]   ;;  %v11489_v20 = vld [vmem:[%s16964_s2 + $0x274] ss:$24 sps:$4 sm:$0xff]  }
 0x1e8   :  { %17078 = vst [vmem:[#allocation62_spill] sm:$0xff] %v14124_v59  ;;  %6639 = vmatprep.subr.bf16.mxu1 %v11486_v30  ;;  %v3272_v9 = vadd.f32 %v3271_v50, %v17080_v7  ;;  %v14137_v10 = vpack.c.bf16 %v7682_v5, %v7676_v44  ;;  %v17083_v54 = vld [vmem:[#allocation26_spill] sm:$0xff]  ;;  %v17085_v59 = vld [vmem:[#allocation27_spill] sm:$0xff] }
 0x1e9   :  { %v3273_v62 = vpop.f32.mrf.mxu0  ;;  %v14139_v63 = vpop.f32.mrf.mxu1  ;;  %4290 = vmatpush2.bf16.msra.mxu0 %v11454_v32  ;;  %v7496_v30 = vadd.f32 %v13640_v61, %v3270_v8  ;;  %v11474_v44 = vld [vmem:[%s16963_s1 + $0x854] ss:$24 sps:$4 sm:$0xff]   ;;  %v11487_v32 = vld [vmem:[%s16964_s2 + $0x270] ss:$24 sps:$4 sm:$0xff]  }
 0x1ea   :  { %17081 = vst [vmem:[#allocation24_spill] sm:$0xff] %v14137_v10  ;;  %17082 = vst [vmem:[#allocation25_spill] sm:$0xff] %v14139_v63  ;;  %v7501_v25 = vadd.f32 %v13627_v21, %v3272_v9  ;;  %v3274_v50 = vadd.f32 %v3273_v62, %v17083_v54  ;;  %4291 = vmatprep.subr.bf16.mxu0 %v11465_v16  ;;  %v12052_v8 = vld [vmem:[%s16962_s0 + $0xf0] ss:$24 sps:$4 sm:$0xff]   ;;  %v7687_v9 = vmax.f32 %v7495_v3, 0.0 }
 0x1eb   :  { %6640 = vmatpush2.bf16.msra.mxu1 %v11484_v11  ;;  %v3277_v5 = vpop.f32.mrf.mxu0  ;;  %v14156_v7 = vpop.f32.mrf.mxu1  ;;  %3968 = vmatmul.mubr.bf16.gmra.mxu0 %v12052_v8  ;;  %v12053_v16 = vld [vmem:[%s16962_s0 + $0xf8] ss:$24 sps:$4 sm:$0xff]   ;;  %v11495_v11 = vld [vmem:[%s16964_s2 + $0x244] ss:$24 sps:$4 sm:$0xff]  }
 0x1ec   :  { %17084 = vst [vmem:[#allocation26_spill] sm:$0xff] %v14156_v7  ;;  %4161 = vmatmul.mubr.bf16.gmra.mxu1 %v12053_v16  ;;  %v7693_v62 = vmax.f32 %v7501_v25, 0.0  ;;  %v7502_v54 = vadd.f32 %v13640_v61, %v3274_v50  ;;  %v3278_v10 = vadd.f32 %v3277_v5, %v17085_v59  ;;  %v12054_v7 = vld [vmem:[%s16962_s0 + $0x124] ss:$24 sps:$4 sm:$0xff]   ;;  %v11472_v3 = vld [vmem:[%s16963_s1 + $0x850] ss:$24 sps:$4 sm:$0xff]   ;;  %6641 = vmatprep.subr.bf16.mxu1 %v11489_v20 }
 0x1ed   :  { %3977 = vmatprep.mubr.bf16.mxu0 %v12054_v7  ;;  %v12055_v8 = vld [vmem:[%s16962_s0 + $0x12c] ss:$24 sps:$4 sm:$0xff]   ;;  %v3279_v16 = vpop.f32.mrf.mxu0  ;;  %v14175_v63 = vpop.f32.mrf.mxu1  ;;  %4292 = vmatpush2.bf16.msra.mxu0 %v11463_v45  ;;  %v7688_v59 = vmax.f32 %v7496_v30, 0.0  ;;  %v11493_v45 = vld [vmem:[%s16964_s2 + $0x240] ss:$24 sps:$4 sm:$0xff]  }
 0x1ee   :  { %4170 = vmatprep.mubr.bf16.mxu1 %v12055_v8  ;;  %17086 = vst [vmem:[#allocation27_spill] sm:$0xff] %v14175_v63  ;;  %v14180_v25 = vpack.c.bf16 %v7693_v62, %v7687_v9  ;;  %v7694_v50 = vmax.f32 %v7502_v54, 0.0  ;;  %v3280_v5 = vadd.f32 %v3279_v16, %v13519_v37  ;;  %4293 = vmatprep.subr.bf16.mxu0 %v11474_v44  ;;  %v11483_v7 = vld [vmem:[%s16963_s1 + $0x824] ss:$24 sps:$4 sm:$0xff]   ;;  %v11498_v54 = vld [vmem:[%s16964_s2 + $0x214] ss:$24 sps:$4 sm:$0xff]  }
 0x1ef   :  { %6642 = vmatpush2.bf16.msra.mxu1 %v11487_v32  ;;  %v3281_v8 = vpop.f32.mrf.mxu0  ;;  %v14189_v63 = vpop.f32.mrf.mxu1  ;;  %v7507_v20 = vadd.f32 %v13627_v21, %v3278_v10  ;;  %v17089_v30 = vld [vmem:[#allocation28_spill] sm:$0xff]  ;;  %v17092_v16 = vld [vmem:[#allocation29_spill] sm:$0xff] }
 0x1f0   :  { %17087 = vst [vmem:[#allocation63_spill] sm:$0xff] %v14180_v25  ;;  %17088 = vst [vmem:[#allocation64_spill] sm:$0xff] %v14189_v63  ;;  %6643 = vmatprep.subr.bf16.mxu1 %v11495_v11  ;;  %v3282_v9 = vadd.f32 %v3281_v8, %v17089_v30  ;;  %v14193_v62 = vpack.c.bf16 %v7694_v50, %v7688_v59  ;;  %v11481_v32 = vld [vmem:[%s16963_s1 + $0x820] ss:$24 sps:$4 sm:$0xff]   ;;  %v7508_v11 = vadd.f32 %v13640_v61, %v3280_v5  ;;  %v11492_v59 = vld [vmem:[%s16963_s1 + $0x7f4] ss:$24 sps:$4 sm:$0xff]  }
 0x1f1   :  { %v3283_v37 = vpop.f32.mrf.mxu0  ;;  %v14195_v44 = vpop.f32.mrf.mxu1  ;;  %4294 = vmatpush2.bf16.msra.mxu0 %v11472_v3  ;;  %v11496_v3 = vld [vmem:[%s16964_s2 + $0x210] ss:$24 sps:$4 sm:$0xff]   ;;  %v12056_v5 = vld [vmem:[%s16962_s0 + $0x120] ss:$24 sps:$4 sm:$0xff]  }
 0x1f2   :  { %17090 = vst [vmem:[#allocation28_spill] sm:$0xff] %v14193_v62  ;;  %17091 = vst [vmem:[#allocation65_spill] sm:$0xff] %v14195_v44  ;;  %v7513_v10 = vadd.f32 %v13627_v21, %v3282_v9  ;;  %v3284_v8 = vadd.f32 %v3283_v37, %v17092_v16  ;;  %4295 = vmatprep.subr.bf16.mxu0 %v11483_v7  ;;  %v12057_v7 = vld [vmem:[%s16962_s0 + $0x128] ss:$24 sps:$4 sm:$0xff]   ;;  %v7699_v9 = vmax.f32 %v7507_v20, 0.0 }
 0x1f3   :  { %6644 = vmatpush2.bf16.msra.mxu1 %v11493_v45  ;;  %v3287_v50 = vpop.f32.mrf.mxu0  ;;  %v14212_v30 = vpop.f32.mrf.mxu1  ;;  %3978 = vmatmul.mubr.bf16.gmra.mxu0 %v12056_v5  ;;  %v11504_v45 = vld [vmem:[%s16964_s2 + $0x1e4] ss:$24 sps:$4 sm:$0xff]   ;;  %v11490_v20 = vld [vmem:[%s16963_s1 + $0x7f0] ss:$24 sps:$4 sm:$0xff]  }
 0x1f4   :  { %17093 = vst [vmem:[#allocation29_spill] sm:$0xff] %v14212_v30  ;;  %4171 = vmatmul.mubr.bf16.gmra.mxu1 %v12057_v7  ;;  %v7705_v37 = vmax.f32 %v7513_v10, 0.0  ;;  %v7514_v16 = vadd.f32 %v13640_v61, %v3284_v8  ;;  %v17094_v25 = vld [vmem:[#allocation30_spill] sm:$0xff]  ;;  %v12059_v5 = vld [vmem:[%s16962_s0 + $0x15c] ss:$24 sps:$4 sm:$0xff]   ;;  %6645 = vmatprep.subr.bf16.mxu1 %v11498_v54 }
 0x1f5   :  { %v3288_v62 = vadd.f32 %v3287_v50, %v17094_v25  ;;  %v12058_v30 = vld [vmem:[%s16962_s0 + $0x154] ss:$24 sps:$4 sm:$0xff]   ;;  %4180 = vmatprep.mubr.bf16.mxu1 %v12059_v5  ;;  %v3289_v7 = vpop.f32.mrf.mxu0  ;;  %v14231_v44 = vpop.f32.mrf.mxu1  ;;  %4296 = vmatpush2.bf16.msra.mxu0 %v11481_v32  ;;  %v7700_v25 = vmax.f32 %v7508_v11, 0.0  ;;  %v11502_v32 = vld [vmem:[%s16964_s2 + $0x1e0] ss:$24 sps:$4 sm:$0xff]  }
 0x1f6   :  { %3987 = vmatprep.mubr.bf16.mxu0 %v12058_v30  ;;  %17095 = vst [vmem:[#allocation30_spill] sm:$0xff] %v14231_v44  ;;  %v14236_v10 = vpack.c.bf16 %v7705_v37, %v7699_v9  ;;  %v7706_v8 = vmax.f32 %v7514_v16, 0.0  ;;  %v3290_v50 = vadd.f32 %v3289_v7, %v13557_v49  ;;  %4297 = vmatprep.subr.bf16.mxu0 %v11492_v59  ;;  %v11501_v30 = vld [vmem:[%s16963_s1 + $0x7c4] ss:$24 sps:$4 sm:$0xff]   ;;  %v17098_v11 = vld [vmem:[#allocation31_spill] sm:$0xff] }
 0x1f7   :  { %6646 = vmatpush2.bf16.msra.mxu1 %v11496_v3  ;;  %v3291_v5 = vpop.f32.mrf.mxu0  ;;  %v14245_v44 = vpop.f32.mrf.mxu1  ;;  %v7519_v54 = vadd.f32 %v13627_v21, %v3288_v62  ;;  %v11499_v3 = vld [vmem:[%s16963_s1 + $0x7c0] ss:$24 sps:$4 sm:$0xff]   ;;  %v11507_v16 = vld [vmem:[%s16964_s2 + $0x1b4] ss:$24 sps:$4 sm:$0xff]  }
 0x1f8   :  { %17096 = vst [vmem:[#allocation66_spill] sm:$0xff] %v14236_v10  ;;  %17097 = vst [vmem:[#allocation67_spill] sm:$0xff] %v14245_v44  ;;  %6647 = vmatprep.subr.bf16.mxu1 %v11504_v45  ;;  %v3292_v9 = vadd.f32 %v3291_v5, %v17098_v11  ;;  %v14249_v37 = vpack.c.bf16 %v7706_v8, %v7700_v25  ;;  %v17101_v7 = vld [vmem:[#allocation32_spill] sm:$0xff]  ;;  %v11505_v25 = vld [vmem:[%s16964_s2 + $0x1b0] ss:$24 sps:$4 sm:$0xff]   ;;  %v7520_v8 = vadd.f32 %v13640_v61, %v3290_v50 }
 0x1f9   :  { %v3293_v49 = vpop.f32.mrf.mxu0  ;;  %v14251_v59 = vpop.f32.mrf.mxu1  ;;  %4298 = vmatpush2.bf16.msra.mxu0 %v11490_v20  ;;  %v11510_v20 = vld [vmem:[%s16963_s1 + $0x794] ss:$24 sps:$4 sm:$0xff]  }
 0x1fa   :  { %17099 = vst [vmem:[#allocation31_spill] sm:$0xff] %v14249_v37  ;;  %17100 = vst [vmem:[#allocation68_spill] sm:$0xff] %v14251_v59  ;;  %v7525_v45 = vadd.f32 %v13627_v21, %v3292_v9  ;;  %v3294_v62 = vadd.f32 %v3293_v49, %v17101_v7  ;;  %4299 = vmatprep.subr.bf16.mxu0 %v11501_v30  ;;  %v12060_v9 = vld [vmem:[%s16962_s0 + $0x150] ss:$24 sps:$4 sm:$0xff]   ;;  %v7711_v49 = vmax.f32 %v7519_v54, 0.0 }
 0x1fb   :  { %6648 = vmatpush2.bf16.msra.mxu1 %v11502_v32  ;;  %v3297_v5 = vpop.f32.mrf.mxu0  ;;  %v14268_v11 = vpop.f32.mrf.mxu1  ;;  %3988 = vmatmul.mubr.bf16.gmra.mxu0 %v12060_v9  ;;  %v12061_v30 = vld [vmem:[%s16962_s0 + $0x158] ss:$24 sps:$4 sm:$0xff]   ;;  %v11513_v32 = vld [vmem:[%s16964_s2 + $0x184] ss:$24 sps:$4 sm:$0xff]  }
 0x1fc   :  { %17102 = vst [vmem:[#allocation32_spill] sm:$0xff] %v14268_v11  ;;  %4181 = vmatmul.mubr.bf16.gmra.mxu1 %v12061_v30  ;;  %v7717_v7 = vmax.f32 %v7525_v45, 0.0  ;;  %v7526_v50 = vadd.f32 %v13640_v61, %v3294_v62  ;;  %v3298_v10 = vadd.f32 %v3297_v5, %v13590_v51  ;;  %v17103_v37 = vld [vmem:[#allocation7_spill] sm:$0xff]  ;;  %v17104_v11 = vld [vmem:[#allocation8_spill] sm:$0xff]  ;;  %6649 = vmatprep.subr.bf16.mxu1 %v11507_v16  ;;  %v17107_v45 = vld [vmem:[#allocation34_spill] sm:$0xff] }
 0x1fd   :  { %3997 = vmatprep.mubr.bf16.mxu0 %v17103_v37  ;;  %4190 = vmatprep.mubr.bf16.mxu1 %v17104_v11  ;;  %v3299_v9 = vpop.f32.mrf.mxu0  ;;  %v14283_v59 = vpop.f32.mrf.mxu1  ;;  %v11508_v30 = vld [vmem:[%s16963_s1 + $0x790] ss:$24 sps:$4 sm:$0xff]   ;;  %v11511_v51 = vld [vmem:[%s16964_s2 + $0x180] ss:$24 sps:$4 sm:$0xff]   ;;  %v11519_v37 = vld [vmem:[%s16964_s2 + $0x754] ss:$24 sps:$4 sm:$0xff]  }
 0x1fe   :  { %17105 = vst [vmem:[#allocation7_spill] sm:$0xff] %v14283_v59  ;;  %4300 = vmatpush2.bf16.msra.mxu0 %v11499_v3  ;;  %v14288_v44 = vpack.c.bf16 %v7717_v7, %v7711_v49  ;;  %v7718_v54 = vmax.f32 %v7526_v50, 0.0  ;;  %v3300_v62 = vadd.f32 %v3299_v9, %v17107_v45  ;;  %v7712_v3 = vmax.f32 %v7520_v8, 0.0  ;;  %v11516_v8 = vld [vmem:[%s16964_s2 + $0x454] ss:$24 sps:$4 sm:$0xff]  }
 0x1ff   :  { %4301 = vmatprep.subr.bf16.mxu0 %v11510_v20  ;;  %6650 = vmatpush2.bf16.msra.mxu1 %v11505_v25  ;;  %v3301_v16 = vpop.f32.mrf.mxu0  ;;  %v14297_v5 = vpop.f32.mrf.mxu1  ;;  %v7531_v11 = vadd.f32 %v13627_v21, %v3298_v10  ;;  %v17111_v45 = vld [vmem:[#allocation35_spill] sm:$0xff] }
 0x200   :  { %17106 = vst [vmem:[#allocation8_spill] sm:$0xff] %v14288_v44  ;;  %17108 = vst [vmem:[#allocation34_spill] sm:$0xff] %v14297_v5  ;;  %6651 = vmatprep.subr.bf16.mxu1 %v11513_v32  ;;  %v3302_v49 = vadd.f32 %v3301_v16, %v13608_v27  ;;  %v7532_v20 = vadd.f32 %v13640_v61, %v3300_v62  ;;  %v14308_v9 = vpack.c.bf16 %v7718_v54, %v7712_v3  ;;  %v17112_v16 = vld [vmem:[#allocation9_spill] sm:$0xff]  ;;  %v17113_v44 = vld [vmem:[#allocation10_spill] sm:$0xff] }
 0x201   :  { %v3303_v25 = vpop.f32.mrf.mxu0  ;;  %v14302_v7 = vpop.f32.mrf.mxu1  ;;  %v7723_v50 = vmax.f32 %v7531_v11, 0.0  ;;  %v17114_v54 = vld [vmem:[#allocation36_spill] sm:$0xff]  ;;  %v17115_v11 = vsub.s32 2, %v13595_v1 }
 0x202   :  { %17109 = vst [vmem:[#allocation69_spill] sm:$0xff] %v14302_v7  ;;  %4302 = vmatpush2.bf16.msra.mxu0 %v11508_v30  ;;  %17110 = vst [vmem:[#allocation70_spill] sm:$0xff] %v14308_v9  ;;  %v7537_v32 = vadd.f32 %v13627_v21, %v3302_v49  ;;  %v3304_v10 = vadd.f32 %v3303_v25, %v17111_v45  ;;  %v16983_v30 = vsub.s32 3, %v13595_v1  ;;  %v12062_v21 = vld [vmem:[%s16962_s0 + $0x1b4] ss:$24 sps:$4 sm:$0xff]  }
 0x203   :  { %6652 = vmatpush2.bf16.msra.mxu1 %v11511_v51  ;;  %6703 = vmatprep.subr.bf16.mxu0 %v11519_v37  ;;  %v3533_v27 = vpop.f32.mrf.mxu0  ;;  %v3726_v62 = vpop.f32.mrf.mxu1  ;;  %v12063_v51 = vld [vmem:[%s16962_s0 + $0x1bc] ss:$24 sps:$4 sm:$0xff]   ;;  %v7724_v37 = vmax.f32 %v7532_v20, 0.0  ;;  %v17118_v9 = vld [vmem:[#allocation38_spill] sm:$0xff] }
 0x204   :  { %3998 = vmatmul.mubr.bf16.gmra.mxu0 %v17112_v16  ;;  %4191 = vmatmul.mubr.bf16.gmra.mxu1 %v17113_v44  ;;  %v7729_v7 = vmax.f32 %v7537_v32, 0.0  ;;  %v7538_v5 = vadd.f32 %v13640_v61, %v3304_v10  ;;  %v3534_v3 = vadd.f32 %v3533_v27, %v17114_v54  ;;  %v12064_v44 = vld [vmem:[%s16966_s4] sm:$0x3f] }
 0x205   :  { %4007 = vmatprep.mubr.bf16.mxu0 %v12062_v21  ;;  %4200 = vmatprep.mubr.bf16.mxu1 %v12063_v51  ;;  %v14328_v61 = vrot.slane %v12064_v44, %v17115_v11  ;;  %v3535_v49 = vpop.f32.mrf.mxu0  ;;  %v3728_v25 = vpop.f32.mrf.mxu1  ;;  %v17117_v27 = vld [vmem:[#allocation37_spill] sm:$0xff]  ;;  %v14335_v20 = vrot.slane %v12064_v44, %v16983_v30  ;;  %v12065_v44 = vld [vmem:[%s16962_s0 + $0x1b0] ss:$24 sps:$4 sm:$0xff]  }
 0x206   :  { %6662 = vmatprep.subr.bf16.mxu1 %v11516_v8  ;;  %v14330_v32 = vpack.c.bf16 %v7729_v7, %v7723_v50  ;;  %v7730_v45 = vmax.f32 %v7538_v5, 0.0  ;;  %v3727_v10 = vadd.f32 %v3726_v62, %v3534_v3  ;;  %v3536_v16 = vadd.f32 %v3535_v49, %v17117_v27  ;;  %v17120_v5 = vld [vmem:[#allocation39_spill] sm:$0xff] }
 0x207   :  { %v3537_v54 = vpop.f32.mrf.mxu0  ;;  %v3730_v21 = vpop.f32.mrf.mxu1 }
 0x208   :  { %17116 = vst [vmem:[#allocation35_spill] sm:$0xff] %v14330_v32  ;;  %v3729_v51 = vadd.f32 %v3728_v25, %v3536_v16  ;;  %v3538_v59 = vadd.f32 %v3537_v54, %v17118_v9  ;;  %v14338_v11 = vpack.c.bf16 %v7730_v45, %v7724_v37  ;;  %v7353_v63 = vadd.f32 %v14328_v61, %v3727_v10  ;;  %v12066_v9 = vld [vmem:[%s16962_s0 + $0x1b8] ss:$24 sps:$4 sm:$0xff]   ;;  %v12067_v10 = vld [vmem:[%s16962_s0 + $0x1e4] ss:$24 sps:$4 sm:$0xff]  }
 0x209   :  { %v3539_v8 = vpop.f32.mrf.mxu0  ;;  %v3732_v7 = vpop.f32.mrf.mxu1  ;;  %v12068_v16 = vld [vmem:[%s16962_s0 + $0x1ec] ss:$24 sps:$4 sm:$0xff]  }
 0x20a   :  { %17119 = vst [vmem:[#allocation9_spill] sm:$0xff] %v14338_v11  ;;  %v3731_v50 = vadd.f32 %v3730_v21, %v3538_v59  ;;  %v3540_v62 = vadd.f32 %v3539_v8, %v17120_v5  ;;  %v7354_v3 = vadd.f32 %v14335_v20, %v3729_v51  ;;  %v17121_v59 = vld [vmem:[#allocation40_spill] sm:$0xff]  ;;  %v7545_v54 = vmax.f32 %v7353_v63, 0.0 }
 0x20b   :  { %v3543_v49 = vpop.f32.mrf.mxu0  ;;  %v3736_v27 = vpop.f32.mrf.mxu1 }
 0x20c   :  { %4008 = vmatmul.mubr.bf16.gmra.mxu0 %v12065_v44  ;;  %4201 = vmatmul.mubr.bf16.gmra.mxu1 %v12066_v9  ;;  %v7359_v37 = vadd.f32 %v14328_v61, %v3731_v50  ;;  %v3733_v25 = vadd.f32 %v3732_v7, %v3540_v62  ;;  %v3544_v45 = vadd.f32 %v3543_v49, %v17121_v59  ;;  %v17122_v7 = vld [vmem:[#allocation41_spill] sm:$0xff]  ;;  %v7546_v9 = vmax.f32 %v7354_v3, 0.0 }
 0x20d   :  { %4017 = vmatprep.mubr.bf16.mxu0 %v12067_v10  ;;  %4210 = vmatprep.mubr.bf16.mxu1 %v12068_v16  ;;  %v3545_v21 = vpop.f32.mrf.mxu0  ;;  %v3738_v51 = vpop.f32.mrf.mxu1  ;;  %v12069_v3 = vld [vmem:[%s16962_s0 + $0x1e0] ss:$24 sps:$4 sm:$0xff]  }
 0x20e   :  { %v7551_v8 = vmax.f32 %v7359_v37, 0.0  ;;  %v7360_v5 = vadd.f32 %v14335_v20, %v3733_v25  ;;  %v3737_v50 = vadd.f32 %v3736_v27, %v3544_v45  ;;  %v3546_v62 = vadd.f32 %v3545_v21, %v17122_v7 }
 0x20f   :  { %v3547_v49 = vpop.f32.mrf.mxu0  ;;  %v3740_v44 = vpop.f32.mrf.mxu1 }
 0x210   :  { %v14359_v59 = vpack.c.bf16 %v7551_v8, %v7545_v54  ;;  %v7552_v10 = vmax.f32 %v7360_v5, 0.0  ;;  %v3739_v30 = vadd.f32 %v3738_v51, %v3546_v62  ;;  %v3548_v32 = vadd.f32 %v3547_v49, %v13672_v23  ;;  %v12070_v23 = vld [vmem:[%s16962_s0 + $0x1e8] ss:$24 sps:$4 sm:$0xff]  }
 0x211   :  { %v3549_v11 = vpop.f32.mrf.mxu0  ;;  %v3742_v16 = vpop.f32.mrf.mxu1  ;;  %v7365_v37 = vadd.f32 %v14328_v61, %v3737_v50 }
 0x212   :  { %17123 = vst [vmem:[#allocation10_spill] sm:$0xff] %v14359_v59  ;;  %v3550_v63 = vadd.f32 %v3549_v11, %v13678_v26  ;;  %v14363_v1 = vpack.c.bf16 %v7552_v10, %v7546_v9  ;;  %v3741_v27 = vadd.f32 %v3740_v44, %v3548_v32  ;;  %v12071_v11 = vld [vmem:[%s16962_s0 + $0x214] ss:$24 sps:$4 sm:$0xff]   ;;  %v7366_v21 = vadd.f32 %v14335_v20, %v3739_v30 }
 0x213   :  { %v3553_v25 = vpop.f32.mrf.mxu0  ;;  %v3746_v45 = vpop.f32.mrf.mxu1  ;;  %v12072_v32 = vld [vmem:[%s16962_s0 + $0x21c] ss:$24 sps:$4 sm:$0xff]   ;;  %v7557_v62 = vmax.f32 %v7365_v37, 0.0 }
 0x214   :  { %17124 = vst [vmem:[#allocation36_spill] sm:$0xff] %v14363_v1  ;;  %4018 = vmatmul.mubr.bf16.gmra.mxu0 %v12069_v3  ;;  %4211 = vmatmul.mubr.bf16.gmra.mxu1 %v12070_v23  ;;  %v3743_v54 = vadd.f32 %v3742_v16, %v3550_v63  ;;  %v3554_v26 = vadd.f32 %v3553_v25, %v13683_v39  ;;  %v7558_v25 = vmax.f32 %v7366_v21, 0.0 }
 0x215   :  { %4027 = vmatprep.mubr.bf16.mxu0 %v12071_v11  ;;  %4220 = vmatprep.mubr.bf16.mxu1 %v12072_v32  ;;  %v7371_v51 = vadd.f32 %v14328_v61, %v3741_v27  ;;  %v3555_v8 = vpop.f32.mrf.mxu0  ;;  %v3748_v5 = vpop.f32.mrf.mxu1 }
 0x216   :  { %v7372_v50 = vadd.f32 %v14335_v20, %v3743_v54  ;;  %v3747_v7 = vadd.f32 %v3746_v45, %v3554_v26  ;;  %v3556_v39 = vadd.f32 %v3555_v8, %v13699_v33  ;;  %v12073_v26 = vld [vmem:[%s16962_s0 + $0x210] ss:$24 sps:$4 sm:$0xff]   ;;  %v12075_v8 = vld [vmem:[%s16962_s0 + $0x244] ss:$24 sps:$4 sm:$0xff]  }
 0x217   :  { %v7563_v49 = vmax.f32 %v7371_v51, 0.0  ;;  %v3557_v44 = vpop.f32.mrf.mxu0  ;;  %v3750_v9 = vpop.f32.mrf.mxu1 }
 0x218   :  { %v7564_v10 = vmax.f32 %v7372_v50, 0.0  ;;  %v3749_v16 = vadd.f32 %v3748_v5, %v3556_v39  ;;  %v3558_v63 = vadd.f32 %v3557_v44, %v13704_v36  ;;  %v7377_v30 = vadd.f32 %v14328_v61, %v3747_v7  ;;  %v12074_v36 = vld [vmem:[%s16962_s0 + $0x218] ss:$24 sps:$4 sm:$0xff]   ;;  %v12076_v5 = vld [vmem:[%s16962_s0 + $0x24c] ss:$24 sps:$4 sm:$0xff]  }
 0x219   :  { %v14384_v3 = vpack.c.bf16 %v7563_v49, %v7557_v62  ;;  %v3559_v27 = vpop.f32.mrf.mxu0  ;;  %v3752_v23 = vpop.f32.mrf.mxu1 }
 0x21a   :  { %v3751_v11 = vadd.f32 %v3750_v9, %v3558_v63  ;;  %v3560_v45 = vadd.f32 %v3559_v27, %v13710_v48  ;;  %v7378_v33 = vadd.f32 %v14335_v20, %v3749_v16  ;;  %v14395_v32 = vpack.c.bf16 %v7564_v10, %v7558_v25 }
 0x21b   :  { %17125 = vst [vmem:[#allocation37_spill] sm:$0xff] %v14384_v3  ;;  %v3563_v37 = vpop.f32.mrf.mxu0  ;;  %v3756_v54 = vpop.f32.mrf.mxu1  ;;  %v7569_v50 = vmax.f32 %v7377_v30, 0.0 }
 0x21c   :  { %4028 = vmatmul.mubr.bf16.gmra.mxu0 %v12073_v26  ;;  %4221 = vmatmul.mubr.bf16.gmra.mxu1 %v12074_v36  ;;  %17126 = vst [vmem:[#allocation38_spill] sm:$0xff] %v14395_v32  ;;  %v7383_v21 = vadd.f32 %v14328_v61, %v3751_v11  ;;  %v3753_v51 = vadd.f32 %v3752_v23, %v3560_v45  ;;  %v7570_v16 = vmax.f32 %v7378_v33, 0.0  ;;  %v12077_v33 = vld [vmem:[%s16962_s0 + $0x240] ss:$24 sps:$4 sm:$0xff]  }
 0x21d   :  { %v3564_v48 = vadd.f32 %v3563_v37, %v13715_v56  ;;  %4037 = vmatprep.mubr.bf16.mxu0 %v12075_v8  ;;  %4230 = vmatprep.mubr.bf16.mxu1 %v12076_v5  ;;  %v3565_v7 = vpop.f32.mrf.mxu0  ;;  %v3758_v39 = vpop.f32.mrf.mxu1 }
 0x21e   :  { %v7575_v62 = vmax.f32 %v7383_v21, 0.0  ;;  %v7384_v49 = vadd.f32 %v14335_v20, %v3753_v51  ;;  %v3566_v9 = vadd.f32 %v3565_v7, %v13731_v15  ;;  %v12079_v51 = vld [vmem:[%s16962_s0 + $0x274] ss:$24 sps:$4 sm:$0xff]  }
 0x21f   :  { %v3757_v44 = vadd.f32 %v3756_v54, %v3564_v48  ;;  %v3567_v56 = vpop.f32.mrf.mxu0  ;;  %v3760_v10 = vpop.f32.mrf.mxu1  ;;  %v12080_v48 = vld [vmem:[%s16962_s0 + $0x27c] ss:$24 sps:$4 sm:$0xff]  }
 0x220   :  { %v14407_v63 = vpack.c.bf16 %v7575_v62, %v7569_v50  ;;  %v7576_v25 = vmax.f32 %v7384_v49, 0.0  ;;  %v3759_v27 = vadd.f32 %v3758_v39, %v3566_v9  ;;  %v3568_v23 = vadd.f32 %v3567_v56, %v13736_v46  ;;  %v12078_v46 = vld [vmem:[%s16962_s0 + $0x248] ss:$24 sps:$4 sm:$0xff]  }
 0x221   :  { %v3569_v11 = vpop.f32.mrf.mxu0  ;;  %v3762_v45 = vpop.f32.mrf.mxu1  ;;  %v7389_v26 = vadd.f32 %v14328_v61, %v3757_v44 }
 0x222   :  { %17127 = vst [vmem:[#allocation39_spill] sm:$0xff] %v14407_v63  ;;  %v3570_v30 = vadd.f32 %v3569_v11, %v13742_v19  ;;  %v14411_v37 = vpack.c.bf16 %v7576_v25, %v7570_v16  ;;  %v3761_v54 = vadd.f32 %v3760_v10, %v3568_v23  ;;  %v7390_v8 = vadd.f32 %v14335_v20, %v3759_v27 }
 0x223   :  { %v3573_v36 = vpop.f32.mrf.mxu0  ;;  %v3766_v15 = vpop.f32.mrf.mxu1  ;;  %v7581_v49 = vmax.f32 %v7389_v26, 0.0 }
 0x224   :  { %17128 = vst [vmem:[#allocation40_spill] sm:$0xff] %v14411_v37  ;;  %4038 = vmatmul.mubr.bf16.gmra.mxu0 %v12077_v33  ;;  %4231 = vmatmul.mubr.bf16.gmra.mxu1 %v12078_v46  ;;  %v3763_v21 = vadd.f32 %v3762_v45, %v3570_v30  ;;  %v3574_v19 = vadd.f32 %v3573_v36, %v13747_v13  ;;  %v7582_v23 = vmax.f32 %v7390_v8, 0.0  ;;  %v12081_v33 = vld [vmem:[%s16962_s0 + $0x270] ss:$24 sps:$4 sm:$0xff]  }
 0x225   :  { %4047 = vmatprep.mubr.bf16.mxu0 %v12079_v51  ;;  %4240 = vmatprep.mubr.bf16.mxu1 %v12080_v48  ;;  %v7395_v5 = vadd.f32 %v14328_v61, %v3761_v54  ;;  %v3575_v50 = vpop.f32.mrf.mxu0  ;;  %v3768_v7 = vpop.f32.mrf.mxu1  ;;  %v12083_v51 = vld [vmem:[%s16962_s0 + $0x2a4] ss:$24 sps:$4 sm:$0xff]  }
 0x226   :  { %v7396_v39 = vadd.f32 %v14335_v20, %v3763_v21  ;;  %v3767_v62 = vadd.f32 %v3766_v15, %v3574_v19  ;;  %v3576_v13 = vadd.f32 %v3575_v50, %v13763_v4  ;;  %v12084_v48 = vld [vmem:[%s16962_s0 + $0x2ac] ss:$24 sps:$4 sm:$0xff]  }
 0x227   :  { %v7587_v44 = vmax.f32 %v7395_v5, 0.0  ;;  %v3577_v9 = vpop.f32.mrf.mxu0  ;;  %v3770_v56 = vpop.f32.mrf.mxu1 }
 0x228   :  { %v7588_v10 = vmax.f32 %v7396_v39, 0.0  ;;  %v3769_v16 = vadd.f32 %v3768_v7, %v3576_v13  ;;  %v3578_v25 = vadd.f32 %v3577_v9, %v13768_v18  ;;  %v7401_v27 = vadd.f32 %v14328_v61, %v3767_v62  ;;  %v12082_v18 = vld [vmem:[%s16962_s0 + $0x278] ss:$24 sps:$4 sm:$0xff]   ;;  %v12085_v7 = vld [vmem:[%s16962_s0 + $0x180] sm:$0xff] }
 0x229   :  { %v14432_v11 = vpack.c.bf16 %v7587_v44, %v7581_v49  ;;  %v3579_v45 = vpop.f32.mrf.mxu0  ;;  %v3772_v30 = vpop.f32.mrf.mxu1  ;;  %v4855_v39 = vunpack.c.h.bf16 %v12085_v7 }
 0x22a   :  { %v3771_v54 = vadd.f32 %v3770_v56, %v3578_v25  ;;  %v3580_v36 = vadd.f32 %v3579_v45, %v13774_v52  ;;  %v7402_v4 = vadd.f32 %v14335_v20, %v3769_v16  ;;  %v14443_v46 = vpack.c.bf16 %v7588_v10, %v7582_v23 }
 0x22b   :  { %17129 = vst [vmem:[#allocation41_spill] sm:$0xff] %v14432_v11  ;;  %v3583_v26 = vpop.f32.mrf.mxu0  ;;  %v3776_v15 = vpop.f32.mrf.mxu1  ;;  %v7593_v8 = vmax.f32 %v7401_v27, 0.0 }
 0x22c   :  { %4048 = vmatmul.mubr.bf16.gmra.mxu0 %v12081_v33  ;;  %4241 = vmatmul.mubr.bf16.gmra.mxu1 %v12082_v18  ;;  %17130 = vst [vmem:[#allocation71_spill] sm:$0xff] %v14443_v46  ;;  %v7407_v21 = vadd.f32 %v14328_v61, %v3771_v54  ;;  %v3773_v19 = vadd.f32 %v3772_v30, %v3580_v36  ;;  %v7594_v56 = vmax.f32 %v7402_v4, 0.0  ;;  %v12086_v30 = vld [vmem:[%s16962_s0] sm:$0xff]  ;;  %v4867_v36 = vrot.slane %v4855_v39, 7 }
 0x22d   :  { %v3584_v52 = vadd.f32 %v3583_v26, %v13779_v41  ;;  %4057 = vmatprep.mubr.bf16.mxu0 %v12083_v51  ;;  %4250 = vmatprep.mubr.bf16.mxu1 %v12084_v48  ;;  %v3585_v5 = vpop.f32.mrf.mxu0  ;;  %v3778_v50 = vpop.f32.mrf.mxu1  ;;  %v4849_v54 = vunpack.c.h.bf16 %v12086_v30  ;;  %v4854_v4 = vunpack.c.l.bf16 %v12085_v7  ;;  %v12089_v51 = vld [vmem:[%s16962_s0 + $0x2d4] ss:$24 sps:$4 sm:$0xff]  }
 0x22e   :  { %v7599_v62 = vmax.f32 %v7407_v21, 0.0  ;;  %v7408_v41 = vadd.f32 %v14335_v20, %v3773_v19  ;;  %v3586_v49 = vadd.f32 %v3585_v5, %v13795_v34  ;;  %v12088_v19 = vld [vmem:[%s16962_s0 + $0x2a8] ss:$24 sps:$4 sm:$0xff]   ;;  %v12090_v48 = vld [vmem:[%s16962_s0 + $0x2dc] ss:$24 sps:$4 sm:$0xff]  }
 0x22f   :  { %v3777_v13 = vadd.f32 %v3776_v15, %v3584_v52  ;;  %v3587_v44 = vpop.f32.mrf.mxu0  ;;  %v3780_v9 = vpop.f32.mrf.mxu1  ;;  %v4880_v39 = vsel %vm4878_vm0, %v4849_v54, %v4867_v36 }
 0x230   :  { %v14458_v10 = vpack.c.bf16 %v7599_v62, %v7593_v8  ;;  %v7600_v16 = vmax.f32 %v7408_v41, 0.0  ;;  %v3779_v25 = vadd.f32 %v3778_v50, %v3586_v49  ;;  %v3588_v23 = vadd.f32 %v3587_v44, %v13800_v22  ;;  %v12087_v22 = vld [vmem:[%s16962_s0 + $0x2a0] ss:$24 sps:$4 sm:$0xff]  }
 0x231   :  { %v3589_v27 = vpop.f32.mrf.mxu0  ;;  %v3782_v45 = vpop.f32.mrf.mxu1  ;;  %v7413_v15 = vadd.f32 %v14328_v61, %v3777_v13  ;;  %v4848_v62 = vunpack.c.l.bf16 %v12086_v30  ;;  %v4866_v49 = vrot.slane %v4854_v4, 7  ;;  %v14493_v54 = vpack.c.bf16 %v4880_v39, %v4880_v39 }
 0x232   :  { %17131 = vst [vmem:[#allocation72_spill] sm:$0xff] %v14458_v10  ;;  %v3590_v26 = vadd.f32 %v3589_v27, %v13806_v12  ;;  %v14465_v34 = vpack.c.bf16 %v7600_v16, %v7594_v56  ;;  %v3781_v33 = vadd.f32 %v3780_v9, %v3588_v23  ;;  %v7414_v8 = vadd.f32 %v14335_v20, %v3779_v25  ;;  %v14489_v25 = vld [vmem:[%s16962_s0 + $0x188] sm:$0xff]  ;;  %v11684_v10 = vld [vmem:[%s16964_s2 + $0x39c] ss:$24 sps:$4 sm:$0xff]  }
 0x233   :  { %v3593_v18 = vpop.f32.mrf.mxu0  ;;  %v3786_v21 = vpop.f32.mrf.mxu1  ;;  %v7605_v44 = vmax.f32 %v7413_v15, 0.0  ;;  %v4857_v23 = vunpack.c.h.bf16 %v14489_v25 }
 0x234   :  { %17132 = vst [vmem:[#allocation73_spill] sm:$0xff] %v14465_v34  ;;  %4058 = vmatmul.mubr.bf16.gmra.mxu0 %v12087_v22  ;;  %4251 = vmatmul.mubr.bf16.gmra.mxu1 %v12088_v19  ;;  %v3783_v12 = vadd.f32 %v3782_v45, %v3590_v26  ;;  %v3594_v52 = vadd.f32 %v3593_v18, %v13811_v29  ;;  %v7606_v36 = vmax.f32 %v7414_v8, 0.0  ;;  %v12092_v19 = vld [vmem:[%s16962_s0 + $0x2d0] ss:$24 sps:$4 sm:$0xff]  }
 0x235   :  { %4067 = vmatprep.mubr.bf16.mxu0 %v12089_v51  ;;  %4260 = vmatprep.mubr.bf16.mxu1 %v12090_v48  ;;  %v7419_v5 = vadd.f32 %v14328_v61, %v3781_v33  ;;  %v3595_v50 = vpop.f32.mrf.mxu0  ;;  %v3788_v7 = vpop.f32.mrf.mxu1  ;;  %v4869_v51 = vrot.slane %v4857_v23, 7 }
 0x236   :  { %v7420_v29 = vadd.f32 %v14335_v20, %v3783_v12  ;;  %v3787_v41 = vadd.f32 %v3786_v21, %v3594_v52  ;;  %v3596_v13 = vadd.f32 %v3595_v50, %v13827_v58  ;;  %v4879_v12 = vsel %vm4878_vm0, %v4848_v62, %v4866_v49  ;;  %v14509_v52 = vld [vmem:[%s16962_s0 + $0x8] sm:$0xff] }
 0x237   :  { %v7611_v9 = vmax.f32 %v7419_v5, 0.0  ;;  %v3597_v56 = vpop.f32.mrf.mxu0  ;;  %v3790_v16 = vpop.f32.mrf.mxu1  ;;  %v14521_v23 = vpack.c.bf16 %v4879_v12, %v4879_v12 }
 0x238   :  { %v7612_v27 = vmax.f32 %v7420_v29, 0.0  ;;  %v3789_v45 = vadd.f32 %v3788_v7, %v3596_v13  ;;  %v3598_v30 = vadd.f32 %v3597_v56, %v13832_v31  ;;  %v7425_v26 = vadd.f32 %v14328_v61, %v3787_v41  ;;  %v12093_v31 = vld [vmem:[%s16962_s0 + $0x2d8] ss:$24 sps:$4 sm:$0xff]  }
 0x239   :  { %v14495_v58 = vpack.c.bf16 %v7611_v9, %v7605_v44  ;;  %v3599_v4 = vpop.f32.mrf.mxu0  ;;  %v3792_v15 = vpop.f32.mrf.mxu1  ;;  %v17135_v7 = vld [vmem:[#allocation11_spill] sm:$0xff] }
 0x23a   :  { %v3791_v33 = vadd.f32 %v3790_v16, %v3598_v30  ;;  %v3600_v18 = vadd.f32 %v3599_v4, %v13838_v38  ;;  %v4851_v38 = vunpack.c.h.bf16 %v14509_v52  ;;  %v14512_v48 = vpack.c.bf16 %v7612_v27, %v7606_v36 }
 0x23b   :  { %17133 = vst [vmem:[#allocation74_spill] sm:$0xff] %v14495_v58  ;;  %v3603_v21 = vpop.f32.mrf.mxu0  ;;  %v7617_v39 = vmax.f32 %v7425_v26, 0.0  ;;  %v7426_v62 = vadd.f32 %v14335_v20, %v3789_v45  ;;  %v11514_v45 = vld [vmem:[%s16964_s2 + $0x450] ss:$24 sps:$4 sm:$0xff]  }
 0x23c   :  { %v3796_v22 = vpop.f32.mrf.mxu1  ;;  %4068 = vmatmul.mubr.bf16.gmra.mxu0 %v12092_v19  ;;  %4261 = vmatmul.mubr.bf16.gmra.mxu1 %v12093_v31  ;;  %17134 = vst [vmem:[#allocation75_spill] sm:$0xff] %v14512_v48  ;;  %v7431_v8 = vadd.f32 %v14328_v61, %v3791_v33  ;;  %v3793_v5 = vadd.f32 %v3792_v15, %v3600_v18  ;;  %v11517_v26 = vld [vmem:[%s16964_s2 + $0x750] ss:$24 sps:$4 sm:$0xff]   ;;  %v11522_v18 = vld [vmem:[%s16964_s2 + $0x424] ss:$24 sps:$4 sm:$0xff]  }
 0x23d   :  { %v3604_v50 = vadd.f32 %v3603_v21, %v13843_v35  ;;  %4303 = vmatprep.mubr.bf16.mxu0 %v17135_v7  ;;  %6653 = vmatprep.mubr.bf16.mxu1 %v14493_v54  ;;  %v3605_v29 = vpop.f32.mrf.mxu0  ;;  %v4882_v35 = vsel %vm4878_vm0, %v4851_v38, %v4869_v51  ;;  %v7618_v4 = vmax.f32 %v7426_v62, 0.0  ;;  %v11526_v7 = vld [vmem:[%s16964_s2 + $0x720] ss:$24 sps:$4 sm:$0xff]  }
 0x23e   :  { %v3798_v41 = vpop.f32.mrf.mxu1  ;;  %v7623_v13 = vmax.f32 %v7431_v8, 0.0  ;;  %v7432_v49 = vadd.f32 %v14335_v20, %v3793_v5  ;;  %v3606_v9 = vadd.f32 %v3605_v29, %v13855_v47  ;;  %v14540_v19 = vpack.c.bf16 %v4882_v35, %v4882_v35 }
 0x23f   :  { %v3797_v44 = vadd.f32 %v3796_v22, %v3604_v50  ;;  %v3607_v56 = vpop.f32.mrf.mxu0  ;;  %v11528_v22 = vld [vmem:[%s16964_s2 + $0x724] ss:$24 sps:$4 sm:$0xff]   ;;  %v11520_v50 = vld [vmem:[%s16964_s2 + $0x420] ss:$24 sps:$4 sm:$0xff]  }
 0x240   :  { %v3800_v16 = vpop.f32.mrf.mxu1  ;;  %v14524_v27 = vpack.c.bf16 %v7623_v13, %v7617_v39  ;;  %v7624_v30 = vmax.f32 %v7432_v49, 0.0  ;;  %v3799_v36 = vadd.f32 %v3798_v41, %v3606_v9  ;;  %v3608_v47 = vadd.f32 %v3607_v56, %v13860_v60  ;;  %v17137_v60 = vld [vmem:[#allocation12_spill] sm:$0xff] }
 0x241   :  { %v3609_v15 = vpop.f32.mrf.mxu0  ;;  %v7437_v31 = vadd.f32 %v14328_v61, %v3797_v44  ;;  %v11525_v13 = vld [vmem:[%s16964_s2 + $0x3f4] ss:$24 sps:$4 sm:$0xff]  }
 0x242   :  { %17136 = vst [vmem:[#allocation11_spill] sm:$0xff] %v14524_v27  ;;  %v3802_v33 = vpop.f32.mrf.mxu1  ;;  %v3610_v21 = vadd.f32 %v3609_v15, %v13869_v17  ;;  %v3801_v12 = vadd.f32 %v3800_v16, %v3608_v47  ;;  %v14545_v8 = vpack.c.bf16 %v7624_v30, %v7618_v4  ;;  %v7438_v39 = vadd.f32 %v14335_v20, %v3799_v36  ;;  %v11537_v49 = vld [vmem:[%s16964_s2 + $0x6f4] ss:$24 sps:$4 sm:$0xff]   ;;  %v11523_v47 = vld [vmem:[%s16964_s2 + $0x3f0] ss:$24 sps:$4 sm:$0xff]  }
 0x243   :  { %v3613_v38 = vpop.f32.mrf.mxu0  ;;  %v7629_v16 = vmax.f32 %v7437_v31, 0.0 }
 0x244   :  { %v3806_v51 = vpop.f32.mrf.mxu1  ;;  %4304 = vmatmul.mubr.bf16.vlgmr.msra.gmra.mxu0 %v17137_v60  ;;  %6654 = vmatmul.mubr.bf16.vlgmr.msra.gmra.mxu1 %v14521_v23  ;;  %17138 = vst [vmem:[#allocation12_spill] sm:$0xff] %v14545_v8  ;;  %v3803_v5 = vadd.f32 %v3802_v33, %v3610_v21  ;;  %v3614_v17 = vadd.f32 %v3613_v38, %v13880_v0  ;;  %v12095_v0 = vld [vmem:[%s16962_s0 + $0x44] ss:$24 sps:$4 sm:$0xff]   ;;  %v7630_v15 = vmax.f32 %v7438_v39, 0.0 }
 0x245   :  { %6663 = vmatpush1.bf16.msra.mxu1 %v11514_v45  ;;  %6704 = vmatpush1.bf16.msra.mxu0 %v11517_v26  ;;  %v7443_v62 = vadd.f32 %v14328_v61, %v3801_v12  ;;  %v3615_v29 = vpop.f32.mrf.mxu0  ;;  %v11546_v38 = vld [vmem:[%s16964_s2 + $0x6c4] ss:$24 sps:$4 sm:$0xff]  }
 0x246   :  { %v3808_v41 = vpop.f32.mrf.mxu1  ;;  %6664 = vmatprep.subr.bf16.mxu1 %v11522_v18  ;;  %4313 = vmatprep.mubr.bf16.mxu0 %v12095_v0  ;;  %v7444_v44 = vadd.f32 %v14335_v20, %v3803_v5  ;;  %v3807_v9 = vadd.f32 %v3806_v51, %v3614_v17  ;;  %v3616_v56 = vadd.f32 %v3615_v29, %v13895_v57  ;;  %v12096_v17 = vld [vmem:[%s16962_s0 + $0x40] ss:$24 sps:$4 sm:$0xff]   ;;  %v12097_v29 = vld [vmem:[%s16962_s0 + $0x74] ss:$24 sps:$4 sm:$0xff]  }
 0x247   :  { %6705 = vmatprep.subr.bf16.mxu0 %v11528_v22  ;;  %6694 = vmatprep.mubr.bf16.mxu1 %v14540_v19  ;;  %v7635_v35 = vmax.f32 %v7443_v62, 0.0  ;;  %v3617_v30 = vpop.f32.mrf.mxu0  ;;  %v11531_v22 = vld [vmem:[%s16964_s2 + $0x3c4] ss:$24 sps:$4 sm:$0xff]   ;;  %v11529_v62 = vld [vmem:[%s16964_s2 + $0x3c0] ss:$24 sps:$4 sm:$0xff]  }
 0x248   :  { %v3810_v36 = vpop.f32.mrf.mxu1  ;;  %v7636_v45 = vmax.f32 %v7444_v44, 0.0  ;;  %v3809_v26 = vadd.f32 %v3808_v41, %v3616_v56  ;;  %v3618_v4 = vadd.f32 %v3617_v30, %v13909_v24  ;;  %v7449_v57 = vadd.f32 %v14328_v61, %v3807_v9  ;;  %v11535_v24 = vld [vmem:[%s16964_s2 + $0x6f0] ss:$24 sps:$4 sm:$0xff]  }
 0x249   :  { %6665 = vmatpush1.bf16.msra.mxu1 %v11520_v50  ;;  %6706 = vmatpush1.bf16.msra.mxu0 %v11526_v7  ;;  %v14572_v33 = vpack.c.bf16 %v7635_v35, %v7629_v16  ;;  %v3619_v18 = vpop.f32.mrf.mxu0  ;;  %v11555_v35 = vld [vmem:[%s16964_s2 + $0x694] ss:$24 sps:$4 sm:$0xff]  }
 0x24a   :  { %v3812_v21 = vpop.f32.mrf.mxu1  ;;  %6666 = vmatprep.subr.bf16.mxu1 %v11525_v13  ;;  %6707 = vmatprep.subr.bf16.mxu0 %v11537_v49  ;;  %v3811_v31 = vadd.f32 %v3810_v36, %v3618_v4  ;;  %v3620_v12 = vadd.f32 %v3619_v18, %v13915_v6  ;;  %v7450_v51 = vadd.f32 %v14335_v20, %v3809_v26  ;;  %v7641_v41 = vmax.f32 %v7449_v57, 0.0  ;;  %v11534_v49 = vld [vmem:[%s16964_s2 + $0x394] ss:$24 sps:$4 sm:$0xff]  }
 0x24b   :  { %17139 = vst [vmem:[#allocation76_spill] sm:$0xff] %v14572_v33  ;;  %v3623_v60 = vpop.f32.mrf.mxu0  ;;  %v14589_v50 = vpack.c.bf16 %v7636_v45, %v7630_v15  ;;  %v11532_v15 = vld [vmem:[%s16964_s2 + $0x390] ss:$24 sps:$4 sm:$0xff]  }
 0x24c   :  { %v3816_v5 = vpop.f32.mrf.mxu1  ;;  %4314 = vmatmul.mubr.bf16.gmra.mxu0 %v12096_v17  ;;  %v7455_v7 = vadd.f32 %v14328_v61, %v3811_v31  ;;  %v3813_v39 = vadd.f32 %v3812_v21, %v3620_v12  ;;  %v3624_v6 = vadd.f32 %v3623_v60, %v13932_v42  ;;  %v11544_v42 = vld [vmem:[%s16964_s2 + $0x6c0] ss:$24 sps:$4 sm:$0xff]   ;;  %v7642_v45 = vmax.f32 %v7450_v51, 0.0  ;;  %v11540_v21 = vld [vmem:[%s16964_s2 + $0x364] ss:$24 sps:$4 sm:$0xff]  }
 0x24d   :  { %17140 = vst [vmem:[#allocation77_spill] sm:$0xff] %v14589_v50  ;;  %6667 = vmatpush1.bf16.msra.mxu1 %v11523_v47  ;;  %4323 = vmatprep.mubr.bf16.mxu0 %v12097_v29  ;;  %v3625_v0 = vpop.f32.mrf.mxu0  ;;  %v11564_v31 = vld [vmem:[%s16964_s2 + $0x664] ss:$24 sps:$4 sm:$0xff]  }
 0x24e   :  { %v3818_v13 = vpop.f32.mrf.mxu1  ;;  %6668 = vmatprep.subr.bf16.mxu1 %v11531_v22  ;;  %6708 = vmatpush1.bf16.msra.mxu0 %v11535_v24  ;;  %v7647_v44 = vmax.f32 %v7455_v7, 0.0  ;;  %v7456_v9 = vadd.f32 %v14335_v20, %v3813_v39  ;;  %v3817_v56 = vadd.f32 %v3816_v5, %v3624_v6  ;;  %v3626_v16 = vadd.f32 %v3625_v0, %v13951_v2  ;;  %v11553_v22 = vld [vmem:[%s16964_s2 + $0x690] ss:$24 sps:$4 sm:$0xff]   ;;  %v11538_v7 = vld [vmem:[%s16964_s2 + $0x360] ss:$24 sps:$4 sm:$0xff]  }
 0x24f   :  { %6709 = vmatprep.subr.bf16.mxu0 %v11546_v38  ;;  %v3627_v30 = vpop.f32.mrf.mxu0  ;;  %v12098_v5 = vld [vmem:[%s16962_s0 + $0x70] ss:$24 sps:$4 sm:$0xff]   ;;  %v12099_v39 = vld [vmem:[%s16962_s0 + $0xa4] ss:$24 sps:$4 sm:$0xff]   ;;  %v11562_v0 = vld [vmem:[%s16964_s2 + $0x660] ss:$24 sps:$4 sm:$0xff]  }
 0x250   :  { %v3820_v36 = vpop.f32.mrf.mxu1  ;;  %v14610_v26 = vpack.c.bf16 %v7647_v44, %v7641_v41  ;;  %v7648_v4 = vmax.f32 %v7456_v9, 0.0  ;;  %v3819_v47 = vadd.f32 %v3818_v13, %v3626_v16  ;;  %v3628_v57 = vadd.f32 %v3627_v30, %v13965_v40  ;;  %v11573_v44 = vld [vmem:[%s16964_s2 + $0x634] ss:$24 sps:$4 sm:$0xff]  }
 0x251   :  { %6669 = vmatpush1.bf16.msra.mxu1 %v11529_v62  ;;  %v3629_v2 = vpop.f32.mrf.mxu0  ;;  %v7461_v12 = vadd.f32 %v14328_v61, %v3817_v56 }
 0x252   :  { %17141 = vst [vmem:[#allocation78_spill] sm:$0xff] %v14610_v26  ;;  %v3822_v18 = vpop.f32.mrf.mxu1  ;;  %6670 = vmatprep.subr.bf16.mxu1 %v11534_v49  ;;  %6710 = vmatpush1.bf16.msra.mxu0 %v11544_v42  ;;  %v3630_v24 = vadd.f32 %v3629_v2, %v13971_v28  ;;  %v14626_v40 = vpack.c.bf16 %v7648_v4, %v7642_v45  ;;  %v11541_v4 = vld [vmem:[%s16964_s2 + $0x330] ss:$24 sps:$4 sm:$0xff]  }
 0x253   :  { %6711 = vmatprep.subr.bf16.mxu0 %v11555_v35  ;;  %v3821_v38 = vadd.f32 %v3820_v36, %v3628_v57  ;;  %v3633_v51 = vpop.f32.mrf.mxu0  ;;  %v7462_v6 = vadd.f32 %v14335_v20, %v3819_v47  ;;  %v7653_v9 = vmax.f32 %v7461_v12, 0.0 }
 0x254   :  { %17142 = vst [vmem:[#allocation79_spill] sm:$0xff] %v14626_v40  ;;  %v3826_v60 = vpop.f32.mrf.mxu1  ;;  %4324 = vmatmul.mubr.bf16.gmra.mxu0 %v12098_v5  ;;  %v3823_v17 = vadd.f32 %v3822_v18, %v3630_v24  ;;  %v3634_v28 = vadd.f32 %v3633_v51, %v13988_v55  ;;  %v11543_v55 = vld [vmem:[%s16964_s2 + $0x334] ss:$24 sps:$4 sm:$0xff]   ;;  %v11549_v18 = vld [vmem:[%s16964_s2 + $0x304] ss:$24 sps:$4 sm:$0xff]  }
 0x255   :  { %6671 = vmatpush1.bf16.msra.mxu1 %v11532_v15  ;;  %4333 = vmatprep.mubr.bf16.mxu0 %v12099_v39  ;;  %v7467_v62 = vadd.f32 %v14328_v61, %v3821_v38  ;;  %v3635_v29 = vpop.f32.mrf.mxu0  ;;  %v7654_v47 = vmax.f32 %v7462_v6, 0.0  ;;  %v11547_v6 = vld [vmem:[%s16964_s2 + $0x300] ss:$24 sps:$4 sm:$0xff]  }
 0x256   :  { %v3828_v41 = vpop.f32.mrf.mxu1  ;;  %6672 = vmatprep.subr.bf16.mxu1 %v11540_v21  ;;  %6712 = vmatpush1.bf16.msra.mxu0 %v11553_v22  ;;  %v7468_v13 = vadd.f32 %v14335_v20, %v3823_v17  ;;  %v3827_v49 = vadd.f32 %v3826_v60, %v3634_v28  ;;  %v3636_v42 = vadd.f32 %v3635_v29, %v14007_v14  ;;  %v17144_v22 = vld [vmem:[#allocation17_spill] sm:$0xff] }
 0x257   :  { %6713 = vmatprep.subr.bf16.mxu0 %v11564_v31  ;;  %v7659_v56 = vmax.f32 %v7467_v62, 0.0  ;;  %v3637_v16 = vpop.f32.mrf.mxu0  ;;  %v11582_v31 = vld [vmem:[%s16964_s2 + $0x604] ss:$24 sps:$4 sm:$0xff]   ;;  %v12100_v60 = vld [vmem:[%s16962_s0 + $0xa0] ss:$24 sps:$4 sm:$0xff]  }
 0x258   :  { %v3830_v35 = vpop.f32.mrf.mxu1  ;;  %v7660_v30 = vmax.f32 %v7468_v13, 0.0  ;;  %v3829_v36 = vadd.f32 %v3828_v41, %v3636_v42  ;;  %v3638_v45 = vadd.f32 %v3637_v16, %v14021_v43  ;;  %v7473_v15 = vadd.f32 %v14328_v61, %v3827_v49  ;;  %v11571_v43 = vld [vmem:[%s16964_s2 + $0x630] ss:$24 sps:$4 sm:$0xff]   ;;  %v12101_v62 = vld [vmem:[%s16962_s0 + $0xd4] ss:$24 sps:$4 sm:$0xff]  }
 0x259   :  { %6673 = vmatpush1.bf16.msra.mxu1 %v11538_v7  ;;  %v14656_v14 = vpack.c.bf16 %v7659_v56, %v7653_v9  ;;  %v3639_v57 = vpop.f32.mrf.mxu0  ;;  %v17146_v7 = vld [vmem:[#allocation18_spill] sm:$0xff]  ;;  %v11580_v13 = vld [vmem:[%s16964_s2 + $0x600] ss:$24 sps:$4 sm:$0xff]   ;;  %v17147_v9 = vld [vmem:[#allocation19_spill] sm:$0xff] }
 0x25a   :  { %v3832_v2 = vpop.f32.mrf.mxu1  ;;  %6674 = vmatprep.subr.bf16.mxu1 %v11543_v55  ;;  %6714 = vmatpush1.bf16.msra.mxu0 %v11562_v0  ;;  %v3831_v21 = vadd.f32 %v3830_v35, %v3638_v45  ;;  %v3640_v24 = vadd.f32 %v3639_v57, %v17144_v22  ;;  %v7474_v12 = vadd.f32 %v14335_v20, %v3829_v36  ;;  %v7665_v29 = vmax.f32 %v7473_v15, 0.0  ;;  %v11552_v0 = vld [vmem:[%s16964_s2 + $0x5d4] ss:$24 sps:$4 sm:$0xff]   ;;  %v11550_v15 = vld [vmem:[%s16964_s2 + $0x5d0] ss:$24 sps:$4 sm:$0xff]  }
 0x25b   :  { %17143 = vst [vmem:[#allocation80_spill] sm:$0xff] %v14656_v14  ;;  %6715 = vmatprep.subr.bf16.mxu0 %v11573_v44  ;;  %v3643_v38 = vpop.f32.mrf.mxu0  ;;  %v14673_v5 = vpack.c.bf16 %v7660_v30, %v7654_v47  ;;  %v11591_v16 = vld [vmem:[%s16964_s2 + $0x8d4] ss:$24 sps:$4 sm:$0xff]   ;;  %v11589_v22 = vld [vmem:[%s16964_s2 + $0x8d0] ss:$24 sps:$4 sm:$0xff]  }
 0x25c   :  { %v3836_v51 = vpop.f32.mrf.mxu1  ;;  %4334 = vmatmul.mubr.bf16.gmra.mxu0 %v12100_v60  ;;  %v7479_v17 = vadd.f32 %v14328_v61, %v3831_v21  ;;  %v3833_v28 = vadd.f32 %v3832_v2, %v3640_v24  ;;  %v3644_v39 = vadd.f32 %v3643_v38, %v17146_v7  ;;  %v7666_v36 = vmax.f32 %v7474_v12, 0.0  ;;  %v17149_v57 = vld [vmem:[#allocation20_spill] sm:$0xff]  ;;  %v17150_v24 = vld [vmem:[#allocation61_spill] sm:$0xff]  ;;  %v12102_v7 = vld [vmem:[%s16962_s0 + $0xd0] ss:$24 sps:$4 sm:$0xff]  }
 0x25d   :  { %17145 = vst [vmem:[#allocation17_spill] sm:$0xff] %v14673_v5  ;;  %6675 = vmatpush1.bf16.msra.mxu1 %v11541_v4  ;;  %4343 = vmatprep.mubr.bf16.mxu0 %v12101_v62  ;;  %v3645_v41 = vpop.f32.mrf.mxu0  ;;  %v11558_v21 = vld [vmem:[%s16964_s2 + $0x5a4] ss:$24 sps:$4 sm:$0xff]   ;;  %v12122_v14 = vld [vmem:[%s16962_s0 + $0x2b0] ss:$24 sps:$4 sm:$0xff]  }
 0x25e   :  { %v3838_v55 = vpop.f32.mrf.mxu1  ;;  %6676 = vmatprep.subr.bf16.mxu1 %v11549_v18  ;;  %6716 = vmatpush1.bf16.msra.mxu0 %v11571_v43  ;;  %v7671_v49 = vmax.f32 %v7479_v17, 0.0  ;;  %v7480_v42 = vadd.f32 %v14335_v20, %v3833_v28  ;;  %v3837_v44 = vadd.f32 %v3836_v51, %v3644_v39  ;;  %v3646_v56 = vadd.f32 %v3645_v41, %v17147_v9  ;;  %v11600_v12 = vld [vmem:[%s16964_s2 + $0x8a4] ss:$24 sps:$4 sm:$0xff]  }
 0x25f   :  { %6717 = vmatprep.subr.bf16.mxu0 %v11582_v31  ;;  %v3647_v35 = vpop.f32.mrf.mxu0  ;;  %v12103_v41 = vld [vmem:[%s16962_s0 + $0x104] ss:$24 sps:$4 sm:$0xff]  }
 0x260   :  { %v3840_v30 = vpop.f32.mrf.mxu1  ;;  %v14694_v45 = vpack.c.bf16 %v7671_v49, %v7665_v29  ;;  %v7672_v4 = vmax.f32 %v7480_v42, 0.0  ;;  %v3839_v47 = vadd.f32 %v3838_v55, %v3646_v56  ;;  %v3648_v2 = vadd.f32 %v3647_v35, %v17149_v57  ;;  %v11556_v29 = vld [vmem:[%s16964_s2 + $0x5a0] ss:$24 sps:$4 sm:$0xff]   ;;  %v11561_v42 = vld [vmem:[%s16964_s2 + $0x574] ss:$24 sps:$4 sm:$0xff]  }
 0x261   :  { %6677 = vmatpush1.bf16.msra.mxu1 %v11547_v6  ;;  %v3649_v18 = vpop.f32.mrf.mxu0  ;;  %v7485_v51 = vadd.f32 %v14328_v61, %v3837_v44  ;;  %v17152_v6 = vld [vmem:[#allocation22_spill] sm:$0xff]  ;;  %v11598_v44 = vld [vmem:[%s16964_s2 + $0x8a0] ss:$24 sps:$4 sm:$0xff]  }
 0x262   :  { %17148 = vst [vmem:[#allocation18_spill] sm:$0xff] %v14694_v45  ;;  %v3842_v43 = vpop.f32.mrf.mxu1  ;;  %6678 = vmatprep.subr.bf16.mxu1 %v11552_v0  ;;  %6718 = vmatpush1.bf16.msra.mxu0 %v11580_v13  ;;  %v3650_v31 = vadd.f32 %v3649_v18, %v17150_v24  ;;  %v14710_v38 = vpack.c.bf16 %v7672_v4, %v7666_v36  ;;  %v12123_v5 = vld [vmem:[%s16962_s0 + $0x2e4] ss:$24 sps:$4 sm:$0xff]  }
 0x263   :  { %6719 = vmatprep.subr.bf16.mxu0 %v11591_v16  ;;  %v3841_v60 = vadd.f32 %v3840_v30, %v3648_v2  ;;  %v3653_v17 = vpop.f32.mrf.mxu0  ;;  %v7486_v55 = vadd.f32 %v14335_v20, %v3839_v47  ;;  %v17153_v16 = vld [vmem:[#allocation23_spill] sm:$0xff]  ;;  %v7677_v36 = vmax.f32 %v7485_v51, 0.0  ;;  %v11567_v51 = vld [vmem:[%s16964_s2 + $0x544] ss:$24 sps:$4 sm:$0xff]  }
 0x264   :  { %17151 = vst [vmem:[#allocation19_spill] sm:$0xff] %v14710_v38  ;;  %v3846_v28 = vpop.f32.mrf.mxu1  ;;  %4344 = vmatmul.mubr.bf16.gmra.mxu0 %v12102_v7  ;;  %v3843_v39 = vadd.f32 %v3842_v43, %v3650_v31  ;;  %v3654_v62 = vadd.f32 %v3653_v17, %v17152_v6  ;;  %v11609_v30 = vld [vmem:[%s16964_s2 + $0x874] ss:$24 sps:$4 sm:$0xff]   ;;  %v11559_v43 = vld [vmem:[%s16964_s2 + $0x570] ss:$24 sps:$4 sm:$0xff]   ;;  %v17155_v17 = vld [vmem:[#allocation25_spill] sm:$0xff] }
 0x265   :  { %6679 = vmatpush2.bf16.msra.mxu1 %v11550_v15  ;;  %4353 = vmatprep.mubr.bf16.mxu0 %v12103_v41  ;;  %v7491_v0 = vadd.f32 %v14328_v61, %v3841_v60  ;;  %v3655_v13 = vpop.f32.mrf.mxu0  ;;  %v11618_v7 = vld [vmem:[%s16964_s2 + $0x844] ss:$24 sps:$4 sm:$0xff]  }
 0x266   :  { %v3848_v49 = vpop.f32.mrf.mxu1  ;;  %6680 = vmatprep.subr.bf16.mxu1 %v11558_v21  ;;  %6720 = vmatpush2.bf16.msra.mxu0 %v11589_v22  ;;  %v7492_v9 = vadd.f32 %v14335_v20, %v3843_v39  ;;  %v3847_v56 = vadd.f32 %v3846_v28, %v3654_v62  ;;  %v3656_v35 = vadd.f32 %v3655_v13, %v17153_v16  ;;  %v7678_v21 = vmax.f32 %v7486_v55, 0.0  ;;  %v17157_v13 = vld [vmem:[#allocation26_spill] sm:$0xff] }
 0x267   :  { %6721 = vmatprep.subr.bf16.mxu0 %v11600_v12  ;;  %v7683_v4 = vmax.f32 %v7491_v0, 0.0  ;;  %v3657_v47 = vpop.f32.mrf.mxu0  ;;  %v11648_v38 = vld [vmem:[%s16964_s2 + $0x1ec] ss:$24 sps:$4 sm:$0xff]  }
 0x268   :  { %v3850_v15 = vpop.f32.mrf.mxu1  ;;  %v7684_v57 = vmax.f32 %v7492_v9, 0.0  ;;  %v3849_v2 = vadd.f32 %v3848_v49, %v3656_v35  ;;  %v3658_v18 = vadd.f32 %v3657_v47, %v14133_v53  ;;  %v7497_v24 = vadd.f32 %v14328_v61, %v3847_v56  ;;  %v11607_v53 = vld [vmem:[%s16964_s2 + $0x870] ss:$24 sps:$4 sm:$0xff]   ;;  %v11570_v35 = vld [vmem:[%s16964_s2 + $0x514] ss:$24 sps:$4 sm:$0xff]  }
 0x269   :  { %6681 = vmatpush2.bf16.msra.mxu1 %v11556_v29  ;;  %v14740_v22 = vpack.c.bf16 %v7683_v4, %v7677_v36  ;;  %v3659_v31 = vpop.f32.mrf.mxu0  ;;  %v12104_v29 = vld [vmem:[%s16962_s0 + $0x100] ss:$24 sps:$4 sm:$0xff]  }
 0x26a   :  { %v3852_v12 = vpop.f32.mrf.mxu1  ;;  %6682 = vmatprep.subr.bf16.mxu1 %v11561_v42  ;;  %6722 = vmatpush2.bf16.msra.mxu0 %v11598_v44  ;;  %v3851_v60 = vadd.f32 %v3850_v15, %v3658_v18  ;;  %v3660_v28 = vadd.f32 %v3659_v31, %v17155_v17  ;;  %v7498_v39 = vadd.f32 %v14335_v20, %v3849_v2  ;;  %v11565_v42 = vld [vmem:[%s16964_s2 + $0x540] ss:$24 sps:$4 sm:$0xff]   ;;  %v12105_v44 = vld [vmem:[%s16962_s0 + $0x134] ss:$24 sps:$4 sm:$0xff]   ;;  %v7689_v9 = vmax.f32 %v7497_v24, 0.0 }
 0x26b   :  { %17154 = vst [vmem:[#allocation20_spill] sm:$0xff] %v14740_v22  ;;  %6723 = vmatprep.subr.bf16.mxu0 %v11609_v30  ;;  %v3663_v6 = vpop.f32.mrf.mxu0  ;;  %v14757_v41 = vpack.c.bf16 %v7684_v57, %v7678_v21  ;;  %v11616_v30 = vld [vmem:[%s16964_s2 + $0x840] ss:$24 sps:$4 sm:$0xff]   ;;  %v17158_v15 = vld [vmem:[#allocation27_spill] sm:$0xff] }
 0x26c   :  { %v3856_v62 = vpop.f32.mrf.mxu1  ;;  %4354 = vmatmul.mubr.bf16.gmra.mxu0 %v12104_v29  ;;  %v7503_v55 = vadd.f32 %v14328_v61, %v3851_v60  ;;  %v3853_v0 = vadd.f32 %v3852_v12, %v3660_v28  ;;  %v3664_v49 = vadd.f32 %v3663_v6, %v17157_v13  ;;  %v11627_v2 = vld [vmem:[%s16964_s2 + $0x814] ss:$24 sps:$4 sm:$0xff]   ;;  %v7690_v21 = vmax.f32 %v7498_v39, 0.0  ;;  %v11625_v39 = vld [vmem:[%s16964_s2 + $0x810] ss:$24 sps:$4 sm:$0xff]   ;;  %v17161_v6 = vld [vmem:[#allocation65_spill] sm:$0xff] }
 0x26d   :  { %17156 = vst [vmem:[#allocation61_spill] sm:$0xff] %v14757_v41  ;;  %6683 = vmatpush2.bf16.msra.mxu1 %v11559_v43  ;;  %4363 = vmatprep.mubr.bf16.mxu0 %v12105_v44  ;;  %v3665_v56 = vpop.f32.mrf.mxu0  ;;  %v11636_v29 = vld [vmem:[%s16964_s2 + $0x7e4] ss:$24 sps:$4 sm:$0xff]  }
 0x26e   :  { %v3858_v16 = vpop.f32.mrf.mxu1  ;;  %6684 = vmatprep.subr.bf16.mxu1 %v11567_v51  ;;  %6724 = vmatpush2.bf16.msra.mxu0 %v11607_v53  ;;  %v7695_v36 = vmax.f32 %v7503_v55, 0.0  ;;  %v7504_v4 = vadd.f32 %v14335_v20, %v3853_v0  ;;  %v3857_v47 = vadd.f32 %v3856_v62, %v3664_v49  ;;  %v3666_v57 = vadd.f32 %v3665_v56, %v17158_v15  ;;  %v11568_v51 = vld [vmem:[%s16964_s2 + $0x510] ss:$24 sps:$4 sm:$0xff]   ;;  %v17160_v53 = vld [vmem:[#allocation64_spill] sm:$0xff] }
 0x26f   :  { %6725 = vmatprep.subr.bf16.mxu0 %v11618_v7  ;;  %v3667_v18 = vpop.f32.mrf.mxu0  ;;  %v11576_v7 = vld [vmem:[%s16964_s2 + $0x4e4] ss:$24 sps:$4 sm:$0xff]   ;;  %v4856_v0 = vunpack.c.l.bf16 %v14489_v25 }
 0x270   :  { %v3860_v43 = vpop.f32.mrf.mxu1  ;;  %v14778_v24 = vpack.c.bf16 %v7695_v36, %v7689_v9  ;;  %v7696_v31 = vmax.f32 %v7504_v4, 0.0  ;;  %v3859_v12 = vadd.f32 %v3858_v16, %v3666_v57  ;;  %v3668_v60 = vadd.f32 %v3667_v18, %v17160_v53  ;;  %v12106_v9 = vld [vmem:[%s16962_s0 + $0x130] ss:$24 sps:$4 sm:$0xff]   ;;  %v17163_v16 = vld [vmem:[#allocation29_spill] sm:$0xff]  ;;  %v11579_v57 = vld [vmem:[%s16964_s2 + $0x4b4] ss:$24 sps:$4 sm:$0xff]  }
 0x271   :  { %6685 = vmatpush2.bf16.msra.mxu1 %v11565_v42  ;;  %v3669_v17 = vpop.f32.mrf.mxu0  ;;  %v7509_v13 = vadd.f32 %v14328_v61, %v3857_v47  ;;  %v12107_v25 = vld [vmem:[%s16962_s0 + $0x164] ss:$24 sps:$4 sm:$0xff]   ;;  %v4868_v53 = vrot.slane %v4856_v0, 7 }
 0x272   :  { %17159 = vst [vmem:[#allocation22_spill] sm:$0xff] %v14778_v24  ;;  %v3862_v28 = vpop.f32.mrf.mxu1  ;;  %6686 = vmatprep.subr.bf16.mxu1 %v11570_v35  ;;  %6726 = vmatpush2.bf16.msra.mxu0 %v11616_v30  ;;  %v3670_v62 = vadd.f32 %v3669_v17, %v17161_v6  ;;  %v14794_v55 = vpack.c.bf16 %v7696_v31, %v7690_v21  ;;  %v11574_v30 = vld [vmem:[%s16964_s2 + $0x4e0] ss:$24 sps:$4 sm:$0xff]   ;;  %v17164_v21 = vld [vmem:[#allocation30_spill] sm:$0xff] }
 0x273   :  { %6727 = vmatprep.subr.bf16.mxu0 %v11627_v2  ;;  %v3861_v49 = vadd.f32 %v3860_v43, %v3668_v60  ;;  %v3673_v42 = vpop.f32.mrf.mxu0  ;;  %v7510_v36 = vadd.f32 %v14335_v20, %v3859_v12  ;;  %v11634_v2 = vld [vmem:[%s16964_s2 + $0x7e0] ss:$24 sps:$4 sm:$0xff]   ;;  %v11645_v12 = vld [vmem:[%s16964_s2 + $0x7b4] ss:$24 sps:$4 sm:$0xff]   ;;  %v7701_v60 = vmax.f32 %v7509_v13, 0.0 }
 0x274   :  { %17162 = vst [vmem:[#allocation23_spill] sm:$0xff] %v14794_v55  ;;  %v3866_v44 = vpop.f32.mrf.mxu1  ;;  %4364 = vmatmul.mubr.bf16.gmra.mxu0 %v12106_v9  ;;  %v3863_v56 = vadd.f32 %v3862_v28, %v3670_v62  ;;  %v3674_v35 = vadd.f32 %v3673_v42, %v17163_v16  ;;  %v17165_v62 = vld [vmem:[#allocation67_spill] sm:$0xff]  ;;  %v11585_v13 = vld [vmem:[%s16964_s2 + $0x484] ss:$24 sps:$4 sm:$0xff]  }
 0x275   :  { %6687 = vmatpush2.bf16.msra.mxu1 %v11568_v51  ;;  %4373 = vmatprep.mubr.bf16.mxu0 %v12107_v25  ;;  %v7515_v4 = vadd.f32 %v14328_v61, %v3861_v49  ;;  %v3675_v47 = vpop.f32.mrf.mxu0  ;;  %v4850_v51 = vunpack.c.l.bf16 %v14509_v52  ;;  %v7702_v42 = vmax.f32 %v7510_v36, 0.0  ;;  %v11654_v25 = vld [vmem:[%s16964_s2 + $0x784] ss:$24 sps:$4 sm:$0xff]  }
 0x276   :  { %v3868_v15 = vpop.f32.mrf.mxu1  ;;  %6688 = vmatprep.subr.bf16.mxu1 %v11576_v7  ;;  %6728 = vmatpush2.bf16.msra.mxu0 %v11625_v39  ;;  %v7516_v18 = vadd.f32 %v14335_v20, %v3863_v56  ;;  %v3867_v43 = vadd.f32 %v3866_v44, %v3674_v35  ;;  %v3676_v31 = vadd.f32 %v3675_v47, %v17164_v21  ;;  %v11643_v56 = vld [vmem:[%s16964_s2 + $0x7b0] ss:$24 sps:$4 sm:$0xff]   ;;  %v17167_v35 = vld [vmem:[#allocation68_spill] sm:$0xff] }
 0x277   :  { %6729 = vmatprep.subr.bf16.mxu0 %v11636_v29  ;;  %v7707_v17 = vmax.f32 %v7515_v4, 0.0  ;;  %v3677_v28 = vpop.f32.mrf.mxu0  ;;  %v11577_v29 = vld [vmem:[%s16964_s2 + $0x4b0] ss:$24 sps:$4 sm:$0xff]   ;;  %v17169_v21 = vld [vmem:[#allocation32_spill] sm:$0xff] }
 0x278   :  { %v3870_v7 = vpop.f32.mrf.mxu1  ;;  %v7708_v39 = vmax.f32 %v7516_v18, 0.0  ;;  %v3869_v6 = vadd.f32 %v3868_v15, %v3676_v31  ;;  %v3678_v49 = vadd.f32 %v3677_v28, %v17165_v62  ;;  %v7521_v9 = vadd.f32 %v14328_v61, %v3867_v43  ;;  %v12108_v15 = vld [vmem:[%s16962_s0 + $0x160] ss:$24 sps:$4 sm:$0xff]   ;;  %v11642_v55 = vld [vmem:[%s16964_s2 + $0x21c] ss:$24 sps:$4 sm:$0xff]  }
 0x279   :  { %6689 = vmatpush2.bf16.msra.mxu1 %v11574_v30  ;;  %v14826_v44 = vpack.c.bf16 %v7707_v17, %v7701_v60  ;;  %v3679_v52 = vpop.f32.mrf.mxu0  ;;  %v17170_v60 = vld [vmem:[#allocation13_spill] sm:$0xff] }
 0x27a   :  { %v3872_v0 = vpop.f32.mrf.mxu1  ;;  %6690 = vmatprep.subr.bf16.mxu1 %v11579_v57  ;;  %6730 = vmatpush2.bf16.msra.mxu0 %v11634_v2  ;;  %v3871_v16 = vadd.f32 %v3870_v7, %v3678_v49  ;;  %v3680_v30 = vadd.f32 %v3679_v52, %v17167_v35  ;;  %v7522_v36 = vadd.f32 %v14335_v20, %v3869_v6  ;;  %v7713_v17 = vmax.f32 %v7521_v9, 0.0  ;;  %v17171_v49 = vld [vmem:[#allocation7_spill] sm:$0xff] }
 0x27b   :  { %17166 = vst [vmem:[#allocation25_spill] sm:$0xff] %v14826_v44  ;;  %6731 = vmatprep.subr.bf16.mxu0 %v11645_v12  ;;  %v3683_v4 = vpop.f32.mrf.mxu0  ;;  %v4881_v57 = vsel %vm4878_vm0, %v4850_v51, %v4868_v53  ;;  %v14844_v2 = vpack.c.bf16 %v7708_v39, %v7702_v42  ;;  %v11583_v12 = vld [vmem:[%s16964_s2 + $0x480] ss:$24 sps:$4 sm:$0xff]   ;;  %v11588_v51 = vld [vmem:[%s16964_s2 + $0x15c] ss:$24 sps:$4 sm:$0xff]  }
 0x27c   :  { %v3876_v47 = vpop.f32.mrf.mxu1  ;;  %4374 = vmatmul.mubr.bf16.gmra.mxu0 %v12108_v15  ;;  %v7527_v18 = vadd.f32 %v14328_v61, %v3871_v16  ;;  %v3873_v43 = vadd.f32 %v3872_v0, %v3680_v30  ;;  %v3684_v31 = vadd.f32 %v3683_v4, %v17169_v21  ;;  %v11652_v53 = vld [vmem:[%s16964_s2 + $0x780] ss:$24 sps:$4 sm:$0xff]   ;;  %v11660_v42 = vld [vmem:[%s16964_s2 + $0x45c] ss:$24 sps:$4 sm:$0xff]   ;;  %v14863_v0 = vpack.c.bf16 %v4881_v57, %v4881_v57  ;;  %v17173_v4 = vld [vmem:[#allocation34_spill] sm:$0xff] }
 0x27d   :  { %17168 = vst [vmem:[#allocation26_spill] sm:$0xff] %v14844_v2  ;;  %6691 = vmatpush2.bf16.msra.mxu1 %v11577_v29  ;;  %4383 = vmatprep.mubr.bf16.mxu0 %v17170_v60  ;;  %v3685_v28 = vpop.f32.mrf.mxu0  ;;  %v11586_v30 = vld [vmem:[%s16964_s2 + $0x158] ss:$24 sps:$4 sm:$0xff]   ;;  %v11594_v57 = vld [vmem:[%s16964_s2 + $0x12c] ss:$24 sps:$4 sm:$0xff]  }
 0x27e   :  { %v3878_v7 = vpop.f32.mrf.mxu1  ;;  %6692 = vmatprep.subr.bf16.mxu1 %v11585_v13  ;;  %6732 = vmatpush2.bf16.msra.mxu0 %v11643_v56  ;;  %v7719_v39 = vmax.f32 %v7527_v18, 0.0  ;;  %v7528_v6 = vadd.f32 %v14335_v20, %v3873_v43  ;;  %v3877_v62 = vadd.f32 %v3876_v47, %v3684_v31  ;;  %v3686_v29 = vadd.f32 %v3685_v28, %v17171_v49 }
 0x27f   :  { %6733 = vmatprep.subr.bf16.mxu0 %v11654_v25  ;;  %v3687_v9 = vpop.f32.mrf.mxu0  ;;  %v7714_v13 = vmax.f32 %v7522_v36, 0.0  ;;  %v17174_v36 = vld [vmem:[#allocation69_spill] sm:$0xff] }
 0x280   :  { %v3880_v52 = vpop.f32.mrf.mxu1  ;;  %v14865_v56 = vpack.c.bf16 %v7719_v39, %v7713_v17  ;;  %v7720_v16 = vmax.f32 %v7528_v6, 0.0  ;;  %v3879_v35 = vadd.f32 %v3878_v7, %v3686_v29  ;;  %v3688_v25 = vadd.f32 %v3687_v9, %v17173_v4  ;;  %v17176_v17 = vld [vmem:[#allocation14_spill] sm:$0xff]  ;;  %v11597_v29 = vld [vmem:[%s16964_s2 + $0xfc] ss:$24 sps:$4 sm:$0xff]  }
 0x281   :  { %6693 = vmatpush2.bf16.msra.mxu1 %v11583_v12  ;;  %v3689_v47 = vpop.f32.mrf.mxu0  ;;  %v7533_v21 = vadd.f32 %v14328_v61, %v3877_v62  ;;  %v12109_v39 = vld [vmem:[%s16962_s0 + $0x1c4] ss:$24 sps:$4 sm:$0xff]  }
 0x282   :  { %17172 = vst [vmem:[#allocation27_spill] sm:$0xff] %v14865_v56  ;;  %v3882_v15 = vpop.f32.mrf.mxu1  ;;  %6744 = vmatprep.subr.bf16.mxu1 %v11588_v51  ;;  %6734 = vmatpush2.bf16.msra.mxu0 %v11652_v53  ;;  %v3690_v18 = vadd.f32 %v3689_v47, %v17174_v36  ;;  %v14875_v43 = vpack.c.bf16 %v7720_v16, %v7714_v13  ;;  %v11592_v53 = vld [vmem:[%s16964_s2 + $0x128] ss:$24 sps:$4 sm:$0xff]   ;;  %v11633_v56 = vld [vmem:[%s16964_s2 + $0x27c] ss:$24 sps:$4 sm:$0xff]  }
 0x283   :  { %6785 = vmatprep.subr.bf16.mxu0 %v11660_v42  ;;  %v3881_v31 = vadd.f32 %v3880_v52, %v3688_v25  ;;  %v3919_v12 = vpop.f32.mrf.mxu0  ;;  %v7534_v28 = vadd.f32 %v14335_v20, %v3879_v35  ;;  %v7725_v52 = vmax.f32 %v7533_v21, 0.0  ;;  %v11595_v25 = vld [vmem:[%s16964_s2 + $0xf8] ss:$24 sps:$4 sm:$0xff]  }
 0x284   :  { %17175 = vst [vmem:[#allocation64_spill] sm:$0xff] %v14875_v43  ;;  %6695 = vmatmul.mubr.bf16.vlgmr.msra.gmra.mxu1 %v14863_v0  ;;  %v4112_v60 = vpop.f32.mrf.mxu1  ;;  %4384 = vmatmul.mubr.bf16.gmra.mxu0 %v17176_v17  ;;  %v3883_v7 = vadd.f32 %v3882_v15, %v3690_v18  ;;  %v12111_v17 = vld [vmem:[%s16962_s0 + $0x1f4] ss:$24 sps:$4 sm:$0xff]   ;;  %v11631_v43 = vld [vmem:[%s16964_s2 + $0x278] ss:$24 sps:$4 sm:$0xff]  }
 0x285   :  { %v14881_v51 = vadd.f32 %v4112_v60, %v3919_v12  ;;  %6745 = vmatpush1.bf16.msra.mxu1 %v11586_v30  ;;  %4393 = vmatprep.mubr.bf16.mxu0 %v12109_v39  ;;  %v7539_v6 = vadd.f32 %v14328_v61, %v3881_v31  ;;  %v3921_v62 = vpop.f32.mrf.mxu0  ;;  %v7726_v30 = vmax.f32 %v7534_v28, 0.0  ;;  %v12110_v31 = vld [vmem:[%s16962_s0 + $0x1c0] ss:$24 sps:$4 sm:$0xff]  }
 0x286   :  { %v4114_v49 = vpop.f32.mrf.mxu1  ;;  %6746 = vmatprep.subr.bf16.mxu1 %v11594_v57  ;;  %6776 = vmatprep.mubr.bf16.mxu1 %v14493_v54  ;;  %v7540_v42 = vadd.f32 %v14335_v20, %v3883_v7  ;;  %v11603_v57 = vld [vmem:[%s16964_s2 + $0xcc] ss:$24 sps:$4 sm:$0xff]   ;;  %v11601_v60 = vld [vmem:[%s16964_s2 + $0xc8] ss:$24 sps:$4 sm:$0xff]  }
 0x287   :  { %v14895_v9 = vadd.f32 %v4114_v49, %v3921_v62  ;;  %v7731_v13 = vmax.f32 %v7539_v6, 0.0  ;;  %v3923_v16 = vpop.f32.mrf.mxu0 }
 0x288   :  { %v4116_v35 = vpop.f32.mrf.mxu1  ;;  %v7732_v4 = vmax.f32 %v7540_v42, 0.0 }
 0x289   :  { %v14897_v61 = vadd.f32 %v4116_v35, %v3923_v16  ;;  %6747 = vmatpush1.bf16.msra.mxu1 %v11592_v53  ;;  %v14902_v47 = vpack.c.bf16 %v7731_v13, %v7725_v52  ;;  %v14904_v15 = vpop.f32.mrf.mxu0  ;;  %v11606_v53 = vld [vmem:[%s16964_s2 + $0x9c] ss:$24 sps:$4 sm:$0xff]   ;;  %v11612_v13 = vld [vmem:[%s16964_s2 + $0x6c] ss:$24 sps:$4 sm:$0xff]  }
 0x28a   :  { %v14906_v20 = vpop.f32.mrf.mxu1  ;;  %6748 = vmatprep.subr.bf16.mxu1 %v11597_v29  ;;  %v14911_v36 = vpack.c.bf16 %v7732_v4, %v7726_v30  ;;  %v11604_v29 = vld [vmem:[%s16964_s2 + $0x98] ss:$24 sps:$4 sm:$0xff]  }
 0x28b   :  { %17177 = vst [vmem:[#allocation65_spill] sm:$0xff] %v14902_v47  ;;  %v3929_v18 = vpop.f32.mrf.mxu0  ;;  %v12112_v30 = vld [vmem:[%s16962_s0 + $0x1f0] ss:$24 sps:$4 sm:$0xff]  }
 0x28c   :  { %17178 = vst [vmem:[#allocation29_spill] sm:$0xff] %v14911_v36  ;;  %v4122_v21 = vpop.f32.mrf.mxu1  ;;  %4394 = vmatmul.mubr.bf16.gmra.mxu0 %v12110_v31  ;;  %v11615_v31 = vld [vmem:[%s16964_s2 + $0x3c] ss:$24 sps:$4 sm:$0xff]  }
 0x28d   :  { %v14916_v12 = vadd.f32 %v4122_v21, %v3929_v18  ;;  %6749 = vmatpush1.bf16.msra.mxu1 %v11595_v25  ;;  %4403 = vmatprep.mubr.bf16.mxu0 %v12111_v17  ;;  %v3931_v28 = vpop.f32.mrf.mxu0  ;;  %v11610_v25 = vld [vmem:[%s16964_s2 + $0x68] ss:$24 sps:$4 sm:$0xff]  }
 0x28e   :  { %v4124_v7 = vpop.f32.mrf.mxu1  ;;  %6750 = vmatprep.subr.bf16.mxu1 %v11603_v57  ;;  %v12113_v57 = vld [vmem:[%s16962_s0 + $0x224] ss:$24 sps:$4 sm:$0xff]  }
 0x28f   :  { %v14927_v39 = vadd.f32 %v4124_v7, %v3931_v28  ;;  %v3933_v6 = vpop.f32.mrf.mxu0 }
 0x290   :  { %v4126_v62 = vpop.f32.mrf.mxu1 }
 0x291   :  { %v14929_v49 = vadd.f32 %v4126_v62, %v3933_v6  ;;  %6751 = vmatpush1.bf16.msra.mxu1 %v11601_v60  ;;  %v14934_v42 = vpop.f32.mrf.mxu0 }
 0x292   :  { %v14936_v52 = vpop.f32.mrf.mxu1  ;;  %6752 = vmatprep.subr.bf16.mxu1 %v11606_v53  ;;  %v11613_v53 = vld [vmem:[%s16964_s2 + $0x38] ss:$24 sps:$4 sm:$0xff]  }
 0x293   :  { %v3939_v16 = vpop.f32.mrf.mxu0 }
 0x294   :  { %v4132_v35 = vpop.f32.mrf.mxu1  ;;  %4404 = vmatmul.mubr.bf16.gmra.mxu0 %v12112_v30 }
 0x295   :  { %v14944_v4 = vadd.f32 %v4132_v35, %v3939_v16  ;;  %6753 = vmatpush1.bf16.msra.mxu1 %v11604_v29  ;;  %4413 = vmatprep.mubr.bf16.mxu0 %v12113_v57  ;;  %v3941_v18 = vpop.f32.mrf.mxu0  ;;  %v11621_v29 = vld [vmem:[%s16964_s2 + $0xc] ss:$24 sps:$4 sm:$0xff]   ;;  %v12114_v35 = vld [vmem:[%s16962_s0 + $0x220] ss:$24 sps:$4 sm:$0xff]  }
 0x296   :  { %v4134_v21 = vpop.f32.mrf.mxu1  ;;  %6754 = vmatprep.subr.bf16.mxu1 %v11612_v13  ;;  %v12115_v57 = vld [vmem:[%s16962_s0 + $0x254] ss:$24 sps:$4 sm:$0xff]  }
 0x297   :  { %v14955_v60 = vadd.f32 %v4134_v21, %v3941_v18  ;;  %v3943_v17 = vpop.f32.mrf.mxu0 }
 0x298   :  { %v4136_v28 = vpop.f32.mrf.mxu1 }
 0x299   :  { %v14957_v7 = vadd.f32 %v4136_v28, %v3943_v17  ;;  %6755 = vmatpush1.bf16.msra.mxu1 %v11610_v25  ;;  %v14962_v6 = vpop.f32.mrf.mxu0  ;;  %v11619_v25 = vld [vmem:[%s16964_s2 + $0x8] ss:$24 sps:$4 sm:$0xff]  }
 0x29a   :  { %v14964_v62 = vpop.f32.mrf.mxu1  ;;  %6756 = vmatprep.subr.bf16.mxu1 %v11615_v31  ;;  %v11624_v31 = vld [vmem:[%s16964_s2 + $0x2dc] ss:$24 sps:$4 sm:$0xff]  }
 0x29b   :  { %v3949_v13 = vpop.f32.mrf.mxu0 }
 0x29c   :  { %v4142_v16 = vpop.f32.mrf.mxu1  ;;  %4414 = vmatmul.mubr.bf16.gmra.mxu0 %v12114_v35 }
 0x29d   :  { %v14972_v30 = vadd.f32 %v4142_v16, %v3949_v13  ;;  %6757 = vmatpush1.bf16.msra.mxu1 %v11613_v53  ;;  %4423 = vmatprep.mubr.bf16.mxu0 %v12115_v57  ;;  %v3951_v18 = vpop.f32.mrf.mxu0  ;;  %v11622_v16 = vld [vmem:[%s16964_s2 + $0x2d8] ss:$24 sps:$4 sm:$0xff]  }
 0x29e   :  { %v4144_v21 = vpop.f32.mrf.mxu1  ;;  %6758 = vmatprep.subr.bf16.mxu1 %v11621_v29  ;;  %v11630_v29 = vld [vmem:[%s16964_s2 + $0x2ac] ss:$24 sps:$4 sm:$0xff]  }
 0x29f   :  { %v14983_v17 = vadd.f32 %v4144_v21, %v3951_v18  ;;  %v3953_v28 = vpop.f32.mrf.mxu0 }
 0x2a0   :  { %v4146_v53 = vpop.f32.mrf.mxu1 }
 0x2a1   :  { %v14985_v13 = vadd.f32 %v4146_v53, %v3953_v28  ;;  %6759 = vmatpush1.bf16.msra.mxu1 %v11619_v25  ;;  %v14990_v35 = vpop.f32.mrf.mxu0  ;;  %v12116_v28 = vld [vmem:[%s16962_s0 + $0x250] ss:$24 sps:$4 sm:$0xff]  }
 0x2a2   :  { %v14992_v57 = vpop.f32.mrf.mxu1  ;;  %6760 = vmatprep.subr.bf16.mxu1 %v11624_v31  ;;  %v11628_v53 = vld [vmem:[%s16964_s2 + $0x2a8] ss:$24 sps:$4 sm:$0xff]   ;;  %v12117_v31 = vld [vmem:[%s16962_s0 + $0x284] ss:$24 sps:$4 sm:$0xff]  }
 0x2a3   :  { %v3959_v18 = vpop.f32.mrf.mxu0 }
 0x2a4   :  { %v4152_v21 = vpop.f32.mrf.mxu1  ;;  %4424 = vmatmul.mubr.bf16.gmra.mxu0 %v12116_v28 }
 0x2a5   :  { %v15000_v25 = vadd.f32 %v4152_v21, %v3959_v18  ;;  %6761 = vmatpush2.bf16.msra.mxu1 %v11622_v16  ;;  %4433 = vmatprep.mubr.bf16.mxu0 %v12117_v31  ;;  %v3961_v47 = vpop.f32.mrf.mxu0 }
 0x2a6   :  { %v4154_v36 = vpop.f32.mrf.mxu1  ;;  %6762 = vmatprep.subr.bf16.mxu1 %v11630_v29  ;;  %v11639_v29 = vld [vmem:[%s16964_s2 + $0x24c] ss:$24 sps:$4 sm:$0xff]  }
 0x2a7   :  { %v15011_v28 = vadd.f32 %v4154_v36, %v3961_v47  ;;  %v3963_v18 = vpop.f32.mrf.mxu0 }
 0x2a8   :  { %v4156_v16 = vpop.f32.mrf.mxu1 }
 0x2a9   :  { %v15013_v21 = vadd.f32 %v4156_v16, %v3963_v18  ;;  %6763 = vmatpush2.bf16.msra.mxu1 %v11628_v53  ;;  %v15018_v44 = vpop.f32.mrf.mxu0  ;;  %v12118_v18 = vld [vmem:[%s16962_s0 + $0x280] ss:$24 sps:$4 sm:$0xff]  }
 0x2aa   :  { %v15020_v31 = vpop.f32.mrf.mxu1  ;;  %6764 = vmatprep.subr.bf16.mxu1 %v11633_v56  ;;  %v11637_v16 = vld [vmem:[%s16964_s2 + $0x248] ss:$24 sps:$4 sm:$0xff]   ;;  %v12119_v56 = vld [vmem:[%s16962_s0 + $0x2b4] ss:$24 sps:$4 sm:$0xff]  }
 0x2ab   :  { %v3969_v47 = vpop.f32.mrf.mxu0 }
 0x2ac   :  { %v4162_v36 = vpop.f32.mrf.mxu1  ;;  %4434 = vmatmul.mubr.bf16.gmra.mxu0 %v12118_v18 }
 0x2ad   :  { %v15028_v53 = vadd.f32 %v4162_v36, %v3969_v47  ;;  %6765 = vmatpush2.bf16.msra.mxu1 %v11631_v43  ;;  %4443 = vmatprep.mubr.bf16.mxu0 %v12119_v56  ;;  %v3971_v2 = vpop.f32.mrf.mxu0  ;;  %v12120_v43 = vld [vmem:[%s16962_s0 + $0x190] sm:$0xff] }
 0x2ae   :  { %v4164_v24 = vpop.f32.mrf.mxu1  ;;  %6766 = vmatprep.subr.bf16.mxu1 %v11639_v29  ;;  %v4859_v47 = vunpack.c.h.bf16 %v12120_v43  ;;  %v11640_v29 = vld [vmem:[%s16964_s2 + $0x218] ss:$24 sps:$4 sm:$0xff]  }
 0x2af   :  { %v15042_v36 = vadd.f32 %v4164_v24, %v3971_v2  ;;  %v3973_v18 = vpop.f32.mrf.mxu0  ;;  %v12121_v24 = vld [vmem:[%s16962_s0 + $0x10] sm:$0xff] }
 0x2b0   :  { %v4166_v22 = vpop.f32.mrf.mxu1  ;;  %v4871_v2 = vrot.slane %v4859_v47, 7  ;;  %v4852_v40 = vunpack.c.l.bf16 %v12121_v24 }
 0x2b1   :  { %v15044_v41 = vadd.f32 %v4166_v22, %v3973_v18  ;;  %6767 = vmatpush2.bf16.msra.mxu1 %v11637_v16  ;;  %v15049_v56 = vpop.f32.mrf.mxu0  ;;  %v4853_v22 = vunpack.c.h.bf16 %v12121_v24 }
 0x2b2   :  { %17179 = vst [vmem:[#allocation30_spill] sm:$0xff] %v15049_v56  ;;  %v15051_v45 = vpop.f32.mrf.mxu1  ;;  %6768 = vmatprep.subr.bf16.mxu1 %v11642_v55  ;;  %v4858_v56 = vunpack.c.l.bf16 %v12120_v43  ;;  %v11646_v55 = vld [vmem:[%s16964_s2 + $0x1e8] ss:$24 sps:$4 sm:$0xff]  }
 0x2b3   :  { %17180 = vst [vmem:[#allocation67_spill] sm:$0xff] %v15051_v45  ;;  %v3979_v16 = vpop.f32.mrf.mxu0  ;;  %v4884_v43 = vsel %vm4878_vm0, %v4853_v22, %v4871_v2  ;;  %v12124_v22 = vld [vmem:[%s16962_s0 + $0x2e0] ss:$24 sps:$4 sm:$0xff]  }
 0x2b4   :  { %v4172_v18 = vpop.f32.mrf.mxu1  ;;  %4444 = vmatmul.mubr.bf16.gmra.mxu0 %v12122_v14  ;;  %v11651_v14 = vld [vmem:[%s16964_s2 + $0x1bc] ss:$24 sps:$4 sm:$0xff]   ;;  %v4870_v33 = vrot.slane %v4858_v56, 7 }
 0x2b5   :  { %v15062_v45 = vadd.f32 %v4172_v18, %v3979_v16  ;;  %6769 = vmatpush2.bf16.msra.mxu1 %v11640_v29  ;;  %4453 = vmatprep.mubr.bf16.mxu0 %v12123_v5  ;;  %v3981_v47 = vpop.f32.mrf.mxu0  ;;  %v11649_v5 = vld [vmem:[%s16964_s2 + $0x1b8] ss:$24 sps:$4 sm:$0xff]  }
 0x2b6   :  { %v4174_v26 = vpop.f32.mrf.mxu1  ;;  %6770 = vmatprep.subr.bf16.mxu1 %v11648_v38  ;;  %v15081_v38 = vpack.c.bf16 %v4884_v43, %v4884_v43 }
 0x2b7   :  { %v15074_v16 = vadd.f32 %v4174_v26, %v3981_v47  ;;  %v3983_v29 = vpop.f32.mrf.mxu0  ;;  %v11657_v26 = vld [vmem:[%s16964_s2 + $0x18c] ss:$24 sps:$4 sm:$0xff]   ;;  %v4883_v47 = vsel %vm4878_vm0, %v4852_v40, %v4870_v33  ;;  %v11658_v33 = vld [vmem:[%s16964_s2 + $0x458] ss:$24 sps:$4 sm:$0xff]  }
 0x2b8   :  { %v4176_v18 = vpop.f32.mrf.mxu1  ;;  %v11661_v40 = vld [vmem:[%s16964_s2 + $0x758] ss:$24 sps:$4 sm:$0xff]  }
 0x2b9   :  { %v15076_v50 = vadd.f32 %v4176_v18, %v3983_v29  ;;  %6771 = vmatpush2.bf16.msra.mxu1 %v11646_v55  ;;  %v15083_v27 = vpop.f32.mrf.mxu0  ;;  %v11655_v55 = vld [vmem:[%s16964_s2 + $0x188] ss:$24 sps:$4 sm:$0xff]   ;;  %v11663_v29 = vld [vmem:[%s16964_s2 + $0x75c] ss:$24 sps:$4 sm:$0xff]  }
 0x2ba   :  { %17181 = vst [vmem:[#allocation68_spill] sm:$0xff] %v15083_v27  ;;  %v15085_v8 = vpop.f32.mrf.mxu1  ;;  %6772 = vmatprep.subr.bf16.mxu1 %v11651_v14  ;;  %v11672_v27 = vld [vmem:[%s16964_s2 + $0x3fc] ss:$24 sps:$4 sm:$0xff]  }
 0x2bb   :  { %17182 = vst [vmem:[#allocation32_spill] sm:$0xff] %v15085_v8  ;;  %v3989_v24 = vpop.f32.mrf.mxu0 }
 0x2bc   :  { %v4182_v56 = vpop.f32.mrf.mxu1  ;;  %4454 = vmatmul.mubr.bf16.gmra.mxu0 %v12124_v22 }
 0x2bd   :  { %v15093_v2 = vadd.f32 %v4182_v56, %v3989_v24  ;;  %6773 = vmatpush2.bf16.msra.mxu1 %v11649_v5  ;;  %6735 = vmatprep.mubr.bf16.mxu0 %v15081_v38  ;;  %v3991_v14 = vpop.f32.mrf.mxu0  ;;  %v15105_v5 = vpack.c.bf16 %v4883_v47, %v4883_v47  ;;  %v11666_v47 = vld [vmem:[%s16964_s2 + $0x42c] ss:$24 sps:$4 sm:$0xff]  }
 0x2be   :  { %v4184_v43 = vpop.f32.mrf.mxu1  ;;  %6774 = vmatprep.subr.bf16.mxu1 %v11657_v26 }
 0x2bf   :  { %v15103_v18 = vadd.f32 %v4184_v43, %v3991_v14  ;;  %v3993_v24 = vpop.f32.mrf.mxu0  ;;  %17183 = vst [vmem:[#allocation13_spill] sm:$0xff] %v15105_v5 }
 0x2c0   :  { %v4186_v56 = vpop.f32.mrf.mxu1 }
 0x2c1   :  { %v15107_v22 = vadd.f32 %v4186_v56, %v3993_v24  ;;  %6775 = vmatpush2.bf16.msra.mxu1 %v11655_v55  ;;  %v15115_v26 = vpop.f32.mrf.mxu0  ;;  %v11669_v55 = vld [vmem:[%s16964_s2 + $0x72c] ss:$24 sps:$4 sm:$0xff]   ;;  %v11667_v56 = vld [vmem:[%s16964_s2 + $0x728] ss:$24 sps:$4 sm:$0xff]  }
 0x2c2   :  { %17184 = vst [vmem:[#allocation7_spill] sm:$0xff] %v15115_v26  ;;  %v15117_v8 = vpop.f32.mrf.mxu1  ;;  %6826 = vmatprep.subr.bf16.mxu1 %v11663_v29  ;;  %v11664_v29 = vld [vmem:[%s16964_s2 + $0x428] ss:$24 sps:$4 sm:$0xff]  }
 0x2c3   :  { %17185 = vst [vmem:[#allocation34_spill] sm:$0xff] %v15117_v8 }
 0x2c4   :  { %v3999_v14 = vpop.f32.mrf.mxu0  ;;  %v4192_v43 = vpop.f32.mrf.mxu1  ;;  %6736 = vmatmul.mubr.bf16.vlgmr.msra.gmra.mxu0 %v15105_v5  ;;  %6777 = vmatmul.mubr.bf16.vlgmr.msra.gmra.mxu1 %v14521_v23 }
 0x2c5   :  { %v15127_v24 = vadd.f32 %v4192_v43, %v3999_v14  ;;  %6786 = vmatpush1.bf16.msra.mxu0 %v11658_v33  ;;  %6827 = vmatpush1.bf16.msra.mxu1 %v11661_v40  ;;  %v11675_v33 = vld [vmem:[%s16964_s2 + $0x6fc] ss:$24 sps:$4 sm:$0xff]  }
 0x2c6   :  { %v4001_v8 = vpop.f32.mrf.mxu0  ;;  %v4194_v26 = vpop.f32.mrf.mxu1  ;;  %6787 = vmatprep.subr.bf16.mxu0 %v11666_v47  ;;  %6828 = vmatprep.subr.bf16.mxu1 %v11669_v55  ;;  %v11670_v47 = vld [vmem:[%s16964_s2 + $0x3f8] ss:$24 sps:$4 sm:$0xff]  }
 0x2c7   :  { %v15141_v40 = vadd.f32 %v4194_v26, %v4001_v8  ;;  %6817 = vmatprep.mubr.bf16.mxu0 %v14540_v19  ;;  %6858 = vmatprep.mubr.bf16.mxu1 %v15081_v38  ;;  %v11673_v55 = vld [vmem:[%s16964_s2 + $0x6f8] ss:$24 sps:$4 sm:$0xff]  }
 0x2c8   :  { %v4003_v14 = vpop.f32.mrf.mxu0  ;;  %v4196_v43 = vpop.f32.mrf.mxu1 }
 0x2c9   :  { %v15145_v58 = vadd.f32 %v4196_v43, %v4003_v14  ;;  %6788 = vmatpush1.bf16.msra.mxu0 %v11664_v29  ;;  %6829 = vmatpush1.bf16.msra.mxu1 %v11667_v56  ;;  %v11678_v14 = vld [vmem:[%s16964_s2 + $0x3cc] ss:$24 sps:$4 sm:$0xff]  }
 0x2ca   :  { %v15153_v8 = vpop.f32.mrf.mxu0  ;;  %v15155_v26 = vpop.f32.mrf.mxu1  ;;  %6789 = vmatprep.subr.bf16.mxu0 %v11672_v27  ;;  %6830 = vmatprep.subr.bf16.mxu1 %v11675_v33  ;;  %v11681_v29 = vld [vmem:[%s16964_s2 + $0x6cc] ss:$24 sps:$4 sm:$0xff]   ;;  %v11679_v27 = vld [vmem:[%s16964_s2 + $0x6c8] ss:$24 sps:$4 sm:$0xff]  }
 0x2cb   :  { %17186 = vst [vmem:[#allocation69_spill] sm:$0xff] %v15153_v8  ;;  %17187 = vst [vmem:[#allocation14_spill] sm:$0xff] %v15155_v26  ;;  %v11676_v26 = vld [vmem:[%s16964_s2 + $0x3c8] ss:$24 sps:$4 sm:$0xff]  }
 0x2cc   :  { %v4009_v56 = vpop.f32.mrf.mxu0  ;;  %v4202_v43 = vpop.f32.mrf.mxu1 }
 0x2cd   :  { %v15163_v48 = vadd.f32 %v4202_v43, %v4009_v56  ;;  %6790 = vmatpush1.bf16.msra.mxu0 %v11670_v47  ;;  %6831 = vmatpush1.bf16.msra.mxu1 %v11673_v55  ;;  %v11687_v47 = vld [vmem:[%s16964_s2 + $0x69c] ss:$24 sps:$4 sm:$0xff]  }
 0x2ce   :  { %v4011_v33 = vpop.f32.mrf.mxu0  ;;  %v4204_v8 = vpop.f32.mrf.mxu1  ;;  %6791 = vmatprep.subr.bf16.mxu0 %v11678_v14  ;;  %6832 = vmatprep.subr.bf16.mxu1 %v11681_v29  ;;  %v11682_v14 = vld [vmem:[%s16964_s2 + $0x398] ss:$24 sps:$4 sm:$0xff]  }
 0x2cf   :  { %v15177_v55 = vadd.f32 %v4204_v8, %v4011_v33  ;;  %v11685_v29 = vld [vmem:[%s16964_s2 + $0x698] ss:$24 sps:$4 sm:$0xff]   ;;  %v11690_v8 = vld [vmem:[%s16964_s2 + $0x36c] ss:$24 sps:$4 sm:$0xff]  }
 0x2d0   :  { %v4013_v56 = vpop.f32.mrf.mxu0  ;;  %v4206_v43 = vpop.f32.mrf.mxu1 }
 0x2d1   :  { %v15179_v34 = vadd.f32 %v4206_v43, %v4013_v56  ;;  %6792 = vmatpush1.bf16.msra.mxu0 %v11676_v26  ;;  %6833 = vmatpush1.bf16.msra.mxu1 %v11679_v27  ;;  %v11693_v26 = vld [vmem:[%s16964_s2 + $0x66c] ss:$24 sps:$4 sm:$0xff]   ;;  %v11688_v43 = vld [vmem:[%s16964_s2 + $0x368] ss:$24 sps:$4 sm:$0xff]  }
 0x2d2   :  { %v15187_v11 = vpop.f32.mrf.mxu0  ;;  %v15189_v46 = vpop.f32.mrf.mxu1  ;;  %6793 = vmatprep.subr.bf16.mxu0 %v11684_v10  ;;  %6834 = vmatprep.subr.bf16.mxu1 %v11687_v47  ;;  %v11691_v10 = vld [vmem:[%s16964_s2 + $0x668] ss:$24 sps:$4 sm:$0xff]  }
 0x2d3   :  { %17188 = vst [vmem:[#allocation81_spill] sm:$0xff] %v15187_v11  ;;  %17189 = vst [vmem:[#allocation82_spill] sm:$0xff] %v15189_v46  ;;  %v11696_v11 = vld [vmem:[%s16964_s2 + $0x33c] ss:$24 sps:$4 sm:$0xff]  }
 0x2d4   :  { %v4019_v27 = vpop.f32.mrf.mxu0  ;;  %v4212_v33 = vpop.f32.mrf.mxu1 }
 0x2d5   :  { %v15197_v56 = vadd.f32 %v4212_v33, %v4019_v27  ;;  %6794 = vmatpush1.bf16.msra.mxu0 %v11682_v14  ;;  %6835 = vmatpush1.bf16.msra.mxu1 %v11685_v29  ;;  %v11699_v14 = vld [vmem:[%s16964_s2 + $0x63c] ss:$24 sps:$4 sm:$0xff]  }
 0x2d6   :  { %v4021_v47 = vpop.f32.mrf.mxu0  ;;  %v4214_v46 = vpop.f32.mrf.mxu1  ;;  %6795 = vmatprep.subr.bf16.mxu0 %v11690_v8  ;;  %6836 = vmatprep.subr.bf16.mxu1 %v11693_v26  ;;  %v11694_v8 = vld [vmem:[%s16964_s2 + $0x338] ss:$24 sps:$4 sm:$0xff]  }
 0x2d7   :  { %v15211_v29 = vadd.f32 %v4214_v46, %v4021_v47  ;;  %v11697_v26 = vld [vmem:[%s16964_s2 + $0x638] ss:$24 sps:$4 sm:$0xff]   ;;  %v11702_v46 = vld [vmem:[%s16964_s2 + $0x30c] ss:$24 sps:$4 sm:$0xff]  }
 0x2d8   :  { %v4023_v27 = vpop.f32.mrf.mxu0  ;;  %v4216_v33 = vpop.f32.mrf.mxu1 }
 0x2d9   :  { %17190 = vst [vmem:[#allocation83_spill] sm:$0xff] %v15211_v29  ;;  %v15213_v63 = vadd.f32 %v4216_v33, %v4023_v27  ;;  %6796 = vmatpush1.bf16.msra.mxu0 %v11688_v43  ;;  %6837 = vmatpush1.bf16.msra.mxu1 %v11691_v10  ;;  %v11705_v43 = vld [vmem:[%s16964_s2 + $0x60c] ss:$24 sps:$4 sm:$0xff]   ;;  %v11700_v33 = vld [vmem:[%s16964_s2 + $0x308] ss:$24 sps:$4 sm:$0xff]  }
 0x2da   :  { %v15221_v37 = vpop.f32.mrf.mxu0  ;;  %v15223_v3 = vpop.f32.mrf.mxu1  ;;  %6797 = vmatprep.subr.bf16.mxu0 %v11696_v11  ;;  %6838 = vmatprep.subr.bf16.mxu1 %v11699_v14  ;;  %v11703_v11 = vld [vmem:[%s16964_s2 + $0x608] ss:$24 sps:$4 sm:$0xff]  }
 0x2db   :  { %17191 = vst [vmem:[#allocation84_spill] sm:$0xff] %v15213_v63  ;;  %17192 = vst [vmem:[#allocation85_spill] sm:$0xff] %v15221_v37  ;;  %v11708_v37 = vld [vmem:[%s16964_s2 + $0x5dc] ss:$24 sps:$4 sm:$0xff]  }
 0x2dc   :  { %17193 = vst [vmem:[#allocation86_spill] sm:$0xff] %v15223_v3  ;;  %v4029_v10 = vpop.f32.mrf.mxu0  ;;  %v4222_v47 = vpop.f32.mrf.mxu1 }
 0x2dd   :  { %v15231_v27 = vadd.f32 %v4222_v47, %v4029_v10  ;;  %6798 = vmatpush1.bf16.msra.mxu0 %v11694_v8  ;;  %6839 = vmatpush1.bf16.msra.mxu1 %v11697_v26  ;;  %v11711_v8 = vld [vmem:[%s16964_s2 + $0x8dc] ss:$24 sps:$4 sm:$0xff]  }
 0x2de   :  { %v4031_v14 = vpop.f32.mrf.mxu0  ;;  %v4224_v3 = vpop.f32.mrf.mxu1  ;;  %6799 = vmatprep.subr.bf16.mxu0 %v11702_v46  ;;  %6840 = vmatprep.subr.bf16.mxu1 %v11705_v43  ;;  %v11706_v46 = vld [vmem:[%s16964_s2 + $0x5d8] ss:$24 sps:$4 sm:$0xff]  }
 0x2df   :  { %17194 = vst [vmem:[#allocation87_spill] sm:$0xff] %v15231_v27  ;;  %v15245_v26 = vadd.f32 %v4224_v3, %v4031_v14  ;;  %v11709_v43 = vld [vmem:[%s16964_s2 + $0x8d8] ss:$24 sps:$4 sm:$0xff]   ;;  %v11714_v3 = vld [vmem:[%s16964_s2 + $0x5ac] ss:$24 sps:$4 sm:$0xff]  }
 0x2e0   :  { %v4033_v10 = vpop.f32.mrf.mxu0  ;;  %v4226_v47 = vpop.f32.mrf.mxu1 }
 0x2e1   :  { %17195 = vst [vmem:[#allocation88_spill] sm:$0xff] %v15245_v26  ;;  %v15247_v32 = vadd.f32 %v4226_v47, %v4033_v10  ;;  %6800 = vmatpush1.bf16.msra.mxu0 %v11700_v33  ;;  %6841 = vmatpush1.bf16.msra.mxu1 %v11703_v11  ;;  %v11717_v33 = vld [vmem:[%s16964_s2 + $0x8ac] ss:$24 sps:$4 sm:$0xff]   ;;  %v11712_v47 = vld [vmem:[%s16964_s2 + $0x5a8] ss:$24 sps:$4 sm:$0xff]  }
 0x2e2   :  { %v15255_v59 = vpop.f32.mrf.mxu0  ;;  %v15257_v1 = vpop.f32.mrf.mxu1  ;;  %6801 = vmatprep.subr.bf16.mxu0 %v11708_v37  ;;  %6842 = vmatprep.subr.bf16.mxu1 %v11711_v8  ;;  %v11715_v37 = vld [vmem:[%s16964_s2 + $0x8a8] ss:$24 sps:$4 sm:$0xff]  }
 0x2e3   :  { %17196 = vst [vmem:[#allocation89_spill] sm:$0xff] %v15247_v32  ;;  %17197 = vst [vmem:[#allocation90_spill] sm:$0xff] %v15255_v59 }
 0x2e4   :  { %17198 = vst [vmem:[#allocation91_spill] sm:$0xff] %v15257_v1  ;;  %v4039_v11 = vpop.f32.mrf.mxu0  ;;  %v4232_v14 = vpop.f32.mrf.mxu1  ;;  %v11720_v1 = vld [vmem:[%s16964_s2 + $0x57c] ss:$24 sps:$4 sm:$0xff]  }
 0x2e5   :  { %v15265_v10 = vadd.f32 %v4232_v14, %v4039_v11  ;;  %6802 = vmatpush2.bf16.msra.mxu0 %v11706_v46  ;;  %6843 = vmatpush2.bf16.msra.mxu1 %v11709_v43  ;;  %v11723_v46 = vld [vmem:[%s16964_s2 + $0x87c] ss:$24 sps:$4 sm:$0xff]  }
 0x2e6   :  { %v4041_v8 = vpop.f32.mrf.mxu0  ;;  %v4234_v32 = vpop.f32.mrf.mxu1  ;;  %6803 = vmatprep.subr.bf16.mxu0 %v11714_v3  ;;  %6844 = vmatprep.subr.bf16.mxu1 %v11717_v33  ;;  %v11718_v3 = vld [vmem:[%s16964_s2 + $0x578] ss:$24 sps:$4 sm:$0xff]  }
 0x2e7   :  { %17199 = vst [vmem:[#allocation92_spill] sm:$0xff] %v15265_v10  ;;  %v15279_v43 = vadd.f32 %v4234_v32, %v4041_v8  ;;  %v11721_v33 = vld [vmem:[%s16964_s2 + $0x878] ss:$24 sps:$4 sm:$0xff]   ;;  %v11726_v32 = vld [vmem:[%s16964_s2 + $0x54c] ss:$24 sps:$4 sm:$0xff]  }
 0x2e8   :  { %v4043_v11 = vpop.f32.mrf.mxu0  ;;  %v4236_v14 = vpop.f32.mrf.mxu1 }
 0x2e9   :  { %17200 = vst [vmem:[#allocation93_spill] sm:$0xff] %v15279_v43  ;;  %v15281_v10 = vadd.f32 %v4236_v14, %v4043_v11  ;;  %6804 = vmatpush2.bf16.msra.mxu0 %v11712_v47  ;;  %6845 = vmatpush2.bf16.msra.mxu1 %v11715_v37  ;;  %v11729_v47 = vld [vmem:[%s16964_s2 + $0x84c] ss:$24 sps:$4 sm:$0xff]   ;;  %v11724_v14 = vld [vmem:[%s16964_s2 + $0x548] ss:$24 sps:$4 sm:$0xff]  }
 0x2ea   :  { %v15289_v59 = vpop.f32.mrf.mxu0  ;;  %v15291_v26 = vpop.f32.mrf.mxu1  ;;  %6805 = vmatprep.subr.bf16.mxu0 %v11720_v1  ;;  %6846 = vmatprep.subr.bf16.mxu1 %v11723_v46  ;;  %v11727_v1 = vld [vmem:[%s16964_s2 + $0x848] ss:$24 sps:$4 sm:$0xff]  }
 0x2eb   :  { %17201 = vst [vmem:[#allocation94_spill] sm:$0xff] %v15281_v10  ;;  %17202 = vst [vmem:[#allocation95_spill] sm:$0xff] %v15289_v59 }
 0x2ec   :  { %17203 = vst [vmem:[#allocation96_spill] sm:$0xff] %v15291_v26  ;;  %v4049_v37 = vpop.f32.mrf.mxu0  ;;  %v4242_v8 = vpop.f32.mrf.mxu1  ;;  %v11732_v26 = vld [vmem:[%s16964_s2 + $0x51c] ss:$24 sps:$4 sm:$0xff]  }
 0x2ed   :  { %v15299_v11 = vadd.f32 %v4242_v8, %v4049_v37  ;;  %6806 = vmatpush2.bf16.msra.mxu0 %v11718_v3  ;;  %6847 = vmatpush2.bf16.msra.mxu1 %v11721_v33  ;;  %v11735_v3 = vld [vmem:[%s16964_s2 + $0x81c] ss:$24 sps:$4 sm:$0xff]  }
 0x2ee   :  { %v4051_v46 = vpop.f32.mrf.mxu0  ;;  %v4244_v10 = vpop.f32.mrf.mxu1  ;;  %6807 = vmatprep.subr.bf16.mxu0 %v11726_v32  ;;  %6848 = vmatprep.subr.bf16.mxu1 %v11729_v47  ;;  %v11730_v32 = vld [vmem:[%s16964_s2 + $0x518] ss:$24 sps:$4 sm:$0xff]  }
 0x2ef   :  { %17204 = vst [vmem:[#allocation97_spill] sm:$0xff] %v15299_v11  ;;  %v15313_v33 = vadd.f32 %v4244_v10, %v4051_v46  ;;  %v11733_v47 = vld [vmem:[%s16964_s2 + $0x818] ss:$24 sps:$4 sm:$0xff]   ;;  %v11738_v10 = vld [vmem:[%s16964_s2 + $0x4ec] ss:$24 sps:$4 sm:$0xff]  }
 0x2f0   :  { %v4053_v37 = vpop.f32.mrf.mxu0  ;;  %v4246_v8 = vpop.f32.mrf.mxu1 }
 0x2f1   :  { %17205 = vst [vmem:[#allocation98_spill] sm:$0xff] %v15313_v33  ;;  %v15315_v11 = vadd.f32 %v4246_v8, %v4053_v37  ;;  %6808 = vmatpush2.bf16.msra.mxu0 %v11724_v14  ;;  %6849 = vmatpush2.bf16.msra.mxu1 %v11727_v1  ;;  %v11741_v14 = vld [vmem:[%s16964_s2 + $0x7ec] ss:$24 sps:$4 sm:$0xff]   ;;  %v11736_v8 = vld [vmem:[%s16964_s2 + $0x4e8] ss:$24 sps:$4 sm:$0xff]  }
 0x2f2   :  { %v15323_v59 = vpop.f32.mrf.mxu0  ;;  %v15325_v43 = vpop.f32.mrf.mxu1  ;;  %6809 = vmatprep.subr.bf16.mxu0 %v11732_v26  ;;  %6850 = vmatprep.subr.bf16.mxu1 %v11735_v3  ;;  %v11739_v26 = vld [vmem:[%s16964_s2 + $0x7e8] ss:$24 sps:$4 sm:$0xff]  }
 0x2f3   :  { %17206 = vst [vmem:[#allocation99_spill] sm:$0xff] %v15315_v11  ;;  %17207 = vst [vmem:[#allocation100_spill] sm:$0xff] %v15323_v59 }
 0x2f4   :  { %17208 = vst [vmem:[#allocation101_spill] sm:$0xff] %v15325_v43  ;;  %v4059_v1 = vpop.f32.mrf.mxu0  ;;  %v4252_v46 = vpop.f32.mrf.mxu1  ;;  %v11744_v43 = vld [vmem:[%s16964_s2 + $0x4bc] ss:$24 sps:$4 sm:$0xff]  }
 0x2f5   :  { %v15333_v37 = vadd.f32 %v4252_v46, %v4059_v1  ;;  %6810 = vmatpush2.bf16.msra.mxu0 %v11730_v32  ;;  %6851 = vmatpush2.bf16.msra.mxu1 %v11733_v47  ;;  %v11747_v32 = vld [vmem:[%s16964_s2 + $0x7bc] ss:$24 sps:$4 sm:$0xff]  }
 0x2f6   :  { %v4061_v3 = vpop.f32.mrf.mxu0  ;;  %v4254_v11 = vpop.f32.mrf.mxu1  ;;  %6811 = vmatprep.subr.bf16.mxu0 %v11738_v10  ;;  %6852 = vmatprep.subr.bf16.mxu1 %v11741_v14  ;;  %v11742_v10 = vld [vmem:[%s16964_s2 + $0x4b8] ss:$24 sps:$4 sm:$0xff]  }
 0x2f7   :  { %17209 = vst [vmem:[#allocation102_spill] sm:$0xff] %v15333_v37  ;;  %v15347_v47 = vadd.f32 %v4254_v11, %v4061_v3  ;;  %v11745_v14 = vld [vmem:[%s16964_s2 + $0x7b8] ss:$24 sps:$4 sm:$0xff]   ;;  %v11750_v11 = vld [vmem:[%s16964_s2 + $0x48c] ss:$24 sps:$4 sm:$0xff]  }
 0x2f8   :  { %v4063_v1 = vpop.f32.mrf.mxu0  ;;  %v4256_v46 = vpop.f32.mrf.mxu1 }
 0x2f9   :  { %17210 = vst [vmem:[#allocation103_spill] sm:$0xff] %v15347_v47  ;;  %v15349_v37 = vadd.f32 %v4256_v46, %v4063_v1  ;;  %6812 = vmatpush2.bf16.msra.mxu0 %v11736_v8  ;;  %6853 = vmatpush2.bf16.msra.mxu1 %v11739_v26  ;;  %v11753_v8 = vld [vmem:[%s16964_s2 + $0x78c] ss:$24 sps:$4 sm:$0xff]   ;;  %v11748_v46 = vld [vmem:[%s16964_s2 + $0x488] ss:$24 sps:$4 sm:$0xff]  }
 0x2fa   :  { %v15357_v59 = vpop.f32.mrf.mxu0  ;;  %v15359_v33 = vpop.f32.mrf.mxu1  ;;  %6813 = vmatprep.subr.bf16.mxu0 %v11744_v43  ;;  %6854 = vmatprep.subr.bf16.mxu1 %v11747_v32  ;;  %v11751_v43 = vld [vmem:[%s16964_s2 + $0x788] ss:$24 sps:$4 sm:$0xff]  }
 0x2fb   :  { %17211 = vst [vmem:[#allocation104_spill] sm:$0xff] %v15349_v37  ;;  %17212 = vst [vmem:[#allocation105_spill] sm:$0xff] %v15357_v59  ;;  %v17217_v59 = vld [vmem:[#allocation33_spill] sm:$0xff] }
 0x2fc   :  { %17213 = vst [vmem:[#allocation106_spill] sm:$0xff] %v15359_v33  ;;  %v4069_v26 = vpop.f32.mrf.mxu0  ;;  %v4262_v3 = vpop.f32.mrf.mxu1  ;;  %v11756_v33 = vld [vmem:[%s16964_s2 + $0x164] ss:$24 sps:$4 sm:$0xff]   ;;  %v16987_v47 = vsub.s32 4, %v17217_v59 }
 0x2fd   :  { %v15367_v1 = vadd.f32 %v4262_v3, %v4069_v26  ;;  %6814 = vmatpush2.bf16.msra.mxu0 %v11742_v10  ;;  %6855 = vmatpush2.bf16.msra.mxu1 %v11745_v14  ;;  %v11759_v10 = vld [vmem:[%s16964_s2 + $0x464] ss:$24 sps:$4 sm:$0xff]  }
 0x2fe   :  { %v4071_v32 = vpop.f32.mrf.mxu0  ;;  %v4264_v37 = vpop.f32.mrf.mxu1  ;;  %6815 = vmatprep.subr.bf16.mxu0 %v11750_v11  ;;  %6856 = vmatprep.subr.bf16.mxu1 %v11753_v8  ;;  %v11754_v11 = vld [vmem:[%s16964_s2 + $0x160] ss:$24 sps:$4 sm:$0xff]  }
 0x2ff   :  { %17214 = vst [vmem:[#allocation107_spill] sm:$0xff] %v15367_v1  ;;  %v15381_v14 = vadd.f32 %v4264_v37, %v4071_v32  ;;  %v11757_v8 = vld [vmem:[%s16964_s2 + $0x460] ss:$24 sps:$4 sm:$0xff]   ;;  %v11760_v32 = vld [vmem:[%s16964_s2 + $0x130] ss:$24 sps:$4 sm:$0xff]  }
 0x300   :  { %v4073_v26 = vpop.f32.mrf.mxu0  ;;  %v4266_v3 = vpop.f32.mrf.mxu1 }
 0x301   :  { %17215 = vst [vmem:[#allocation108_spill] sm:$0xff] %v15381_v14  ;;  %v15383_v1 = vadd.f32 %v4266_v3, %v4073_v26  ;;  %6816 = vmatpush2.bf16.msra.mxu0 %v11748_v46  ;;  %6857 = vmatpush2.bf16.msra.mxu1 %v11751_v43  ;;  %v11762_v46 = vld [vmem:[%s16964_s2 + $0x134] ss:$24 sps:$4 sm:$0xff]   ;;  %v4119_v14 = vadd.f32 %v14906_v20, %v14904_v15 }
 0x302   :  { %v15392_v27 = vpop.f32.mrf.mxu0  ;;  %v15394_v37 = vpop.f32.mrf.mxu1  ;;  %6867 = vmatprep.subr.bf16.mxu0 %v11756_v33  ;;  %6908 = vmatprep.subr.bf16.mxu1 %v11759_v10  ;;  %v11765_v43 = vld [vmem:[%s16964_s2 + $0x434] ss:$24 sps:$4 sm:$0xff]   ;;  %v12125_v10 = vld [vmem:[%s16966_s4] sm:$0x3f] }
 0x303   :  { %17216 = vst [vmem:[#allocation109_spill] sm:$0xff] %v15383_v1  ;;  %17218 = vst [vmem:[#allocation33_spill] sm:$0xff] %v15392_v27  ;;  %v15413_v1 = vrot.slane %v12125_v10, %v16987_v47  ;;  %v17220_v47 = vsub.s32 5, %v17217_v59  ;;  %v11774_v15 = vld [vmem:[%s16964_s2 + $0xd4] ss:$24 sps:$4 sm:$0xff]  }
 0x304   :  { %17219 = vst [vmem:[#allocation110_spill] sm:$0xff] %v15394_v37  ;;  %6818 = vmatmul.mubr.bf16.vlgmr.msra.gmra.mxu0 %v14863_v0  ;;  %v4305_v26 = vpop.f32.mrf.mxu0  ;;  %6859 = vmatmul.mubr.bf16.vlgmr.msra.gmra.mxu1 %v15105_v5  ;;  %v15405_v3 = vpop.f32.mrf.mxu1  ;;  %v11763_v5 = vld [vmem:[%s16964_s2 + $0x430] ss:$24 sps:$4 sm:$0xff]  }
 0x305   :  { %v4306_v33 = vadd.f32 %v4305_v26, %v14881_v51  ;;  %6868 = vmatpush1.bf16.msra.mxu0 %v11754_v11  ;;  %6909 = vmatpush1.bf16.msra.mxu1 %v11757_v8  ;;  %v11768_v51 = vld [vmem:[%s16964_s2 + $0x104] ss:$24 sps:$4 sm:$0xff]   ;;  %v15432_v27 = vrot.slane %v12125_v10, %v17220_v47 }
 0x306   :  { %v4307_v37 = vpop.f32.mrf.mxu0  ;;  %6869 = vmatprep.subr.bf16.mxu0 %v11762_v46  ;;  %6910 = vmatprep.subr.bf16.mxu1 %v11765_v43  ;;  %v11771_v11 = vld [vmem:[%s16964_s2 + $0x404] ss:$24 sps:$4 sm:$0xff]   ;;  %v15427_v8 = vpop.f32.mrf.mxu1 }
 0x307   :  { %v4308_v26 = vadd.f32 %v4307_v37, %v14895_v9  ;;  %6899 = vmatprep.mubr.bf16.mxu0 %v14493_v54  ;;  %6940 = vmatprep.mubr.bf16.mxu1 %v14540_v19  ;;  %v7355_v63 = vadd.f32 %v15413_v1, %v4306_v33  ;;  %v11766_v9 = vld [vmem:[%s16964_s2 + $0x100] ss:$24 sps:$4 sm:$0xff]  }
 0x308   :  { %v4309_v46 = vpop.f32.mrf.mxu0  ;;  %v6659_v43 = vpop.f32.mrf.mxu1  ;;  %v11769_v54 = vld [vmem:[%s16964_s2 + $0x400] ss:$24 sps:$4 sm:$0xff]  }
 0x309   :  { %v4310_v29 = vadd.f32 %v4309_v46, %v14897_v61  ;;  %6870 = vmatpush1.bf16.msra.mxu0 %v11760_v32  ;;  %6911 = vmatpush1.bf16.msra.mxu1 %v11763_v5  ;;  %v11777_v61 = vld [vmem:[%s16964_s2 + $0x3d4] ss:$24 sps:$4 sm:$0xff]   ;;  %v7356_v5 = vadd.f32 %v15432_v27, %v4308_v26  ;;  %v7547_v33 = vmax.f32 %v7355_v63, 0.0  ;;  %v11772_v46 = vld [vmem:[%s16964_s2 + $0xd0] ss:$24 sps:$4 sm:$0xff]  }
 0x30a   :  { %v4311_v19 = vpop.f32.mrf.mxu0  ;;  %6871 = vmatprep.subr.bf16.mxu0 %v11768_v51  ;;  %6912 = vmatprep.subr.bf16.mxu1 %v11771_v11  ;;  %v6660_v20 = vpop.f32.mrf.mxu1  ;;  %v11775_v26 = vld [vmem:[%s16964_s2 + $0x3d0] ss:$24 sps:$4 sm:$0xff]   ;;  %v11780_v63 = vld [vmem:[%s16964_s2 + $0xa4] ss:$24 sps:$4 sm:$0xff]  }
 0x30b   :  { %v7361_v47 = vadd.f32 %v15413_v1, %v4310_v29  ;;  %v4312_v37 = vadd.f32 %v4311_v19, %v4119_v14  ;;  %v7548_v29 = vmax.f32 %v7356_v5, 0.0  ;;  %v4129_v19 = vadd.f32 %v14936_v52, %v14934_v42  ;;  %v11781_v5 = vld [vmem:[%s16964_s2 + $0x3a0] ss:$24 sps:$4 sm:$0xff]   ;;  %v11786_v42 = vld [vmem:[%s16964_s2 + $0x74] ss:$24 sps:$4 sm:$0xff]  }
 0x30c   :  { %v4315_v32 = vpop.f32.mrf.mxu0 }
 0x30d   :  { %v7553_v10 = vmax.f32 %v7361_v47, 0.0  ;;  %v7362_v51 = vadd.f32 %v15432_v27, %v4312_v37  ;;  %v4316_v11 = vadd.f32 %v4315_v32, %v14916_v12  ;;  %6872 = vmatpush1.bf16.msra.mxu0 %v11766_v9  ;;  %6913 = vmatpush1.bf16.msra.mxu1 %v11769_v54  ;;  %v11783_v12 = vld [vmem:[%s16964_s2 + $0x3a4] ss:$24 sps:$4 sm:$0xff]   ;;  %v11778_v47 = vld [vmem:[%s16964_s2 + $0xa0] ss:$24 sps:$4 sm:$0xff]  }
 0x30e   :  { %v4317_v43 = vpop.f32.mrf.mxu0  ;;  %6873 = vmatprep.subr.bf16.mxu0 %v11774_v15  ;;  %6914 = vmatprep.subr.bf16.mxu1 %v11777_v61 }
 0x30f   :  { %v15468_v14 = vpack.c.bf16 %v7553_v10, %v7547_v33  ;;  %v7554_v9 = vmax.f32 %v7362_v51, 0.0  ;;  %v4318_v54 = vadd.f32 %v4317_v43, %v14927_v39  ;;  %v7367_v15 = vadd.f32 %v15413_v1, %v4316_v11  ;;  %v11784_v43 = vld [vmem:[%s16964_s2 + $0x70] ss:$24 sps:$4 sm:$0xff]  }
 0x310   :  { %v4319_v20 = vpop.f32.mrf.mxu0 }
 0x311   :  { %v4320_v61 = vadd.f32 %v4319_v20, %v14929_v49  ;;  %6874 = vmatpush1.bf16.msra.mxu0 %v11772_v46  ;;  %6915 = vmatpush1.bf16.msra.mxu1 %v11775_v26  ;;  %v15481_v37 = vpack.c.bf16 %v7554_v9, %v7548_v29  ;;  %v11789_v49 = vld [vmem:[%s16964_s2 + $0x374] ss:$24 sps:$4 sm:$0xff]   ;;  %v7368_v52 = vadd.f32 %v15432_v27, %v4318_v54  ;;  %v7559_v51 = vmax.f32 %v7367_v15, 0.0  ;;  %v11792_v29 = vld [vmem:[%s16964_s2 + $0x44] ss:$24 sps:$4 sm:$0xff]  }
 0x312   :  { %v4321_v39 = vpop.f32.mrf.mxu0  ;;  %6875 = vmatprep.subr.bf16.mxu0 %v11780_v63  ;;  %6916 = vmatprep.subr.bf16.mxu1 %v11783_v12  ;;  %v11787_v63 = vld [vmem:[%s16964_s2 + $0x370] ss:$24 sps:$4 sm:$0xff]   ;;  %v4139_v15 = vadd.f32 %v14964_v62, %v14962_v6  ;;  %v11798_v6 = vld [vmem:[%s16964_s2 + $0x14] ss:$24 sps:$4 sm:$0xff]  }
 0x313   :  { %v7373_v32 = vadd.f32 %v15413_v1, %v4320_v61  ;;  %v4322_v33 = vadd.f32 %v4321_v39, %v4129_v19  ;;  %v7560_v9 = vmax.f32 %v7368_v52, 0.0  ;;  %v11790_v39 = vld [vmem:[%s16964_s2 + $0x40] ss:$24 sps:$4 sm:$0xff]  }
 0x314   :  { %v4325_v10 = vpop.f32.mrf.mxu0 }
 0x315   :  { %v7565_v11 = vmax.f32 %v7373_v32, 0.0  ;;  %v7374_v46 = vadd.f32 %v15432_v27, %v4322_v33  ;;  %v4326_v26 = vadd.f32 %v4325_v10, %v14944_v4  ;;  %6876 = vmatpush1.bf16.msra.mxu0 %v11778_v47  ;;  %6917 = vmatpush1.bf16.msra.mxu1 %v11781_v5  ;;  %v11795_v4 = vld [vmem:[%s16964_s2 + $0x344] ss:$24 sps:$4 sm:$0xff]  }
 0x316   :  { %v4327_v12 = vpop.f32.mrf.mxu0  ;;  %6877 = vmatprep.subr.bf16.mxu0 %v11786_v42  ;;  %6918 = vmatprep.subr.bf16.mxu1 %v11789_v49  ;;  %v11793_v42 = vld [vmem:[%s16964_s2 + $0x340] ss:$24 sps:$4 sm:$0xff]  }
 0x317   :  { %v15505_v54 = vpack.c.bf16 %v7565_v11, %v7559_v51  ;;  %v7566_v19 = vmax.f32 %v7374_v46, 0.0  ;;  %v4328_v20 = vadd.f32 %v4327_v12, %v14955_v60  ;;  %v7379_v47 = vadd.f32 %v15413_v1, %v4326_v26  ;;  %v11796_v26 = vld [vmem:[%s16964_s2 + $0x10] ss:$24 sps:$4 sm:$0xff]   ;;  %v11804_v12 = vld [vmem:[%s16964_s2 + $0x2e4] ss:$24 sps:$4 sm:$0xff]  }
 0x318   :  { %v4329_v61 = vpop.f32.mrf.mxu0 }
 0x319   :  { %v4330_v5 = vadd.f32 %v4329_v61, %v14957_v7  ;;  %6878 = vmatpush1.bf16.msra.mxu0 %v11784_v43  ;;  %6919 = vmatpush1.bf16.msra.mxu1 %v11787_v63  ;;  %v15518_v49 = vpack.c.bf16 %v7566_v19, %v7560_v9  ;;  %v11801_v7 = vld [vmem:[%s16964_s2 + $0x314] ss:$24 sps:$4 sm:$0xff]   ;;  %v7380_v62 = vadd.f32 %v15432_v27, %v4328_v20  ;;  %v7571_v10 = vmax.f32 %v7379_v47, 0.0  ;;  %v11799_v43 = vld [vmem:[%s16964_s2 + $0x310] ss:$24 sps:$4 sm:$0xff]  }
 0x31a   :  { %v4331_v60 = vpop.f32.mrf.mxu0  ;;  %6879 = vmatprep.subr.bf16.mxu0 %v11792_v29  ;;  %6920 = vmatprep.subr.bf16.mxu1 %v11795_v4  ;;  %v4149_v20 = vadd.f32 %v14992_v57, %v14990_v35  ;;  %v11810_v35 = vld [vmem:[%s16964_s2 + $0x2b4] ss:$24 sps:$4 sm:$0xff]  }
 0x31b   :  { %v7385_v52 = vadd.f32 %v15413_v1, %v4330_v5  ;;  %v4332_v32 = vadd.f32 %v4331_v60, %v4139_v15  ;;  %v7572_v29 = vmax.f32 %v7380_v62, 0.0  ;;  %v11802_v5 = vld [vmem:[%s16964_s2 + $0x2e0] ss:$24 sps:$4 sm:$0xff]  }
 0x31c   :  { %v4335_v33 = vpop.f32.mrf.mxu0 }
 0x31d   :  { %v7577_v51 = vmax.f32 %v7385_v52, 0.0  ;;  %v7386_v11 = vadd.f32 %v15432_v27, %v4332_v32  ;;  %v4336_v46 = vadd.f32 %v4335_v33, %v14972_v30  ;;  %6880 = vmatpush1.bf16.msra.mxu0 %v11790_v39  ;;  %6921 = vmatpush1.bf16.msra.mxu1 %v11793_v42  ;;  %v11807_v30 = vld [vmem:[%s16964_s2 + $0x5e4] ss:$24 sps:$4 sm:$0xff]   ;;  %v11805_v39 = vld [vmem:[%s16964_s2 + $0x5e0] ss:$24 sps:$4 sm:$0xff]  }
 0x31e   :  { %v4337_v63 = vpop.f32.mrf.mxu0  ;;  %6881 = vmatprep.subr.bf16.mxu0 %v11798_v6  ;;  %6922 = vmatprep.subr.bf16.mxu1 %v11801_v7 }
 0x31f   :  { %v15542_v4 = vpack.c.bf16 %v7577_v51, %v7571_v10  ;;  %v7578_v9 = vmax.f32 %v7386_v11, 0.0  ;;  %v4338_v19 = vadd.f32 %v4337_v63, %v14983_v17  ;;  %v7391_v61 = vadd.f32 %v15413_v1, %v4336_v46  ;;  %v11808_v10 = vld [vmem:[%s16964_s2 + $0x2b0] ss:$24 sps:$4 sm:$0xff]   ;;  %v11816_v46 = vld [vmem:[%s16964_s2 + $0x284] ss:$24 sps:$4 sm:$0xff]  }
 0x320   :  { %v4339_v15 = vpop.f32.mrf.mxu0  ;;  %v11811_v51 = vld [vmem:[%s16964_s2 + $0x5b0] ss:$24 sps:$4 sm:$0xff]  }
 0x321   :  { %v4340_v47 = vadd.f32 %v4339_v15, %v14985_v13  ;;  %6882 = vmatpush1.bf16.msra.mxu0 %v11796_v26  ;;  %6923 = vmatpush1.bf16.msra.mxu1 %v11799_v43  ;;  %v15555_v42 = vpack.c.bf16 %v7578_v9, %v7572_v29  ;;  %v11813_v13 = vld [vmem:[%s16964_s2 + $0x5b4] ss:$24 sps:$4 sm:$0xff]   ;;  %v7392_v57 = vadd.f32 %v15432_v27, %v4338_v19  ;;  %v7583_v62 = vmax.f32 %v7391_v61, 0.0  ;;  %v11817_v15 = vld [vmem:[%s16964_s2 + $0x580] ss:$24 sps:$4 sm:$0xff]  }
 0x322   :  { %v4341_v17 = vpop.f32.mrf.mxu0  ;;  %6883 = vmatprep.subr.bf16.mxu0 %v11804_v12  ;;  %6924 = vmatprep.subr.bf16.mxu1 %v11807_v30  ;;  %v4159_v30 = vadd.f32 %v15020_v31, %v15018_v44  ;;  %v11822_v44 = vld [vmem:[%s16964_s2 + $0x254] ss:$24 sps:$4 sm:$0xff]  }
 0x323   :  { %v7397_v60 = vadd.f32 %v15413_v1, %v4340_v47  ;;  %v4342_v6 = vadd.f32 %v4341_v17, %v4149_v20  ;;  %v7584_v26 = vmax.f32 %v7392_v57, 0.0  ;;  %v11814_v20 = vld [vmem:[%s16964_s2 + $0x280] ss:$24 sps:$4 sm:$0xff]  }
 0x324   :  { %v4345_v7 = vpop.f32.mrf.mxu0 }
 0x325   :  { %v7589_v52 = vmax.f32 %v7397_v60, 0.0  ;;  %v7398_v32 = vadd.f32 %v15432_v27, %v4342_v6  ;;  %v4346_v33 = vadd.f32 %v4345_v7, %v15000_v25  ;;  %6884 = vmatpush2.bf16.msra.mxu0 %v11802_v5  ;;  %6925 = vmatpush2.bf16.msra.mxu1 %v11805_v39  ;;  %v11819_v25 = vld [vmem:[%s16964_s2 + $0x584] ss:$24 sps:$4 sm:$0xff]   ;;  %v11820_v60 = vld [vmem:[%s16964_s2 + $0x250] ss:$24 sps:$4 sm:$0xff]  }
 0x326   :  { %v4347_v11 = vpop.f32.mrf.mxu0  ;;  %6885 = vmatprep.subr.bf16.mxu0 %v11810_v35  ;;  %6926 = vmatprep.subr.bf16.mxu1 %v11813_v13  ;;  %v11823_v6 = vld [vmem:[%s16964_s2 + $0x550] ss:$24 sps:$4 sm:$0xff]  }
 0x327   :  { %v15579_v43 = vpack.c.bf16 %v7589_v52, %v7583_v62  ;;  %v7590_v63 = vmax.f32 %v7398_v32, 0.0  ;;  %v4348_v12 = vadd.f32 %v4347_v11, %v15011_v28  ;;  %v7403_v9 = vadd.f32 %v15413_v1, %v4346_v33  ;;  %v11828_v62 = vld [vmem:[%s16964_s2 + $0x224] ss:$24 sps:$4 sm:$0xff]  }
 0x328   :  { %v4349_v29 = vpop.f32.mrf.mxu0 }
 0x329   :  { %v4350_v19 = vadd.f32 %v4349_v29, %v15013_v21  ;;  %6886 = vmatpush2.bf16.msra.mxu0 %v11808_v10  ;;  %6927 = vmatpush2.bf16.msra.mxu1 %v11811_v51  ;;  %v15592_v61 = vpack.c.bf16 %v7590_v63, %v7584_v26  ;;  %v11825_v21 = vld [vmem:[%s16964_s2 + $0x554] ss:$24 sps:$4 sm:$0xff]   ;;  %v7404_v31 = vadd.f32 %v15432_v27, %v4348_v12  ;;  %v7595_v17 = vmax.f32 %v7403_v9, 0.0  ;;  %v11829_v26 = vld [vmem:[%s16964_s2 + $0x520] ss:$24 sps:$4 sm:$0xff]  }
 0x32a   :  { %v4351_v28 = vpop.f32.mrf.mxu0  ;;  %6887 = vmatprep.subr.bf16.mxu0 %v11816_v46  ;;  %6928 = vmatprep.subr.bf16.mxu1 %v11819_v25  ;;  %v11826_v25 = vld [vmem:[%s16964_s2 + $0x220] ss:$24 sps:$4 sm:$0xff]  }
 0x32b   :  { %v7409_v47 = vadd.f32 %v15413_v1, %v4350_v19  ;;  %v4352_v5 = vadd.f32 %v4351_v28, %v4159_v30  ;;  %v7596_v52 = vmax.f32 %v7404_v31, 0.0  ;;  %v11835_v28 = vld [vmem:[%s16964_s2 + $0x4f0] ss:$24 sps:$4 sm:$0xff]  }
 0x32c   :  { %v4355_v39 = vpop.f32.mrf.mxu0 }
 0x32d   :  { %v7601_v35 = vmax.f32 %v7409_v47, 0.0  ;;  %v7410_v13 = vadd.f32 %v15432_v27, %v4352_v5  ;;  %v4356_v57 = vadd.f32 %v4355_v39, %v15028_v53  ;;  %6888 = vmatpush2.bf16.msra.mxu0 %v11814_v20  ;;  %6929 = vmatpush2.bf16.msra.mxu1 %v11817_v15  ;;  %v11831_v53 = vld [vmem:[%s16964_s2 + $0x524] ss:$24 sps:$4 sm:$0xff]   ;;  %v11832_v15 = vld [vmem:[%s16964_s2 + $0x1f0] ss:$24 sps:$4 sm:$0xff]  }
 0x32e   :  { %v4357_v7 = vpop.f32.mrf.mxu0  ;;  %6889 = vmatprep.subr.bf16.mxu0 %v11822_v44  ;;  %6930 = vmatprep.subr.bf16.mxu1 %v11825_v21  ;;  %v11840_v21 = vld [vmem:[%s16964_s2 + $0x1c4] ss:$24 sps:$4 sm:$0xff]  }
 0x32f   :  { %v15616_v32 = vpack.c.bf16 %v7601_v35, %v7595_v17  ;;  %v7602_v33 = vmax.f32 %v7410_v13, 0.0  ;;  %v15619_v10 = vadd.f32 %v4357_v7, %v15042_v36  ;;  %v7415_v11 = vadd.f32 %v15413_v1, %v4356_v57  ;;  %v11837_v36 = vld [vmem:[%s16964_s2 + $0x4f4] ss:$24 sps:$4 sm:$0xff]   ;;  %v11838_v35 = vld [vmem:[%s16964_s2 + $0x1c0] ss:$24 sps:$4 sm:$0xff]  }
 0x330   :  { %v4359_v51 = vpop.f32.mrf.mxu0  ;;  %v11841_v13 = vld [vmem:[%s16964_s2 + $0x4c0] ss:$24 sps:$4 sm:$0xff]  }
 0x331   :  { %v4360_v46 = vadd.f32 %v4359_v51, %v15044_v41  ;;  %6890 = vmatpush2.bf16.msra.mxu0 %v11820_v60  ;;  %6931 = vmatpush2.bf16.msra.mxu1 %v11823_v6  ;;  %v15629_v63 = vpack.c.bf16 %v7602_v33, %v7596_v52  ;;  %v11834_v41 = vld [vmem:[%s16964_s2 + $0x1f4] ss:$24 sps:$4 sm:$0xff]   ;;  %v7607_v9 = vmax.f32 %v7415_v11, 0.0  ;;  %v11844_v52 = vld [vmem:[%s16964_s2 + $0x190] ss:$24 sps:$4 sm:$0xff]  }
 0x332   :  { %v15631_v12 = vpop.f32.mrf.mxu0  ;;  %6891 = vmatprep.subr.bf16.mxu0 %v11828_v62  ;;  %6932 = vmatprep.subr.bf16.mxu1 %v11831_v53  ;;  %v11847_v33 = vld [vmem:[%s16964_s2 + $0x490] ss:$24 sps:$4 sm:$0xff]   ;;  %v11852_v11 = vld [vmem:[%s16964_s2 + $0x764] ss:$24 sps:$4 sm:$0xff]  }
 0x333   :  { %v7421_v30 = vadd.f32 %v15413_v1, %v4360_v46 }
 0x334   :  { %v4365_v29 = vpop.f32.mrf.mxu0 }
 0x335   :  { %v7613_v19 = vmax.f32 %v7421_v30, 0.0  ;;  %v4366_v20 = vadd.f32 %v4365_v29, %v15062_v45  ;;  %6892 = vmatpush2.bf16.msra.mxu0 %v11826_v25  ;;  %6933 = vmatpush2.bf16.msra.mxu1 %v11829_v26  ;;  %v11843_v45 = vld [vmem:[%s16964_s2 + $0x4c4] ss:$24 sps:$4 sm:$0xff]   ;;  %v11850_v30 = vld [vmem:[%s16964_s2 + $0x760] ss:$24 sps:$4 sm:$0xff]  }
 0x336   :  { %v4367_v44 = vpop.f32.mrf.mxu0  ;;  %6893 = vmatprep.subr.bf16.mxu0 %v11834_v41  ;;  %6934 = vmatprep.subr.bf16.mxu1 %v11837_v36  ;;  %v15703_v29 = vld [vmem:[%s16965_s3 + $0x38] sm:$0xff]  }
 0x337   :  { %v15653_v31 = vpack.c.bf16 %v7613_v19, %v7607_v9  ;;  %v15656_v47 = vadd.f32 %v4367_v44, %v15074_v16  ;;  %v7427_v39 = vadd.f32 %v15413_v1, %v4366_v20  ;;  %v11846_v16 = vld [vmem:[%s16964_s2 + $0x194] ss:$24 sps:$4 sm:$0xff]  }
 0x338   :  { %v4369_v5 = vpop.f32.mrf.mxu0  ;;  %v15715_v19 = vld [vmem:[%s16965_s3 + $0x70] sm:$0xff]  }
 0x339   :  { %v4370_v17 = vadd.f32 %v4369_v5, %v15076_v50  ;;  %6894 = vmatpush2.bf16.msra.mxu0 %v11832_v15  ;;  %6935 = vmatpush2.bf16.msra.mxu1 %v11835_v28  ;;  %v11849_v50 = vld [vmem:[%s16964_s2 + $0x494] ss:$24 sps:$4 sm:$0xff]   ;;  %v7619_v7 = vmax.f32 %v7427_v39, 0.0  ;;  %v11855_v5 = vld [vmem:[%s16964_s2 + $0x730] ss:$24 sps:$4 sm:$0xff]  }
 0x33a   :  { %v15666_v57 = vpop.f32.mrf.mxu0  ;;  %6895 = vmatprep.subr.bf16.mxu0 %v11840_v21  ;;  %6936 = vmatprep.subr.bf16.mxu1 %v11843_v45 }
 0x33b   :  { %v7433_v60 = vadd.f32 %v15413_v1, %v4370_v17 }
 0x33c   :  { %v4375_v6 = vpop.f32.mrf.mxu0 }
 0x33d   :  { %v7625_v62 = vmax.f32 %v7433_v60, 0.0  ;;  %v4376_v53 = vadd.f32 %v4375_v6, %v15093_v2  ;;  %6896 = vmatpush2.bf16.msra.mxu0 %v11838_v35  ;;  %6937 = vmatpush2.bf16.msra.mxu1 %v11841_v13  ;;  %v15688_v2 = vld [vmem:[%s16965_s3 + $0x78] sm:$0xff]  }
 0x33e   :  { %v4377_v51 = vpop.f32.mrf.mxu0  ;;  %6897 = vmatprep.subr.bf16.mxu0 %v11846_v16  ;;  %6938 = vmatprep.subr.bf16.mxu1 %v11849_v50 }
 0x33f   :  { %v15690_v46 = vpack.c.bf16 %v7625_v62, %v7619_v7  ;;  %v15693_v25 = vadd.f32 %v4377_v51, %v15103_v18  ;;  %v7439_v41 = vadd.f32 %v15413_v1, %v4376_v53  ;;  %v11857_v18 = vld [vmem:[%s16964_s2 + $0x734] ss:$24 sps:$4 sm:$0xff]   ;;  %v15771_v53 = vld [vmem:[%s16965_s3 + $0x60] sm:$0xff]  }
 0x340   :  { %v4379_v26 = vpop.f32.mrf.mxu0 }
 0x341   :  { %v4380_v36 = vadd.f32 %v4379_v26, %v15107_v22  ;;  %6898 = vmatpush2.bf16.msra.mxu0 %v11844_v52  ;;  %6939 = vmatpush2.bf16.msra.mxu1 %v11847_v33  ;;  %v7631_v28 = vmax.f32 %v7439_v41, 0.0 }
 0x342   :  { %v15705_v9 = vpop.f32.mrf.mxu0  ;;  %6949 = vmatprep.subr.bf16.mxu0 %v11852_v11  ;;  %10321 = vmatprep.subr.bf16.mxu1 %v15688_v2 }
 0x343   :  { %v7445_v22 = vadd.f32 %v15413_v1, %v4380_v36  ;;  %v11865_v36 = vld [vmem:[%s16964_s2 + $0x6d0] ss:$24 sps:$4 sm:$0xff]  }
 0x344   :  { %v6696_v20 = vpop.f32.mrf.mxu1  ;;  %6900 = vmatmul.mubr.bf16.vlgmr.msra.gmra.mxu0 %v14521_v23  ;;  %6941 = vmatmul.mubr.bf16.vlgmr.msra.gmra.mxu1 %v14863_v0  ;;  %v4385_v15 = vpop.f32.mrf.mxu0  ;;  %v15730_v23 = vld [vmem:[%s16965_s3 + $0x30] sm:$0xff]  }
 0x345   :  { %v7637_v44 = vmax.f32 %v7445_v22, 0.0  ;;  %v15720_v21 = vadd.f32 %v6696_v20, %v15405_v3  ;;  %v4386_v45 = vadd.f32 %v4385_v15, %v15127_v24  ;;  %6950 = vmatpush1.bf16.msra.mxu0 %v11850_v30  ;;  %10322 = vmatpush3.bf16.msra.mxu1 %v15703_v29  ;;  %v17221_v0 = vld [vmem:[#allocation43_spill] sm:$0xff]  ;;  %v11862_v24 = vld [vmem:[%s16964_s2 + $0x704] ss:$24 sps:$4 sm:$0xff]  }
 0x346   :  { %8151 = vmatprep.mubr.bf16.mxu1 %v17221_v0  ;;  %v6698_v39 = vpop.f32.mrf.mxu1  ;;  %v4387_v17 = vpop.f32.mrf.mxu0  ;;  %6951 = vmatprep.subr.bf16.mxu0 %v11857_v18  ;;  %v15739_v3 = vld [vmem:[%s16965_s3 + $0x68] sm:$0xff]   ;;  %v15782_v30 = vld [vmem:[%s16965_s3 + $0x20] sm:$0xff]   ;;  %v15791_v22 = vld [vmem:[%s16965_s3 + $0x58] sm:$0xff]  }
 0x347   :  { %v15741_v35 = vpack.c.bf16 %v7637_v44, %v7631_v28  ;;  %v15744_v13 = vadd.f32 %v6698_v39, %v15427_v8  ;;  %10323 = vmatprep.subr.bf16.mxu1 %v15715_v19  ;;  %6981 = vmatprep.mubr.bf16.mxu0 %v15081_v38  ;;  %v15749_v16 = vadd.f32 %v4387_v17, %v15141_v40  ;;  %v11860_v8 = vld [vmem:[%s16964_s2 + $0x700] ss:$24 sps:$4 sm:$0xff]   ;;  %v15760_v38 = vld [vmem:[%s16965_s3 + $0x28] sm:$0xff]   ;;  %v12148_v40 = vmov 0.0  }
 0x348   :  { %v4389_v50 = vpop.f32.mrf.mxu0  ;;  %v6700_v60 = vpop.f32.mrf.mxu1  ;;  %v7451_v6 = vadd.f32 %v15413_v1, %v4386_v45  ;;  %230 = vst [vmem:[#allocation3 + $0x8] sm:$0xf] %v12148_v40  ;;  %v15807_v0 = vld [vmem:[%s16965_s3 + $0x18] sm:$0xff]  }
 0x349   :  { %17222 = vst [vmem:[#allocation43_spill] sm:$0xff] %v15741_v35  ;;  %v4390_v7 = vadd.f32 %v4389_v50, %v15145_v58  ;;  %6952 = vmatpush1.bf16.msra.mxu0 %v11855_v5  ;;  %10324 = vmatpush3.bf16.msra.mxu1 %v15730_v23  ;;  %v11867_v58 = vld [vmem:[%s16964_s2 + $0x6d4] ss:$24 sps:$4 sm:$0xff]   ;;  %v11870_v5 = vld [vmem:[%s16964_s2 + $0x6a0] ss:$24 sps:$4 sm:$0xff]  }
 0x34a   :  { %v15762_v62 = vpop.f32.mrf.mxu0  ;;  %6953 = vmatprep.subr.bf16.mxu0 %v11862_v24  ;;  %10325 = vmatprep.subr.bf16.mxu1 %v15739_v3  ;;  %v6701_v52 = vpop.f32.mrf.mxu1  ;;  %v7643_v11 = vmax.f32 %v7451_v6, 0.0  ;;  %v17248_v35 = vld [vmem:[#allocation94_spill] sm:$0xff] }
 0x34b   :  { %v7457_v33 = vadd.f32 %v15413_v1, %v4390_v7  ;;  %v11875_v7 = vld [vmem:[%s16964_s2 + $0x670] ss:$24 sps:$4 sm:$0xff]  }
 0x34c   :  { %v4395_v51 = vpop.f32.mrf.mxu0 }
 0x34d   :  { %v7649_v26 = vmax.f32 %v7457_v33, 0.0  ;;  %v4396_v41 = vadd.f32 %v4395_v51, %v15163_v48  ;;  %6954 = vmatpush1.bf16.msra.mxu0 %v11860_v8  ;;  %10326 = vmatpush3.bf16.msra.mxu1 %v15760_v38  ;;  %v11872_v48 = vld [vmem:[%s16964_s2 + $0x6a4] ss:$24 sps:$4 sm:$0xff]   ;;  %v15829_v8 = vld [vmem:[%s16965_s3 + $0x10] sm:$0xff]  }
 0x34e   :  { %v4397_v18 = vpop.f32.mrf.mxu0  ;;  %6955 = vmatprep.subr.bf16.mxu0 %v11867_v58  ;;  %10327 = vmatprep.subr.bf16.mxu1 %v15771_v53  ;;  %v15838_v58 = vld [vmem:[%s16965_s3 + $0x48] sm:$0xff]  }
 0x34f   :  { %v15793_v20 = vpack.c.bf16 %v7649_v26, %v7643_v11  ;;  %v15796_v15 = vadd.f32 %v4397_v18, %v15177_v55  ;;  %v7463_v44 = vadd.f32 %v15413_v1, %v4396_v41  ;;  %v15818_v55 = vld [vmem:[%s16965_s3 + $0x50] sm:$0xff]   ;;  %v11880_v18 = vld [vmem:[%s16964_s2 + $0x640] ss:$24 sps:$4 sm:$0xff]  }
 0x350   :  { %v4399_v28 = vpop.f32.mrf.mxu0  ;;  %v17226_v33 = vld [vmem:[#allocation83_spill] sm:$0xff]  ;;  %v17228_v41 = vld [vmem:[#allocation84_spill] sm:$0xff] }
 0x351   :  { %17223 = vst [vmem:[#allocation111_spill] sm:$0xff] %v15793_v20  ;;  %17224 = vst [vmem:[#allocation112_spill] sm:$0xff] %v15796_v15  ;;  %v4400_v45 = vadd.f32 %v4399_v28, %v15179_v34  ;;  %6956 = vmatpush1.bf16.msra.mxu0 %v11865_v36  ;;  %10328 = vmatpush3.bf16.msra.mxu1 %v15782_v30  ;;  %v11877_v34 = vld [vmem:[%s16964_s2 + $0x674] ss:$24 sps:$4 sm:$0xff]   ;;  %v7655_v50 = vmax.f32 %v7463_v44, 0.0 }
 0x352   :  { %v15809_v39 = vpop.f32.mrf.mxu0  ;;  %6957 = vmatprep.subr.bf16.mxu0 %v11872_v48  ;;  %10329 = vmatprep.subr.bf16.mxu1 %v15791_v22  ;;  %v15854_v48 = vld [vmem:[%s16965_s3 + $0x8] sm:$0xff]  }
 0x353   :  { %v7469_v17 = vadd.f32 %v15413_v1, %v4400_v45  ;;  %v11887_v44 = vld [vmem:[%s16964_s2 + $0x614] ss:$24 sps:$4 sm:$0xff]   ;;  %v15865_v45 = vld [vmem:[%s16965_s3 + $0x40] sm:$0xff]  }
 0x354   :  { %v4405_v24 = vpop.f32.mrf.mxu0 }
 0x355   :  { %v7661_v60 = vmax.f32 %v7469_v17, 0.0  ;;  %v4406_v6 = vadd.f32 %v4405_v24, %v15197_v56  ;;  %6958 = vmatpush1.bf16.msra.mxu0 %v11870_v5  ;;  %10330 = vmatpush3.bf16.msra.mxu1 %v15807_v0  ;;  %v11882_v56 = vld [vmem:[%s16964_s2 + $0x644] ss:$24 sps:$4 sm:$0xff]  }
 0x356   :  { %v4407_v40 = vpop.f32.mrf.mxu0  ;;  %6959 = vmatprep.subr.bf16.mxu0 %v11877_v34  ;;  %10331 = vmatprep.subr.bf16.mxu1 %v15818_v55 }
 0x357   :  { %v15840_v52 = vpack.c.bf16 %v7661_v60, %v7655_v50  ;;  %v15843_v51 = vadd.f32 %v4407_v40, %v17226_v33  ;;  %v7475_v26 = vadd.f32 %v15413_v1, %v4406_v6  ;;  %v17230_v50 = vld [vmem:[#allocation87_spill] sm:$0xff]  ;;  %v15885_v33 = vld [vmem:[%s16965_s3 + $0x178] sm:$0xff]  }
 0x358   :  { %v4409_v11 = vpop.f32.mrf.mxu0  ;;  %v11885_v6 = vld [vmem:[%s16964_s2 + $0x610] ss:$24 sps:$4 sm:$0xff]   ;;  %17231 = vst [vmem:[#allocation87_spill] sm:$0xff] %v15885_v33 }
 0x359   :  { %17225 = vst [vmem:[#allocation113_spill] sm:$0xff] %v15840_v52  ;;  %17227 = vst [vmem:[#allocation83_spill] sm:$0xff] %v15843_v51  ;;  %v4410_v36 = vadd.f32 %v4409_v11, %v17228_v41  ;;  %6960 = vmatpush1.bf16.msra.mxu0 %v11875_v7  ;;  %10332 = vmatpush3.bf16.msra.mxu1 %v15829_v8  ;;  %v7667_v17 = vmax.f32 %v7475_v26, 0.0  ;;  %v15876_v7 = vld [vmem:[%s16965_s3] sm:$0xff]   ;;  %v17233_v26 = vld [vmem:[#allocation88_spill] sm:$0xff] }
 0x35a   :  { %v15856_v28 = vpop.f32.mrf.mxu0  ;;  %6961 = vmatprep.subr.bf16.mxu0 %v11882_v56  ;;  %10333 = vmatprep.subr.bf16.mxu1 %v15838_v58  ;;  %v11892_v56 = vld [vmem:[%s16964_s2 + $0x8e4] ss:$24 sps:$4 sm:$0xff]   ;;  %v11890_v51 = vld [vmem:[%s16964_s2 + $0x8e0] ss:$24 sps:$4 sm:$0xff]  }
 0x35b   :  { %17229 = vst [vmem:[#allocation84_spill] sm:$0xff] %v15856_v28  ;;  %v7481_v5 = vadd.f32 %v15413_v1, %v4410_v36  ;;  %v17241_v28 = vld [vmem:[#allocation45_spill] sm:$0xff] }
 0x35c   :  { %v4415_v34 = vpop.f32.mrf.mxu0 }
 0x35d   :  { %v7673_v24 = vmax.f32 %v7481_v5, 0.0  ;;  %v4416_v60 = vadd.f32 %v4415_v34, %v17230_v50  ;;  %6962 = vmatpush1.bf16.msra.mxu0 %v11880_v18  ;;  %10334 = vmatpush3.bf16.msra.mxu1 %v15854_v48  ;;  %v17234_v18 = vld [vmem:[#allocation90_spill] sm:$0xff]  ;;  %v17235_v5 = vld [vmem:[#allocation91_spill] sm:$0xff]  ;;  %v17236_v50 = vld [vmem:[#allocation89_spill] sm:$0xff] }
 0x35e   :  { %v4417_v40 = vpop.f32.mrf.mxu0  ;;  %6963 = vmatprep.subr.bf16.mxu0 %v11887_v44  ;;  %10335 = vmatprep.subr.bf16.mxu1 %v15865_v45  ;;  %v4229_v34 = vadd.f32 %v17235_v5, %v17234_v18 }
 0x35f   :  { %v15887_v11 = vpack.c.bf16 %v7673_v24, %v7667_v17  ;;  %v4418_v41 = vadd.f32 %v4417_v40, %v17233_v26  ;;  %v7487_v44 = vadd.f32 %v15413_v1, %v4416_v60  ;;  %v11895_v17 = vld [vmem:[%s16964_s2 + $0x8b4] ss:$24 sps:$4 sm:$0xff]   ;;  %v15905_v24 = vld [vmem:[%s16965_s3 + $0x138] sm:$0xff]  }
 0x360   :  { %v4419_v36 = vpop.f32.mrf.mxu0  ;;  %17237 = vst [vmem:[#allocation88_spill] sm:$0xff] %v15905_v24  ;;  %v17239_v26 = vld [vmem:[#allocation42_spill] sm:$0xff] }
 0x361   :  { %17232 = vst [vmem:[#allocation114_spill] sm:$0xff] %v15887_v11  ;;  %v4420_v52 = vadd.f32 %v4419_v36, %v17236_v50  ;;  %6964 = vmatpush1.bf16.msra.mxu0 %v11885_v6  ;;  %10336 = vmatpush3.bf16.msra.mxu1 %v15876_v7  ;;  %v7488_v60 = vadd.f32 %v15432_v27, %v4418_v41  ;;  %v7679_v18 = vmax.f32 %v7487_v44, 0.0  ;;  %v11898_v41 = vld [vmem:[%s16964_s2 + $0x884] ss:$24 sps:$4 sm:$0xff]  }
 0x362   :  { %v4421_v20 = vpop.f32.mrf.mxu0  ;;  %6965 = vmatprep.subr.bf16.mxu0 %v11892_v56  ;;  %10545 = vmatprep.subr.bf16.mxu1 %v15885_v33  ;;  %v15912_v56 = vld [vmem:[%s16965_s3 + $0x170] sm:$0xff]   ;;  %v17244_v44 = vld [vmem:[#allocation93_spill] sm:$0xff] }
 0x363   :  { %v7493_v6 = vadd.f32 %v15413_v1, %v4420_v52  ;;  %v4422_v40 = vadd.f32 %v4421_v20, %v4229_v34  ;;  %17238 = vst [vmem:[#allocation90_spill] sm:$0xff] %v15912_v56  ;;  %v17240_v33 = vld [vmem:[#allocation92_spill] sm:$0xff]  ;;  %v11893_v20 = vld [vmem:[%s16964_s2 + $0x8b0] ss:$24 sps:$4 sm:$0xff]  }
 0x364   :  { %8152 = vmatmul.mubr.bf16.vlgmr.msra.gmra.mxu1 %v17239_v26  ;;  %v4425_v36 = vpop.f32.mrf.mxu0  ;;  %v15928_v34 = vld [vmem:[%s16965_s3 + $0x130] sm:$0xff]  }
 0x365   :  { %v7685_v5 = vmax.f32 %v7493_v6, 0.0  ;;  %v7494_v50 = vadd.f32 %v15432_v27, %v4422_v40  ;;  %v4426_v11 = vadd.f32 %v4425_v36, %v17240_v33  ;;  %6966 = vmatpush2.bf16.msra.mxu0 %v11890_v51  ;;  %8159 = vmatprep.mubr.bf16.mxu1 %v17241_v28  ;;  %17242 = vst [vmem:[#allocation91_spill] sm:$0xff] %v15928_v34  ;;  %v7680_v51 = vmax.f32 %v7488_v60, 0.0  ;;  %v17246_v26 = vld [vmem:[#allocation95_spill] sm:$0xff]  ;;  %v17247_v36 = vld [vmem:[#allocation96_spill] sm:$0xff] }
 0x366   :  { %v4427_v52 = vpop.f32.mrf.mxu0  ;;  %6967 = vmatprep.subr.bf16.mxu0 %v11895_v17  ;;  %10546 = vmatpush3.bf16.msra.mxu1 %v15905_v24  ;;  %v15937_v17 = vld [vmem:[%s16965_s3 + $0x168] sm:$0xff]   ;;  %v4239_v24 = vadd.f32 %v17247_v36, %v17246_v26 }
 0x367   :  { %v15930_v33 = vpack.c.bf16 %v7685_v5, %v7679_v18  ;;  %v7686_v28 = vmax.f32 %v7494_v50, 0.0  ;;  %v4428_v6 = vadd.f32 %v4427_v52, %v17244_v44  ;;  %10547 = vmatprep.subr.bf16.mxu1 %v15912_v56  ;;  %17245 = vst [vmem:[#allocation42_spill] sm:$0xff] %v15937_v17  ;;  %v7499_v15 = vadd.f32 %v15413_v1, %v4426_v11  ;;  %v11896_v18 = vld [vmem:[%s16964_s2 + $0x880] ss:$24 sps:$4 sm:$0xff]   ;;  %v11901_v52 = vld [vmem:[%s16964_s2 + $0x854] ss:$24 sps:$4 sm:$0xff]  }
 0x368   :  { %v4429_v40 = vpop.f32.mrf.mxu0  ;;  %v15955_v11 = vld [vmem:[%s16965_s3 + $0x128] sm:$0xff]  }
 0x369   :  { %17243 = vst [vmem:[#allocation89_spill] sm:$0xff] %v15930_v33  ;;  %v4430_v60 = vadd.f32 %v4429_v40, %v17248_v35  ;;  %6968 = vmatpush2.bf16.msra.mxu0 %v11893_v20  ;;  %v15946_v5 = vpack.c.bf16 %v7686_v28, %v7680_v51  ;;  %17250 = vst [vmem:[#allocation45_spill] sm:$0xff] %v15955_v11  ;;  %v7500_v35 = vadd.f32 %v15432_v27, %v4428_v6  ;;  %v17252_v51 = vld [vmem:[#allocation44_spill] sm:$0xff]  ;;  %v17254_v6 = vld [vmem:[#allocation47_spill] sm:$0xff] }
 0x36a   :  { %v4431_v50 = vpop.f32.mrf.mxu0  ;;  %6969 = vmatprep.subr.bf16.mxu0 %v11898_v41  ;;  %10548 = vmatpush3.bf16.msra.mxu1 %v15928_v34  ;;  %v15963_v41 = vld [vmem:[%s16965_s3 + $0x160] sm:$0xff]   ;;  %v7691_v40 = vmax.f32 %v7499_v15, 0.0 }
 0x36b   :  { %17249 = vst [vmem:[#allocation92_spill] sm:$0xff] %v15946_v5  ;;  %v7505_v20 = vadd.f32 %v15413_v1, %v4430_v60  ;;  %v4432_v44 = vadd.f32 %v4431_v50, %v4239_v24  ;;  %10549 = vmatprep.subr.bf16.mxu1 %v15937_v17  ;;  %17251 = vst [vmem:[#allocation93_spill] sm:$0xff] %v15963_v41  ;;  %v17253_v34 = vld [vmem:[#allocation97_spill] sm:$0xff]  ;;  %v11899_v24 = vld [vmem:[%s16964_s2 + $0x850] ss:$24 sps:$4 sm:$0xff]  }
 0x36c   :  { %8160 = vmatmul.mubr.bf16.gmra.mxu1 %v17252_v51  ;;  %v4435_v28 = vpop.f32.mrf.mxu0  ;;  %v11904_v50 = vld [vmem:[%s16964_s2 + $0x824] ss:$24 sps:$4 sm:$0xff]   ;;  %v17261_v5 = vld [vmem:[#allocation99_spill] sm:$0xff] }
 0x36d   :  { %v7697_v26 = vmax.f32 %v7505_v20, 0.0  ;;  %v7506_v36 = vadd.f32 %v15432_v27, %v4432_v44  ;;  %v4436_v56 = vadd.f32 %v4435_v28, %v17253_v34  ;;  %6970 = vmatpush2.bf16.msra.mxu0 %v11896_v18  ;;  %8167 = vmatprep.mubr.bf16.mxu1 %v17254_v6  ;;  %v15979_v15 = vld [vmem:[%s16965_s3 + $0x120] sm:$0xff]   ;;  %v7692_v34 = vmax.f32 %v7500_v35, 0.0  ;;  %v17259_v6 = vld [vmem:[#allocation100_spill] sm:$0xff] }
 0x36e   :  { %v4437_v60 = vpop.f32.mrf.mxu0  ;;  %6971 = vmatprep.subr.bf16.mxu0 %v11901_v52  ;;  %10550 = vmatpush3.bf16.msra.mxu1 %v15955_v11  ;;  %17255 = vst [vmem:[#allocation95_spill] sm:$0xff] %v15979_v15  ;;  %v17257_v44 = vld [vmem:[#allocation98_spill] sm:$0xff]  ;;  %v15988_v52 = vld [vmem:[%s16965_s3 + $0x158] sm:$0xff]  }
 0x36f   :  { %v15981_v18 = vpack.c.bf16 %v7697_v26, %v7691_v40  ;;  %v7698_v20 = vmax.f32 %v7506_v36, 0.0  ;;  %v4438_v51 = vadd.f32 %v4437_v60, %v17257_v44  ;;  %10551 = vmatprep.subr.bf16.mxu1 %v15963_v41  ;;  %17258 = vst [vmem:[#allocation94_spill] sm:$0xff] %v15988_v52  ;;  %v17260_v11 = vld [vmem:[#allocation101_spill] sm:$0xff]  ;;  %v7511_v33 = vadd.f32 %v15413_v1, %v4436_v56  ;;  %v11907_v60 = vld [vmem:[%s16964_s2 + $0x7f4] ss:$24 sps:$4 sm:$0xff]  }
 0x370   :  { %v4439_v28 = vpop.f32.mrf.mxu0  ;;  %v4249_v17 = vadd.f32 %v17260_v11, %v17259_v6  ;;  %v11902_v40 = vld [vmem:[%s16964_s2 + $0x820] ss:$24 sps:$4 sm:$0xff]  }
 0x371   :  { %17256 = vst [vmem:[#allocation96_spill] sm:$0xff] %v15981_v18  ;;  %v4440_v35 = vadd.f32 %v4439_v28, %v17261_v5  ;;  %6972 = vmatpush2.bf16.msra.mxu0 %v11899_v24  ;;  %v15997_v26 = vpack.c.bf16 %v7698_v20, %v7692_v34  ;;  %v16006_v56 = vld [vmem:[%s16965_s3 + $0x118] sm:$0xff]   ;;  %v7512_v5 = vadd.f32 %v15432_v27, %v4438_v51  ;;  %v17265_v34 = vld [vmem:[#allocation46_spill] sm:$0xff]  ;;  %v7703_v44 = vmax.f32 %v7511_v33, 0.0  ;;  %v16030_v33 = vld [vmem:[%s16965_s3 + $0x110] sm:$0xff]  }
 0x372   :  { %v4441_v36 = vpop.f32.mrf.mxu0  ;;  %6973 = vmatprep.subr.bf16.mxu0 %v11904_v50  ;;  %10552 = vmatpush3.bf16.msra.mxu1 %v15979_v15  ;;  %17263 = vst [vmem:[#allocation97_spill] sm:$0xff] %v16006_v56  ;;  %v16014_v50 = vld [vmem:[%s16965_s3 + $0x150] sm:$0xff]   ;;  %v17266_v15 = vld [vmem:[#allocation102_spill] sm:$0xff]  ;;  %v17267_v51 = vld [vmem:[#allocation49_spill] sm:$0xff] }
 0x373   :  { %17262 = vst [vmem:[#allocation44_spill] sm:$0xff] %v15997_v26  ;;  %v7517_v11 = vadd.f32 %v15413_v1, %v4440_v35  ;;  %v4442_v24 = vadd.f32 %v4441_v36, %v4249_v17  ;;  %10553 = vmatprep.subr.bf16.mxu1 %v15988_v52  ;;  %17264 = vst [vmem:[#allocation47_spill] sm:$0xff] %v16014_v50  ;;  %v11905_v17 = vld [vmem:[%s16964_s2 + $0x7f0] ss:$24 sps:$4 sm:$0xff]   ;;  %v11910_v36 = vld [vmem:[%s16964_s2 + $0x7c4] ss:$24 sps:$4 sm:$0xff]  }
 0x374   :  { %8168 = vmatmul.mubr.bf16.gmra.mxu1 %v17265_v34  ;;  %v4445_v20 = vpop.f32.mrf.mxu0  ;;  %17268 = vst [vmem:[#allocation98_spill] sm:$0xff] %v16030_v33  ;;  %v17274_v26 = vld [vmem:[#allocation104_spill] sm:$0xff] }
 0x375   :  { %v7709_v28 = vmax.f32 %v7517_v11, 0.0  ;;  %v7518_v6 = vadd.f32 %v15432_v27, %v4442_v24  ;;  %v4446_v41 = vadd.f32 %v4445_v20, %v17266_v15  ;;  %6974 = vmatpush2.bf16.msra.mxu0 %v11902_v40  ;;  %8175 = vmatprep.mubr.bf16.mxu1 %v17267_v51  ;;  %v7704_v15 = vmax.f32 %v7512_v5, 0.0  ;;  %v17270_v24 = vld [vmem:[#allocation103_spill] sm:$0xff]  ;;  %v17272_v51 = vld [vmem:[#allocation105_spill] sm:$0xff] }
 0x376   :  { %v4447_v35 = vpop.f32.mrf.mxu0  ;;  %6975 = vmatprep.subr.bf16.mxu0 %v11907_v60  ;;  %10554 = vmatpush3.bf16.msra.mxu1 %v16006_v56  ;;  %v16039_v60 = vld [vmem:[%s16965_s3 + $0x148] sm:$0xff]  }
 0x377   :  { %v16032_v40 = vpack.c.bf16 %v7709_v28, %v7703_v44  ;;  %v7710_v11 = vmax.f32 %v7518_v6, 0.0  ;;  %v4448_v34 = vadd.f32 %v4447_v35, %v17270_v24  ;;  %10555 = vmatprep.subr.bf16.mxu1 %v16014_v50  ;;  %17271 = vst [vmem:[#allocation101_spill] sm:$0xff] %v16039_v60  ;;  %v17273_v56 = vld [vmem:[#allocation106_spill] sm:$0xff]  ;;  %v7523_v18 = vadd.f32 %v15413_v1, %v4446_v41  ;;  %v11908_v44 = vld [vmem:[%s16964_s2 + $0x7c0] ss:$24 sps:$4 sm:$0xff]  }
 0x378   :  { %v4449_v20 = vpop.f32.mrf.mxu0  ;;  %v4259_v52 = vadd.f32 %v17273_v56, %v17272_v51  ;;  %v11913_v35 = vld [vmem:[%s16964_s2 + $0x794] ss:$24 sps:$4 sm:$0xff]  }
 0x379   :  { %17269 = vst [vmem:[#allocation100_spill] sm:$0xff] %v16032_v40  ;;  %v4450_v5 = vadd.f32 %v4449_v20, %v17274_v26  ;;  %6976 = vmatpush2.bf16.msra.mxu0 %v11905_v17  ;;  %v16048_v28 = vpack.c.bf16 %v7710_v11, %v7704_v15  ;;  %v16057_v41 = vld [vmem:[%s16965_s3 + $0x108] sm:$0xff]   ;;  %v7524_v26 = vadd.f32 %v15432_v27, %v4448_v34  ;;  %v17278_v15 = vld [vmem:[#allocation48_spill] sm:$0xff]  ;;  %v7715_v24 = vmax.f32 %v7523_v18, 0.0  ;;  %v16083_v18 = vld [vmem:[%s16965_s3 + $0x100] sm:$0xff]  }
 0x37a   :  { %v4451_v6 = vpop.f32.mrf.mxu0  ;;  %6977 = vmatprep.subr.bf16.mxu0 %v11910_v36  ;;  %10556 = vmatpush3.bf16.msra.mxu1 %v16030_v33  ;;  %17276 = vst [vmem:[#allocation46_spill] sm:$0xff] %v16057_v41  ;;  %v16065_v36 = vld [vmem:[%s16965_s3 + $0x140] sm:$0xff]   ;;  %v17279_v33 = vld [vmem:[#allocation107_spill] sm:$0xff]  ;;  %17281 = vst [vmem:[#allocation49_spill] sm:$0xff] %v16083_v18 }
 0x37b   :  { %17275 = vst [vmem:[#allocation99_spill] sm:$0xff] %v16048_v28  ;;  %v7529_v56 = vadd.f32 %v15413_v1, %v4450_v5  ;;  %v4452_v17 = vadd.f32 %v4451_v6, %v4259_v52  ;;  %10557 = vmatprep.subr.bf16.mxu1 %v16039_v60  ;;  %17277 = vst [vmem:[#allocation102_spill] sm:$0xff] %v16065_v36  ;;  %v17280_v34 = vld [vmem:[#allocation51_spill] sm:$0xff]  ;;  %v16077_v6 = vld [vmem:[%s16965_s3 + $0xf8] sm:$0xff]  }
 0x37c   :  { %8176 = vmatmul.mubr.bf16.gmra.mxu1 %v17278_v15  ;;  %v4455_v11 = vpop.f32.mrf.mxu0  ;;  %v11911_v52 = vld [vmem:[%s16964_s2 + $0x790] ss:$24 sps:$4 sm:$0xff]  }
 0x37d   :  { %v7721_v20 = vmax.f32 %v7529_v56, 0.0  ;;  %v7530_v51 = vadd.f32 %v15432_v27, %v4452_v17  ;;  %v4456_v50 = vadd.f32 %v4455_v11, %v17279_v33  ;;  %6978 = vmatpush2.bf16.msra.mxu0 %v11908_v44  ;;  %8183 = vmatprep.mubr.bf16.mxu1 %v17280_v34  ;;  %v7716_v33 = vmax.f32 %v7524_v26, 0.0  ;;  %v17283_v17 = vld [vmem:[#allocation108_spill] sm:$0xff]  ;;  %v17284_v11 = vld [vmem:[#allocation33_spill] sm:$0xff]  ;;  %v17285_v34 = vld [vmem:[#allocation110_spill] sm:$0xff] }
 0x37e   :  { %v4457_v5 = vpop.f32.mrf.mxu0  ;;  %6979 = vmatprep.subr.bf16.mxu0 %v11913_v35  ;;  %10558 = vmatpush3.bf16.msra.mxu1 %v16057_v41  ;;  %v4269_v60 = vadd.f32 %v17285_v34, %v17284_v11  ;;  %v17286_v41 = vld [vmem:[#allocation109_spill] sm:$0xff] }
 0x37f   :  { %v16085_v44 = vpack.c.bf16 %v7721_v20, %v7715_v24  ;;  %v7722_v56 = vmax.f32 %v7530_v51, 0.0  ;;  %v4458_v15 = vadd.f32 %v4457_v5, %v17283_v17  ;;  %10559 = vmatprep.subr.bf16.mxu1 %v16065_v36  ;;  %v7535_v40 = vadd.f32 %v15413_v1, %v4456_v50  ;;  %v16096_v26 = vld [vmem:[%s16965_s3 + $0xb8] sm:$0xff]   ;;  %v16104_v51 = vld [vmem:[%s16965_s3 + $0xf0] sm:$0xff]   ;;  %v17289_v17 = vld [vmem:[#allocation50_spill] sm:$0xff] }
 0x380   :  { %v4459_v35 = vpop.f32.mrf.mxu0  ;;  %v17288_v5 = vld [vmem:[#allocation13_spill] sm:$0xff] }
 0x381   :  { %17282 = vst [vmem:[#allocation103_spill] sm:$0xff] %v16085_v44  ;;  %v4460_v28 = vadd.f32 %v4459_v35, %v17286_v41  ;;  %6980 = vmatpush2.bf16.msra.mxu0 %v11911_v52  ;;  %v16098_v24 = vpack.c.bf16 %v7722_v56, %v7716_v33  ;;  %v7536_v50 = vadd.f32 %v15432_v27, %v4458_v15  ;;  %v7727_v35 = vmax.f32 %v7535_v40, 0.0  ;;  %v16129_v40 = vld [vmem:[%s16965_s3 + $0xe8] sm:$0xff]  }
 0x382   :  { %v4461_v20 = vpop.f32.mrf.mxu0  ;;  %10433 = vmatprep.subr.bf16.mxu0 %v16077_v6  ;;  %10560 = vmatpush3.bf16.msra.mxu1 %v16083_v18  ;;  %v17290_v18 = vld [vmem:[#allocation53_spill] sm:$0xff]  ;;  %v17302_v44 = vld [vmem:[#allocation10_spill] sm:$0xff] }
 0x383   :  { %17287 = vst [vmem:[#allocation105_spill] sm:$0xff] %v16098_v24  ;;  %v7541_v41 = vadd.f32 %v15413_v1, %v4460_v28  ;;  %v4462_v52 = vadd.f32 %v4461_v20, %v4269_v60  ;;  %v16122_v1 = vld [vmem:[%s16965_s3 + $0xb0] sm:$0xff]  }
 0x384   :  { %6982 = vmatmul.mubr.bf16.vlgmr.msra.gmra.mxu0 %v17288_v5  ;;  %8184 = vmatmul.mubr.bf16.gmra.mxu1 %v17289_v17  ;;  %v6737_v33 = vpop.f32.mrf.mxu0  ;;  %v16111_v56 = vpop.f32.mrf.mxu1  ;;  %v17291_v60 = vld [vmem:[#allocation36_spill] sm:$0xff]  ;;  %v17299_v17 = vld [vmem:[#allocation59_spill] sm:$0xff] }
 0x385   :  { %v7733_v11 = vmax.f32 %v7541_v41, 0.0  ;;  %v7542_v34 = vadd.f32 %v15432_v27, %v4462_v52  ;;  %v16115_v36 = vadd.f32 %v6737_v33, %v15720_v21  ;;  %8191 = vmatprep.mubr.bf16.mxu1 %v17290_v18  ;;  %10434 = vmatpush3.bf16.msra.mxu0 %v16096_v26  ;;  %v7728_v18 = vmax.f32 %v7536_v50, 0.0  ;;  %v16144_v33 = vld [vmem:[%s16965_s3 + $0xa8] sm:$0xff]  }
 0x386   :  { %8312 = vmatprep.mubr.bf16.mxu0 %v17291_v60  ;;  %v6739_v28 = vpop.f32.mrf.mxu0  ;;  %10435 = vmatprep.subr.bf16.mxu0 %v16104_v51  ;;  %v16131_v21 = vpop.f32.mrf.mxu1  ;;  %v17305_v24 = vld [vmem:[#allocation15_spill] sm:$0xff] }
 0x387   :  { %v16133_v15 = vpack.c.bf16 %v7733_v11, %v7727_v35  ;;  %v7734_v20 = vmax.f32 %v7542_v34, 0.0  ;;  %v16136_v41 = vadd.f32 %v6739_v28, %v15744_v13  ;;  %v16152_v13 = vld [vmem:[%s16965_s3 + $0xe0] sm:$0xff]   ;;  %v17294_v11 = vld [vmem:[#allocation52_spill] sm:$0xff]  ;;  %v17295_v34 = vld [vmem:[#allocation55_spill] sm:$0xff] }
 0x388   :  { %v6741_v52 = vpop.f32.mrf.mxu0  ;;  %v6782_v5 = vpop.f32.mrf.mxu1  ;;  %v16160_v28 = vld [vmem:[%s16965_s3 + $0xa0] sm:$0xff]  }
 0x389   :  { %17292 = vst [vmem:[#allocation106_spill] sm:$0xff] %v16133_v15  ;;  %10436 = vmatpush3.bf16.msra.mxu0 %v16122_v1  ;;  %v16146_v60 = vpack.c.bf16 %v7734_v20, %v7728_v18  ;;  %v16166_v18 = vld [vmem:[%s16965_s3 + $0xd8] sm:$0xff]   ;;  %v16178_v52 = vld [vmem:[%s16965_s3 + $0xd0] sm:$0xff]   ;;  %v17296_v5 = vld [vmem:[#allocation54_spill] sm:$0xff] }
 0x38a   :  { %v6742_v50 = vpop.f32.mrf.mxu0  ;;  %10437 = vmatprep.subr.bf16.mxu0 %v16129_v40  ;;  %v6783_v35 = vpop.f32.mrf.mxu1  ;;  %v16172_v20 = vld [vmem:[%s16965_s3 + $0x98] sm:$0xff]   ;;  %v16212_v15 = vld [vmem:[%s16965_s3 + $0x80] sm:$0xff]  }
 0x38b   :  { %17293 = vst [vmem:[#allocation104_spill] sm:$0xff] %v16146_v60  ;;  %v17297_v50 = vld [vmem:[#allocation57_spill] sm:$0xff]  ;;  %v16186_v35 = vld [vmem:[%s16965_s3 + $0x90] sm:$0xff]   ;;  %17300 = vst [vmem:[#allocation48_spill] sm:$0xff] %v16212_v15 }
 0x38c   :  { %8192 = vmatmul.mubr.bf16.gmra.mxu1 %v17294_v11  ;;  %v16192_v11 = vld [vmem:[%s16965_s3 + $0xc8] sm:$0xff]  }
 0x38d   :  { %8199 = vmatprep.mubr.bf16.mxu1 %v17295_v34  ;;  %10438 = vmatpush3.bf16.msra.mxu0 %v16144_v33  ;;  %v16198_v34 = vld [vmem:[%s16965_s3 + $0x88] sm:$0xff]  }
 0x38e   :  { %10439 = vmatprep.subr.bf16.mxu0 %v16152_v13  ;;  %v17301_v60 = vld [vmem:[#allocation58_spill] sm:$0xff] }
 0x391   :  { %10440 = vmatpush3.bf16.msra.mxu0 %v16160_v28 }
 0x392   :  { %10441 = vmatprep.subr.bf16.mxu0 %v16166_v18 }
 0x394   :  { %8200 = vmatmul.mubr.bf16.gmra.mxu1 %v17296_v5  ;;  %v16204_v5 = vld [vmem:[%s16965_s3 + $0xc0] sm:$0xff]  }
 0x395   :  { %8207 = vmatprep.mubr.bf16.mxu1 %v17297_v50  ;;  %10442 = vmatpush3.bf16.msra.mxu0 %v16172_v20  ;;  %v17298_v50 = vld [vmem:[#allocation56_spill] sm:$0xff] }
 0x396   :  { %10443 = vmatprep.subr.bf16.mxu0 %v16178_v52 }
 0x399   :  { %10444 = vmatpush3.bf16.msra.mxu0 %v16186_v35 }
 0x39a   :  { %10445 = vmatprep.subr.bf16.mxu0 %v16192_v11 }
 0x39c   :  { %8208 = vmatmul.mubr.bf16.gmra.mxu1 %v17298_v50  ;;  %v17303_v50 = vld [vmem:[#allocation16_spill] sm:$0xff] }
 0x39d   :  { %8215 = vmatprep.mubr.bf16.mxu1 %v17299_v17  ;;  %10446 = vmatpush3.bf16.msra.mxu0 %v16198_v34  ;;  %v17304_v17 = vld [vmem:[#allocation38_spill] sm:$0xff] }
 0x39e   :  { %10447 = vmatprep.subr.bf16.mxu0 %v16204_v5 }
 0x3a1   :  { %10448 = vmatpush3.bf16.msra.mxu0 %v16212_v15  ;;  %v17306_v15 = vld [vmem:[#allocation37_spill] sm:$0xff] }
 0x3a2   :  { %10657 = vmatprep.subr.bf16.mxu0 %v15688_v2  ;;  %v17307_v2 = vld [vmem:[#allocation21_spill] sm:$0xff] }
 0x3a4   :  { %8216 = vmatmul.mubr.bf16.gmra.mxu1 %v17301_v60  ;;  %8313 = vmatmul.mubr.bf16.vlgmr.msra.gmra.mxu0 %v17302_v44  ;;  %v17308_v60 = vld [vmem:[#allocation40_spill] sm:$0xff]  ;;  %v12149_v44 = vmov 1983009808  }
 0x3a5   :  { %8223 = vmatprep.mubr.bf16.mxu1 %v17303_v50  ;;  %8320 = vmatprep.mubr.bf16.mxu0 %v17304_v17  ;;  %v17319_v17 = vld [vmem:[#allocation31_spill] sm:$0xff] }
 0x3a6   :  { %10658 = vmatpush3.bf16.msra.mxu0 %v15703_v29  ;;  %v17309_v29 = vld [vmem:[#allocation60_spill] sm:$0xff] }
 0x3a7   :  { %10659 = vmatprep.subr.bf16.mxu0 %v15715_v19  ;;  %v17310_v19 = vld [vmem:[#allocation39_spill] sm:$0xff] }
 0x3aa   :  { %10660 = vmatpush3.bf16.msra.mxu0 %v15730_v23  ;;  %v17311_v23 = vld [vmem:[#allocation24_spill] sm:$0xff] }
 0x3ab   :  { %10661 = vmatprep.subr.bf16.mxu0 %v15739_v3  ;;  %v17312_v3 = vld [vmem:[#allocation71_spill] sm:$0xff] }
 0x3ac   :  { %8224 = vmatmul.mubr.bf16.gmra.mxu1 %v17305_v24  ;;  %8321 = vmatmul.mubr.bf16.gmra.mxu0 %v17306_v15 }
 0x3ad   :  { %8231 = vmatprep.mubr.bf16.mxu1 %v17307_v2  ;;  %8328 = vmatprep.mubr.bf16.mxu0 %v17308_v60 }
 0x3ae   :  { %10662 = vmatpush3.bf16.msra.mxu0 %v15760_v38  ;;  %v17313_v38 = vld [vmem:[#allocation62_spill] sm:$0xff] }
 0x3af   :  { %10663 = vmatprep.subr.bf16.mxu0 %v15771_v53  ;;  %v17314_v53 = vld [vmem:[#allocation41_spill] sm:$0xff] }
 0x3b2   :  { %10664 = vmatpush3.bf16.msra.mxu0 %v15782_v30  ;;  %v17315_v30 = vld [vmem:[#allocation28_spill] sm:$0xff] }
 0x3b3   :  { %10665 = vmatprep.subr.bf16.mxu0 %v15791_v22  ;;  %v17316_v22 = vld [vmem:[#allocation73_spill] sm:$0xff] }
 0x3b4   :  { %8232 = vmatmul.mubr.bf16.gmra.mxu1 %v17309_v29  ;;  %8329 = vmatmul.mubr.bf16.gmra.mxu0 %v17310_v19 }
 0x3b5   :  { %8239 = vmatprep.mubr.bf16.mxu1 %v17311_v23  ;;  %8336 = vmatprep.mubr.bf16.mxu0 %v17312_v3 }
 0x3b6   :  { %10666 = vmatpush3.bf16.msra.mxu0 %v15807_v0  ;;  %v6999_v0 = vunpack.c.l.s4 %v12149_v44 }
 0x3b7   :  { %10667 = vmatprep.subr.bf16.mxu0 %v15818_v55 }
 0x3b8   :  { %v7000_v15 = vunpack.c.0.s8 %v6999_v0  ;;  %v17324_v0 = vld [vmem:[#allocation70_spill] sm:$0xff] }
 0x3ba   :  { %10668 = vmatpush3.bf16.msra.mxu0 %v15829_v8  ;;  %v17317_v8 = vld [vmem:[#allocation63_spill] sm:$0xff] }
 0x3bb   :  { %10669 = vmatprep.subr.bf16.mxu0 %v15838_v58  ;;  %v17318_v58 = vld [vmem:[#allocation72_spill] sm:$0xff] }
 0x3bc   :  { %8240 = vmatmul.mubr.bf16.gmra.mxu1 %v17313_v38  ;;  %8337 = vmatmul.mubr.bf16.gmra.mxu0 %v17314_v53 }
 0x3bd   :  { %8247 = vmatprep.mubr.bf16.mxu1 %v17315_v30  ;;  %8344 = vmatprep.mubr.bf16.mxu0 %v17316_v22  ;;  %v17321_v30 = vld [vmem:[#allocation66_spill] sm:$0xff]  ;;  %v17323_v22 = vcombine.low %v16115_v36, %v16136_v41  ;;  %v17332_v36 = vld [vmem:[#allocation79_spill] sm:$0xff] }
 0x3be   :  { %10670 = vmatpush3.bf16.msra.mxu0 %v15854_v48  ;;  %v17320_v48 = vld [vmem:[#allocation75_spill] sm:$0xff]  ;;  %v17333_v41 = vld [vmem:[#allocation78_spill] sm:$0xff] }
 0x3bf   :  { %10671 = vmatprep.subr.bf16.mxu0 %v15865_v45 }
 0x3c2   :  { %10672 = vmatpush3.bf16.msra.mxu0 %v15876_v7 }
 0x3c3   :  { %10679 = vmatprep.subr.bf16.mxu0 %v16077_v6  ;;  %v16256_v6 = vsub.s32 %v7000_v15, %v17217_v59  ;;  %v17328_v15 = vld [vmem:[#allocation9_spill] sm:$0xff] }
 0x3c4   :  { %v6819_v55 = vpop.f32.mrf.mxu0  ;;  %8248 = vmatmul.mubr.bf16.gmra.mxu1 %v17317_v8  ;;  %8345 = vmatmul.mubr.bf16.gmra.mxu0 %v17318_v58  ;;  %v6860_v24 = vpop.f32.mrf.mxu1  ;;  %v17326_v58 = vld [vmem:[#allocation8_spill] sm:$0xff] }
 0x3c5   :  { %v6820_v50 = vadd.f32 %v6819_v55, %v16111_v56  ;;  %8255 = vmatprep.mubr.bf16.mxu1 %v17319_v17  ;;  %8352 = vmatprep.mubr.bf16.mxu0 %v17320_v48  ;;  %v17322_v56 = vld [vmem:[#allocation74_spill] sm:$0xff]  ;;  %v7004_v44 = vrot.slane %v17323_v22, %v16256_v6  ;;  %v17325_v55 = vld [vmem:[#allocation12_spill] sm:$0xff]  ;;  %v17330_v17 = vld [vmem:[#allocation35_spill] sm:$0xff] }
 0x3c6   :  { %v6821_v45 = vpop.f32.mrf.mxu0  ;;  %v6862_v2 = vpop.f32.mrf.mxu1  ;;  %v17331_v48 = vld [vmem:[#allocation76_spill] sm:$0xff] }
 0x3c7   :  { %v6822_v60 = vadd.f32 %v6821_v45, %v16131_v21  ;;  %v6861_v19 = vadd.f32 %v6860_v24, %v6820_v50  ;;  %v17327_v24 = vld [vmem:[#allocation11_spill] sm:$0xff]  ;;  %v17329_v50 = vld [vmem:[#allocation77_spill] sm:$0xff] }
 0x3c8   :  { %v6823_v7 = vpop.f32.mrf.mxu0  ;;  %v6864_v29 = vpop.f32.mrf.mxu1  ;;  %v17334_v45 = vld [vmem:[#allocation17_spill] sm:$0xff] }
 0x3c9   :  { %v6863_v23 = vadd.f32 %v6862_v2, %v6822_v60  ;;  %v17335_v2 = vld [vmem:[#allocation80_spill] sm:$0xff]  ;;  %v16284_v60 = vld [vmem:[%s16967_s5] sm:$0x3f]  ;;  %v17336_v7 = vld [vmem:[#allocation19_spill] sm:$0xff]  ;;  %v17338_v29 = vsub.s32 1, %v17217_v59 }
 0x3ca   :  { %v6824_v3 = vpop.f32.mrf.mxu0  ;;  %v6865_v38 = vpop.f32.mrf.mxu1 }
 0x3cb   :  { %v6997_v53 = vcombine.low %v6861_v19, %v6863_v23  ;;  %v17339_v19 = vsub.s32 2, %v17217_v59  ;;  %v17340_v23 = vsub.s32 3, %v17217_v59 }
 0x3cc   :  { %8256 = vmatmul.mubr.bf16.gmra.mxu1 %v17321_v30  ;;  %8353 = vmatmul.mubr.bf16.gmra.mxu0 %v17322_v56  ;;  %v17341_v30 = vld [vmem:[#allocation18_spill] sm:$0xff]  ;;  %v17343_v56 = vld [vmem:[#allocation67_spill] sm:$0xff] }
 0x3cd   :  { %v7011_v21 = vrot.slane %v6997_v53, %v16256_v6  ;;  %8263 = vmatprep.mubr.bf16.mxu1 %v17324_v0  ;;  %8360 = vmatprep.mubr.bf16.mxu0 %v17325_v55  ;;  %v9175_v3 = vrot.slane %v16284_v60, %v17340_v23 }
 0x3cf   :  { %v7012_v8 = vcombine.low %v7004_v44, %v7011_v21  ;;  %v17344_v44 = vld [vmem:[#allocation61_spill] sm:$0xff] }
 0x3d4   :  { %8264 = vmatmul.mubr.bf16.gmra.mxu1 %v17326_v58  ;;  %8361 = vmatmul.mubr.bf16.gmra.mxu0 %v17327_v24 }
 0x3d5   :  { %8271 = vmatprep.mubr.bf16.mxu1 %v17328_v15  ;;  %8368 = vmatprep.mubr.bf16.mxu0 %v17329_v50  ;;  %v17345_v15 = vld [vmem:[#allocation20_spill] sm:$0xff] }
 0x3d6   :  { %v17347_v50 = vld [vmem:[#allocation32_spill] sm:$0xff] }
 0x3dc   :  { %8272 = vmatmul.mubr.bf16.gmra.mxu1 %v17330_v17  ;;  %8369 = vmatmul.mubr.bf16.gmra.mxu0 %v17331_v48  ;;  %v7416_v48 = vadd.f32 %v15432_v27, %v15619_v10  ;;  %v17350_v10 = vld [vmem:[#allocation7_spill] sm:$0xff] }
 0x3dd   :  { %8376 = vmatprep.mubr.bf16.mxu0 %v17332_v36  ;;  %8473 = vmatprep.mubr.bf16.mxu1 %v15481_v37  ;;  %v17337_v37 = vsub.s32 0, %v17217_v59 }
 0x3e4   :  { %8377 = vmatmul.mubr.bf16.gmra.mxu0 %v17333_v41  ;;  %8474 = vmatmul.mubr.bf16.vlgmr.msra.gmra.mxu1 %v15468_v14  ;;  %v9163_v14 = vrot.slane %v16284_v60, %v17337_v37 }
 0x3e5   :  { %8384 = vmatprep.mubr.bf16.mxu0 %v17334_v45  ;;  %8481 = vmatprep.mubr.bf16.mxu1 %v15518_v49  ;;  %v9167_v49 = vrot.slane %v16284_v60, %v17338_v29  ;;  %v7608_v45 = vmax.f32 %v7416_v48, 0.0  ;;  %v17351_v29 = vld [vmem:[#allocation34_spill] sm:$0xff] }
 0x3e7   :  { %v9184_v38 = vcombine.low %v9163_v14, %v9167_v49  ;;  %v17349_v14 = vld [vmem:[#allocation22_spill] sm:$0xff]  ;;  %v4189_v49 = vadd.f32 %v17351_v29, %v17350_v10  ;;  %v17362_v29 = vld [vmem:[#allocation43_spill] sm:$0xff] }
 0x3e9   :  { %v9192_v0 = vrot.slane %v9184_v38, %v16256_v6 }
 0x3ec   :  { %8385 = vmatmul.mubr.bf16.gmra.mxu0 %v17335_v2  ;;  %8482 = vmatmul.mubr.bf16.gmra.mxu1 %v15505_v54  ;;  %v9171_v54 = vrot.slane %v16284_v60, %v17339_v19 }
 0x3ed   :  { %8392 = vmatprep.mubr.bf16.mxu0 %v17336_v7  ;;  %8489 = vmatprep.mubr.bf16.mxu1 %v15555_v42  ;;  %v17342_v42 = vld [vmem:[#allocation30_spill] sm:$0xff] }
 0x3ee   :  { %v9185_v53 = vcombine.low %v9171_v54, %v9175_v3  ;;  %v4169_v22 = vadd.f32 %v17343_v56, %v17342_v42  ;;  %v4382_v3 = vadd.f32 %v15705_v9, %v4189_v49 }
 0x3f0   :  { %v4362_v21 = vadd.f32 %v15631_v12, %v4169_v22  ;;  %v9199_v55 = vrot.slane %v9185_v53, %v16256_v6  ;;  %v7446_v56 = vadd.f32 %v15432_v27, %v4382_v3  ;;  %v17353_v22 = vld [vmem:[#allocation25_spill] sm:$0xff] }
 0x3f2   :  { %v7422_v58 = vadd.f32 %v15432_v27, %v4362_v21  ;;  %v9200_v24 = vcombine.low %v9192_v0, %v9199_v55  ;;  %v17355_v21 = vld [vmem:[#allocation14_spill] sm:$0xff]  ;;  %v7440_v55 = vadd.f32 %v15432_v27, %v15693_v25  ;;  %v7638_v9 = vmax.f32 %v7446_v56, 0.0 }
 0x3f4   :  { %8393 = vmatmul.mubr.bf16.gmra.mxu0 %v17341_v30  ;;  %8490 = vmatmul.mubr.bf16.gmra.mxu1 %v15542_v4  ;;  %v17346_v4 = vld [vmem:[#allocation68_spill] sm:$0xff]  ;;  %v7614_v12 = vmax.f32 %v7422_v58, 0.0  ;;  %v9211_v41 = vadd.f32 %v9200_v24, %v7012_v8 }
 0x3f5   :  { %8400 = vmatprep.mubr.bf16.mxu0 %v17344_v44  ;;  %8497 = vmatprep.mubr.bf16.mxu1 %v15592_v61  ;;  %v4179_v17 = vadd.f32 %v17347_v50, %v17346_v4  ;;  %v17348_v61 = vld [vmem:[#allocation23_spill] sm:$0xff]  ;;  %v17354_v44 = vld [vmem:[#allocation69_spill] sm:$0xff]  ;;  %v17356_v58 = vld [vmem:[#allocation64_spill] sm:$0xff]  ;;  %v7632_v4 = vmax.f32 %v7440_v55, 0.0 }
 0x3f6   :  { %v7770_v7 = vpack.c.bf16 %v7614_v12, %v7608_v45  ;;  %11946 = vtanh.f32 %v9211_v41  ;;  %v4199_v0 = vadd.f32 %v17355_v21, %v17354_v44  ;;  %v17359_v12 = vld [vmem:[#allocation82_spill] sm:$0xff]  ;;  %v17360_v41 = vld [vmem:[#allocation29_spill] sm:$0xff]  ;;  %v17367_v44 = vld [vmem:[#allocation111_spill] sm:$0xff] }
 0x3f7   :  { %v4372_v36 = vadd.f32 %v15666_v57, %v4179_v17  ;;  %v17352_v57 = vld [vmem:[#allocation26_spill] sm:$0xff]  ;;  %v7782_v17 = vpack.c.bf16 %v7638_v9, %v7632_v4 }
 0x3f8   :  { %v4392_v24 = vadd.f32 %v15762_v62, %v4199_v0  ;;  %v17368_v0 = vld [vmem:[#allocation83_spill] sm:$0xff] }
 0x3f9   :  { %v7434_v2 = vadd.f32 %v15432_v27, %v4372_v36  ;;  %v7452_v36 = vadd.f32 %v15432_v27, %v15749_v16  ;;  %v17363_v16 = vld [vmem:[#allocation85_spill] sm:$0xff]  ;;  %v7476_v55 = vadd.f32 %v15432_v27, %v17368_v0 }
 0x3fa   :  { %v7458_v50 = vadd.f32 %v15432_v27, %v4392_v24 }
 0x3fb   :  { %v7626_v23 = vmax.f32 %v7434_v2, 0.0  ;;  %v7668_v4 = vmax.f32 %v7476_v55, 0.0 }
 0x3fc   :  { %8401 = vmatmul.mubr.bf16.gmra.mxu0 %v17345_v15  ;;  %8498 = vmatmul.mubr.bf16.gmra.mxu1 %v15579_v43  ;;  %v7650_v62 = vmax.f32 %v7458_v50, 0.0 }
 0x3fd   :  { %8408 = vmatprep.mubr.bf16.mxu0 %v17348_v61  ;;  %8505 = vmatprep.mubr.bf16.mxu1 %v15629_v63  ;;  %v7428_v63 = vadd.f32 %v15432_v27, %v15656_v47  ;;  %v17358_v61 = vld [vmem:[#allocation81_spill] sm:$0xff] }
 0x3fe   :  { %v4209_v25 = vadd.f32 %v17359_v12, %v17358_v61 }
 0x3ff   :  { %v7620_v53 = vmax.f32 %v7428_v63, 0.0  ;;  %v17364_v63 = vld [vmem:[#allocation86_spill] sm:$0xff] }
 0x400   :  { %v4402_v45 = vadd.f32 %v15809_v39, %v4209_v25  ;;  %v17370_v25 = vld [vmem:[#allocation114_spill] sm:$0xff] }
 0x401   :  { %v7776_v47 = vpack.c.bf16 %v7626_v23, %v7620_v53  ;;  %v17365_v23 = vld [vmem:[#allocation112_spill] sm:$0xff] }
 0x402   :  { %v7464_v39 = vadd.f32 %v15432_v27, %v17365_v23 }
 0x403   :  { %v11947_v15 = vpop.eup %11946 }
 0x404   :  { %v6901_v43 = vpop.f32.mrf.mxu0  ;;  %v6942_v37 = vpop.f32.mrf.mxu1  ;;  %8409 = vmatmul.mubr.bf16.gmra.mxu0 %v17349_v14  ;;  %8506 = vmatmul.mubr.bf16.gmra.mxu1 %v15616_v32  ;;  %v9224_v48 = vrot.slane %v11947_v15, %v16256_v6 }
 0x405   :  { %v16326_v19 = vadd.f32 %v6942_v37, %v6901_v43  ;;  %8416 = vmatprep.mubr.bf16.mxu0 %v17352_v57  ;;  %8513 = vmatprep.mubr.bf16.mxu1 %v7770_v7  ;;  %v9217_v7 = vcombine.high %v11947_v15, %v11947_v15  ;;  %v7644_v43 = vmax.f32 %v7452_v36, 0.0  ;;  %v7470_v37 = vadd.f32 %v15432_v27, %v4402_v45  ;;  %v17372_v45 = vld [vmem:[#allocation89_spill] sm:$0xff] }
 0x406   :  { %v16329_v8 = vpop.f32.mrf.mxu0  ;;  %v16331_v54 = vpop.f32.mrf.mxu1  ;;  %v9232_v2 = vcombine.high %v9224_v48, %v9224_v48  ;;  %v4219_v57 = vadd.f32 %v17364_v63, %v17363_v16  ;;  %v17378_v16 = vld [vmem:[#allocation88_spill] sm:$0xff] }
 0x407   :  { %v7788_v14 = vpack.c.bf16 %v7650_v62, %v7644_v43  ;;  %v16357_v49 = vrot.slane %v9217_v7, %v16256_v6  ;;  %v7662_v3 = vmax.f32 %v7470_v37, 0.0  ;;  %v17374_v43 = vld [vmem:[#allocation48_spill] sm:$0xff]  ;;  %v17375_v37 = vld [vmem:[#allocation87_spill] sm:$0xff] }
 0x408   :  { %v6905_v38 = vpop.f32.mrf.mxu0  ;;  %v6946_v32 = vpop.f32.mrf.mxu1  ;;  %v9249_v10 = vpack.c.bf16 %v9232_v2, %v9232_v2 }
 0x409   :  { %v17366_v38 = vld [vmem:[#allocation84_spill] sm:$0xff]  ;;  %v9233_v53 = vcombine.high %v16357_v49, %v16357_v49 }
 0x40a   :  { %v6906_v30 = vpop.f32.mrf.mxu0  ;;  %v6947_v42 = vpop.f32.mrf.mxu1  ;;  %v4412_v32 = vadd.f32 %v17366_v38, %v4219_v57 }
 0x40b   :  { %v7656_v30 = vmax.f32 %v7464_v39, 0.0  ;;  %v9248_v42 = vpack.c.bf16 %v9224_v48, %v9224_v48  ;;  %v9251_v21 = vpack.c.bf16 %v9233_v53, %v9233_v53 }
 0x40c   :  { %8417 = vmatmul.mubr.bf16.gmra.mxu0 %v17353_v22  ;;  %8514 = vmatmul.mubr.bf16.gmra.mxu1 %v15653_v31  ;;  %v17357_v31 = vld [vmem:[#allocation27_spill] sm:$0xff]  ;;  %v7482_v56 = vadd.f32 %v15432_v27, %v4412_v32 }
 0x40d   :  { %8424 = vmatprep.mubr.bf16.mxu0 %v17356_v58  ;;  %8521 = vmatprep.mubr.bf16.mxu1 %v7776_v47  ;;  %v7794_v47 = vpack.c.bf16 %v7662_v3, %v7656_v30  ;;  %v17380_v30 = vld [vmem:[#allocation91_spill] sm:$0xff] }
 0x40e   :  { %v7674_v9 = vmax.f32 %v7482_v56, 0.0  ;;  %v17381_v56 = vld [vmem:[#allocation42_spill] sm:$0xff] }
 0x410   :  { %v7800_v27 = vpack.c.bf16 %v7674_v9, %v7668_v4  ;;  %v17386_v4 = vld [vmem:[#allocation45_spill] sm:$0xff] }
 0x414   :  { %8425 = vmatmul.mubr.bf16.gmra.mxu0 %v17357_v31  ;;  %8522 = vmatmul.mubr.bf16.gmra.mxu1 %v15690_v46  ;;  %v17361_v46 = vld [vmem:[#allocation65_spill] sm:$0xff] }
 0x415   :  { %8432 = vmatprep.mubr.bf16.mxu0 %v17360_v41  ;;  %8529 = vmatprep.mubr.bf16.mxu1 %v7782_v17 }
 0x41c   :  { %8433 = vmatmul.mubr.bf16.gmra.mxu0 %v17361_v46  ;;  %8530 = vmatmul.mubr.bf16.gmra.mxu1 %v17362_v29  ;;  %v17376_v46 = vld [vmem:[#allocation96_spill] sm:$0xff]  ;;  %v17377_v29 = vld [vmem:[#allocation99_spill] sm:$0xff] }
 0x41d   :  { %8537 = vmatprep.mubr.bf16.mxu1 %v7788_v14  ;;  %9286 = vmatprep.mubr.bf16.mxu0 %v9249_v10 }
 0x424   :  { %v10337_v22 = vpop.f32.mrf.mxu1  ;;  %8538 = vmatmul.mubr.bf16.gmra.mxu1 %v17367_v44  ;;  %9287 = vmatmul.mubr.bf16.vlgmr.msra.gmra.mxu0 %v9248_v42  ;;  %v4892_v42 = vld [vmem:[#allocation3 + $0x8] sm:$0xf]  ;;  %v17382_v44 = vsub.s32 4, %v17217_v59 }
 0x425   :  { %10680 = vmatpush3.bf16.msra.mxu0 %v16096_v26  ;;  %8545 = vmatprep.mubr.bf16.mxu1 %v7794_v47  ;;  %v17369_v26 = vld [vmem:[#allocation113_spill] sm:$0xff] }
 0x426   :  { %9326 = vmatprep.mubr.bf16.mxu0 %v9251_v21  ;;  %v10338_v58 = vpop.f32.mrf.mxu1  ;;  %10681 = vmatprep.subr.bf16.mxu0 %v16104_v51  ;;  %v17383_v21 = vsub.s32 5, %v17217_v59 }
 0x427   :  { %v16372_v24 = vadd.f32 %v10338_v58, %v10337_v22  ;;  %v17384_v58 = vld [vmem:[#allocation100_spill] sm:$0xff] }
 0x428   :  { %v10340_v15 = vpop.f32.mrf.mxu1  ;;  %v9183_v0 = vrot.slane %v16284_v60, %v17383_v21 }
 0x429   :  { %10682 = vmatpush3.bf16.msra.mxu0 %v16122_v1 }
 0x42a   :  { %v10341_v50 = vpop.f32.mrf.mxu1  ;;  %10683 = vmatprep.subr.bf16.mxu0 %v16129_v40 }
 0x42b   :  { %v16376_v17 = vadd.f32 %v10341_v50, %v10340_v15  ;;  %v17385_v15 = vld [vmem:[#allocation105_spill] sm:$0xff] }
 0x42c   :  { %v10343_v48 = vpop.f32.mrf.mxu1  ;;  %8546 = vmatmul.mubr.bf16.gmra.mxu1 %v17369_v26 }
 0x42d   :  { %10684 = vmatpush3.bf16.msra.mxu0 %v16144_v33  ;;  %8553 = vmatprep.mubr.bf16.mxu1 %v7800_v27  ;;  %v17371_v33 = vld [vmem:[#allocation92_spill] sm:$0xff]  ;;  %v17387_v27 = vld [vmem:[#allocation93_spill] sm:$0xff] }
 0x42e   :  { %v10344_v51 = vpop.f32.mrf.mxu1  ;;  %10685 = vmatprep.subr.bf16.mxu0 %v16152_v13 }
 0x42f   :  { %v16381_v31 = vadd.f32 %v10344_v51, %v10343_v48 }
 0x430   :  { %v10346_v61 = vpop.f32.mrf.mxu1 }
 0x431   :  { %10686 = vmatpush3.bf16.msra.mxu0 %v16160_v28 }
 0x432   :  { %v10347_v1 = vpop.f32.mrf.mxu1  ;;  %10687 = vmatprep.subr.bf16.mxu0 %v16166_v18 }
 0x433   :  { %v16385_v40 = vadd.f32 %v10347_v1, %v10346_v61  ;;  %v17388_v61 = vld [vmem:[#allocation95_spill] sm:$0xff] }
 0x434   :  { %v10349_v12 = vpop.f32.mrf.mxu1  ;;  %8554 = vmatmul.mubr.bf16.gmra.mxu1 %v17370_v25 }
 0x435   :  { %10688 = vmatpush3.bf16.msra.mxu0 %v16172_v20  ;;  %8561 = vmatprep.mubr.bf16.mxu1 %v17371_v33  ;;  %v17373_v20 = vld [vmem:[#allocation44_spill] sm:$0xff]  ;;  %v17390_v33 = vld [vmem:[#allocation103_spill] sm:$0xff] }
 0x436   :  { %v10350_v36 = vpop.f32.mrf.mxu1  ;;  %10689 = vmatprep.subr.bf16.mxu0 %v16178_v52 }
 0x437   :  { %v16391_v13 = vadd.f32 %v10350_v36, %v10349_v12  ;;  %v17391_v36 = vld [vmem:[#allocation104_spill] sm:$0xff] }
 0x438   :  { %v10352_v41 = vpop.f32.mrf.mxu1 }
 0x439   :  { %10690 = vmatpush3.bf16.msra.mxu0 %v16186_v35  ;;  %v9250_v35 = vpack.c.bf16 %v16357_v49, %v16357_v49  ;;  %v17379_v49 = vld [vmem:[#allocation90_spill] sm:$0xff] }
 0x43a   :  { %v10353_v28 = vpop.f32.mrf.mxu1  ;;  %10691 = vmatprep.subr.bf16.mxu0 %v16192_v11 }
 0x43b   :  { %v16395_v18 = vadd.f32 %v10353_v28, %v10352_v41  ;;  %v17392_v41 = vld [vmem:[#allocation97_spill] sm:$0xff] }
 0x43c   :  { %v10355_v62 = vpop.f32.mrf.mxu1  ;;  %8562 = vmatmul.mubr.bf16.gmra.mxu1 %v17372_v45 }
 0x43d   :  { %10692 = vmatpush3.bf16.msra.mxu0 %v16198_v34  ;;  %8569 = vmatprep.mubr.bf16.mxu1 %v17373_v20 }
 0x43e   :  { %v10356_v2 = vpop.f32.mrf.mxu1  ;;  %10693 = vmatprep.subr.bf16.mxu0 %v16204_v5  ;;  %v6945_v5 = vadd.f32 %v16331_v54, %v16329_v8 }
 0x43f   :  { %v16401_v52 = vadd.f32 %v10356_v2, %v10355_v62  ;;  %v17393_v62 = vld [vmem:[#allocation47_spill] sm:$0xff] }
 0x440   :  { %v10358_v7 = vpop.f32.mrf.mxu1 }
 0x441   :  { %10694 = vmatpush3.bf16.msra.mxu0 %v17374_v43  ;;  %v17394_v43 = vld [vmem:[#allocation98_spill] sm:$0xff] }
 0x442   :  { %v10359_v11 = vpop.f32.mrf.mxu1  ;;  %10701 = vmatprep.subr.bf16.mxu0 %v17375_v37 }
 0x443   :  { %v16407_v14 = vadd.f32 %v10359_v11, %v10358_v7  ;;  %v17395_v11 = vld [vmem:[#allocation101_spill] sm:$0xff] }
 0x444   :  { %9327 = vmatmul.mubr.bf16.vlgmr.msra.gmra.mxu0 %v9250_v35  ;;  %v6983_v34 = vpop.f32.mrf.mxu0  ;;  %v10361_v10 = vpop.f32.mrf.mxu1  ;;  %8570 = vmatmul.mubr.bf16.gmra.mxu1 %v17376_v46  ;;  %v17397_v46 = vld [vmem:[#allocation46_spill] sm:$0xff] }
 0x445   :  { %8577 = vmatprep.mubr.bf16.mxu1 %v17377_v29  ;;  %10702 = vmatpush3.bf16.msra.mxu0 %v17378_v16  ;;  %v6984_v23 = vadd.f32 %v6983_v34, %v16326_v19  ;;  %v9179_v19 = vrot.slane %v16284_v60, %v17382_v44  ;;  %v17389_v60 = vld [vmem:[#allocation94_spill] sm:$0xff] }
 0x446   :  { %v6985_v63 = vpop.f32.mrf.mxu0  ;;  %v10362_v57 = vpop.f32.mrf.mxu1  ;;  %10703 = vmatprep.subr.bf16.mxu0 %v17379_v49  ;;  %v17398_v29 = vld [vmem:[#allocation102_spill] sm:$0xff] }
 0x447   :  { %v6986_v39 = vadd.f32 %v6985_v63, %v6945_v5  ;;  %v16416_v3 = vadd.f32 %v10362_v57, %v10361_v10  ;;  %v9201_v26 = vcombine.low %v9179_v19, %v9183_v0  ;;  %v17396_v10 = vld [vmem:[#allocation106_spill] sm:$0xff]  ;;  %v17399_v57 = vld [vmem:[#allocation49_spill] sm:$0xff] }
 0x448   :  { %v6987_v38 = vpop.f32.mrf.mxu0  ;;  %v10364_v32 = vpop.f32.mrf.mxu1 }
 0x449   :  { %v7013_v53 = vcombine.low %v6984_v23, %v6986_v39  ;;  %10704 = vmatpush3.bf16.msra.mxu0 %v17380_v30  ;;  %v9208_v12 = vrot.slane %v9201_v26, %v16256_v6 }
 0x44a   :  { %v6988_v8 = vpop.f32.mrf.mxu0  ;;  %v10365_v54 = vpop.f32.mrf.mxu1  ;;  %10705 = vmatprep.subr.bf16.mxu0 %v17381_v56 }
 0x44b   :  { %v7020_v47 = vrot.slane %v7013_v53, %v16256_v6  ;;  %v16421_v22 = vadd.f32 %v10365_v54, %v10364_v32 }
 0x44c   :  { %v10367_v55 = vpop.f32.mrf.mxu1  ;;  %8578 = vmatmul.mubr.bf16.gmra.mxu1 %v17384_v58 }
 0x44d   :  { %v7024_v9 = vadd.f32 %v7020_v47, %v4892_v42  ;;  %8585 = vmatprep.mubr.bf16.mxu1 %v17385_v15  ;;  %10706 = vmatpush3.bf16.msra.mxu0 %v17386_v4 }
 0x44e   :  { %v10368_v50 = vpop.f32.mrf.mxu1  ;;  %10707 = vmatprep.subr.bf16.mxu0 %v17387_v27 }
 0x44f   :  { %7026 = vst [vmem:[#allocation3 + $0x8] sm:$0xf] %v7024_v9  ;;  %v16433_v48 = vadd.f32 %v10368_v50, %v10367_v55 }
 0x450   :  { %v10370_v51 = vpop.f32.mrf.mxu1 }
 0x451   :  { %10708 = vmatpush3.bf16.msra.mxu0 %v17388_v61 }
 0x452   :  { %v10371_v59 = vpop.f32.mrf.mxu1  ;;  %10709 = vmatprep.subr.bf16.mxu0 %v17389_v60 }
 0x453   :  { %v16437_v1 = vadd.f32 %v10371_v59, %v10370_v51 }
 0x454   :  { %v10373_v25 = vpop.f32.mrf.mxu1  ;;  %8586 = vmatmul.mubr.bf16.gmra.mxu1 %v17390_v33 }
 0x455   :  { %8593 = vmatprep.mubr.bf16.mxu1 %v17391_v36  ;;  %10710 = vmatpush3.bf16.msra.mxu0 %v17392_v41 }
 0x456   :  { %v10374_v28 = vpop.f32.mrf.mxu1  ;;  %10711 = vmatprep.subr.bf16.mxu0 %v17393_v62  ;;  %v9157_v45 = vld [vmem:[#allocation3 + $0x8] sm:$0xf] }
 0x457   :  { %v16444_v20 = vadd.f32 %v10374_v28, %v10373_v25  ;;  %v9212_v2 = vadd.f32 %v9208_v12, %v9157_v45 }
 0x458   :  { %v10376_v7 = vpop.f32.mrf.mxu1 }
 0x459   :  { %10712 = vmatpush3.bf16.msra.mxu0 %v17394_v43  ;;  %11948 = vtanh.f32 %v9212_v2 }
 0x45a   :  { %v10377_v35 = vpop.f32.mrf.mxu1  ;;  %10713 = vmatprep.subr.bf16.mxu0 %v17395_v11 }
 0x45b   :  { %v16448_v37 = vadd.f32 %v10377_v35, %v10376_v7 }
 0x45c   :  { %v10379_v34 = vpop.f32.mrf.mxu1  ;;  %8594 = vmatmul.mubr.bf16.gmra.mxu1 %v17396_v10 }
 0x45d   :  { %10714 = vmatpush3.bf16.msra.mxu0 %v17397_v46 }
 0x45e   :  { %v10380_v5 = vpop.f32.mrf.mxu1  ;;  %10715 = vmatprep.subr.bf16.mxu0 %v17398_v29 }
 0x45f   :  { %v16453_v16 = vadd.f32 %v10380_v5, %v10379_v34 }
 0x460   :  { %v10382_v63 = vpop.f32.mrf.mxu1 }
 0x461   :  { %10716 = vmatpush3.bf16.msra.mxu0 %v17399_v57 }
 0x462   :  { %v10383_v49 = vpop.f32.mrf.mxu1 }
 0x463   :  { %v16456_v23 = vadd.f32 %v10383_v49, %v10382_v63 }
 0x464   :  { %v10385_v39 = vpop.f32.mrf.mxu1  ;;  %v10449_v38 = vpop.f32.mrf.mxu0 }
 0x466   :  { %v11949_v32 = vpop.eup %11948  ;;  %v10386_v53 = vpop.f32.mrf.mxu1 }
 0x467   :  { %v10450_v30 = vpop.f32.mrf.mxu0  ;;  %v16458_v42 = vadd.f32 %v10386_v53, %v10385_v39  ;;  %v9240_v54 = vrot.slane %v11949_v32, %v16256_v6 }
 0x468   :  { %v10451_v8 = vadd.f32 %v10450_v30, %v10449_v38  ;;  %v10388_v56 = vpop.f32.mrf.mxu1 }
 0x469   :  { %v10452_v47 = vpop.f32.mrf.mxu0  ;;  %v9241_v19 = vcombine.high %v9240_v54, %v9240_v54  ;;  %v9252_v50 = vpack.c.bf16 %v9240_v54, %v9240_v54 }
 0x46a   :  { %v16462_v44 = vadd.f32 %v10451_v8, %v16372_v24  ;;  %v10389_v21 = vpop.f32.mrf.mxu1 }
 0x46b   :  { %v10453_v0 = vpop.f32.mrf.mxu0  ;;  %v16464_v55 = vadd.f32 %v10389_v21, %v10388_v56  ;;  %v9253_v9 = vpack.c.bf16 %v9241_v19, %v9241_v19 }
 0x46c   :  { %v10454_v58 = vadd.f32 %v10453_v0, %v10452_v47  ;;  %v10391_v15 = vpop.f32.mrf.mxu1 }
 0x46d   :  { %v10455_v4 = vpop.f32.mrf.mxu0  ;;  %9366 = vmatprep.mubr.bf16.mxu0 %v9253_v9 }
 0x46e   :  { %v16467_v27 = vadd.f32 %v10454_v58, %v16376_v17  ;;  %v10392_v6 = vpop.f32.mrf.mxu1  ;;  %9367 = vmatmul.mubr.bf16.vlgmr.msra.gmra.mxu0 %v9252_v50 }
 0x46f   :  { %v10456_v26 = vpop.f32.mrf.mxu0  ;;  %v16469_v51 = vadd.f32 %v10392_v6, %v10391_v15 }
 0x470   :  { %v10457_v24 = vadd.f32 %v10456_v26, %v10455_v4  ;;  %v10394_v61 = vpop.f32.mrf.mxu1 }
 0x471   :  { %v10458_v59 = vpop.f32.mrf.mxu0 }
 0x472   :  { %v16472_v60 = vadd.f32 %v10457_v24, %v16381_v31  ;;  %v10395_v12 = vpop.f32.mrf.mxu1 }
 0x473   :  { %v10459_v25 = vpop.f32.mrf.mxu0  ;;  %v16474_v33 = vadd.f32 %v10395_v12, %v10394_v61 }
 0x474   :  { %v10460_v36 = vadd.f32 %v10459_v25, %v10458_v59  ;;  %v10397_v41 = vpop.f32.mrf.mxu1 }
 0x475   :  { %v10461_v17 = vpop.f32.mrf.mxu0 }
 0x476   :  { %v16477_v28 = vadd.f32 %v10460_v36, %v16385_v40  ;;  %v10398_v62 = vpop.f32.mrf.mxu1 }
 0x477   :  { %v10462_v45 = vpop.f32.mrf.mxu0  ;;  %v16479_v2 = vadd.f32 %v10398_v62, %v10397_v41 }
 0x478   :  { %v10463_v7 = vadd.f32 %v10462_v45, %v10461_v17  ;;  %v10400_v43 = vpop.f32.mrf.mxu1 }
 0x479   :  { %v10464_v35 = vpop.f32.mrf.mxu0 }
 0x47a   :  { %v16482_v31 = vadd.f32 %v10463_v7, %v16391_v13  ;;  %v10401_v11 = vpop.f32.mrf.mxu1 }
 0x47b   :  { %v10465_v34 = vpop.f32.mrf.mxu0  ;;  %v16484_v10 = vadd.f32 %v10401_v11, %v10400_v43 }
 0x47c   :  { %v10466_v46 = vadd.f32 %v10465_v34, %v10464_v35  ;;  %v10403_v5 = vpop.f32.mrf.mxu1 }
 0x47d   :  { %v10467_v29 = vpop.f32.mrf.mxu0 }
 0x47e   :  { %v16487_v40 = vadd.f32 %v10466_v46, %v16395_v18  ;;  %v10404_v63 = vpop.f32.mrf.mxu1 }
 0x47f   :  { %v10468_v57 = vpop.f32.mrf.mxu0  ;;  %v16489_v49 = vadd.f32 %v10404_v63, %v10403_v5 }
 0x480   :  { %v10469_v39 = vadd.f32 %v10468_v57, %v10467_v29  ;;  %v10406_v38 = vpop.f32.mrf.mxu1 }
 0x481   :  { %v10470_v32 = vpop.f32.mrf.mxu0 }
 0x482   :  { %v16492_v13 = vadd.f32 %v10469_v39, %v16401_v52  ;;  %v10407_v53 = vpop.f32.mrf.mxu1 }
 0x483   :  { %v10471_v30 = vpop.f32.mrf.mxu0  ;;  %v16494_v8 = vadd.f32 %v10407_v53, %v10406_v38 }
 0x484   :  { %v10472_v54 = vadd.f32 %v10471_v30, %v10470_v32  ;;  %v10409_v56 = vpop.f32.mrf.mxu1 }
 0x485   :  { %v10473_v47 = vpop.f32.mrf.mxu0 }
 0x486   :  { %v16497_v18 = vadd.f32 %v10472_v54, %v16407_v14  ;;  %v10410_v19 = vpop.f32.mrf.mxu1 }
 0x487   :  { %v10474_v21 = vpop.f32.mrf.mxu0  ;;  %v16499_v0 = vadd.f32 %v10410_v19, %v10409_v56 }
 0x488   :  { %v10475_v58 = vadd.f32 %v10474_v21, %v10473_v47  ;;  %v10412_v9 = vpop.f32.mrf.mxu1 }
 0x489   :  { %v10476_v15 = vpop.f32.mrf.mxu0 }
 0x48a   :  { %v16502_v52 = vadd.f32 %v10475_v58, %v16416_v3  ;;  %v10413_v4 = vpop.f32.mrf.mxu1 }
 0x48b   :  { %v10477_v50 = vpop.f32.mrf.mxu0  ;;  %v16504_v6 = vadd.f32 %v10413_v4, %v10412_v9 }
 0x48c   :  { %v10478_v26 = vadd.f32 %v10477_v50, %v10476_v15  ;;  %v10415_v24 = vpop.f32.mrf.mxu1 }
 0x48d   :  { %v10479_v61 = vpop.f32.mrf.mxu0 }
 0x48e   :  { %v16507_v14 = vadd.f32 %v10478_v26, %v16421_v22  ;;  %v10416_v59 = vpop.f32.mrf.mxu1 }
 0x48f   :  { %v10480_v12 = vpop.f32.mrf.mxu0  ;;  %v16509_v25 = vadd.f32 %v10416_v59, %v10415_v24 }
 0x490   :  { %v10481_v36 = vadd.f32 %v10480_v12, %v10479_v61  ;;  %v10418_v41 = vpop.f32.mrf.mxu1 }
 0x491   :  { %v10482_v17 = vpop.f32.mrf.mxu0 }
 0x492   :  { %v16512_v3 = vadd.f32 %v10481_v36, %v16433_v48  ;;  %v10419_v62 = vpop.f32.mrf.mxu1 }
 0x493   :  { %v10483_v45 = vpop.f32.mrf.mxu0  ;;  %v16514_v7 = vadd.f32 %v10419_v62, %v10418_v41 }
 0x494   :  { %v10484_v43 = vadd.f32 %v10483_v45, %v10482_v17  ;;  %v10421_v35 = vpop.f32.mrf.mxu1 }
 0x495   :  { %v10485_v11 = vpop.f32.mrf.mxu0 }
 0x496   :  { %v16517_v22 = vadd.f32 %v10484_v43, %v16437_v1  ;;  %v10422_v34 = vpop.f32.mrf.mxu1 }
 0x497   :  { %v10486_v46 = vpop.f32.mrf.mxu0  ;;  %v16519_v5 = vadd.f32 %v10422_v34, %v10421_v35 }
 0x498   :  { %v10487_v29 = vadd.f32 %v10486_v46, %v10485_v11  ;;  %v10424_v63 = vpop.f32.mrf.mxu1 }
 0x499   :  { %v10488_v57 = vpop.f32.mrf.mxu0 }
 0x49a   :  { %v16522_v48 = vadd.f32 %v10487_v29, %v16444_v20  ;;  %v10425_v39 = vpop.f32.mrf.mxu1 }
 0x49b   :  { %v10489_v38 = vpop.f32.mrf.mxu0  ;;  %v16524_v32 = vadd.f32 %v10425_v39, %v10424_v63 }
 0x49c   :  { %v10490_v53 = vadd.f32 %v10489_v38, %v10488_v57  ;;  %v10427_v30 = vpop.f32.mrf.mxu1 }
 0x49d   :  { %v10491_v54 = vpop.f32.mrf.mxu0 }
 0x49e   :  { %v16527_v1 = vadd.f32 %v10490_v53, %v16448_v37  ;;  %v10428_v56 = vpop.f32.mrf.mxu1 }
 0x49f   :  { %v10492_v47 = vpop.f32.mrf.mxu0  ;;  %v16529_v19 = vadd.f32 %v10428_v56, %v10427_v30 }
 0x4a0   :  { %v10493_v21 = vadd.f32 %v10492_v47, %v10491_v54  ;;  %v10430_v58 = vpop.f32.mrf.mxu1 }
 0x4a1   :  { %v10494_v9 = vpop.f32.mrf.mxu0 }
 0x4a2   :  { %v16532_v20 = vadd.f32 %v10493_v21, %v16453_v16  ;;  %v10431_v15 = vpop.f32.mrf.mxu1 }
 0x4a3   :  { %v10495_v4 = vpop.f32.mrf.mxu0  ;;  %v16534_v50 = vadd.f32 %v10431_v15, %v10430_v58 }
 0x4a4   :  { %v10496_v26 = vadd.f32 %v10495_v4, %v10494_v9  ;;  %v10561_v61 = vpop.f32.mrf.mxu1 }
 0x4a5   :  { %v10497_v24 = vpop.f32.mrf.mxu0 }
 0x4a6   :  { %v16537_v37 = vadd.f32 %v10496_v26, %v16456_v23  ;;  %v10562_v12 = vpop.f32.mrf.mxu1  ;;  %v16546_v23 = vld [vmem:[%s16968_s6] ss:$0 sm:$0xff]  ;;  %s12151_s6 = smov 126  }
 0x4a7   :  { %v10498_v59 = vpop.f32.mrf.mxu0  ;;  %v10563_v41 = vadd.f32 %v10562_v12, %v10561_v61 }
 0x4a8   :  { %v10499_v36 = vadd.f32 %v10498_v59, %v10497_v24  ;;  %v10564_v62 = vpop.f32.mrf.mxu1 }
 0x4a9   :  { %v10500_v17 = vpop.f32.mrf.mxu0  ;;  %v8476_v16 = vadd.f32 %v10563_v41, %v16462_v44 }
 0x4aa   :  { %v16540_v45 = vadd.f32 %v10499_v36, %v16458_v42  ;;  %v10565_v35 = vpop.f32.mrf.mxu1 }
 0x4ab   :  { %v10501_v43 = vpop.f32.mrf.mxu0  ;;  %v10566_v34 = vadd.f32 %v10565_v35, %v10564_v62  ;;  %v8608_v44 = vadd.f32 %v16546_v23, %v8476_v16 }
 0x4ac   :  { %v10502_v11 = vadd.f32 %v10501_v43, %v10500_v17  ;;  %v10567_v29 = vpop.f32.mrf.mxu1 }
 0x4ad   :  { %v10503_v46 = vpop.f32.mrf.mxu0  ;;  %v8479_v57 = vadd.f32 %v10566_v34, %v16467_v27 }
 0x4ae   :  { %v16549_v63 = vadd.f32 %v10502_v11, %v16464_v55  ;;  %v10568_v39 = vpop.f32.mrf.mxu1 }
 0x4af   :  { %v10504_v42 = vpop.f32.mrf.mxu0  ;;  %v8609_v38 = vadd.f32 %v16546_v23, %v8479_v57  ;;  %v10569_v30 = vadd.f32 %v10568_v39, %v10567_v29 }
 0x4b0   :  { %v10505_v53 = vadd.f32 %v10504_v42, %v10503_v46  ;;  %v10570_v56 = vpop.f32.mrf.mxu1 }
 0x4b1   :  { %v10506_v54 = vpop.f32.mrf.mxu0  ;;  %v8484_v21 = vadd.f32 %v10569_v30, %v16472_v60  ;;  %v16558_v58 = vpack.i.bf16 %v8609_v38, %v8608_v44 }
 0x4b2   :  { %v16555_v47 = vadd.f32 %v10505_v53, %v16469_v51  ;;  %v10571_v9 = vpop.f32.mrf.mxu1 }
 0x4b3   :  { %v10507_v55 = vpop.f32.mrf.mxu0  ;;  %v10572_v15 = vadd.f32 %v10571_v9, %v10570_v56  ;;  %v8610_v51 = vadd.f32 %v16546_v23, %v8484_v21 }
 0x4b4   :  { %v10508_v27 = vadd.f32 %v10507_v55, %v10506_v54  ;;  %v10573_v26 = vpop.f32.mrf.mxu1 }
 0x4b5   :  { %v10509_v4 = vpop.f32.mrf.mxu0  ;;  %v8487_v61 = vadd.f32 %v10572_v15, %v16477_v28 }
 0x4b6   :  { %v16561_v24 = vadd.f32 %v10508_v27, %v16474_v33  ;;  %v10574_v12 = vpop.f32.mrf.mxu1 }
 0x4b7   :  { %v10510_v59 = vpop.f32.mrf.mxu0  ;;  %v8611_v36 = vadd.f32 %v16546_v23, %v8487_v61  ;;  %v10575_v41 = vadd.f32 %v10574_v12, %v10573_v26 }
 0x4b8   :  { %v10511_v60 = vadd.f32 %v10510_v59, %v10509_v4  ;;  %v10576_v62 = vpop.f32.mrf.mxu1 }
 0x4b9   :  { %v10512_v17 = vpop.f32.mrf.mxu0  ;;  %v8492_v43 = vadd.f32 %v10575_v41, %v16482_v31  ;;  %v16570_v35 = vpack.i.bf16 %v8611_v36, %v8610_v51 }
 0x4ba   :  { %v16567_v16 = vadd.f32 %v10511_v60, %v16479_v2  ;;  %v10577_v11 = vpop.f32.mrf.mxu1 }
 0x4bb   :  { %v10513_v33 = vpop.f32.mrf.mxu0  ;;  %v10578_v34 = vadd.f32 %v10577_v11, %v10576_v62  ;;  %v8612_v2 = vadd.f32 %v16546_v23, %v8492_v43 }
 0x4bc   :  { %v10514_v28 = vadd.f32 %v10513_v33, %v10512_v17  ;;  %v10579_v29 = vpop.f32.mrf.mxu1 }
 0x4bd   :  { %v10515_v46 = vpop.f32.mrf.mxu0  ;;  %v8495_v42 = vadd.f32 %v10578_v34, %v16487_v40 }
 0x4be   :  { %v16573_v57 = vadd.f32 %v10514_v28, %v16484_v10  ;;  %v10580_v44 = vpop.f32.mrf.mxu1 }
 0x4bf   :  { %v10516_v39 = vpop.f32.mrf.mxu0  ;;  %v8613_v38 = vadd.f32 %v16546_v23, %v8495_v42  ;;  %v10581_v53 = vadd.f32 %v10580_v44, %v10579_v29 }
 0x4c0   :  { %v10517_v31 = vadd.f32 %v10516_v39, %v10515_v46  ;;  %v10582_v54 = vpop.f32.mrf.mxu1 }
 0x4c1   :  { %v10518_v30 = vpop.f32.mrf.mxu0  ;;  %v16581_v21 = vpack.i.bf16 %v8613_v38, %v8612_v2  ;;  %v8500_v9 = vadd.f32 %v10581_v53, %v16492_v13 }
 0x4c2   :  { %v16579_v56 = vadd.f32 %v10517_v31, %v16489_v49  ;;  %v10583_v10 = vpop.f32.mrf.mxu1 }
 0x4c3   :  { %v10519_v55 = vpop.f32.mrf.mxu0  ;;  %v10584_v27 = vadd.f32 %v10583_v10, %v10582_v54  ;;  %v8614_v49 = vadd.f32 %v16546_v23, %v8500_v9 }
 0x4c4   :  { %v10520_v40 = vadd.f32 %v10519_v55, %v10518_v30  ;;  %v10585_v4 = vpop.f32.mrf.mxu1 }
 0x4c5   :  { %v10521_v15 = vpop.f32.mrf.mxu0  ;;  %v8503_v61 = vadd.f32 %v10584_v27, %v16497_v18 }
 0x4c6   :  { %v16585_v26 = vadd.f32 %v10520_v40, %v16494_v8  ;;  %v10586_v12 = vpop.f32.mrf.mxu1 }
 0x4c7   :  { %v10522_v59 = vpop.f32.mrf.mxu0  ;;  %v8615_v51 = vadd.f32 %v16546_v23, %v8503_v61  ;;  %v10587_v60 = vadd.f32 %v10586_v12, %v10585_v4 }
 0x4c8   :  { %v10523_v36 = vadd.f32 %v10522_v59, %v10521_v15  ;;  %v10588_v17 = vpop.f32.mrf.mxu1 }
 0x4c9   :  { %v10524_v41 = vpop.f32.mrf.mxu0  ;;  %v16593_v62 = vpack.i.bf16 %v8615_v51, %v8614_v49  ;;  %v8508_v33 = vadd.f32 %v10587_v60, %v16502_v52 }
 0x4ca   :  { %v16591_v13 = vadd.f32 %v10523_v36, %v16499_v0  ;;  %v10589_v8 = vpop.f32.mrf.mxu1 }
 0x4cb   :  { %v10525_v43 = vpop.f32.mrf.mxu0  ;;  %v10590_v11 = vadd.f32 %v10589_v8, %v10588_v17  ;;  %v8616_v0 = vadd.f32 %v16546_v23, %v8508_v33 }
 0x4cc   :  { %v10526_v18 = vadd.f32 %v10525_v43, %v10524_v41  ;;  %v10591_v34 = vpop.f32.mrf.mxu1 }
 0x4cd   :  { %v10527_v28 = vpop.f32.mrf.mxu0  ;;  %v8511_v29 = vadd.f32 %v10590_v11, %v16507_v14 }
 0x4ce   :  { %v16597_v46 = vadd.f32 %v10526_v18, %v16504_v6  ;;  %v10592_v39 = vpop.f32.mrf.mxu1 }
 0x4cf   :  { %v10528_v42 = vpop.f32.mrf.mxu0  ;;  %v8617_v44 = vadd.f32 %v16546_v23, %v8511_v29  ;;  %v10593_v38 = vadd.f32 %v10592_v39, %v10591_v34 }
 0x4d0   :  { %v10529_v2 = vadd.f32 %v10528_v42, %v10527_v28  ;;  %v10594_v53 = vpop.f32.mrf.mxu1 }
 0x4d1   :  { %v10530_v31 = vpop.f32.mrf.mxu0  ;;  %v16605_v30 = vpack.i.bf16 %v8617_v44, %v8616_v0  ;;  %v8516_v55 = vadd.f32 %v10593_v38, %v16512_v3 }
 0x4d2   :  { %v16603_v52 = vadd.f32 %v10529_v2, %v16509_v25  ;;  %v10595_v6 = vpop.f32.mrf.mxu1 }
 0x4d3   :  { %v10531_v54 = vpop.f32.mrf.mxu0  ;;  %v10596_v10 = vadd.f32 %v10595_v6, %v10594_v53  ;;  %v8618_v25 = vadd.f32 %v16546_v23, %v8516_v55 }
 0x4d4   :  { %v10532_v14 = vadd.f32 %v10531_v54, %v10530_v31  ;;  %v10597_v40 = vpop.f32.mrf.mxu1 }
 0x4d5   :  { %v10533_v9 = vpop.f32.mrf.mxu0  ;;  %v8519_v15 = vadd.f32 %v10596_v10, %v16517_v22 }
 0x4d6   :  { %v16609_v27 = vadd.f32 %v10532_v14, %v16514_v7  ;;  %v10598_v61 = vpop.f32.mrf.mxu1 }
 0x4d7   :  { %v10534_v4 = vpop.f32.mrf.mxu0  ;;  %v8619_v59 = vadd.f32 %v16546_v23, %v8519_v15  ;;  %v10599_v49 = vadd.f32 %v10598_v61, %v10597_v40 }
 0x4d8   :  { %v10535_v12 = vadd.f32 %v10534_v4, %v10533_v9  ;;  %v10600_v36 = vpop.f32.mrf.mxu1 }
 0x4d9   :  { %v10536_v51 = vpop.f32.mrf.mxu0  ;;  %v16617_v60 = vpack.i.bf16 %v8619_v59, %v8618_v25  ;;  %v8524_v17 = vadd.f32 %v10599_v49, %v16522_v48 }
 0x4da   :  { %v16615_v3 = vadd.f32 %v10535_v12, %v16519_v5  ;;  %v10601_v7 = vpop.f32.mrf.mxu1 }
 0x4db   :  { %v10537_v41 = vpop.f32.mrf.mxu0  ;;  %v10602_v43 = vadd.f32 %v10601_v7, %v10600_v36  ;;  %v8620_v5 = vadd.f32 %v16546_v23, %v8524_v17 }
 0x4dc   :  { %v10538_v22 = vadd.f32 %v10537_v41, %v10536_v51  ;;  %v10603_v33 = vpop.f32.mrf.mxu1 }
 0x4dd   :  { %v10539_v8 = vpop.f32.mrf.mxu0  ;;  %v8527_v11 = vadd.f32 %v10602_v43, %v16527_v1 }
 0x4de   :  { %v16621_v18 = vadd.f32 %v10538_v22, %v16524_v32  ;;  %v10604_v34 = vpop.f32.mrf.mxu1 }
 0x4df   :  { %v10540_v28 = vpop.f32.mrf.mxu0  ;;  %v8621_v29 = vadd.f32 %v16546_v23, %v8527_v11  ;;  %v10605_v39 = vadd.f32 %v10604_v34, %v10603_v33 }
 0x4e0   :  { %v10541_v42 = vadd.f32 %v10540_v28, %v10539_v8  ;;  %v10606_v44 = vpop.f32.mrf.mxu1 }
 0x4e1   :  { %v10542_v0 = vpop.f32.mrf.mxu0  ;;  %v16629_v2 = vpack.i.bf16 %v8621_v29, %v8620_v5  ;;  %v8532_v31 = vadd.f32 %v10605_v39, %v16532_v20 }
 0x4e2   :  { %v16627_v48 = vadd.f32 %v10541_v42, %v16529_v19  ;;  %v10607_v32 = vpop.f32.mrf.mxu1 }
 0x4e3   :  { %v10543_v38 = vpop.f32.mrf.mxu0  ;;  %v10608_v53 = vadd.f32 %v10607_v32, %v10606_v44  ;;  %v8622_v19 = vadd.f32 %v16546_v23, %v8532_v31 }
 0x4e4   :  { %v10544_v1 = vadd.f32 %v10543_v38, %v10542_v0  ;;  %v10609_v54 = vpop.f32.mrf.mxu1 }
 0x4e5   :  { %v10673_v6 = vpop.f32.mrf.mxu0  ;;  %v8535_v14 = vadd.f32 %v10608_v53, %v16537_v37 }
 0x4e6   :  { %v16633_v55 = vadd.f32 %v10544_v1, %v16534_v50  ;;  %v10610_v10 = vpop.f32.mrf.mxu1 }
 0x4e7   :  { %v10674_v9 = vpop.f32.mrf.mxu0  ;;  %v8623_v40 = vadd.f32 %v16546_v23, %v8535_v14  ;;  %v10611_v15 = vadd.f32 %v10610_v10, %v10609_v54 }
 0x4e8   :  { %v16638_v4 = vadd.f32 %v10674_v9, %v10673_v6  ;;  %v10612_v61 = vpop.f32.mrf.mxu1 }
 0x4e9   :  { %v10676_v20 = vpop.f32.mrf.mxu0  ;;  %v16640_v25 = vpack.i.bf16 %v8623_v40, %v8622_v19  ;;  %v8540_v50 = vadd.f32 %v10611_v15, %v16540_v45 }
 0x4ea   :  { %v10613_v59 = vpop.f32.mrf.mxu1 }
 0x4eb   :  { %v10677_v12 = vpop.f32.mrf.mxu0  ;;  %v10614_v49 = vadd.f32 %v10613_v59, %v10612_v61  ;;  %v8624_v41 = vadd.f32 %v16546_v23, %v8540_v50 }
 0x4ec   :  { %v10615_v51 = vpop.f32.mrf.mxu1 }
 0x4ed   :  { %v8543_v37 = vadd.f32 %v10614_v49, %v16549_v63 }
 0x4ee   :  { %v10616_v36 = vpop.f32.mrf.mxu1 }
 0x4ef   :  { %v8625_v7 = vadd.f32 %v16546_v23, %v8543_v37  ;;  %v10617_v17 = vadd.f32 %v10616_v36, %v10615_v51 }
 0x4f0   :  { %v10618_v22 = vpop.f32.mrf.mxu1 }
 0x4f1   :  { %v16646_v43 = vpack.i.bf16 %v8625_v7, %v8624_v41  ;;  %v8548_v33 = vadd.f32 %v10617_v17, %v16555_v47 }
 0x4f2   :  { %v10619_v8 = vpop.f32.mrf.mxu1 }
 0x4f3   :  { %v10620_v11 = vadd.f32 %v10619_v8, %v10618_v22  ;;  %v8626_v5 = vadd.f32 %v16546_v23, %v8548_v33 }
 0x4f4   :  { %v10621_v28 = vpop.f32.mrf.mxu1 }
 0x4f5   :  { %v8551_v45 = vadd.f32 %v10620_v11, %v16561_v24 }
 0x4f6   :  { %v10622_v34 = vpop.f32.mrf.mxu1 }
 0x4f7   :  { %v8627_v63 = vadd.f32 %v16546_v23, %v8551_v45  ;;  %v10623_v29 = vadd.f32 %v10622_v34, %v10621_v28 }
 0x4f8   :  { %v10624_v42 = vpop.f32.mrf.mxu1 }
 0x4f9   :  { %v16652_v39 = vpack.i.bf16 %v8627_v63, %v8626_v5  ;;  %v8556_v44 = vadd.f32 %v10623_v29, %v16567_v16 }
 0x4fa   :  { %v10625_v0 = vpop.f32.mrf.mxu1 }
 0x4fb   :  { %v10626_v38 = vadd.f32 %v10625_v0, %v10624_v42  ;;  %v8628_v1 = vadd.f32 %v16546_v23, %v8556_v44 }
 0x4fc   :  { %v10627_v32 = vpop.f32.mrf.mxu1 }
 0x4fd   :  { %v8559_v47 = vadd.f32 %v10626_v38, %v16573_v57 }
 0x4fe   :  { %v10628_v31 = vpop.f32.mrf.mxu1 }
 0x4ff   :  { %v8629_v24 = vadd.f32 %v16546_v23, %v8559_v47  ;;  %v10629_v53 = vadd.f32 %v10628_v31, %v10627_v32 }
 0x500   :  { %v10630_v54 = vpop.f32.mrf.mxu1 }
 0x501   :  { %v16658_v6 = vpack.i.bf16 %v8629_v24, %v8628_v1  ;;  %v8564_v10 = vadd.f32 %v10629_v53, %v16579_v56 }
 0x502   :  { %v10631_v14 = vpop.f32.mrf.mxu1 }
 0x503   :  { %v10632_v9 = vadd.f32 %v10631_v14, %v10630_v54  ;;  %v8630_v57 = vadd.f32 %v16546_v23, %v8564_v10 }
 0x504   :  { %v10695_v19 = vpop.f32.mrf.mxu0  ;;  %v10633_v40 = vpop.f32.mrf.mxu1 }
 0x505   :  { %v8567_v16 = vadd.f32 %v10632_v9, %v16585_v26 }
 0x506   :  { %v10696_v15 = vpop.f32.mrf.mxu0  ;;  %v10634_v61 = vpop.f32.mrf.mxu1 }
 0x507   :  { %v8631_v20 = vadd.f32 %v16546_v23, %v8567_v16  ;;  %v10635_v59 = vadd.f32 %v10634_v61, %v10633_v40 }
 0x508   :  { %v10698_v12 = vpop.f32.mrf.mxu0  ;;  %v10636_v50 = vpop.f32.mrf.mxu1 }
 0x509   :  { %v16664_v49 = vpack.i.bf16 %v8631_v20, %v8630_v57  ;;  %v8572_v56 = vadd.f32 %v10635_v59, %v16591_v13  ;;  %v10697_v57 = vadd.f32 %v10696_v15, %v10695_v19 }
 0x50a   :  { %v10699_v51 = vpop.f32.mrf.mxu0  ;;  %v10637_v37 = vpop.f32.mrf.mxu1 }
 0x50b   :  { %v10638_v36 = vadd.f32 %v10637_v37, %v10636_v50  ;;  %v8632_v17 = vadd.f32 %v16546_v23, %v8572_v56  ;;  %v9329_v12 = vadd.f32 %v10697_v57, %v16638_v4  ;;  %v9393_v4 = vld [vmem:[%s16969_s7] sm:$0x3] }
 0x50c   :  { %v10639_v41 = vpop.f32.mrf.mxu1 }
 0x50d   :  { %v8575_v7 = vadd.f32 %v10638_v36, %v16597_v46 }
 0x50e   :  { %v10640_v26 = vpop.f32.mrf.mxu1 }
 0x50f   :  { %v8633_v22 = vadd.f32 %v16546_v23, %v8575_v7  ;;  %v10641_v8 = vadd.f32 %v10640_v26, %v10639_v41  ;;  %v12152_v26 = vmov 1  }
 0x510   :  { %v10642_v33 = vpop.f32.mrf.mxu1  ;;  %10778 = vset.pattern.permute.xlu0 %v12152_v26 }
 0x511   :  { %v16670_v11 = vpack.i.bf16 %v8633_v22, %v8632_v17  ;;  %v8580_v45 = vadd.f32 %v10641_v8, %v16603_v52  ;;  %v17400_v22 = vlaneseq }
 0x512   :  { %v10643_v28 = vpop.f32.mrf.mxu1 }
 0x513   :  { %v10644_v34 = vadd.f32 %v10643_v28, %v10642_v33  ;;  %v8634_v29 = vadd.f32 %v16546_v23, %v8580_v45  ;;  %v16699_v8 = vand.u32 127, %v17400_v22 }
 0x514   :  { %v10645_v5 = vpop.f32.mrf.mxu1 }
 0x515   :  { %v8583_v13 = vadd.f32 %v10644_v34, %v16609_v27  ;;  %vm8643_vm5 = vcmp.eq.s32.totalorder %v16699_v8, 1  ;;  %vm8642_vm6 = vcmp.eq.s32.totalorder %v16699_v8, 0 }
 0x516   :  { %v10646_v63 = vpop.f32.mrf.mxu1 }
 0x517   :  { %v8635_v46 = vadd.f32 %v16546_v23, %v8583_v13  ;;  %v10647_v42 = vadd.f32 %v10646_v63, %v10645_v5 }
 0x518   :  { %v10648_v0 = vpop.f32.mrf.mxu1 }
 0x519   :  { %v16676_v44 = vpack.i.bf16 %v8635_v46, %v8634_v29  ;;  %v8588_v32 = vadd.f32 %v10647_v42, %v16615_v3 }
 0x51a   :  { %v10649_v38 = vpop.f32.mrf.mxu1 }
 0x51b   :  { %v10650_v47 = vadd.f32 %v10649_v38, %v10648_v0  ;;  %v8636_v24 = vadd.f32 %v16546_v23, %v8588_v32 }
 0x51c   :  { %v10651_v31 = vpop.f32.mrf.mxu1 }
 0x51d   :  { %v8591_v52 = vadd.f32 %v10650_v47, %v16621_v18 }
 0x51e   :  { %v10652_v1 = vpop.f32.mrf.mxu1 }
 0x51f   :  { %v8637_v27 = vadd.f32 %v16546_v23, %v8591_v52  ;;  %v10653_v53 = vadd.f32 %v10652_v1, %v10651_v31 }
 0x520   :  { %v10654_v54 = vpop.f32.mrf.mxu1 }
 0x521   :  { %v16682_v14 = vpack.i.bf16 %v8637_v27, %v8636_v24  ;;  %v8596_v9 = vadd.f32 %v10653_v53, %v16627_v48 }
 0x522   :  { %v10655_v10 = vpop.f32.mrf.mxu1 }
 0x523   :  { %v10656_v40 = vadd.f32 %v10655_v10, %v10654_v54  ;;  %v8638_v3 = vadd.f32 %v16546_v23, %v8596_v9 }
 0x525   :  { %v8599_v16 = vadd.f32 %v10656_v40, %v16633_v55  ;;  %v12150_v55 = vmov 0  }
 0x526   :  { %10731 = vset.pattern.permute.xlu1 %v12150_v55 }
 0x527   :  { %v8639_v61 = vadd.f32 %v16546_v23, %v8599_v16 }
 0x529   :  { %v16688_v18 = vpack.i.bf16 %v8639_v61, %v8638_v3 }
 0x52e   :  { %v10717_v20 = vpop.f32.mrf.mxu0 }
 0x530   :  { %v10718_v59 = vpop.f32.mrf.mxu0 }
 0x531   :  { %v10719_v50 = vadd.f32 %v10718_v59, %v10717_v20 }
 0x532   :  { %v10720_v51 = vpop.f32.mrf.mxu0 }
 0x533   :  { %v9369_v37 = vadd.f32 %v10719_v50, %v9329_v12 }
 0x534   :  { %v10721_v56 = vpop.f32.mrf.mxu0 }
 0x535   :  { %v9374_v48 = vadd.f32 %v16546_v23, %v9369_v37 }
 0x537   :  { %v9376_v36 = vsel %vm9375_vm1, %v9374_v48, -inf }
 0x538   :  { %9377 = vmax.xlane.f32.xlu0 %v9376_v36 }
 0x5c1   :  { %v16692_v41 = vpop.xlane.xlu0 %9377 }
 0x5c2   :  { %v9379_v7 = vsub.f32 %v9374_v48, %v16692_v41 }
 0x5c4   :  { %v9380_v19 = vmul.f32 1.442695, %v9379_v7 }
 0x5c6   :  { %11950 = vpow2.f32 %v9380_v19 }
 0x5d3   :  { %v11951_v15 = vpop.eup %11950 }
 0x5d4   :  { %9383 = vrot.lane.b32.xlu1 %v11951_v15, %s12151_s6 }
 0x5d8   :  { %9395 = vperm.xlu1 %10731, %v9393_v4  }
 0x5dc   :  { %9399 = vrot.lane.b32.xlu1 %v9374_v48, %s12151_s6 }
 0x5dd   :  { %10732 = vset.pattern.permute.xlu1 %v12152_v26 }
 0x646   :  { %v9384_v23 = vpop.permute.xlu1 %9383 }
 0x647   :  { %v9387_v17 = vsel %vm9386_vm2, %v9384_v23, 0.0 }
 0x648   :  { %9388 = vadd.xlane.f32.xlu1 %v9387_v17 }
 0x653   :  { %v9396_v33 = vpop.permute.xlu1 %9395 }
 0x654   :  { %vm9397_vm3 = vcmp.eq.s32.totalorder %v16699_v8, %v9396_v33 }
 0x657   :  { %v9400_v28 = vpop.permute.xlu1 %9399 }
 0x658   :  { %v9402_v45 = vsel %vm9397_vm3, %v9400_v28, 0.0 }
 0x659   :  { %10734 = vperm.xlu1 %10732, %v16570_v35   ;;  %v9403_v34 = vsel %vm9386_vm2, %v9402_v45, 0.0 }
 0x65a   :  { %9404 = vadd.xlane.f32.xlu0 %v9403_v34 }
 0x65d   :  { %10739 = vperm.xlu1 %10732, %v16581_v21  }
 0x661   :  { %10744 = vperm.xlu1 %10732, %v16593_v62  }
 0x665   :  { %10749 = vperm.xlu1 %10732, %v16605_v30  }
 0x669   :  { %10754 = vperm.xlu1 %10732, %v16617_v60  }
 0x66d   :  { %10759 = vperm.xlu1 %10732, %v16629_v2  }
 0x670   :  { %10780 = vperm.xlu0 %10778, %v16558_v58  }
 0x671   :  { %10764 = vperm.xlu1 %10732, %v16640_v25  }
 0x674   :  { %10785 = vperm.xlu0 %10778, %v16658_v6  }
 0x675   :  { %10769 = vperm.xlu1 %10732, %v16646_v43  }
 0x678   :  { %10790 = vperm.xlu0 %10778, %v16664_v49  }
 0x679   :  { %10774 = vperm.xlu1 %10732, %v16652_v39  }
 0x67c   :  { %10845 = vset.pattern.permute.xlu0 %v12150_v55 }
 0x67d   :  { %10795 = vperm.xlu1 %10732, %v16670_v11  }
 0x681   :  { %10800 = vperm.xlu1 %10732, %v16676_v44  }
 0x685   :  { %10805 = vperm.xlu1 %10732, %v16682_v14  }
 0x689   :  { %10810 = vperm.xlu1 %10732, %v16688_v18  }
 0x68d   :  { %10814 = vset.pattern.permute.xlu1 %v12150_v55 }
 0x68e   :  { %10816 = vperm.xlu1 %10814, %v16558_v58  }
 0x692   :  { %10821 = vperm.xlu1 %10814, %v16570_v35  }
 0x696   :  { %10826 = vperm.xlu1 %10814, %v16581_v21  }
 0x69a   :  { %10831 = vperm.xlu1 %10814, %v16593_v62  }
 0x69e   :  { %10836 = vperm.xlu1 %10814, %v16605_v30  }
 0x6a2   :  { %10841 = vperm.xlu1 %10814, %v16617_v60  }
 0x6a6   :  { %10852 = vperm.xlu1 %10814, %v16640_v25  }
 0x6aa   :  { %10857 = vperm.xlu1 %10814, %v16646_v43  }
 0x6ae   :  { %10862 = vperm.xlu1 %10814, %v16652_v39  }
 0x6b2   :  { %10867 = vperm.xlu1 %10814, %v16658_v6  }
 0x6b6   :  { %10872 = vperm.xlu1 %10814, %v16664_v49  }
 0x6ba   :  { %10877 = vperm.xlu1 %10814, %v16670_v11  }
 0x6be   :  { %10882 = vperm.xlu1 %10814, %v16676_v44  }
 0x6c2   :  { %10887 = vperm.xlu1 %10814, %v16682_v14  }
 0x6c6   :  { %10892 = vperm.xlu1 %10814, %v16688_v18  }
 0x6d1   :  { %v9389_v58 = vpop.xlane.xlu1 %9388 }
 0x6d2   :  { %11952 = vlog2.f32 %v9389_v58 }
 0x6d5   :  { %v10735_v35 = vpop.permute.xlu1 %10734 }
 0x6d6   :  { %v10737_v14 = vunpack.i.h.bf16 %v10735_v35  ;;  %v10736_v10 = vunpack.i.l.bf16 %v10735_v35 }
 0x6d8   :  { %v8807_v20 = vsel %vm8643_vm5, %v10737_v14, 0.0  ;;  %v8806_v59 = vsel %vm8643_vm5, %v10736_v10, 0.0 }
 0x6d9   :  { %v10740_v21 = vpop.permute.xlu1 %10739 }
 0x6da   :  { %v10742_v12 = vunpack.i.h.bf16 %v10740_v21  ;;  %v10741_v50 = vunpack.i.l.bf16 %v10740_v21 }
 0x6dc   :  { %v8808_v7 = vsel %vm8643_vm5, %v10741_v50, 0.0 }
 0x6dd   :  { %v16733_v62 = vpop.permute.xlu1 %10744 }
 0x6de   :  { %v10747_v19 = vunpack.i.h.bf16 %v16733_v62  ;;  %v10746_v15 = vunpack.i.l.bf16 %v16733_v62 }
 0x6df   :  { %v11953_v30 = vpop.eup %11952 }
 0x6e0   :  { %v9391_v60 = vmul.f32 0.6931472, %v11953_v30  ;;  %v8811_v28 = vsel %vm8643_vm5, %v10747_v19, 0.0  ;;  %v8810_v45 = vsel %vm8643_vm5, %v10746_v15, 0.0 }
 0x6e1   :  { %v16735_v25 = vpop.permute.xlu1 %10749 }
 0x6e2   :  { %v9392_v43 = vadd.f32 %v9391_v60, %v16692_v41  ;;  %v8809_v41 = vsel %vm8643_vm5, %v10742_v12, 0.0  ;;  %v10752_v34 = vunpack.i.h.bf16 %v16735_v25  ;;  %v10751_v58 = vunpack.i.l.bf16 %v16735_v25 }
 0x6e3   :  { %v9405_v39 = vpop.xlane.xlu0 %9404 }
 0x6e4   :  { %v9406_v6 = vsub.f32 %v9392_v43, %v9405_v39  ;;  %v8813_v39 = vsel %vm8643_vm5, %v10752_v34, 0.0  ;;  %v8812_v25 = vsel %vm8643_vm5, %v10751_v58, 0.0 }
 0x6e5   :  { %v16738_v49 = vpop.permute.xlu1 %10754 }
 0x6e6   :  { %v9408_v11 = vsel %vm9407_vm4, %v9406_v6, 0.0  ;;  %v10757_v6 = vunpack.i.h.bf16 %v16738_v49 }
 0x6e7   :  { %9409 = vadd.xlane.f32.xlu0 %v9408_v11  ;;  %v10756_v11 = vunpack.i.l.bf16 %v16738_v49 }
 0x6e9   :  { %v10760_v5 = vpop.permute.xlu1 %10759  ;;  %v8814_v49 = vsel %vm8643_vm5, %v10756_v11, 0.0 }
 0x6ea   :  { %v10762_v13 = vunpack.i.h.bf16 %v10760_v5  ;;  %v10761_v63 = vunpack.i.l.bf16 %v10760_v5 }
 0x6eb   :  { %v10781_v31 = vpop.permute.xlu0 %10780 }
 0x6ec   :  { %v16743_v29 = vsel %vm8643_vm5, %v10762_v13, 0.0  ;;  %v16747_v46 = vsel %vm8643_vm5, %v10761_v63, 0.0  ;;  %v10783_v1 = vunpack.i.h.bf16 %v10781_v31  ;;  %v10782_v24 = vunpack.i.l.bf16 %v10781_v31 }
 0x6ed   :  { %v16749_v42 = vpop.permute.xlu1 %10764 }
 0x6ee   :  { %v8805_v9 = vsel %vm8643_vm5, %v10783_v1, 0.0 }
 0x6ef   :  { %v10786_v50 = vpop.permute.xlu0 %10785 }
 0x6f1   :  { %v16751_v0 = vpop.permute.xlu1 %10769 }
 0x6f5   :  { %v16753_v44 = vpop.permute.xlu1 %10774 }
 0x6f9   :  { %v16755_v38 = vpop.permute.xlu1 %10795 }
 0x6fd   :  { %10847 = vperm.xlu0 %10845, %v16629_v2   ;;  %v16758_v32 = vpop.permute.xlu1 %10800  ;;  %v8804_v2 = vsel %vm8643_vm5, %v10782_v24, 0.0 }
 0x701   :  { %v16760_v47 = vpop.permute.xlu1 %10805 }
 0x705   :  { %v16762_v52 = vpop.permute.xlu1 %10810 }
 0x709   :  { %v10817_v27 = vpop.permute.xlu1 %10816 }
 0x70a   :  { %v10819_v53 = vunpack.i.h.bf16 %v10817_v27  ;;  %v10818_v54 = vunpack.i.l.bf16 %v10817_v27  ;;  %v8815_v27 = vsel %vm8643_vm5, %v10757_v6, 0.0 }
 0x70c   :  { %v8965_v40 = vsel %vm8642_vm6, %v10819_v53, %v8805_v9  ;;  %v8964_v16 = vsel %vm8642_vm6, %v10818_v54, %v8804_v2  ;;  %v10767_v53 = vunpack.i.h.bf16 %v16749_v42  ;;  %v10766_v54 = vunpack.i.l.bf16 %v16749_v42 }
 0x70d   :  { %v10229_v3 = vpack.c.bf16 %v8965_v40, %v8964_v16  ;;  %v10822_v61 = vpop.permute.xlu1 %10821 }
 0x70e   :  { %v10824_v18 = vunpack.i.h.bf16 %v10822_v61  ;;  %v10823_v57 = vunpack.i.l.bf16 %v10822_v61  ;;  %v8818_v42 = vsel %vm8643_vm5, %v10766_v54, 0.0  ;;  %v10772_v61 = vunpack.i.h.bf16 %v16751_v0 }
 0x70f   :  { %10230 = vst [vmem:[%s16970_s8] sm:$0xff] %v10229_v3   ;;  %v8819_v3 = vsel %vm8643_vm5, %v10767_v53, 0.0 }
 0x710   :  { %v8966_v51 = vsel %vm8642_vm6, %v10823_v57, %v8806_v59  ;;  %v8967_v37 = vsel %vm8642_vm6, %v10824_v18, %v8807_v20  ;;  %v10771_v18 = vunpack.i.l.bf16 %v16751_v0 }
 0x711   :  { %v10234_v56 = vpack.c.bf16 %v8967_v37, %v8966_v51  ;;  %v10827_v48 = vpop.permute.xlu1 %10826 }
 0x712   :  { %v10829_v36 = vunpack.i.h.bf16 %v10827_v48  ;;  %v10828_v55 = vunpack.i.l.bf16 %v10827_v48  ;;  %v8820_v0 = vsel %vm8643_vm5, %v10771_v18, 0.0  ;;  %v10777_v48 = vunpack.i.h.bf16 %v16753_v44 }
 0x713   :  { %10306 = vst [vmem:[%s16970_s8 + $0x8] sm:$0xff] %v10234_v56   ;;  %v8821_v56 = vsel %vm8643_vm5, %v10772_v61, 0.0 }
 0x714   :  { %v8968_v4 = vsel %vm8642_vm6, %v10828_v55, %v8808_v7  ;;  %v8969_v26 = vsel %vm8642_vm6, %v10829_v36, %v8809_v41  ;;  %v10776_v36 = vunpack.i.l.bf16 %v16753_v44 }
 0x715   :  { %v10239_v23 = vpack.c.bf16 %v8969_v26, %v8968_v4  ;;  %v10832_v17 = vpop.permute.xlu1 %10831  ;;  %v10788_v26 = vunpack.i.h.bf16 %v10786_v50 }
 0x716   :  { %v10834_v22 = vunpack.i.h.bf16 %v10832_v17  ;;  %v10833_v33 = vunpack.i.l.bf16 %v10832_v17  ;;  %v8823_v17 = vsel %vm8643_vm5, %v10777_v48, 0.0  ;;  %v8822_v44 = vsel %vm8643_vm5, %v10776_v36, 0.0 }
 0x717   :  { %10307 = vst [vmem:[%s16970_s8 + $0x10] sm:$0xff] %v10239_v23   ;;  %v10787_v23 = vunpack.i.l.bf16 %v10786_v50  ;;  %v10813_v36 = vunpack.i.h.bf16 %v16762_v52 }
 0x718   :  { %v8970_v35 = vsel %vm8642_vm6, %v10833_v33, %v8810_v45  ;;  %v8971_v21 = vsel %vm8642_vm6, %v10834_v22, %v8811_v28  ;;  %v10791_v22 = vpop.permute.xlu0 %10790 }
 0x719   :  { %v10244_v62 = vpack.c.bf16 %v8971_v21, %v8970_v35  ;;  %v10837_v30 = vpop.permute.xlu1 %10836  ;;  %v8825_v21 = vsel %vm8643_vm5, %v10788_v26, 0.0 }
 0x71a   :  { %v10839_v60 = vunpack.i.h.bf16 %v10837_v30  ;;  %v10838_v43 = vunpack.i.l.bf16 %v10837_v30  ;;  %v10793_v30 = vunpack.i.h.bf16 %v10791_v22 }
 0x71b   :  { %10308 = vst [vmem:[%s16970_s8 + $0x18] sm:$0xff] %v10244_v62   ;;  %v8824_v62 = vsel %vm8643_vm5, %v10787_v23, 0.0  ;;  %v8835_v23 = vsel %vm8643_vm5, %v10813_v36, 0.0 }
 0x71c   :  { %v8972_v5 = vsel %vm8642_vm6, %v10838_v43, %v8812_v25  ;;  %v8973_v13 = vsel %vm8642_vm6, %v10839_v60, %v8813_v39  ;;  %v10792_v60 = vunpack.i.l.bf16 %v10791_v22 }
 0x71d   :  { %v10249_v63 = vpack.c.bf16 %v8973_v13, %v8972_v5  ;;  %v10842_v31 = vpop.permute.xlu1 %10841  ;;  %v8827_v13 = vsel %vm8643_vm5, %v10793_v30, 0.0 }
 0x71e   :  { %v10844_v1 = vunpack.i.h.bf16 %v10842_v31  ;;  %v10843_v24 = vunpack.i.l.bf16 %v10842_v31  ;;  %v10798_v31 = vunpack.i.h.bf16 %v16755_v38 }
 0x71f   :  { %10309 = vst [vmem:[%s16970_s8 + $0x20] sm:$0xff] %v10249_v63   ;;  %v8826_v63 = vsel %vm8643_vm5, %v10792_v60, 0.0 }
 0x720   :  { %v8974_v14 = vsel %vm8642_vm6, %v10843_v24, %v8814_v49  ;;  %v8975_v10 = vsel %vm8642_vm6, %v10844_v1, %v8815_v27  ;;  %v10797_v1 = vunpack.i.l.bf16 %v16755_v38 }
 0x721   :  { %v10254_v9 = vpack.c.bf16 %v8975_v10, %v8974_v14  ;;  %v10853_v2 = vpop.permute.xlu1 %10852  ;;  %v8829_v10 = vsel %vm8643_vm5, %v10798_v31, 0.0 }
 0x722   :  { %v10855_v40 = vunpack.i.h.bf16 %v10853_v2  ;;  %v10854_v16 = vunpack.i.l.bf16 %v10853_v2  ;;  %v8828_v38 = vsel %vm8643_vm5, %v10797_v1, 0.0  ;;  %v10802_v2 = vunpack.i.l.bf16 %v16758_v32 }
 0x723   :  { %10310 = vst [vmem:[%s16970_s8 + $0x28] sm:$0xff] %v10254_v9   ;;  %v10803_v9 = vunpack.i.h.bf16 %v16758_v32 }
 0x724   :  { %v8978_v57 = vsel %vm8642_vm6, %v10854_v16, %v8818_v42  ;;  %v8979_v20 = vsel %vm8642_vm6, %v10855_v40, %v8819_v3  ;;  %v8830_v32 = vsel %vm8643_vm5, %v10802_v2, 0.0 }
 0x725   :  { %v10264_v59 = vpack.c.bf16 %v8979_v20, %v8978_v57  ;;  %v10858_v12 = vpop.permute.xlu1 %10857  ;;  %v8831_v57 = vsel %vm8643_vm5, %v10803_v9, 0.0  ;;  %v10808_v20 = vunpack.i.h.bf16 %v16760_v47 }
 0x726   :  { %v10860_v51 = vunpack.i.h.bf16 %v10858_v12  ;;  %v10859_v37 = vunpack.i.l.bf16 %v10858_v12 }
 0x727   :  { %10312 = vst [vmem:[%s16970_s8 + $0x38] sm:$0xff] %v10264_v59   ;;  %v10807_v59 = vunpack.i.l.bf16 %v16760_v47  ;;  %v8833_v48 = vsel %vm8643_vm5, %v10808_v20, 0.0 }
 0x728   :  { %v8980_v55 = vsel %vm8642_vm6, %v10859_v37, %v8820_v0  ;;  %v8981_v41 = vsel %vm8642_vm6, %v10860_v51, %v8821_v56 }
 0x729   :  { %v10269_v7 = vpack.c.bf16 %v8981_v41, %v8980_v55  ;;  %v10863_v19 = vpop.permute.xlu1 %10862  ;;  %v8832_v47 = vsel %vm8643_vm5, %v10807_v59, 0.0  ;;  %v10812_v55 = vunpack.i.l.bf16 %v16762_v52 }
 0x72a   :  { %v10865_v15 = vunpack.i.h.bf16 %v10863_v19  ;;  %v10864_v4 = vunpack.i.l.bf16 %v10863_v19 }
 0x72b   :  { %10313 = vst [vmem:[%s16970_s8 + $0x40] sm:$0xff] %v10269_v7   ;;  %v8834_v52 = vsel %vm8643_vm5, %v10812_v55, 0.0 }
 0x72c   :  { %v8982_v33 = vsel %vm8642_vm6, %v10864_v4, %v8822_v44  ;;  %v8983_v28 = vsel %vm8642_vm6, %v10865_v15, %v8823_v17 }
 0x72d   :  { %v10274_v45 = vpack.c.bf16 %v8983_v28, %v8982_v33  ;;  %v10868_v34 = vpop.permute.xlu1 %10867 }
 0x72e   :  { %v10870_v58 = vunpack.i.h.bf16 %v10868_v34  ;;  %v10869_v35 = vunpack.i.l.bf16 %v10868_v34 }
 0x72f   :  { %10314 = vst [vmem:[%s16970_s8 + $0x48] sm:$0xff] %v10274_v45  }
 0x730   :  { %v8985_v43 = vsel %vm8642_vm6, %v10870_v58, %v8825_v21  ;;  %v8984_v39 = vsel %vm8642_vm6, %v10869_v35, %v8824_v62 }
 0x731   :  { %v10279_v25 = vpack.c.bf16 %v8985_v43, %v8984_v39  ;;  %v10873_v6 = vpop.permute.xlu1 %10872 }
 0x732   :  { %v10875_v11 = vunpack.i.h.bf16 %v10873_v6  ;;  %v10874_v5 = vunpack.i.l.bf16 %v10873_v6 }
 0x733   :  { %10315 = vst [vmem:[%s16970_s8 + $0x50] sm:$0xff] %v10279_v25  }
 0x734   :  { %v8987_v24 = vsel %vm8642_vm6, %v10875_v11, %v8827_v13  ;;  %v8986_v27 = vsel %vm8642_vm6, %v10874_v5, %v8826_v63 }
 0x735   :  { %v10284_v49 = vpack.c.bf16 %v8987_v24, %v8986_v27  ;;  %v10878_v53 = vpop.permute.xlu1 %10877 }
 0x736   :  { %v10880_v54 = vunpack.i.h.bf16 %v10878_v53  ;;  %v10879_v14 = vunpack.i.l.bf16 %v10878_v53 }
 0x737   :  { %10316 = vst [vmem:[%s16970_s8 + $0x58] sm:$0xff] %v10284_v49  }
 0x738   :  { %v8988_v40 = vsel %vm8642_vm6, %v10879_v14, %v8828_v38  ;;  %v8989_v16 = vsel %vm8642_vm6, %v10880_v54, %v8829_v10 }
 0x739   :  { %v10289_v3 = vpack.c.bf16 %v8989_v16, %v8988_v40  ;;  %v10883_v42 = vpop.permute.xlu1 %10882 }
 0x73a   :  { %v10885_v61 = vunpack.i.h.bf16 %v10883_v42  ;;  %v10884_v18 = vunpack.i.l.bf16 %v10883_v42 }
 0x73b   :  { %10317 = vst [vmem:[%s16970_s8 + $0x60] sm:$0xff] %v10289_v3  }
 0x73c   :  { %v8990_v12 = vsel %vm8642_vm6, %v10884_v18, %v8830_v32  ;;  %v8991_v50 = vsel %vm8642_vm6, %v10885_v61, %v8831_v57 }
 0x73d   :  { %v10294_v51 = vpack.c.bf16 %v8991_v50, %v8990_v12  ;;  %v10888_v37 = vpop.permute.xlu1 %10887 }
 0x73e   :  { %v10890_v56 = vunpack.i.h.bf16 %v10888_v37  ;;  %v10889_v0 = vunpack.i.l.bf16 %v10888_v37 }
 0x73f   :  { %10318 = vst [vmem:[%s16970_s8 + $0x68] sm:$0xff] %v10294_v51  }
 0x740   :  { %v8992_v41 = vsel %vm8642_vm6, %v10889_v0, %v8832_v47  ;;  %v8993_v7 = vsel %vm8642_vm6, %v10890_v56, %v8833_v48 }
 0x741   :  { %v10299_v19 = vpack.c.bf16 %v8993_v7, %v8992_v41  ;;  %v10893_v15 = vpop.permute.xlu1 %10892 }
 0x742   :  { %v10895_v4 = vunpack.i.h.bf16 %v10893_v15  ;;  %v10894_v26 = vunpack.i.l.bf16 %v10893_v15 }
 0x743   :  { %10319 = vst [vmem:[%s16970_s8 + $0x70] sm:$0xff] %v10299_v19  }
 0x744   :  { %v8994_v17 = vsel %vm8642_vm6, %v10894_v26, %v8834_v52  ;;  %v8995_v44 = vsel %vm8642_vm6, %v10895_v4, %v8835_v23 }
 0x745   :  { %v10304_v22 = vpack.c.bf16 %v8995_v44, %v8994_v17 }
 0x747   :  { %10320 = vst [vmem:[%s16970_s8 + $0x78] sm:$0xff] %v10304_v22  }
 0x770   :  { %v9410_v33 = vpop.xlane.xlu0 %9409 }
 0x771   :  { %v9411_v28 = vrot.slane %v9410_v33, 4 }
 0x773   :  { %v9412_v45 = vadd.f32 %v9411_v28, %v9410_v33 }
 0x775   :  { %v9413_v34 = vrot.slane %v9412_v45, 2 }
 0x777   :  { %v9414_v58 = vadd.f32 %v9413_v34, %v9412_v45 }
 0x778   :  { %v10848_v35 = vpop.permute.xlu0 %10847 }
 0x779   :  { %v10850_v21 = vunpack.i.h.bf16 %v10848_v35  ;;  %v10849_v62 = vunpack.i.l.bf16 %v10848_v35  ;;  %v9415_v30 = vrot.slane %v9414_v58, 1 }
 0x77b   :  { %v8976_v60 = vsel %vm8642_vm6, %v10849_v62, %v16747_v46  ;;  %v8977_v43 = vsel %vm8642_vm6, %v10850_v21, %v16743_v29  ;;  %v9416_v39 = vadd.f32 %v9415_v30, %v9414_v58 }
 0x77c   :  { %v10259_v25 = vpack.c.bf16 %v8977_v43, %v8976_v60 }
 0x77d   :  { %10723 = vpush %v9416_v39 }
 0x77e   :  { %10311 = vst [vmem:[%s16970_s8 + $0x30] sm:$0xff] %v10259_v25  }
 0x7ae   :  { %s10724_s16 = spop %10723 }
 0x7af   :  { %v9418_v6 = vstv %s10724_s16 }
 0x7b0   :  { %v9420_v11 = vmul.f32 0.5, %v9418_v6 }
 0x7b2   :  { %9422 = vst.msk [vmem:[#allocation4] sm:$0x1] %vm9421_vm7, %v9420_v11 }
 0x7b3   :  { %12137 = shalt.err (!%p12134_p4)
}
 0x7b4   :  { %9434 = dma.vmem_to_hbm [thread:$0]  %s9432_s15, 16, %s16971_s9, [#allocation5]  }
 0x7b5   :  { %12146 = dma.done.wait [#allocation5], 16  }
 0x7b6   :  { %12147 = vsyncadd [#allocation5], 4294967280 }
 0x7b7   :  { %9440 = vsyncpa [#allocation5], 1 }

</bundles_post_ra>
